<compile_context>
chip_gen: v5e
topology: v5e:2x2
jax: 0.10.0
libtpu: 0.0.40
codegen_flags: <defaults>
</compile_context>

<pallas_src>
import math
import string
import functools

import numpy as np
import jax
import jax.numpy as jnp
from jax.experimental import pallas as pl
from jax.experimental.pallas import tpu as pltpu

# ----------------------------------------------------------------------------
# Host-side string glue (exactly mirrors the PyTorch module's Python code)
# ----------------------------------------------------------------------------
CTLABELS = [' ', '!', '"', '#', '$', '%', '&', "'", '(', ')', '*', '+', ',', '-', '.', '/',
            '0', '1', '2', '3', '4', '5', '6', '7', '8', '9', ':', ';', '<', '=', '>', '?',
            '@', 'A', 'B', 'C', 'D', 'E', 'F', 'G', 'H', 'I', 'J', 'K', 'L', 'M', 'N', 'O',
            'P', 'Q', 'R', 'S', 'T', 'U', 'V', 'W', 'X', 'Y', 'Z', '[', '\\', ']', '^', '_',
            '`', 'a', 'b', 'c', 'd', 'e', 'f', 'g', 'h', 'i', 'j', 'k', 'l', 'm', 'n', 'o',
            'p', 'q', 'r', 's', 't', 'u', 'v', 'w', 'x', 'y', 'z', '{', '|', '}', '~', u'口']
IND_TO_CHR = {k: v for k, v in enumerate(CTLABELS)}
CHR_TO_IND = {v: k for k, v in enumerate(CTLABELS)}

CHARACTER = string.printable[:-6]          # 94 printable chars
NUM_CLS = len(CHARACTER) + 1               # 95


def indices_to_text(indices):
    return ''.join((IND_TO_CHR[i] if i != 96 else '' for i in indices))


def get_index(texts, max_len):
    indexes = []
    for label in texts:
        assert len(label) <= max_len
        index = [CHARACTER.find(c) + 1 for c in label]
        index = index + [0] * (max_len - len(index))
        indexes.append(index)
    return jnp.asarray(indexes, dtype=jnp.int32)


# ----------------------------------------------------------------------------
# Fused Pallas kernel: layer-streamed TransformerEncoder + final Linear
# ----------------------------------------------------------------------------
def _layer_norm(x, gamma, beta, eps=1e-5):
    mu = jnp.mean(x, axis=-1, keepdims=True)
    var = jnp.mean((x - mu) ** 2, axis=-1, keepdims=True)
    return (x - mu) * jax.lax.rsqrt(var + eps) * gamma + beta


def fused_encoder_kernel(x_ref, mask_ref, bsum_ref,
                         wqkv_ref, bqkv_ref, wo_ref, bo_ref,
                         w1_ref, b1_ref, w2_ref, b2_ref,
                         g1_ref, be1_ref, g2_ref, be2_ref,
                         pw_ref, pb_ref,
                         o_ref, act_ref, *, n_heads, batch, seq_len):
    """One encoder layer per grid step (grid axis = layer index).

    x_ref    : (M, D) f32 flattened tokens (resident across the whole grid)
    mask_ref : (D, H*L) bf16 head-block mask for the packed attention matmuls
    bsum_ref : (H*L, H*L) f32 block-sum matrix for the per-head softmax denominator
    w*_ref   : per-layer weights, streamed (layer axis squeezed by the BlockSpec)
    pw/pb    : final projection (resident)
    o_ref    : (M, P) f32 output (written on the last grid step)
    act_ref  : (M, D) f32 VMEM scratch carrying the activation across layers
    """
    f32 = jnp.float32
    bf16 = jnp.bfloat16
    layer = pl.program_id(0)

    B, L, H = batch, seq_len, n_heads
    M, D = act_ref.shape
    HL = H * L

    @pl.when(layer == 0)
    def _():
        act_ref[...] = x_ref[...]

    x = act_ref[...]                                                     # (M, D) f32

    # --- fused QKV projection (bf16 MXU, f32 acc); 1/sqrt(dh) pre-folded into Wq/bq ---
    qkv = jnp.dot(x.astype(bf16), wqkv_ref[...],
                  preferred_element_type=f32) + bqkv_ref[...]            # (M, 3D) f32

    # --- head-packed attention: everything stays >=128 lanes wide ---
    q3 = qkv[:, :D].reshape(B, L, D)                                     # (B, L, D)
    kt = jnp.swapaxes(qkv[:, D:2 * D].reshape(B, L, D), 1, 2)            # (B, D, L)
    vt = jnp.swapaxes(qkv[:, 2 * D:].reshape(B, L, D), 1, 2)             # (B, D, L)

    head_mask = mask_ref[...]                                            # (D, HL) bf16
    # lane-tile K^T / V^T across heads and mask out cross-head contributions
    k_exp = jnp.concatenate([kt.astype(bf16)] * H, axis=-1) * head_mask  # (B, D, HL)
    v_exp = jnp.concatenate([vt.astype(bf16)] * H, axis=-1) * head_mask  # (B, D, HL)

    # scores for ALL heads packed along the lane axis: s[b, i, h*L + j]
    s = jnp.einsum('bld,bdm->blm', q3.astype(bf16), k_exp,
                   preferred_element_type=f32)                           # (B, L, HL) f32

    # per-head softmax (shift by the row-global max; softmax is shift-invariant)
    s2 = s.reshape(M, HL)
    s2 = s2 - jnp.max(s2, axis=-1, keepdims=True)
    e2 = jnp.exp(s2)
    denom = jnp.dot(e2, bsum_ref[...], preferred_element_type=f32)       # (M, HL) per-head sums
    p2 = e2 * pl.reciprocal(denom, approx=True)
    p3 = p2.reshape(B, L, HL)

    # P @ V directly yields the head-merged activation (B, L, D)
    attn = jnp.einsum('blm,bdm->bld', p3.astype(bf16), v_exp,
                      preferred_element_type=f32)                        # (B, L, D) f32
    attn = attn.reshape(M, D)
    attn = jnp.dot(attn.astype(bf16), wo_ref[...],
                   preferred_element_type=f32) + bo_ref[...]

    # --- residual + LayerNorm 1 (post-norm, f32) ---
    h1 = _layer_norm(x + attn, g1_ref[...], be1_ref[...])

    # --- feed-forward (ReLU) ---
    f = jnp.dot(h1.astype(bf16), w1_ref[...], preferred_element_type=f32) + b1_ref[...]
    f = jnp.maximum(f, 0.0)
    f = jnp.dot(f.astype(bf16), w2_ref[...], preferred_element_type=f32) + b2_ref[...]

    # --- residual + LayerNorm 2; carry activation to the next grid step ---
    x_new = _layer_norm(h1 + f, g2_ref[...], be2_ref[...])
    act_ref[...] = x_new

    # --- final linear projection on the last layer ---
    @pl.when(layer == pl.num_programs(0) - 1)
    def _():
        out = jnp.dot(x_new.astype(bf16), pw_ref[...],
                      preferred_element_type=f32) + pb_ref[...]
        o_ref[...] = out.astype(o_ref.dtype)


def run_label_encoder_core(x2d, fused, n_heads, batch, seq_len):
    """Single pallas_call; grid streams one encoder layer per step."""
    M, D = x2d.shape
    P = fused["pw"].shape[1]
    n_layers = fused["wqkv"].shape[0]

    layer_ws = [fused["wqkv"], fused["bqkv"], fused["wo"], fused["bo"],
                fused["w1"], fused["b1"], fused["w2"], fused["b2"],
                fused["g1"], fused["be1"], fused["g2"], fused["be2"]]
    resident_ws = [fused["pw"], fused["pb"]]

    def resident_spec(a):
        zeros = (0,) * a.ndim
        return pl.BlockSpec(a.shape, lambda l, _z=zeros: _z)

    def layer_spec(a):
        zeros = (0,) * (a.ndim - 1)
        return pl.BlockSpec((None,) + a.shape[1:], lambda l, _z=zeros: (l,) + _z)

    in_specs = ([resident_spec(x2d),
                 resident_spec(fused["head_mask"]),
                 resident_spec(fused["blocksum"])]
                + [layer_spec(w) for w in layer_ws]
                + [resident_spec(w) for w in resident_ws])

    kernel = functools.partial(fused_encoder_kernel,
                               n_heads=n_heads, batch=batch, seq_len=seq_len)

    return pl.pallas_call(
        kernel,
        out_shape=jax.ShapeDtypeStruct((M, P), jnp.float32),
        grid_spec=pltpu.PrefetchScalarGridSpec(
            num_scalar_prefetch=0,
            grid=(n_layers,),                    # one layer per grid step -> weight streaming
            in_specs=in_specs,
            out_specs=pl.BlockSpec((M, P), lambda l: (0, 0)),
            scratch_shapes=[pltpu.VMEM((M, D), jnp.float32)],   # activation carry
        ),
        compiler_params=pltpu.CompilerParams(
            dimension_semantics=("arbitrary",),  # sequential dependence across layers
            vmem_limit_bytes=32 * 1024 * 1024,   # explicit (v5e scoped default is 16 MiB)
        ),
    )(x2d, fused["head_mask"], fused["blocksum"], *layer_ws, *resident_ws)


# ----------------------------------------------------------------------------
# Parameter construction (deterministic, synthetic) + fused-kernel prep
# ----------------------------------------------------------------------------
def make_positional_encoding(max_len, d_model):
    pe = np.zeros((max_len, d_model), dtype=np.float32)
    position = np.arange(0, max_len, dtype=np.float32)[:, None]
    div_term = np.exp(np.arange(0, d_model, 2, dtype=np.float32)
                      * (-math.log(10000.0) / d_model))
    pe[:, 0::2] = np.sin(position * div_term)
    pe[:, 1::2] = np.cos(position * div_term)
    return jnp.asarray(pe)


def make_attention_constants(n_heads, seq_len, emb_dim):
    """Constant masks for the head-packed attention formulation."""
    H, L, D = n_heads, seq_len, emb_dim
    dh = D // H
    d_head = np.repeat(np.arange(H), dh)                  # head owning each model column
    m_head = np.repeat(np.arange(H), L)                   # head owning each packed score lane
    head_mask = (d_head[:, None] == m_head[None, :]).astype(np.float32)   # (D, H*L)
    blocksum = (m_head[:, None] == m_head[None, :]).astype(np.float32)    # (H*L, H*L)
    return (jnp.asarray(head_mask, dtype=jnp.bfloat16),
            jnp.asarray(blocksum, dtype=jnp.float32))


def make_params(key, emb_dim, n_trans_layers, ffn_dim, proj_out):
    """f32 params in 'PyTorch layout' (linear weights already transposed to (in, out))."""
    D, F = emb_dim, ffn_dim
    scale = 0.02
    params = {}
    key, k = jax.random.split(key)
    params["emb_table"] = scale * jax.random.normal(k, (NUM_CLS, D), jnp.float32)

    layers = []
    for _ in range(n_trans_layers):
        keys = jax.random.split(key, 7)
        key = keys[0]
        wqkv = scale * jax.random.normal(keys[1], (D, 3 * D), jnp.float32)   # in_proj (transposed)
        bqkv = jnp.zeros((1, 3 * D), jnp.float32)
        wo = scale * jax.random.normal(keys[2], (D, D), jnp.float32)         # out_proj (transposed)
        bo = jnp.zeros((1, D), jnp.float32)
        w1 = scale * jax.random.normal(keys[3], (D, F), jnp.float32)         # linear1 (transposed)
        b1 = jnp.zeros((1, F), jnp.float32)
        w2 = scale * jax.random.normal(keys[4], (F, D), jnp.float32)         # linear2 (transposed)
        b2 = jnp.zeros((1, D), jnp.float32)
        g1 = jnp.ones((1, D), jnp.float32)
        be1 = jnp.zeros((1, D), jnp.float32)
        g2 = jnp.ones((1, D), jnp.float32)
        be2 = jnp.zeros((1, D), jnp.float32)
        layers.append([wqkv, bqkv, wo, bo, w1, b1, w2, b2, g1, be1, g2, be2])
    params["layers"] = layers

    key, k1 = jax.random.split(key)
    params["proj_w"] = scale * jax.random.normal(k1, (D, proj_out), jnp.float32)
    params["proj_b"] = jnp.zeros((1, proj_out), jnp.float32)
    return params


def prepare_fused_params(params, n_heads, max_len):
    """Stack per-layer weights along a leading 'layer' axis (streamed by the grid),
    fold the 1/sqrt(dh) attention scale into W_q / b_q (in f32), cast matmul weights
    to bf16, and build the constant head-packing masks."""
    D = params["layers"][0][0].shape[0]
    dh = D // n_heads
    scale = 1.0 / math.sqrt(dh)

    acc = {k: [] for k in ["wqkv", "bqkv", "wo", "bo", "w1", "b1", "w2", "b2",
                           "g1", "be1", "g2", "be2"]}
    for (wqkv, bqkv, wo, bo, w1, b1, w2, b2, g1, be1, g2, be2) in params["layers"]:
        wqkv = wqkv.at[:, :D].multiply(scale)   # fold q-scale into the Q columns
        bqkv = bqkv.at[:, :D].multiply(scale)
        acc["wqkv"].append(wqkv); acc["bqkv"].append(bqkv)
        acc["wo"].append(wo);     acc["bo"].append(bo)
        acc["w1"].append(w1);     acc["b1"].append(b1)
        acc["w2"].append(w2);     acc["b2"].append(b2)
        acc["g1"].append(g1);     acc["be1"].append(be1)
        acc["g2"].append(g2);     acc["be2"].append(be2)

    bf16 = jnp.bfloat16
    head_mask, blocksum = make_attention_constants(n_heads, max_len, D)
    fused = {
        "wqkv": jnp.stack(acc["wqkv"]).astype(bf16),   # (N, D, 3D)
        "bqkv": jnp.stack(acc["bqkv"]),                # (N, 1, 3D) f32
        "wo":   jnp.stack(acc["wo"]).astype(bf16),     # (N, D, D)
        "bo":   jnp.stack(acc["bo"]),
        "w1":   jnp.stack(acc["w1"]).astype(bf16),     # (N, D, F)
        "b1":   jnp.stack(acc["b1"]),
        "w2":   jnp.stack(acc["w2"]).astype(bf16),     # (N, F, D)
        "b2":   jnp.stack(acc["b2"]),
        "g1":   jnp.stack(acc["g1"]),
        "be1":  jnp.stack(acc["be1"]),
        "g2":   jnp.stack(acc["g2"]),
        "be2":  jnp.stack(acc["be2"]),
        "pw":   params["proj_w"].astype(bf16),         # (D, P)
        "pb":   params["proj_b"],                      # (1, P) f32
        "head_mask": head_mask,                        # (D, H*L) bf16
        "blocksum":  blocksum,                         # (H*L, H*L) f32
    }
    return fused


# ----------------------------------------------------------------------------
# LabelEncoder forward
# ----------------------------------------------------------------------------
def label_encoder_forward(labels, params, fused, pe, max_len, n_heads):
    # --- host-side: indices -> text -> printable-char indices (glue) ---
    texts = []
    for label in labels:
        label = np.asarray(label).tolist()
        for t in label:
            texts.append(indices_to_text(t[0]))
    idx = get_index(texts, max_len)                       # (B, max_len) int32

    # --- embedding + positional encoding (glue) ---
    emb = params["emb_table"][idx]                        # (B, L, D)
    emb = emb + pe[None, :emb.shape[1], :]

    # --- fused transformer encoder + projection (single Pallas kernel) ---
    # TODO(synk): batching more texts (raising M=B*L) is the main lever to move this
    #             kernel off the weight-streaming roofline at the real model size.
    B, L, D = emb.shape
    x2d = emb.astype(jnp.float32).reshape(B * L, D)
    out = run_label_encoder_core(x2d, fused, n_heads, B, L)
    return out.reshape(B, L, -1)


# ----------------------------------------------------------------------------
if __name__ == "__main__":
    # Small, module-consistent shapes
    MAX_LEN = 16
    EMB_DIM = 128          # TODO(synk): original model implies emb_dim=2048 (Linear(2048,256))
    N_HEADS = 8
    N_LAYERS = 2
    FFN_DIM = 2048         # PyTorch TransformerEncoderLayer default dim_feedforward
    PROJ_OUT = 256

    key = jax.random.PRNGKey(0)
    params = make_params(key, EMB_DIM, N_LAYERS, FFN_DIM, PROJ_OUT)
    fused = prepare_fused_params(params, N_HEADS, MAX_LEN)
    pe = make_positional_encoding(MAX_LEN, EMB_DIM)

    # Build synthetic `labels`: list of arrays of shape (num_instances, 1, text_len)
    # containing CTLABELS indices (96 = blank / skipped).
    def text_to_ct_indices(text, length):
        ids = [CHR_TO_IND[c] for c in text]
        ids = ids + [96] * (length - len(ids))
        return ids

    TEXT_LEN = 6
    labels = [
        np.asarray([[text_to_ct_indices("hello", TEXT_LEN)],
                    [text_to_ct_indices("WORLD!", TEXT_LEN)]], dtype=np.int64),
        np.asarray([[text_to_ct_indices("Pallas", TEXT_LEN)],
                    [text_to_ct_indices("tpu9", TEXT_LEN)]], dtype=np.int64),
    ]
    # total texts B = 4  ->  output (4, MAX_LEN, 256)

    out = label_encoder_forward(labels, params, fused, pe, MAX_LEN, N_HEADS)
    out = jax.block_until_ready(out)

    assert out.shape == (4, MAX_LEN, PROJ_OUT), out.shape
    assert out.dtype == jnp.float32
    assert bool(jnp.all(jnp.isfinite(out)))
    print("KERNEL_OK")
</pallas_src>

<mosaic_0001>
module attributes {stable_mosaic.version = 11 : i64} {
  func.func @fused_encoder_kernel(%arg0: i32, %arg1: memref<64x128xf32, #tpu.memory_space<vmem>>, %arg2: memref<128x128xbf16, #tpu.memory_space<vmem>>, %arg3: memref<128x128xf32, #tpu.memory_space<vmem>>, %arg4: memref<1x128x384xbf16, #tpu.memory_space<vmem>>, %arg5: memref<1x1x384xf32, #tpu.memory_space<vmem>>, %arg6: memref<1x128x128xbf16, #tpu.memory_space<vmem>>, %arg7: memref<1x1x128xf32, #tpu.memory_space<vmem>>, %arg8: memref<1x128x2048xbf16, #tpu.memory_space<vmem>>, %arg9: memref<1x1x2048xf32, #tpu.memory_space<vmem>>, %arg10: memref<1x2048x128xbf16, #tpu.memory_space<vmem>>, %arg11: memref<1x1x128xf32, #tpu.memory_space<vmem>>, %arg12: memref<1x1x128xf32, #tpu.memory_space<vmem>>, %arg13: memref<1x1x128xf32, #tpu.memory_space<vmem>>, %arg14: memref<1x1x128xf32, #tpu.memory_space<vmem>>, %arg15: memref<1x1x128xf32, #tpu.memory_space<vmem>>, %arg16: memref<128x256xbf16, #tpu.memory_space<vmem>>, %arg17: memref<1x256xf32, #tpu.memory_space<vmem>>, %arg18: memref<64x256xf32, #tpu.memory_space<vmem>>, %arg19: memref<64x128xf32, #tpu.memory_space<vmem>>) attributes {dimension_semantics = [#tpu.dimension_semantics<arbitrary>], iteration_bounds = array<i64: 2>, scalar_prefetch = 0 : i64, scratch_operands = 1 : i64, tpu.core_type = #tpu.core_type<tc>, window_params = [{pipeline_mode = #tpu.pipeline_mode<synchronous>, transform_indices = @transform_0, window_bounds = array<i64: 64, 128>}, {pipeline_mode = #tpu.pipeline_mode<synchronous>, transform_indices = @transform_1, window_bounds = array<i64: 128, 128>}, {pipeline_mode = #tpu.pipeline_mode<synchronous>, transform_indices = @transform_2, window_bounds = array<i64: 128, 128>}, {transform_indices = @transform_3, window_bounds = array<i64: 1, 128, 384>}, {transform_indices = @transform_4, window_bounds = array<i64: 1, 1, 384>}, {transform_indices = @transform_5, window_bounds = array<i64: 1, 128, 128>}, {transform_indices = @transform_6, window_bounds = array<i64: 1, 1, 128>}, {transform_indices = @transform_7, window_bounds = array<i64: 1, 128, 2048>}, {transform_indices = @transform_8, window_bounds = array<i64: 1, 1, 2048>}, {transform_indices = @transform_9, window_bounds = array<i64: 1, 2048, 128>}, {transform_indices = @transform_10, window_bounds = array<i64: 1, 1, 128>}, {transform_indices = @transform_11, window_bounds = array<i64: 1, 1, 128>}, {transform_indices = @transform_12, window_bounds = array<i64: 1, 1, 128>}, {transform_indices = @transform_13, window_bounds = array<i64: 1, 1, 128>}, {transform_indices = @transform_14, window_bounds = array<i64: 1, 1, 128>}, {pipeline_mode = #tpu.pipeline_mode<synchronous>, transform_indices = @transform_15, window_bounds = array<i64: 128, 256>}, {pipeline_mode = #tpu.pipeline_mode<synchronous>, transform_indices = @transform_16, window_bounds = array<i64: 1, 256>}, {pipeline_mode = #tpu.pipeline_mode<synchronous>, transform_indices = @transform_17, window_bounds = array<i64: 64, 256>}]} {
    %c0_i32 = arith.constant 0 : i32
    %0 = arith.cmpi eq, %arg0, %c0_i32 : i32
    %1 = arith.extui %0 : i1 to i32
    %c0_i32_0 = arith.constant 0 : i32
    %2 = arith.cmpi ne, %1, %c0_i32_0 : i32
    scf.if %2 {
      %c0_63 = arith.constant 0 : index
      %c0_64 = arith.constant 0 : index
      %131 = vector.load %arg1[%c0_63, %c0_64] : memref<64x128xf32, #tpu.memory_space<vmem>>, vector<64x128xf32>
      %c0_65 = arith.constant 0 : index
      %c0_66 = arith.constant 0 : index
      %132 = vector.load %arg19[%c0_65, %c0_66] : memref<64x128xf32, #tpu.memory_space<vmem>>, vector<64x128xf32>
      tpu.vector_store %arg19[%c0_65, %c0_66], %131 {strides = array<i32>} : memref<64x128xf32, #tpu.memory_space<vmem>>, vector<64x128xf32>,
    } else {
    }
    %c0 = arith.constant 0 : index
    %c0_1 = arith.constant 0 : index
    %3 = vector.load %arg19[%c0, %c0_1] : memref<64x128xf32, #tpu.memory_space<vmem>>, vector<64x128xf32>
    %4 = arith.truncf %3 : vector<64x128xf32> to vector<64x128xbf16>
    %c0_2 = arith.constant 0 : index
    %c0_3 = arith.constant 0 : index
    %c0_4 = arith.constant 0 : index
    %5 = vector.load %arg4[%c0_2, %c0_3, %c0_4] : memref<1x128x384xbf16, #tpu.memory_space<vmem>>, vector<1x128x384xbf16>
    %6 = vector.shape_cast %5 : vector<1x128x384xbf16> to vector<128x384xbf16>
    %cst = arith.constant dense<0.000000e+00> : vector<64x384xf32>
    %7 = tpu.matmul %4, %6, %cst {dimension_numbers = #tpu.dot_dimension_numbers<[1], [0], [0], [1], [0, 0, 1, 1], [], []>} : vector<64x128xbf16>, vector<128x384xbf16>, vector<64x384xf32> -> vector<64x384xf32>
    %c0_5 = arith.constant 0 : index
    %c0_6 = arith.constant 0 : index
    %c0_7 = arith.constant 0 : index
    %8 = vector.load %arg5[%c0_5, %c0_6, %c0_7] : memref<1x1x384xf32, #tpu.memory_space<vmem>>, vector<1x1x384xf32>
    %9 = vector.shape_cast %8 : vector<1x1x384xf32> to vector<1x384xf32>
    %10 = vector.broadcast %9 : vector<1x384xf32> to vector<64x384xf32>
    %11 = arith.addf %7, %10 : vector<64x384xf32>
    %12 = vector.extract_strided_slice %11 {offsets = [0, 0], sizes = [64, 128], strides = [1, 1]} : vector<64x384xf32> to vector<64x128xf32>
    %13 = vector.shape_cast %12 : vector<64x128xf32> to vector<4x16x128xf32>
    %14 = vector.extract_strided_slice %11 {offsets = [0, 128], sizes = [64, 128], strides = [1, 1]} : vector<64x384xf32> to vector<64x128xf32>
    %15 = vector.shape_cast %14 : vector<64x128xf32> to vector<4x16x128xf32>
    %16 = tpu.transpose %15, [0, 2, 1] : vector<4x16x128xf32> -> vector<4x128x16xf32>
    %17 = vector.extract_strided_slice %11 {offsets = [0, 256], sizes = [64, 128], strides = [1, 1]} : vector<64x384xf32> to vector<64x128xf32>
    %18 = vector.shape_cast %17 : vector<64x128xf32> to vector<4x16x128xf32>
    %19 = tpu.transpose %18, [0, 2, 1] : vector<4x16x128xf32> -> vector<4x128x16xf32>
    %c0_8 = arith.constant 0 : index
    %c0_9 = arith.constant 0 : index
    %20 = vector.load %arg2[%c0_8, %c0_9] : memref<128x128xbf16, #tpu.memory_space<vmem>>, vector<128x128xbf16>
    %21 = arith.truncf %16 : vector<4x128x16xf32> to vector<4x128x16xbf16>
    %22 = tpu.concatenate %21, %21, %21, %21, %21, %21, %21, %21 in 2 : vector<4x128x16xbf16>, vector<4x128x16xbf16>, vector<4x128x16xbf16>, vector<4x128x16xbf16>, vector<4x128x16xbf16>, vector<4x128x16xbf16>, vector<4x128x16xbf16>, vector<4x128x16xbf16> -> vector<4x128x128xbf16>
    %23 = vector.shape_cast %20 : vector<128x128xbf16> to vector<1x128x128xbf16>
    %24 = vector.broadcast %23 : vector<1x128x128xbf16> to vector<4x128x128xbf16>
    %25 = arith.mulf %22, %24 : vector<4x128x128xbf16>
    %26 = arith.truncf %19 : vector<4x128x16xf32> to vector<4x128x16xbf16>
    %27 = tpu.concatenate %26, %26, %26, %26, %26, %26, %26, %26 in 2 : vector<4x128x16xbf16>, vector<4x128x16xbf16>, vector<4x128x16xbf16>, vector<4x128x16xbf16>, vector<4x128x16xbf16>, vector<4x128x16xbf16>, vector<4x128x16xbf16>, vector<4x128x16xbf16> -> vector<4x128x128xbf16>
    %28 = vector.shape_cast %20 : vector<128x128xbf16> to vector<1x128x128xbf16>
    %29 = vector.broadcast %28 : vector<1x128x128xbf16> to vector<4x128x128xbf16>
    %30 = arith.mulf %27, %29 : vector<4x128x128xbf16>
    %31 = arith.truncf %13 : vector<4x16x128xf32> to vector<4x16x128xbf16>
    "tpu.trace_start"() <{level = 10 : i32, message = "bld,bdm->blm"}> : () -> ()
    %cst_10 = arith.constant dense<0.000000e+00> : vector<4x16x128xf32>
    %32 = tpu.matmul %31, %25, %cst_10 {dimension_numbers = #tpu.dot_dimension_numbers<[2], [1], [1], [2], [0, 0, 0, 1, 1, 2], [0], [0]>} : vector<4x16x128xbf16>, vector<4x128x128xbf16>, vector<4x16x128xf32> -> vector<4x16x128xf32>
    "tpu.trace_stop"() : () -> ()
    %33 = vector.shape_cast %32 : vector<4x16x128xf32> to vector<64x128xf32>
    %cst_11 = arith.constant dense<0xFF800000> : vector<64xf32>
    %34 = vector.multi_reduction <maximumf>, %33, %cst_11 [1] : vector<64x128xf32> to vector<64xf32>
    %35 = vector.shape_cast %34 : vector<64xf32> to vector<64x1xf32>
    %36 = vector.broadcast %35 : vector<64x1xf32> to vector<64x128xf32>
    %37 = arith.subf %33, %36 : vector<64x128xf32>
    %38 = math.exp %37 : vector<64x128xf32>
    %c0_12 = arith.constant 0 : index
    %c0_13 = arith.constant 0 : index
    %39 = vector.load %arg3[%c0_12, %c0_13] : memref<128x128xf32, #tpu.memory_space<vmem>>, vector<128x128xf32>
    %cst_14 = arith.constant dense<0.000000e+00> : vector<64x128xf32>
    %40 = tpu.matmul %38, %39, %cst_14 {dimension_numbers = #tpu.dot_dimension_numbers<[1], [0], [0], [1], [0, 0, 1, 1], [], []>} : vector<64x128xf32>, vector<128x128xf32>, vector<64x128xf32> -> vector<64x128xf32>
    %41 = tpu.reciprocal %40 {approx = true} : vector<64x128xf32> -> vector<64x128xf32>
    %42 = arith.mulf %38, %41 : vector<64x128xf32>
    %43 = vector.shape_cast %42 : vector<64x128xf32> to vector<4x16x128xf32>
    %44 = arith.truncf %43 : vector<4x16x128xf32> to vector<4x16x128xbf16>
    "tpu.trace_start"() <{level = 10 : i32, message = "blm,bdm->bld"}> : () -> ()
    %cst_15 = arith.constant dense<0.000000e+00> : vector<4x16x128xf32>
    %45 = tpu.matmul %44, %30, %cst_15 {dimension_numbers = #tpu.dot_dimension_numbers<[2], [2], [1], [1], [0, 0, 0, 1, 1, 1], [0], [0]>} : vector<4x16x128xbf16>, vector<4x128x128xbf16>, vector<4x16x128xf32> -> vector<4x16x128xf32>
    "tpu.trace_stop"() : () -> ()
    %46 = vector.shape_cast %45 : vector<4x16x128xf32> to vector<64x128xf32>
    %47 = arith.truncf %46 : vector<64x128xf32> to vector<64x128xbf16>
    %c0_16 = arith.constant 0 : index
    %c0_17 = arith.constant 0 : index
    %c0_18 = arith.constant 0 : index
    %48 = vector.load %arg6[%c0_16, %c0_17, %c0_18] : memref<1x128x128xbf16, #tpu.memory_space<vmem>>, vector<1x128x128xbf16>
    %49 = vector.shape_cast %48 : vector<1x128x128xbf16> to vector<128x128xbf16>
    %cst_19 = arith.constant dense<0.000000e+00> : vector<64x128xf32>
    %50 = tpu.matmul %47, %49, %cst_19 {dimension_numbers = #tpu.dot_dimension_numbers<[1], [0], [0], [1], [0, 0, 1, 1], [], []>} : vector<64x128xbf16>, vector<128x128xbf16>, vector<64x128xf32> -> vector<64x128xf32>
    %c0_20 = arith.constant 0 : index
    %c0_21 = arith.constant 0 : index
    %c0_22 = arith.constant 0 : index
    %51 = vector.load %arg7[%c0_20, %c0_21, %c0_22] : memref<1x1x128xf32, #tpu.memory_space<vmem>>, vector<1x1x128xf32>
    %52 = vector.shape_cast %51 : vector<1x1x128xf32> to vector<1x128xf32>
    %53 = vector.broadcast %52 : vector<1x128xf32> to vector<64x128xf32>
    %54 = arith.addf %50, %53 : vector<64x128xf32>
    %55 = arith.addf %3, %54 : vector<64x128xf32>
    %c0_23 = arith.constant 0 : index
    %c0_24 = arith.constant 0 : index
    %c0_25 = arith.constant 0 : index
    %56 = vector.load %arg12[%c0_23, %c0_24, %c0_25] : memref<1x1x128xf32, #tpu.memory_space<vmem>>, vector<1x1x128xf32>
    %57 = vector.shape_cast %56 : vector<1x1x128xf32> to vector<1x128xf32>
    %c0_26 = arith.constant 0 : index
    %c0_27 = arith.constant 0 : index
    %c0_28 = arith.constant 0 : index
    %58 = vector.load %arg13[%c0_26, %c0_27, %c0_28] : memref<1x1x128xf32, #tpu.memory_space<vmem>>, vector<1x1x128xf32>
    %59 = vector.shape_cast %58 : vector<1x1x128xf32> to vector<1x128xf32>
    %cst_29 = arith.constant dense<0.000000e+00> : vector<64xf32>
    %60 = vector.multi_reduction <add>, %55, %cst_29 [1] : vector<64x128xf32> to vector<64xf32>
    %61 = vector.shape_cast %60 : vector<64xf32> to vector<64x1xf32>
    %cst_30 = arith.constant 1.280000e+02 : f32
    %62 = vector.broadcast %cst_30 : f32 to vector<64x1xf32>
    %63 = arith.divf %61, %62 : vector<64x1xf32>
    %64 = vector.broadcast %63 : vector<64x1xf32> to vector<64x128xf32>
    %65 = arith.subf %55, %64 : vector<64x128xf32>
    %66 = arith.mulf %65, %65 : vector<64x128xf32>
    %cst_31 = arith.constant dense<0.000000e+00> : vector<64xf32>
    %67 = vector.multi_reduction <add>, %66, %cst_31 [1] : vector<64x128xf32> to vector<64xf32>
    %68 = vector.shape_cast %67 : vector<64xf32> to vector<64x1xf32>
    %cst_32 = arith.constant 1.280000e+02 : f32
    %69 = vector.broadcast %cst_32 : f32 to vector<64x1xf32>
    %70 = arith.divf %68, %69 : vector<64x1xf32>
    %71 = vector.broadcast %63 : vector<64x1xf32> to vector<64x128xf32>
    %72 = arith.subf %55, %71 : vector<64x128xf32>
    %cst_33 = arith.constant 9.99999974E-6 : f32
    %73 = vector.broadcast %cst_33 : f32 to vector<64x1xf32>
    %74 = arith.addf %70, %73 : vector<64x1xf32>
    %75 = math.rsqrt %74 : vector<64x1xf32>
    %76 = vector.broadcast %75 : vector<64x1xf32> to vector<64x128xf32>
    %77 = arith.mulf %72, %76 : vector<64x128xf32>
    %78 = vector.broadcast %57 : vector<1x128xf32> to vector<64x128xf32>
    %79 = arith.mulf %77, %78 : vector<64x128xf32>
    %80 = vector.broadcast %59 : vector<1x128xf32> to vector<64x128xf32>
    %81 = arith.addf %79, %80 : vector<64x128xf32>
    %82 = arith.truncf %81 : vector<64x128xf32> to vector<64x128xbf16>
    %c0_34 = arith.constant 0 : index
    %c0_35 = arith.constant 0 : index
    %c0_36 = arith.constant 0 : index
    %83 = vector.load %arg8[%c0_34, %c0_35, %c0_36] : memref<1x128x2048xbf16, #tpu.memory_space<vmem>>, vector<1x128x2048xbf16>
    %84 = vector.shape_cast %83 : vector<1x128x2048xbf16> to vector<128x2048xbf16>
    %cst_37 = arith.constant dense<0.000000e+00> : vector<64x2048xf32>
    %85 = tpu.matmul %82, %84, %cst_37 {dimension_numbers = #tpu.dot_dimension_numbers<[1], [0], [0], [1], [0, 0, 1, 1], [], []>} : vector<64x128xbf16>, vector<128x2048xbf16>, vector<64x2048xf32> -> vector<64x2048xf32>
    %c0_38 = arith.constant 0 : index
    %c0_39 = arith.constant 0 : index
    %c0_40 = arith.constant 0 : index
    %86 = vector.load %arg9[%c0_38, %c0_39, %c0_40] : memref<1x1x2048xf32, #tpu.memory_space<vmem>>, vector<1x1x2048xf32>
    %87 = vector.shape_cast %86 : vector<1x1x2048xf32> to vector<1x2048xf32>
    %88 = vector.broadcast %87 : vector<1x2048xf32> to vector<64x2048xf32>
    %89 = arith.addf %85, %88 : vector<64x2048xf32>
    %cst_41 = arith.constant 0.000000e+00 : f32
    %90 = vector.broadcast %cst_41 : f32 to vector<64x2048xf32>
    %91 = arith.maximumf %89, %90 : vector<64x2048xf32>
    %92 = arith.truncf %91 : vector<64x2048xf32> to vector<64x2048xbf16>
    %c0_42 = arith.constant 0 : index
    %c0_43 = arith.constant 0 : index
    %c0_44 = arith.constant 0 : index
    %93 = vector.load %arg10[%c0_42, %c0_43, %c0_44] : memref<1x2048x128xbf16, #tpu.memory_space<vmem>>, vector<1x2048x128xbf16>
    %94 = vector.shape_cast %93 : vector<1x2048x128xbf16> to vector<2048x128xbf16>
    %cst_45 = arith.constant dense<0.000000e+00> : vector<64x128xf32>
    %95 = tpu.matmul %92, %94, %cst_45 {dimension_numbers = #tpu.dot_dimension_numbers<[1], [0], [0], [1], [0, 0, 1, 1], [], []>} : vector<64x2048xbf16>, vector<2048x128xbf16>, vector<64x128xf32> -> vector<64x128xf32>
    %c0_46 = arith.constant 0 : index
    %c0_47 = arith.constant 0 : index
    %c0_48 = arith.constant 0 : index
    %96 = vector.load %arg11[%c0_46, %c0_47, %c0_48] : memref<1x1x128xf32, #tpu.memory_space<vmem>>, vector<1x1x128xf32>
    %97 = vector.shape_cast %96 : vector<1x1x128xf32> to vector<1x128xf32>
    %98 = vector.broadcast %97 : vector<1x128xf32> to vector<64x128xf32>
    %99 = arith.addf %95, %98 : vector<64x128xf32>
    %100 = arith.addf %81, %99 : vector<64x128xf32>
    %c0_49 = arith.constant 0 : index
    %c0_50 = arith.constant 0 : index
    %c0_51 = arith.constant 0 : index
    %101 = vector.load %arg14[%c0_49, %c0_50, %c0_51] : memref<1x1x128xf32, #tpu.memory_space<vmem>>, vector<1x1x128xf32>
    %102 = vector.shape_cast %101 : vector<1x1x128xf32> to vector<1x128xf32>
    %c0_52 = arith.constant 0 : index
    %c0_53 = arith.constant 0 : index
    %c0_54 = arith.constant 0 : index
    %103 = vector.load %arg15[%c0_52, %c0_53, %c0_54] : memref<1x1x128xf32, #tpu.memory_space<vmem>>, vector<1x1x128xf32>
    %104 = vector.shape_cast %103 : vector<1x1x128xf32> to vector<1x128xf32>
    %cst_55 = arith.constant dense<0.000000e+00> : vector<64xf32>
    %105 = vector.multi_reduction <add>, %100, %cst_55 [1] : vector<64x128xf32> to vector<64xf32>
    %106 = vector.shape_cast %105 : vector<64xf32> to vector<64x1xf32>
    %cst_56 = arith.constant 1.280000e+02 : f32
    %107 = vector.broadcast %cst_56 : f32 to vector<64x1xf32>
    %108 = arith.divf %106, %107 : vector<64x1xf32>
    %109 = vector.broadcast %108 : vector<64x1xf32> to vector<64x128xf32>
    %110 = arith.subf %100, %109 : vector<64x128xf32>
    %111 = arith.mulf %110, %110 : vector<64x128xf32>
    %cst_57 = arith.constant dense<0.000000e+00> : vector<64xf32>
    %112 = vector.multi_reduction <add>, %111, %cst_57 [1] : vector<64x128xf32> to vector<64xf32>
    %113 = vector.shape_cast %112 : vector<64xf32> to vector<64x1xf32>
    %cst_58 = arith.constant 1.280000e+02 : f32
    %114 = vector.broadcast %cst_58 : f32 to vector<64x1xf32>
    %115 = arith.divf %113, %114 : vector<64x1xf32>
    %116 = vector.broadcast %108 : vector<64x1xf32> to vector<64x128xf32>
    %117 = arith.subf %100, %116 : vector<64x128xf32>
    %cst_59 = arith.constant 9.99999974E-6 : f32
    %118 = vector.broadcast %cst_59 : f32 to vector<64x1xf32>
    %119 = arith.addf %115, %118 : vector<64x1xf32>
    %120 = math.rsqrt %119 : vector<64x1xf32>
    %121 = vector.broadcast %120 : vector<64x1xf32> to vector<64x128xf32>
    %122 = arith.mulf %117, %121 : vector<64x128xf32>
    %123 = vector.broadcast %102 : vector<1x128xf32> to vector<64x128xf32>
    %124 = arith.mulf %122, %123 : vector<64x128xf32>
    %125 = vector.broadcast %104 : vector<1x128xf32> to vector<64x128xf32>
    %126 = arith.addf %124, %125 : vector<64x128xf32>
    %c0_60 = arith.constant 0 : index
    %c0_61 = arith.constant 0 : index
    %127 = vector.load %arg19[%c0_60, %c0_61] : memref<64x128xf32, #tpu.memory_space<vmem>>, vector<64x128xf32>
    tpu.vector_store %arg19[%c0_60, %c0_61], %126 {strides = array<i32>} : memref<64x128xf32, #tpu.memory_space<vmem>>, vector<64x128xf32>,
    %c1_i32 = arith.constant 1 : i32
    %128 = arith.cmpi eq, %arg0, %c1_i32 : i32
    %129 = arith.extui %128 : i1 to i32
    %c0_i32_62 = arith.constant 0 : i32
    %130 = arith.cmpi ne, %129, %c0_i32_62 : i32
    scf.if %130 {
      %131 = arith.truncf %126 : vector<64x128xf32> to vector<64x128xbf16>
      %c0_63 = arith.constant 0 : index
      %c0_64 = arith.constant 0 : index
      %132 = vector.load %arg16[%c0_63, %c0_64] : memref<128x256xbf16, #tpu.memory_space<vmem>>, vector<128x256xbf16>
      %cst_65 = arith.constant dense<0.000000e+00> : vector<64x256xf32>
      %133 = tpu.matmul %131, %132, %cst_65 {dimension_numbers = #tpu.dot_dimension_numbers<[1], [0], [0], [1], [0, 0, 1, 1], [], []>} : vector<64x128xbf16>, vector<128x256xbf16>, vector<64x256xf32> -> vector<64x256xf32>
      %c0_66 = arith.constant 0 : index
      %c0_67 = arith.constant 0 : index
      %134 = vector.load %arg17[%c0_66, %c0_67] : memref<1x256xf32, #tpu.memory_space<vmem>>, vector<1x256xf32>
      %135 = vector.broadcast %134 : vector<1x256xf32> to vector<64x256xf32>
      %136 = arith.addf %133, %135 : vector<64x256xf32>
      %c0_68 = arith.constant 0 : index
      %c0_69 = arith.constant 0 : index
      %137 = vector.load %arg18[%c0_68, %c0_69] : memref<64x256xf32, #tpu.memory_space<vmem>>, vector<64x256xf32>
      tpu.vector_store %arg18[%c0_68, %c0_69], %136 {strides = array<i32>} : memref<64x256xf32, #tpu.memory_space<vmem>>, vector<64x256xf32>,
    } else {
    }
    return
  }
  func.func @transform_0(%arg0: i32) -> (i32, i32) {
    %c0_i32 = arith.constant 0 : i32
    %c0_i32_0 = arith.constant 0 : i32
    %c0_i32_1 = arith.constant 0 : i32
    return %c0_i32, %c0_i32_0 : i32, i32
  }
  func.func @transform_1(%arg0: i32) -> (i32, i32) {
    %c0_i32 = arith.constant 0 : i32
    %c0_i32_0 = arith.constant 0 : i32
    %c0_i32_1 = arith.constant 0 : i32
    return %c0_i32, %c0_i32_0 : i32, i32
  }
  func.func @transform_2(%arg0: i32) -> (i32, i32) {
    %c0_i32 = arith.constant 0 : i32
    %c0_i32_0 = arith.constant 0 : i32
    %c0_i32_1 = arith.constant 0 : i32
    return %c0_i32, %c0_i32_0 : i32, i32
  }
  func.func @transform_3(%arg0: i32) -> (i32, i32, i32) {
    %c0_i32 = arith.constant 0 : i32
    %c0_i32_0 = arith.constant 0 : i32
    %c0_i32_1 = arith.constant 0 : i32
    return %arg0, %c0_i32, %c0_i32_0 : i32, i32, i32
  }
  func.func @transform_4(%arg0: i32) -> (i32, i32, i32) {
    %c0_i32 = arith.constant 0 : i32
    %c0_i32_0 = arith.constant 0 : i32
    %c0_i32_1 = arith.constant 0 : i32
    return %arg0, %c0_i32, %c0_i32_0 : i32, i32, i32
  }
  func.func @transform_5(%arg0: i32) -> (i32, i32, i32) {
    %c0_i32 = arith.constant 0 : i32
    %c0_i32_0 = arith.constant 0 : i32
    %c0_i32_1 = arith.constant 0 : i32
    return %arg0, %c0_i32, %c0_i32_0 : i32, i32, i32
  }
  func.func @transform_6(%arg0: i32) -> (i32, i32, i32) {
    %c0_i32 = arith.constant 0 : i32
    %c0_i32_0 = arith.constant 0 : i32
    %c0_i32_1 = arith.constant 0 : i32
    return %arg0, %c0_i32, %c0_i32_0 : i32, i32, i32
  }
  func.func @transform_7(%arg0: i32) -> (i32, i32, i32) {
    %c0_i32 = arith.constant 0 : i32
    %c0_i32_0 = arith.constant 0 : i32
    %c0_i32_1 = arith.constant 0 : i32
    return %arg0, %c0_i32, %c0_i32_0 : i32, i32, i32
  }
  func.func @transform_8(%arg0: i32) -> (i32, i32, i32) {
    %c0_i32 = arith.constant 0 : i32
    %c0_i32_0 = arith.constant 0 : i32
    %c0_i32_1 = arith.constant 0 : i32
    return %arg0, %c0_i32, %c0_i32_0 : i32, i32, i32
  }
  func.func @transform_9(%arg0: i32) -> (i32, i32, i32) {
    %c0_i32 = arith.constant 0 : i32
    %c0_i32_0 = arith.constant 0 : i32
    %c0_i32_1 = arith.constant 0 : i32
    return %arg0, %c0_i32, %c0_i32_0 : i32, i32, i32
  }
  func.func @transform_10(%arg0: i32) -> (i32, i32, i32) {
    %c0_i32 = arith.constant 0 : i32
    %c0_i32_0 = arith.constant 0 : i32
    %c0_i32_1 = arith.constant 0 : i32
    return %arg0, %c0_i32, %c0_i32_0 : i32, i32, i32
  }
  func.func @transform_11(%arg0: i32) -> (i32, i32, i32) {
    %c0_i32 = arith.constant 0 : i32
    %c0_i32_0 = arith.constant 0 : i32
    %c0_i32_1 = arith.constant 0 : i32
    return %arg0, %c0_i32, %c0_i32_0 : i32, i32, i32
  }
  func.func @transform_12(%arg0: i32) -> (i32, i32, i32) {
    %c0_i32 = arith.constant 0 : i32
    %c0_i32_0 = arith.constant 0 : i32
    %c0_i32_1 = arith.constant 0 : i32
    return %arg0, %c0_i32, %c0_i32_0 : i32, i32, i32
  }
  func.func @transform_13(%arg0: i32) -> (i32, i32, i32) {
    %c0_i32 = arith.constant 0 : i32
    %c0_i32_0 = arith.constant 0 : i32
    %c0_i32_1 = arith.constant 0 : i32
    return %arg0, %c0_i32, %c0_i32_0 : i32, i32, i32
  }
  func.func @transform_14(%arg0: i32) -> (i32, i32, i32) {
    %c0_i32 = arith.constant 0 : i32
    %c0_i32_0 = arith.constant 0 : i32
    %c0_i32_1 = arith.constant 0 : i32
    return %arg0, %c0_i32, %c0_i32_0 : i32, i32, i32
  }
  func.func @transform_15(%arg0: i32) -> (i32, i32) {
    %c0_i32 = arith.constant 0 : i32
    %c0_i32_0 = arith.constant 0 : i32
    %c0_i32_1 = arith.constant 0 : i32
    return %c0_i32, %c0_i32_0 : i32, i32
  }
  func.func @transform_16(%arg0: i32) -> (i32, i32) {
    %c0_i32 = arith.constant 0 : i32
    %c0_i32_0 = arith.constant 0 : i32
    %c0_i32_1 = arith.constant 0 : i32
    return %c0_i32, %c0_i32_0 : i32, i32
  }
  func.func @transform_17(%arg0: i32) -> (i32, i32) {
    %c0_i32 = arith.constant 0 : i32
    %c0_i32_0 = arith.constant 0 : i32
    %c0_i32_1 = arith.constant 0 : i32
    return %c0_i32, %c0_i32_0 : i32, i32
  }
}

</mosaic_0001>

<bundles_post_ra>
// kernel: tpu_custom_call.1
= control target key start
LH: loop header
LB: loop body
LE: loop exit
PB: predicated region body
PF: predicated region fallthrough
CT: control target
= control target key end

     0   :  { %s15790_s0 = inlined_call_operand.hbm [shape: f32[64,128], index: 0, kind: input, shape index: {}]   ;;  %s15791_s1 = inlined_call_operand.hbm [shape: bf16[128,128], index: 1, kind: input, shape index: {}]   ;;  %s15792_s2 = inlined_call_operand.hbm [shape: f32[128,128], index: 2, kind: input, shape index: {}]   ;;  %s15793_s3 = inlined_call_operand.hbm [shape: bf16[2,128,384], index: 3, kind: input, shape index: {}]   ;;  %s15794_s4 = inlined_call_operand.hbm [shape: f32[2,1,384], index: 4, kind: input, shape index: {}]   ;;  %s15795_s5 = inlined_call_operand.hbm [shape: bf16[2,128,128], index: 5, kind: input, shape index: {}]   ;;  %s15796_s6 = inlined_call_operand.vmem [shape: f32[2,1,128], index: 6, kind: input, shape index: {}]   ;;  %s15797_s7 = inlined_call_operand.hbm [shape: bf16[2,128,2048], index: 7, kind: input, shape index: {}]   ;;  %s15798_s8 = inlined_call_operand.hbm [shape: f32[2,1,2048], index: 8, kind: input, shape index: {}]   ;;  %s15799_s9 = inlined_call_operand.hbm [shape: bf16[2,2048,128], index: 9, kind: input, shape index: {}]   ;;  %s15800_s10 = inlined_call_operand.vmem [shape: f32[2,1,128], index: 10, kind: input, shape index: {}]   ;;  %s15801_s11 = inlined_call_operand.vmem [shape: f32[2,1,128], index: 11, kind: input, shape index: {}]   ;;  %s15802_s12 = inlined_call_operand.vmem [shape: f32[2,1,128], index: 12, kind: input, shape index: {}]   ;;  %s15803_s13 = inlined_call_operand.vmem [shape: f32[2,1,128], index: 13, kind: input, shape index: {}]   ;;  %s15804_s14 = inlined_call_operand.vmem [shape: f32[2,1,128], index: 14, kind: input, shape index: {}]   ;;  %s15805_s15 = inlined_call_operand.hbm [shape: bf16[128,256], index: 15, kind: input, shape index: {}]   ;;  %s15806_s16 = inlined_call_operand.vmem [shape: f32[1,256], index: 16, kind: input, shape index: {}]   ;;  %s15807_s17 = inlined_call_operand.hbm [shape: f32[64,256], index: 17, kind: output, shape index: {}]  }
   0x1   :  { %15914 = sst [smem:[#allocation100_spill]] %s15790_s0 }
   0x2   :  { %15915 = sst [smem:[#allocation101_spill]] %s15791_s1 }
   0x3   :  { %15916 = sst [smem:[#allocation102_spill]] %s15792_s2 }
   0x4   :  { %15917 = sst [smem:[#allocation103_spill]] %s15793_s3 }
   0x5   :  { %15918 = sst [smem:[#allocation104_spill]] %s15794_s4 }
   0x6   :  { %15919 = sst [smem:[#allocation105_spill]] %s15795_s5 }
   0x7   :  { %15920 = sst [smem:[#allocation106_spill]] %s15796_s6 }
   0x8   :  { %15921 = sst [smem:[#allocation107_spill]] %s15797_s7 }
   0x9   :  { %15922 = sst [smem:[#allocation108_spill]] %s15798_s8 }
   0xa   :  { %15923 = sst [smem:[#allocation109_spill]] %s15800_s10 }
   0xb   :  { %15924 = sst [smem:[#allocation110_spill]] %s15801_s11 }
   0xc   :  { %15925 = sst [smem:[#allocation111_spill]] %s15802_s12 }
   0xd   :  { %15926 = sst [smem:[#allocation112_spill]] %s15803_s13 }
   0xe   :  { %15927 = sst [smem:[#allocation113_spill]] %s15804_s14 }
   0xf   :  { %15928 = sst [smem:[#allocation114_spill]] %s15806_s16 }
  0x10   :  { %15929 = sst [smem:[#allocation115_spill]] %s15807_s17 }
  0x11   :  { %22 = vsyncpa [#allocation4], 0 }
  0x12   :  { %23 = vsyncpa [#allocation7], 0 }
  0x13   :  { %24 = vsyncpa [#allocation10], 0 }
  0x14   :  { %26 = vsyncpa [#allocation10 + $0x1], 0 }
  0x15   :  { %27 = vsyncpa [#allocation13], 0 }
  0x16   :  { %29 = vsyncpa [#allocation13 + $0x1], 0 }
  0x17   :  { %30 = vsyncpa [#allocation16], 0 }
  0x18   :  { %32 = vsyncpa [#allocation16 + $0x1], 0 }
  0x19   :  { %33 = vsyncpa [#allocation19], 0 }
  0x1a   :  { %34 = vsyncpa [#allocation5], 0  ;;  %s11483_s24 = smov 0   ;;  %s11485_s25 = smov 0  }
  0x1b   :  { %s11487_s26 = smov 0   ;;  %s11489_s27 = smov 0  }
  0x1c LB: > { %15930 = sst [smem:[#allocation28_spill]] %s11362_s25  ;;  %s11502_s28 = sadd.s32 4294967295, %s11370_s27   ;;  %s11370_s27 = sphi %s11489_s27, %s16171_s27   ;;  %s11366_s26 = sphi %s11487_s26, %s16174_s26   ;;  %s11362_s25 = sphi %s11485_s25, %s16173_s25   ;;  %s11358_s24 = sphi %s11483_s24, %s16172_s24  }
  0x1d   : > { %15931 = sst [smem:[#allocation29_spill]] %s11366_s26  ;;  %p123_p0 = scmp.ne.s32.totalorder %s11362_s25, %s11358_s24 }
  0x1e   : > { %p124_p1 = scmp.eq.s32.totalorder %s11502_s28, 0  ;;  %p8813_p2 = scmp.ge.s32.totalorder %s11370_s27, 1 }
  0x1f   : > { %p483_p3 = scmp.lt.s32.totalorder %s11370_s27, 3  ;;  %p8814_p4 = scmp.ne.s32.totalorder %s11502_s28, 0 }
  0x20   : > { %p11511_p5 = por %p124_p1, %p123_p0  ;;  %s15934_s18 = sld [smem:[#allocation101_spill]] }
  0x21   : > { %p11518_p6 = pnand %p8813_p2, %p483_p3  ;;  %s11372_s20 = smov [#allocation6]  }
  0x22   : > { %s15932_s29 = scalar_select %p11511_p5, 1, 0 }
  0x23   : > { %p10470_p7 = pneg %p11518_p6  ;;  %s510_s21 = sshll.u32 %s11372_s20, 4  ;;  %s511_s21 = int_to_ptr.vmem [resolvable:$true] %s510_s21 }
  0x24   : > { %15933 = sst [smem:[#allocation30_spill]] %s15932_s29  ;;  %s11531_s23 = sadd.s32 1, %s11370_s27  }
  0x25   : > { %p11526_p8 = pnand %p10470_p7, %p124_p1  ;;  %15937 = sst [smem:[#allocation31_spill]] %s11531_s23 }
  0x26   : > { %s508_s19 = sshll.u32 %s15934_s18, 4  ;;  %s15808_s24 = smov 64   ;;  %s509_s19 = int_to_ptr.hbm [resolvable:$true] %s508_s19 }
  0x27   : > { %s15810_s0 = smov 4   ;;  %s107_s30 = ssub.s32 %s11370_s27, %s11531_s23 }
  0x28   : > { %10476 = dma.hbm_to_vmem [thread:$0]  (!%p11526_p8), %s509_s19, 1024, %s511_s21, [#allocation7], %s15808_s24, %s15808_s24, %s15810_s0  }
  0x29   : > { %s110_s18 = sadd.s32 1, %s11366_s26  ;;  %p108_p9 = scmp.eq.s32.totalorder %s107_s30, 0 }
  0x2a   : > { %p117_p10 = scmp.ne.s32.totalorder %s11366_s26, %s11362_s25  ;;  %p118_p11 = scmp.eq.s32.totalorder %s11370_s27, 0 }
  0x2b   : > { %p10506_p12 = scmp.lt.s32.totalorder %s11370_s27, 2  ;;  %s11549_s17 = sand.u32 1, %s11370_s27  }
  0x2c   : > { %s11546_s20 = scalar_select %p108_p9, %s11366_s26, %s110_s18  }
  0x2d   : > { %p119_p13 = por %p118_p11, %p117_p10  ;;  %s11552_s16 = sand.u32 1, %s11366_s26  }
  0x2e   : > { %15938 = sst [smem:[#allocation32_spill]] %s11546_s20  ;;  %s10432_s14 = smul.u32 192, %s11552_s16 }
  0x2f   : > { %p11555_p0 = pnand %p10506_p12, %p119_p13  ;;  %s10433_s19 = smul.u32 192, %s11370_s27 }
  0x30   : > { %s15940_s3 = sld [smem:[#allocation103_spill]]  ;;  %s559_s18 = scalar_lea.vmem [#allocation9], %s10432_s14 }
  0x31   : > { %s567_s0 = sshll.u32 %s559_s18, 4  ;;  %p11566_p3 = pneg %p11555_p0  ;;  %s568_s0 = int_to_ptr.vmem [resolvable:$true] %s567_s0 }
  0x36   : > { %s564_s24 = scalar_lea.hbm %s15940_s3, %s10433_s19 }
  0x37   : > { %s565_s20 = sshll.u32 %s564_s24, 4  ;;  %s11021_s24 = scalar_lea.hbm %s15940_s3, 384  ;;  %s566_s20 = int_to_ptr.hbm [resolvable:$true] %s565_s20 }
  0x38   : > { %s11014_s26 = sshra.s32 %s566_s20, 4  ;;  %s11015_s26 = int_to_ptr.hbm [resolvable:$true] %s11014_s26 }
  0x39   : > { %s11016_s12 = scalar_lea.hbm %s11015_s26, 192  ;;  %p11022_p10 = scmp.lt.s32.totalorder %s11015_s26, %s15940_s3 }
  0x3a   : > { %p11017_p2 = scmp.ne.s32.totalorder %s11015_s26, %s11016_s12  ;;  %p11023_p11 = scmp.lt.s32.totalorder %s11021_s24, %s11016_s12 }
  0x3c   : > { %p11019_p7 = pnand %p11566_p3, %p11017_p2  ;;  %p11024_p12 = por %p11023_p11, %p11022_p10 }
  0x3e   : > { %p11020_p9 = pneg %p11019_p7 }
  0x40   : > { %p11025_p13 = pnand %p11024_p12, %p11020_p9 }
  0x42   : > { %11028 = shalt.err (!%p11025_p13)
}
  0x43   : > { %s11375_s18 = smov 192   ;;  %s11376_s23 = smov 12  }
  0x44   : > { %s15942_s10 = scalar_lea.sflag [#allocation10], %s11549_s17  ;;  %s8820_s19 = sshll.u32 %s11552_s16, 6 }
  0x45   : > { %10486 = dma.hbm_to_vmem [thread:$0]  (!%p11555_p0), %s566_s20, 3072, %s568_s0, %s15942_s10, %s11375_s18, %s11375_s18, %s11376_s23  }
  0x46   : > { %s10062_s14 = sshll.u32 %s11370_s27, 6  ;;  %s15943_s5 = sld [smem:[#allocation105_spill]] }
  0x47   : > { %s600_s26 = scalar_lea.vmem [#allocation12], %s8820_s19  ;;  %s15818_s3 = scalar_lea.sflag [#allocation13], %s11549_s17 }
  0x48   : > { %s608_s24 = sshll.u32 %s600_s26, 4  ;;  %s609_s24 = int_to_ptr.vmem [resolvable:$true] %s608_s24 }
  0x4c   : > { %s605_s12 = scalar_lea.hbm %s15943_s5, %s10062_s14  ;;  %s11051_s0 = scalar_lea.hbm %s15943_s5, 128 }
  0x4d   : > { %s606_s30 = sshll.u32 %s605_s12, 4  ;;  %s607_s30 = int_to_ptr.hbm [resolvable:$true] %s606_s30 }
  0x4e   : > { %s11044_s29 = sshra.s32 %s607_s30, 4  ;;  %s11045_s29 = int_to_ptr.hbm [resolvable:$true] %s11044_s29 }
  0x4f   : > { %s11046_s25 = scalar_lea.hbm %s11045_s29, 64  ;;  %p11052_p10 = scmp.lt.s32.totalorder %s11045_s29, %s15943_s5 }
  0x50   : > { %p11047_p2 = scmp.ne.s32.totalorder %s11045_s29, %s11046_s25  ;;  %p11053_p11 = scmp.lt.s32.totalorder %s11051_s0, %s11046_s25 }
  0x52   : > { %p11049_p7 = pnand %p11047_p2, %p11566_p3  ;;  %p11054_p12 = por %p11053_p11, %p11052_p10 }
  0x54   : > { %p11050_p9 = pneg %p11049_p7 }
  0x56   : > { %p11055_p13 = pnand %p11054_p12, %p11050_p9 }
  0x58   : > { %11058 = shalt.err (!%p11055_p13)
}
  0x59   : > { %s15944_s18 = smov 4   ;;  %s15945_s19 = smov 64  }
  0x5a   : > { %10492 = dma.hbm_to_vmem [thread:$0]  (!%p11555_p0), %s607_s30, 1024, %s609_s24, %s15818_s3, %s15945_s19, %s15945_s19, %s15944_s18  }
  0x5b   : > { %s8826_s14 = sshll.u32 %s11552_s16, 4  ;;  %s8827_s21 = sshll.u32 %s11370_s27, 4 }
  0x5c   : > { %s15946_s8 = sld [smem:[#allocation108_spill]]  ;;  %s650_s10 = scalar_lea.vmem [#allocation15], %s8826_s14 }
  0x5d   : > { %s658_s23 = sshll.u32 %s650_s10, 4  ;;  %s15819_s0 = scalar_lea.sflag [#allocation16], %s11549_s17  ;;  %s659_s23 = int_to_ptr.vmem [resolvable:$true] %s658_s23 }
  0x62   : > { %s654_s25 = scalar_lea.hbm %s15946_s8, %s8827_s21  ;;  %s11081_s3 = scalar_lea.hbm %s15946_s8, 32 }
  0x63   : > { %s656_s26 = sshll.u32 %s654_s25, 4  ;;  %s657_s26 = int_to_ptr.hbm [resolvable:$true] %s656_s26 }
  0x64   : > { %s11074_s20 = sshra.s32 %s657_s26, 4  ;;  %s11075_s20 = int_to_ptr.hbm [resolvable:$true] %s11074_s20 }
  0x65   : > { %s11076_s6 = scalar_lea.hbm %s11075_s20, 16  ;;  %p11082_p10 = scmp.lt.s32.totalorder %s11075_s20, %s15946_s8 }
  0x66   : > { %p11077_p2 = scmp.ne.s32.totalorder %s11075_s20, %s11076_s6  ;;  %p11083_p11 = scmp.lt.s32.totalorder %s11081_s3, %s11076_s6 }
  0x68   : > { %p11079_p7 = pnand %p11077_p2, %p11566_p3  ;;  %p11084_p12 = por %p11083_p11, %p11082_p10 }
  0x6a   : > { %p11080_p9 = pneg %p11079_p7 }
  0x6c   : > { %p11085_p13 = pnand %p11084_p12, %p11080_p9 }
  0x6e   : > { %11088 = shalt.err (!%p11085_p13)
}
  0x6f   : > { %10498 = dma.hbm_to_vmem [thread:$0]  (!%p11555_p0), %s657_s26, 256, %s659_s23, %s15819_s0  }
  0x70   : > { %s15947_s29 = sld [smem:[#allocation100_spill]]  ;;  %s11377_s10 = smov [#allocation3]  }
  0x71   : > { %s496_s5 = sshll.u32 %s11377_s10, 4  ;;  %s15948_s2 = sld [smem:[#allocation102_spill]]  ;;  %s497_s5 = int_to_ptr.vmem [resolvable:$true] %s496_s5 }
  0x72   : > { %s11378_s24 = smov 128   ;;  %s11379_s30 = smov 8  }
  0x73   : > { %s11380_s26 = smov [#allocation8]   ;;  %s536_s21 = sshll.u32 %s15805_s15, 4  ;;  %s537_s21 = int_to_ptr.hbm [resolvable:$true] %s536_s21 }
  0x74   : > { %s524_s23 = sshll.u32 %s11380_s26, 4  ;;  %s11381_s10 = smov [#allocation18]   ;;  %s525_s23 = int_to_ptr.vmem [resolvable:$true] %s524_s23 }
  0x75   : > { %s538_s3 = sshll.u32 %s11381_s10, 4  ;;  %s10435_s20 = smul.u32 3, %s11370_s27  ;;  %s539_s3 = int_to_ptr.vmem [resolvable:$true] %s538_s3 }
  0x76   : > { %s494_s25 = sshll.u32 %s15947_s29, 4  ;;  %s10434_s29 = smul.u32 3, %s11552_s16  ;;  %s495_s25 = int_to_ptr.hbm [resolvable:$true] %s494_s25 }
  0x77   : > { %s522_s6 = sshll.u32 %s15948_s2, 4  ;;  %s15949_s4 = sld [smem:[#allocation104_spill]]  ;;  %s523_s6 = int_to_ptr.hbm [resolvable:$true] %s522_s6 }
  0x78   : > { %10473 = dma.hbm_to_vmem [thread:$0]  (!%p11526_p8), %s495_s25, 1024, %s497_s5, [#allocation4], %s11378_s24, %s11378_s24, %s11379_s30  }
  0x79   : > { %10479 = dma.hbm_to_vmem [thread:$0]  (!%p11526_p8), %s523_s6, 2048, %s525_s23, [#allocation7], %s11378_s24, %s11378_s24, %s11379_s30  }
  0x7a   : > { %10482 = dma.hbm_to_vmem [thread:$0]  (!%p11526_p8), %s537_s21, 2048, %s539_s3, [#allocation19], %s11378_s24, %s11378_s24, %s11379_s30  }
  0x7b   : > { %s581_s0 = scalar_lea.vmem [#allocation11], %s10434_s29  ;;  %s8823_s2 = sshll.u32 %s11552_s16, 10 }
  0x7c   : > { %s589_s12 = sshll.u32 %s581_s0, 4  ;;  %s590_s12 = int_to_ptr.vmem [resolvable:$true] %s589_s12 }
  0x7d   : > { %s585_s26 = scalar_lea.hbm %s15949_s4, %s10435_s20  ;;  %s11201_s24 = scalar_lea.hbm %s15949_s4, 6 }
  0x7e   : > { %s587_s14 = sshll.u32 %s585_s26, 4  ;;  %s588_s14 = int_to_ptr.hbm [resolvable:$true] %s587_s14 }
  0x7f   : > { %s11194_s8 = sshra.s32 %s588_s14, 4  ;;  %s11195_s8 = int_to_ptr.hbm [resolvable:$true] %s11194_s8 }
  0x80   : > { %s11196_s6 = scalar_lea.hbm %s11195_s8, 3  ;;  %p11202_p8 = scmp.lt.s32.totalorder %s11195_s8, %s15949_s4 }
  0x81   : > { %p11197_p2 = scmp.ne.s32.totalorder %s11195_s8, %s11196_s6  ;;  %p11203_p10 = scmp.lt.s32.totalorder %s11201_s24, %s11196_s6 }
  0x83   : > { %p11199_p7 = pnand %p11197_p2, %p11566_p3  ;;  %p11204_p11 = por %p11203_p10, %p11202_p8 }
  0x85   : > { %p11200_p9 = pneg %p11199_p7 }
  0x87   : > { %p11205_p12 = pnand %p11204_p11, %p11200_p9 }
  0x89   : > { %11208 = shalt.err (!%p11205_p12)
}
  0x8a   : > { %s15950_s0 = scalar_lea.sflag [#allocation10], %s11549_s17  ;;  %s10063_s29 = sshll.u32 %s11370_s27, 10 }
  0x8b   : > { %10489 = dma.hbm_to_vmem [thread:$0]  (!%p11555_p0), %s588_s14, 48, %s590_s12, %s15950_s0  }
  0x8c   : > { %s15951_s7 = sld [smem:[#allocation107_spill]]  ;;  %s628_s25 = scalar_lea.vmem [#allocation14], %s8823_s2 }
  0x8d   : > { %s636_s8 = sshll.u32 %s628_s25, 4  ;;  %s637_s8 = int_to_ptr.vmem [resolvable:$true] %s636_s8 }
  0x92   : > { %s633_s20 = scalar_lea.hbm %s15951_s7, %s10063_s29  ;;  %s11231_s27 = scalar_lea.hbm %s15951_s7, 2048 }
  0x93   : > { %s634_s5 = sshll.u32 %s633_s20, 4  ;;  %s635_s5 = int_to_ptr.hbm [resolvable:$true] %s634_s5 }
  0x94   : > { %s11224_s26 = sshra.s32 %s635_s5, 4  ;;  %s11225_s26 = int_to_ptr.hbm [resolvable:$true] %s11224_s26 }
  0x95   : > { %s11226_s6 = scalar_lea.hbm %s11225_s26, 1024  ;;  %p11232_p9 = scmp.lt.s32.totalorder %s11225_s26, %s15951_s7 }
  0x96   : > { %p11227_p13 = scmp.ne.s32.totalorder %s11225_s26, %s11226_s6  ;;  %p11233_p8 = scmp.lt.s32.totalorder %s11231_s27, %s11226_s6 }
  0x98   : > { %p11229_p2 = pnand %p11227_p13, %p11566_p3  ;;  %p11234_p10 = por %p11233_p8, %p11232_p9 }
  0x9a   : > { %p11230_p7 = pneg %p11229_p2 }
  0x9c   : > { %p11235_p11 = pnand %p11234_p10, %p11230_p7 }
  0x9e   : > { %11238 = shalt.err (!%p11235_p11)
}
  0x9f   : > { %s11382_s24 = smov 1024   ;;  %s15952_s30 = scalar_lea.sflag [#allocation13], %s11549_s17 }
  0xa0   : > { %10495 = dma.hbm_to_vmem [thread:$0]  (!%p11555_p0), %s635_s5, 16384, %s637_s8, %s15952_s30, %s11382_s24, %s11382_s24, %s15945_s19  }
  0xa1   : > { %s674_s10 = scalar_lea.hbm %s15799_s9, %s10063_s29  ;;  %s669_s20 = scalar_lea.vmem [#allocation17], %s8823_s2 }
  0xa2   : > { %s675_s3 = sshll.u32 %s674_s10, 4  ;;  %s677_s25 = sshll.u32 %s669_s20, 4  ;;  %s676_s3 = int_to_ptr.hbm [resolvable:$true] %s675_s3  ;;  %s678_s25 = int_to_ptr.vmem [resolvable:$true] %s677_s25 }
  0xa3   : > { %s11254_s26 = sshra.s32 %s676_s3, 4  ;;  %s11261_s8 = scalar_lea.hbm %s15799_s9, 2048  ;;  %s11255_s26 = int_to_ptr.hbm [resolvable:$true] %s11254_s26 }
  0xa4   : > { %s11256_s6 = scalar_lea.hbm %s11255_s26, 1024  ;;  %p11262_p7 = scmp.lt.s32.totalorder %s11255_s26, %s15799_s9 }
  0xa5   : > { %p11257_p12 = scmp.ne.s32.totalorder %s11255_s26, %s11256_s6  ;;  %p11263_p9 = scmp.lt.s32.totalorder %s11261_s8, %s11256_s6 }
  0xa7   : > { %p11259_p13 = pnand %p11257_p12, %p11566_p3  ;;  %p11264_p8 = por %p11263_p9, %p11262_p7 }
  0xa9   : > { %p11260_p2 = pneg %p11259_p13 }
  0xab   : > { %p11265_p10 = pnand %p11264_p8, %p11260_p2 }
  0xad   : > { %11268 = shalt.err (!%p11265_p10)
}
  0xae   : > { %s15953_s2 = scalar_lea.sflag [#allocation16], %s11549_s17  ;;  %719 = sbr.rel (%p11518_p6) target bundleno = 3984 (0xf90), region = 88 }
  0xaf   : > { %10501 = dma.hbm_to_vmem [thread:$0]  (!%p11555_p0), %s676_s3, 16384, %s678_s25, %s15953_s2, %s15945_s19, %s15945_s19, %s15944_s18  }
  0xb3   : > { %11329 = dma.done.wait (%p124_p1), [#allocation4], 1024  }
  0xb4   : > { %11331 = vsyncadd (%p124_p1), [#allocation4], 4294966272 }
  0xb5   : > { %11333 = dma.done.wait (%p124_p1), [#allocation7], 3072  }
  0xb6   : > { %11335 = vsyncadd (%p124_p1), [#allocation7], 4294964224  ;;  %s15954_s11 = sld [smem:[#allocation28_spill]]  ;;  %s736_s16 = sand.u32 1, %s11502_s28  }
  0xb7   : > { %s737_s1 = scalar_lea.sflag [#allocation10], %s736_s16 }
  0xbc   : > { %s738_s17 = sand.u32 1, %s15954_s11  }
  0xbd   : > { %s10436_s18 = smul.u32 192, %s738_s17 }
  0xbf   : > { %s11705_s19 = scalar_lea.vmem [#allocation9], %s10436_s18 }
  0xc0   : > { %11337 = dma.done.wait (%p11511_p5), %s737_s1, 3120  }
  0xc1   : > { %11339 = vsyncadd (%p11511_p5), %s737_s1, 4294964176  ;;  %s10437_s29 = smul.u32 3, %s738_s17  ;;  %s8835_s14 = sshll.u32 %s738_s17, 6 }
  0xc2   : > { %s757_s24 = scalar_lea.sflag [#allocation13], %s736_s16  ;;  %s11713_s30 = scalar_lea.vmem [#allocation12], %s8835_s14 }
  0xc3   : > { %s11711_s22 = scalar_lea.vmem [#allocation11], %s10437_s29 }
  0xc4   : > { %11341 = dma.done.wait (%p11511_p5), %s757_s24, 17408  }
  0xc5   : > { %11343 = vsyncadd (%p11511_p5), %s757_s24, 4294949888  ;;  %s8836_s21 = sshll.u32 %s738_s17, 10  ;;  %s8837_s0 = sshll.u32 %s738_s17, 4 }
  0xc6   : > { %s11719_s10 = scalar_lea.vmem [#allocation14], %s8836_s21  ;;  %s777_s3 = scalar_lea.sflag [#allocation16], %s736_s16 }
  0xc7   : > { %s11721_s20 = scalar_lea.vmem [#allocation15], %s8837_s0 }
  0xc8   : > { %11345 = dma.done.wait (%p11511_p5), %s777_s3, 16640  }
  0xc9   : > { %11347 = vsyncadd (%p11511_p5), %s777_s3, 4294950656  ;;  %s11727_s25 = scalar_lea.vmem [#allocation17], %s8836_s21 }
  0xca   : > { %11349 = dma.done.wait (%p124_p1), [#allocation19], 2048  }
  0xcb   : > { %11351 = vsyncadd (%p124_p1), [#allocation19], 4294965248  ;;  %p885_p6 = scmp.lt.s32.totalorder %s11502_s28, 1  ;;  %s15956_s12 = sld [smem:[#allocation106_spill]] }
  0xcc   : > { %s15957_s2 = sld [smem:[#allocation109_spill]] }
  0xcd   : > { %s11735_s26 = scalar_select %p885_p6, %s11502_s28, 1 }
  0xce   : > { %s15958_s17 = sld [smem:[#allocation110_spill]] }
  0xcf   : > { %s15959_s14 = sld [smem:[#allocation111_spill]] }
  0xd0   : > { %s15960_s3 = sld [smem:[#allocation112_spill]] }
  0xd1   : > { %s887_s8 = scalar_lea.vmem %s15956_s12, %s11735_s26  ;;  %s15961_s7 = sld [smem:[#allocation113_spill]] }
  0xd2   : > { %s890_s11 = scalar_lea.vmem %s15957_s2, %s11735_s26 }
  0xd3   : > { %906 = sbr.rel (%p8814_p4) target bundleno = 225 (0xe1), region = 132 }
  0xd4   : > { %s893_s18 = scalar_lea.vmem %s15958_s17, %s11735_s26 }
  0xd5   : > { %s896_s24 = scalar_lea.vmem %s15959_s14, %s11735_s26 }
  0xd6   : > { %s899_s6 = scalar_lea.vmem %s15960_s3, %s11735_s26 }
  0xd7   : > { %s902_s12 = scalar_lea.vmem %s15961_s7, %s11735_s26 }
  0xd8   : > { %v907_v0 = vld [vmem:[#allocation3] sm:$0xff]  ;;  %v908_v1 = vld [vmem:[#allocation3 + $0x8] sm:$0xff]  ;;  %v909_v2 = vld [vmem:[#allocation3 + $0x10] sm:$0xff] }
  0xd9   : > { %915 = vst [vmem:[#allocation2 + $0x30] sm:$0xff] %v907_v0  ;;  %v910_v3 = vld [vmem:[#allocation3 + $0x18] sm:$0xff]  ;;  %v911_v4 = vld [vmem:[#allocation3 + $0x20] sm:$0xff]  ;;  %v912_v5 = vld [vmem:[#allocation3 + $0x28] sm:$0xff] }
  0xda   : > { %916 = vst [vmem:[#allocation2] sm:$0xff] %v908_v1  ;;  %v913_v6 = vld [vmem:[#allocation3 + $0x30] sm:$0xff]  ;;  %v914_v7 = vld [vmem:[#allocation3 + $0x38] sm:$0xff] }
  0xdb   : > { %917 = vst [vmem:[#allocation2 + $0x18] sm:$0xff] %v909_v2 }
  0xdc   : > { %918 = vst [vmem:[#allocation2 + $0x10] sm:$0xff] %v910_v3 }
  0xdd   : > { %919 = vst [vmem:[#allocation2 + $0x8] sm:$0xff] %v911_v4 }
  0xde   : > { %920 = vst [vmem:[#allocation2 + $0x20] sm:$0xff] %v912_v5 }
  0xdf   : > { %921 = vst [vmem:[#allocation2 + $0x28] sm:$0xff] %v913_v6 }
  0xe0   : > { %922 = vst [vmem:[#allocation2 + $0x38] sm:$0xff] %v914_v7 }
  0xe1 PF: > { %v10086_v8 = vld [vmem:[%s11705_s19 + $0xac] sm:$0xf]  ;;  %v8929_v9 = vld [vmem:[%s11705_s19 + $0xb4] sm:$0xf0]  ;;  %v10083_v10 = vld [vmem:[%s11705_s19 + $0x94] sm:$0xf] }
  0xe2   : > { %v8932_v11 = vor.u32 %v10086_v8, %v8929_v9  ;;  %v8917_v12 = vld [vmem:[%s11705_s19 + $0x9c] sm:$0xf0]  ;;  %v10080_v14 = vld [vmem:[%s11705_s19 + $0x7c] sm:$0xf]  ;;  %v8905_v15 = vld [vmem:[%s11705_s19 + $0x84] sm:$0xf0] }
  0xe3   : > { %v8920_v13 = vor.u32 %v10083_v10, %v8917_v12  ;;  %v10077_v16 = vld [vmem:[%s11705_s19 + $0x64] sm:$0xf]  ;;  %v8908_v17 = vor.u32 %v10080_v14, %v8905_v15  ;;  %v8893_v18 = vld [vmem:[%s11705_s19 + $0x6c] sm:$0xf0]  ;;  %v10074_v20 = vld [vmem:[%s11705_s19 + $0x4c] sm:$0xf] }
  0xe4   : > { %1132 = vmatpush.bf16.msra.mxu1 %v8932_v11  ;;  %v8896_v19 = vor.u32 %v10077_v16, %v8893_v18  ;;  %v8881_v21 = vld [vmem:[%s11705_s19 + $0x54] sm:$0xf0]  ;;  %v10071_v23 = vld [vmem:[%s11705_s19 + $0x34] sm:$0xf]  ;;  %v8869_v24 = vld [vmem:[%s11705_s19 + $0x3c] sm:$0xf0] }
  0xe5   : > { %v8884_v22 = vor.u32 %v10074_v20, %v8881_v21  ;;  %v8935_v25 = vld [vmem:[%s11705_s19 + $0xb0] sm:$0xf]  ;;  %v10088_v26 = vld [vmem:[%s11705_s19 + $0xb8] sm:$0xf0]  ;;  %v8923_v27 = vld [vmem:[%s11705_s19 + $0x98] sm:$0xf]  ;;  %v8872_v28 = vor.u32 %v10071_v23, %v8869_v24 }
  0xe6   : > { %v8936_v29 = vor.u32 %v10088_v26, %v8935_v25  ;;  %v10085_v30 = vld [vmem:[%s11705_s19 + $0xa0] sm:$0xf0]  ;;  %v10068_v31 = vld [vmem:[%s11705_s19 + $0x1c] sm:$0xf]  ;;  %v8857_v32 = vld [vmem:[%s11705_s19 + $0x24] sm:$0xf0] }
  0xe7   : > { %v8924_v33 = vor.u32 %v10085_v30, %v8923_v27  ;;  %v8911_v34 = vld [vmem:[%s11705_s19 + $0x80] sm:$0xf]  ;;  %v10082_v35 = vld [vmem:[%s11705_s19 + $0x88] sm:$0xf0]  ;;  %v8860_v36 = vor.u32 %v10068_v31, %v8857_v32  ;;  %v10065_v37 = vld [vmem:[%s11705_s19 + $0x4] sm:$0xf] }
  0xe8   : > { %1133 = vmatpush.bf16.msra.mxu1 %v8920_v13  ;;  %1161 = vmatpush.bf16.msra.mxu2 %v8936_v29  ;;  %v8845_v38 = vld [vmem:[%s11705_s19 + $0xc] sm:$0xf0]  ;;  %v8912_v39 = vor.u32 %v10082_v35, %v8911_v34  ;;  %v8899_v40 = vld [vmem:[%s11705_s19 + $0x68] sm:$0xf]  ;;  %v10079_v41 = vld [vmem:[%s11705_s19 + $0x70] sm:$0xf0] }
  0xe9   : > { %v8848_v42 = vor.u32 %v10065_v37, %v8845_v38  ;;  %v923_v43 = vld [vmem:[#allocation2 + $0x30] sm:$0xff]  ;;  %v924_v44 = vld [vmem:[#allocation2] sm:$0xff]  ;;  %v8900_v45 = vor.u32 %v10079_v41, %v8899_v40  ;;  %v10076_v48 = vld [vmem:[%s11705_s19 + $0x58] sm:$0xf0]  ;;  %s11383_s4 = smov 32   ;;  %s11384_s7 = smov 16  }
  0xea   : > { %v11787_v46 = vpack.c.bf16 %v924_v44, %v923_v43  ;;  %v8887_v47 = vld [vmem:[%s11705_s19 + $0x50] sm:$0xf]  ;;  %v8875_v50 = vld [vmem:[%s11705_s19 + $0x38] sm:$0xf]  ;;  %v10073_v51 = vld [vmem:[%s11705_s19 + $0x40] sm:$0xf0] }
  0xeb   : > { %v8888_v49 = vor.u32 %v10076_v48, %v8887_v47  ;;  %v8876_v52 = vor.u32 %v10073_v51, %v8875_v50  ;;  %v8863_v53 = vld [vmem:[%s11705_s19 + $0x20] sm:$0xf]  ;;  %v10070_v54 = vld [vmem:[%s11705_s19 + $0x28] sm:$0xf0]  ;;  %v8851_v56 = vld [vmem:[%s11705_s19 + $0x8] sm:$0xf] }
  0xec   : > { %1134 = vmatpush.bf16.msra.mxu1 %v8908_v17  ;;  %1162 = vmatpush.bf16.msra.mxu2 %v8924_v33  ;;  %15962 = vst [vmem:[#allocation33_spill] sm:$0xff] %v11787_v46  ;;  %v8864_v55 = vor.u32 %v10070_v54, %v8863_v53  ;;  %v10067_v57 = vld [vmem:[%s11705_s19 + $0x10] sm:$0xf0]  ;;  %v925_v58 = vld [vmem:[#allocation2 + $0x18] sm:$0xff]  ;;  %v927_v62 = vld [vmem:[#allocation2 + $0x8] sm:$0xff]  ;;  %s11385_s5 = smov 48  }
  0xed   : > { %v926_v59 = vld [vmem:[#allocation2 + $0x10] sm:$0xff]  ;;  %v8852_v60 = vor.u32 %v10067_v57, %v8851_v56  ;;  %v928_v63 = vld [vmem:[#allocation2 + $0x20] sm:$0xff]  ;;  %v929_v1 = vld [vmem:[#allocation2 + $0x28] sm:$0xff]  ;;  %s11386_s27 = smov 64   ;;  %s11387_s2 = smov 80   ;;  %vm2134_vm0 = vcmask 130048  }
  0xee   : > { %v11798_v61 = vpack.c.bf16 %v926_v59, %v925_v58  ;;  %v11802_v0 = vpack.c.bf16 %v928_v63, %v927_v62  ;;  %v930_v2 = vld [vmem:[#allocation2 + $0x38] sm:$0xff]  ;;  %v967_v6 = vld [vmem:[%s11711_s22] sm:$0x7]  ;;  %s11388_s13 = smov 96   ;;  %s11389_s16 = smov 112   ;;  %vm2231_vm1 = vcmask 261120  }
  0xef   : > { %v11806_v3 = vpack.c.bf16 %v930_v2, %v929_v1  ;;  %v970_v7 = vperm.slane %v967_v6, 1  ;;  %vm2296_vm2 = vcmask 392192   ;;  %vm2361_vm3 = vcmask 523264   ;;  %p9993_p1 = scmp.ne.s32.totalorder %s11502_s28, 1 }
  0xf0   : > { %1135 = vmatpush.bf16.msra.mxu1 %v8896_v19  ;;  %1163 = vmatpush.bf16.msra.mxu2 %v8912_v39  ;;  %15963 = vst [vmem:[#allocation34_spill] sm:$0xff] %v11798_v61  ;;  %v971_v19 = vperm.slane %v967_v6, 2  ;;  %vm2426_vm4 = vcmask 654336   ;;  %vm2491_vm5 = vcmask 785408   ;;  %vm2556_vm6 = vcmask 916480  }
  0xf1   : > { %15964 = vst [vmem:[#allocation35_spill] sm:$0xff] %v11802_v0 }
  0xf2   : > { %15965 = vst [vmem:[#allocation36_spill] sm:$0xff] %v11806_v3 }
  0xf4   : > { %1136 = vmatpush.bf16.msra.mxu1 %v8884_v22  ;;  %1164 = vmatpush.bf16.msra.mxu2 %v8900_v45 }
  0xf8   : > { %1137 = vmatpush.bf16.msra.mxu1 %v8872_v28  ;;  %1165 = vmatpush.bf16.msra.mxu2 %v8888_v49 }
  0xfc   : > { %1138 = vmatpush.bf16.msra.mxu1 %v8860_v36  ;;  %1166 = vmatpush.bf16.msra.mxu2 %v8876_v52 }
 0x100   : > { %1139 = vmatpush.bf16.msra.mxu1 %v8848_v42  ;;  %1167 = vmatpush.bf16.msra.mxu2 %v8864_v55 }
 0x103   : > { %1140 = vmatmul.bf16.vlgmr.msra.gmra.mxu1 %v11787_v46 }
 0x104   : > { %1168 = vmatpush.bf16.msra.mxu2 %v8852_v60 }
 0x107   : > { %1169 = vmatmul.bf16.vlgmr.msra.gmra.mxu2 %v11787_v46 }
 0x113   : > { %1145 = vmatmul.bf16.gmra.mxu1 %v11798_v61 }
 0x117   : > { %1174 = vmatmul.bf16.gmra.mxu2 %v11798_v61 }
 0x123   : > { %1150 = vmatmul.bf16.gmra.mxu1 %v11802_v0 }
 0x127   : > { %1179 = vmatmul.bf16.gmra.mxu2 %v11802_v0 }
 0x133   : > { %1155 = vmatmul.bf16.gmra.mxu1 %v11806_v3 }
 0x137   : > { %1184 = vmatmul.bf16.gmra.mxu2 %v11806_v3 }
 0x180   : > { %v1141_v4 = vpop.f32.mrf.mxu1 }
 0x181   : > { %v1142_v9 = vadd.f32 %v1141_v4, %v970_v7 }
 0x188   : > { %v1143_v5 = vpop.f32.mrf.mxu1 }
 0x189   : > { %v1144_v14 = vadd.f32 %v1143_v5, %v970_v7 }
 0x18a   : > { %v1170_v13 = vpop.f32.mrf.mxu2 }
 0x18b   : > { %v1171_v20 = vadd.f32 %v1170_v13, %v971_v19 }
 0x190   : > { %v1146_v8 = vpop.f32.mrf.mxu1 }
 0x191   : > { %v1147_v10 = vadd.f32 %v1146_v8, %v970_v7 }
 0x192   : > { %v1172_v18 = vpop.f32.mrf.mxu2 }
 0x193   : > { %v10567_v11 = vpack.i.bf16 %v1147_v10, %v1142_v9  ;;  %v1173_v26 = vadd.f32 %v1172_v18, %v971_v19 }
 0x195   : > { %10568 = vxpose.xlu0.b32.start [1/2] (short) %v10567_v11, 128 }
 0x198   : > { %v1148_v12 = vpop.f32.mrf.mxu1 }
 0x199   : > { %v1149_v15 = vadd.f32 %v1148_v12, %v970_v7 }
 0x19a   : > { %v1175_v22 = vpop.f32.mrf.mxu2 }
 0x19b   : > { %v10569_v16 = vpack.i.bf16 %v1149_v15, %v1144_v14  ;;  %v1176_v23 = vadd.f32 %v1175_v22, %v971_v19 }
 0x19d   : > { %10570 = vxpose.xlu0.b32.end [2/2] (short) %v10569_v16, 128  ;;  %v10651_v24 = vpack.i.bf16 %v1176_v23, %v1171_v20 }
 0x19f   : > { %10652 = vxpose.xlu2.b32.start [1/2] (short) %v10651_v24, 128 }
 0x1a0   : > { %v1151_v17 = vpop.f32.mrf.mxu1 }
 0x1a1   : > { %v1152_v25 = vadd.f32 %v1151_v17, %v970_v7 }
 0x1a2   : > { %v1177_v28 = vpop.f32.mrf.mxu2 }
 0x1a3   : > { %v1178_v30 = vadd.f32 %v1177_v28, %v971_v19 }
 0x1a5   : > { %v10653_v32 = vpack.i.bf16 %v1178_v30, %v1173_v26 }
 0x1a7   : > { %10654 = vxpose.xlu2.b32.end [2/2] (short) %v10653_v32, 128 }
 0x1a8   : > { %v1153_v21 = vpop.f32.mrf.mxu1 }
 0x1a9   : > { %v1154_v33 = vadd.f32 %v1153_v21, %v970_v7 }
 0x1aa   : > { %v1180_v37 = vpop.f32.mrf.mxu2 }
 0x1ab   : > { %v1181_v40 = vadd.f32 %v1180_v37, %v971_v19 }
 0x1b0   : > { %v1156_v27 = vpop.f32.mrf.mxu1 }
 0x1b1   : > { %v1157_v29 = vadd.f32 %v1156_v27, %v970_v7 }
 0x1b2   : > { %v1182_v38 = vpop.f32.mrf.mxu2 }
 0x1b3   : > { %v10735_v31 = vpack.i.bf16 %v1157_v29, %v1152_v25  ;;  %v1183_v44 = vadd.f32 %v1182_v38, %v971_v19 }
 0x1b5   : > { %10736 = vxpose.xlu1.b32.start [1/2] (short) %v10735_v31, 128 }
 0x1b8   : > { %v1158_v34 = vpop.f32.mrf.mxu1 }
 0x1b9   : > { %v1159_v35 = vadd.f32 %v1158_v34, %v970_v7 }
 0x1ba   : > { %v1185_v39 = vpop.f32.mrf.mxu2 }
 0x1bb   : > { %v10737_v36 = vpack.i.bf16 %v1159_v35, %v1154_v33  ;;  %v1186_v41 = vadd.f32 %v1185_v39, %v971_v19 }
 0x1bd   : > { %10738 = vxpose.xlu1.b32.end [2/2] (short) %v10737_v36, 128  ;;  %v10819_v42 = vpack.i.bf16 %v1186_v41, %v1181_v40 }
 0x1c2   : > { %v1187_v43 = vpop.f32.mrf.mxu2 }
 0x1c3   : > { %v1188_v45 = vadd.f32 %v1187_v43, %v971_v19 }
 0x1c5   : > { %v10821_v47 = vpack.i.bf16 %v1188_v45, %v1183_v44 }
 0x215   : > { %10820 = vxpose.xlu0.b32.start [1/2] (short) %v10819_v42, 128 }
 0x21d   : > { %10822 = vxpose.xlu0.b32.end [2/2] (short) %v10821_v47, 128 }
 0x238   : > { %v11828_v56 = vpop.trf.xlu2 }
 0x239   : > { %v11812_v48 = vpop.trf.xlu0  ;;  %15966 = vst [vmem:[#allocation37_spill] sm:$0xff] %v11828_v56 }
 0x240   : > { %v11832_v58 = vpop.trf.xlu2 }
 0x241   : > { %v11814_v49 = vpop.trf.xlu0  ;;  %15967 = vst [vmem:[#allocation38_spill] sm:$0xff] %v11832_v58 }
 0x248   : > { %v11836_v60 = vpop.trf.xlu2 }
 0x249   : > { %v11816_v50 = vpop.trf.xlu0  ;;  %15968 = vst [vmem:[#allocation39_spill] sm:$0xff] %v11836_v60 }
 0x250   : > { %v11842_v1 = vpop.trf.xlu2 }
 0x251   : > { %v11818_v51 = vpop.trf.xlu0  ;;  %15970 = vst [vmem:[#allocation41_spill] sm:$0xff] %v11842_v1 }
 0x258   : > { %v11848_v5 = vpop.trf.xlu2 }
 0x259   : > { %v11820_v52 = vpop.trf.xlu0  ;;  %v11838_v62 = vpop.trf.xlu1  ;;  %15972 = vst [vmem:[#allocation43_spill] sm:$0xff] %v11848_v5 }
 0x25a   : > { %15969 = vst [vmem:[#allocation40_spill] sm:$0xff] %v11838_v62  ;;  %v10595_v61 = vunpack.i.h.bf16 %v11820_v52 }
 0x260   : > { %v11854_v8 = vpop.trf.xlu2 }
 0x261   : > { %v11822_v53 = vpop.trf.xlu0  ;;  %v11844_v2 = vpop.trf.xlu1  ;;  %15974 = vst [vmem:[#allocation45_spill] sm:$0xff] %v11854_v8 }
 0x262   : > { %15971 = vst [vmem:[#allocation42_spill] sm:$0xff] %v11844_v2  ;;  %v10600_v3 = vunpack.i.h.bf16 %v11822_v53 }
 0x268   : > { %v11860_v11 = vpop.trf.xlu2 }
 0x269   : > { %v11824_v54 = vpop.trf.xlu0  ;;  %v11850_v6 = vpop.trf.xlu1  ;;  %15976 = vst [vmem:[#allocation47_spill] sm:$0xff] %v11860_v11 }
 0x26a   : > { %15973 = vst [vmem:[#allocation44_spill] sm:$0xff] %v11850_v6  ;;  %v1482_v6 = vpack.c.bf16 %v10595_v61, %v10595_v61 }
 0x270   : > { %v11866_v14 = vpop.trf.xlu2 }
 0x271   : > { %v11826_v55 = vpop.trf.xlu0  ;;  %v11856_v9 = vpop.trf.xlu1  ;;  %15978 = vst [vmem:[#allocation49_spill] sm:$0xff] %v11866_v14 }
 0x272   : > { %15975 = vst [vmem:[#allocation46_spill] sm:$0xff] %v11856_v9  ;;  %v1483_v9 = vpack.c.bf16 %v10600_v3, %v10600_v3 }
 0x278   : > { %v11876_v23 = vpop.trf.xlu2 }
 0x279   : > { %v11830_v57 = vpop.trf.xlu0  ;;  %v11862_v12 = vpop.trf.xlu1  ;;  %15980 = vst [vmem:[#allocation51_spill] sm:$0xff] %v11876_v23 }
 0x27a   : > { %15977 = vst [vmem:[#allocation48_spill] sm:$0xff] %v11862_v12  ;;  %v10615_v14 = vunpack.i.h.bf16 %v11830_v57 }
 0x27c   : > { %v1486_v11 = vpack.c.bf16 %v10615_v14, %v10615_v14 }
 0x280   : > { %v11888_v36 = vpop.trf.xlu2 }
 0x281   : > { %v11834_v59 = vpop.trf.xlu0  ;;  %v11868_v15 = vpop.trf.xlu1  ;;  %15982 = vst [vmem:[#allocation53_spill] sm:$0xff] %v11888_v36 }
 0x282   : > { %15979 = vst [vmem:[#allocation50_spill] sm:$0xff] %v11868_v15  ;;  %v10620_v8 = vunpack.i.h.bf16 %v11834_v59 }
 0x288   : > { %v11900_v42 = vpop.trf.xlu2 }
 0x289   : > { %v11840_v63 = vpop.trf.xlu0  ;;  %v11878_v24 = vpop.trf.xlu1  ;;  %15984 = vst [vmem:[#allocation55_spill] sm:$0xff] %v11900_v42 }
 0x28a   : > { %15981 = vst [vmem:[#allocation52_spill] sm:$0xff] %v11878_v24  ;;  %v10622_v25 = vunpack.i.l.bf16 %v11840_v63 }
 0x28c   : > { %v1472_v32 = vpack.c.bf16 %v10622_v25, %v10622_v25 }
 0x28e   : > { %v1600_v38 = vunpack.c.l.b16 %v1472_v32 }
 0x290   : > { %v11910_v45 = vpop.trf.xlu2 }
 0x291   : > { %v11846_v4 = vpop.trf.xlu0  ;;  %v11890_v37 = vpop.trf.xlu1  ;;  %15987 = vst [vmem:[#allocation58_spill] sm:$0xff] %v11910_v45 }
 0x292   : > { %v10627_v20 = vunpack.i.l.bf16 %v11846_v4  ;;  %15983 = vst [vmem:[#allocation54_spill] sm:$0xff] %v11890_v37 }
 0x294   : > { %v1473_v29 = vpack.c.bf16 %v10627_v20, %v10627_v20 }
 0x296   : > { %v1601_v34 = vunpack.c.l.b16 %v1473_v29  ;;  %v10607_v29 = vunpack.i.l.bf16 %v11826_v55 }
 0x298   : > { %v11892_v40 = vpack.c.b16 %v1601_v34, %v1600_v38  ;;  %v10602_v34 = vunpack.i.l.bf16 %v11824_v54  ;;  %v1469_v38 = vpack.c.bf16 %v10607_v29, %v10607_v29 }
 0x299   : > { %v11852_v7 = vpop.trf.xlu0  ;;  %v11902_v43 = vpop.trf.xlu1 }
 0x29a   : > { %v10632_v26 = vunpack.i.l.bf16 %v11852_v7  ;;  %15985 = vst [vmem:[#allocation56_spill] sm:$0xff] %v11902_v43 }
 0x29c   : > { %v1474_v33 = vpack.c.bf16 %v10632_v26, %v10632_v26 }
 0x29e   : > { %v1602_v39 = vunpack.c.l.b16 %v1474_v33 }
 0x2a1   : > { %v11858_v10 = vpop.trf.xlu0  ;;  %v11912_v47 = vpop.trf.xlu1 }
 0x2a2   : > { %v10637_v21 = vunpack.i.l.bf16 %v11858_v10  ;;  %15988 = vst [vmem:[#allocation59_spill] sm:$0xff] %v11912_v47 }
 0x2a4   : > { %v1475_v30 = vpack.c.bf16 %v10637_v21, %v10637_v21 }
 0x2a6   : > { %v1603_v35 = vunpack.c.l.b16 %v1475_v30  ;;  %v10617_v30 = vunpack.i.l.bf16 %v11834_v59  ;;  %v10577_v59 = vunpack.i.l.bf16 %v11814_v49 }
 0x2a8   : > { %v11894_v41 = vpack.c.b16 %v1603_v35, %v1602_v39  ;;  %v10612_v35 = vunpack.i.l.bf16 %v11830_v57  ;;  %v1471_v39 = vpack.c.bf16 %v10617_v30, %v10617_v30  ;;  %v10572_v57 = vunpack.i.l.bf16 %v11812_v48 }
 0x2a9   : > { %v11864_v13 = vpop.trf.xlu0  ;;  %v1463_v45 = vpack.c.bf16 %v10577_v59, %v10577_v59 }
 0x2aa   : > { %v10642_v16 = vunpack.i.l.bf16 %v11864_v13  ;;  %v10645_v30 = vunpack.i.h.bf16 %v11864_v13  ;;  %v1462_v14 = vpack.c.bf16 %v10572_v57, %v10572_v57  ;;  %v10610_v57 = vunpack.i.h.bf16 %v11826_v55 }
 0x2ac   : > { %v1476_v18 = vpack.c.bf16 %v10642_v16, %v10642_v16 }
 0x2ae   : > { %v1604_v27 = vunpack.c.l.b16 %v1476_v18  ;;  %v11920_v18 = vpop.trf.xlu2 }
 0x2af   : > { %15990 = vst [vmem:[#allocation61_spill] sm:$0xff] %v11920_v18 }
 0x2b1   : > { %v11871_v17 = vpop.trf.xlu0 }
 0x2b2   : > { %v10647_v19 = vunpack.i.l.bf16 %v11871_v17  ;;  %v10650_v56 = vunpack.i.h.bf16 %v11871_v17 }
 0x2b4   : > { %v1477_v22 = vpack.c.bf16 %v10647_v19, %v10647_v19  ;;  %v11922_v19 = vpop.trf.xlu1  ;;  %v1493_v60 = vpack.c.bf16 %v10650_v56, %v10650_v56  ;;  %v10640_v56 = vunpack.i.h.bf16 %v11858_v10  ;;  %v10592_v10 = vunpack.i.l.bf16 %v11820_v52 }
 0x2b5   : > { %15991 = vst [vmem:[#allocation62_spill] sm:$0xff] %v11922_v19 }
 0x2b6   : > { %v1605_v28 = vunpack.c.l.b16 %v1477_v22  ;;  %v11930_v21 = vpop.trf.xlu2 }
 0x2b7   : > { %15993 = vst [vmem:[#allocation64_spill] sm:$0xff] %v11930_v21 }
 0x2b8   : > { %v11882_v31 = vpack.c.b16 %v1605_v28, %v1604_v27 }
 0x2b9   : > { %v11908_v44 = vpop.trf.xlu0 }
 0x2ba   : > { %1764 = vrot.lane.b32.xlu2 %v11882_v31, %s11383_s4  ;;  %1700 = vrot.lane.b32.xlu1 %v11882_v31, %s11384_s7  ;;  %15986 = vst [vmem:[#allocation57_spill] sm:$0xff] %v11908_v44  ;;  %v1470_v44 = vpack.c.bf16 %v10612_v35, %v10612_v35 }
 0x2bc   : > { %v11932_v22 = vpop.trf.xlu1  ;;  %v1598_v29 = vunpack.c.l.b16 %v1470_v44  ;;  %v1621_v44 = vunpack.c.l.b16 %v1493_v60  ;;  %v10635_v60 = vunpack.i.h.bf16 %v11852_v7 }
 0x2bd   : > { %15994 = vst [vmem:[#allocation65_spill] sm:$0xff] %v11932_v22 }
 0x2be   : > { %v11940_v26 = vpop.trf.xlu2 }
 0x2bf   : > { %15996 = vst [vmem:[#allocation67_spill] sm:$0xff] %v11940_v26 }
 0x2c1   : > { %v11918_v16 = vpop.trf.xlu0 }
 0x2c2   : > { %1698 = vrot.lane.b32.xlu1 %v11894_v41, %s11384_s7  ;;  %1696 = vrot.lane.b32.xlu2 %v11892_v40, %s11384_s7  ;;  %15989 = vst [vmem:[#allocation60_spill] sm:$0xff] %v11918_v16  ;;  %v1468_v16 = vpack.c.bf16 %v10602_v34, %v10602_v34 }
 0x2c4   : > { %v11942_v27 = vpop.trf.xlu1  ;;  %v1596_v1 = vunpack.c.l.b16 %v1468_v16 }
 0x2c6   : > { %v11952_v32 = vpop.trf.xlu2 }
 0x2c7   : > { %15998 = vst [vmem:[#allocation69_spill] sm:$0xff] %v11952_v32  ;;  %v1590_v32 = vunpack.c.l.b16 %v1462_v14 }
 0x2c9   : > { %v11928_v20 = vpop.trf.xlu0 }
 0x2ca   : > { %1762 = vrot.lane.b32.xlu1 %v11894_v41, %s11383_s4  ;;  %1760 = vrot.lane.b32.xlu2 %v11892_v40, %s11383_s4  ;;  %15992 = vst [vmem:[#allocation63_spill] sm:$0xff] %v11928_v20  ;;  %v1599_v20 = vunpack.c.l.b16 %v1471_v39  ;;  %v1490_v39 = vpack.c.bf16 %v10635_v60, %v10635_v60 }
 0x2cc   : > { %v11954_v33 = vpop.trf.xlu1  ;;  %v11970_v35 = vpack.c.b16 %v1599_v20, %v1598_v29  ;;  %v10597_v29 = vunpack.i.l.bf16 %v11822_v53  ;;  %v1611_v53 = vunpack.c.l.b16 %v1483_v9 }
 0x2ce   : > { %v1467_v7 = vpack.c.bf16 %v10597_v29, %v10597_v29  ;;  %v10625_v29 = vunpack.i.h.bf16 %v11840_v63  ;;  %v10582_v63 = vunpack.i.l.bf16 %v11816_v50 }
 0x2d1   : > { %v11938_v25 = vpop.trf.xlu0 }
 0x2d2   : > { %1826 = vrot.lane.b32.xlu1 %v11894_v41, %s11385_s5  ;;  %1824 = vrot.lane.b32.xlu2 %v11892_v40, %s11385_s5  ;;  %15995 = vst [vmem:[#allocation66_spill] sm:$0xff] %v11938_v25  ;;  %v1597_v25 = vunpack.c.l.b16 %v1469_v38  ;;  %v1492_v38 = vpack.c.bf16 %v10645_v30, %v10645_v30 }
 0x2d4   : > { %v11968_v34 = vpack.c.b16 %v1597_v25, %v1596_v1  ;;  %v1620_v1 = vunpack.c.l.b16 %v1492_v38  ;;  %v1491_v25 = vpack.c.bf16 %v10640_v56, %v10640_v56  ;;  %v1466_v56 = vpack.c.bf16 %v10592_v10, %v10592_v10 }
 0x2d5   : > { %v1488_v10 = vpack.c.bf16 %v10625_v29, %v10625_v29  ;;  %v1464_v29 = vpack.c.bf16 %v10582_v63, %v10582_v63 }
 0x2d6   : > { %v11982_v13 = vpack.c.b16 %v1621_v44, %v1620_v1  ;;  %v1619_v30 = vunpack.c.l.b16 %v1491_v25  ;;  %v1618_v44 = vunpack.c.l.b16 %v1490_v39  ;;  %v1595_v25 = vunpack.c.l.b16 %v1467_v7 }
 0x2d7   : > { %v1594_v39 = vunpack.c.l.b16 %v1466_v56 }
 0x2d8   : > { %16003 = vst [vmem:[#allocation74_spill] sm:$0xff] %v11982_v13  ;;  %v12004_v1 = vpack.c.b16 %v1619_v30, %v1618_v44 }
 0x2d9   : > { %v11948_v28 = vpop.trf.xlu0  ;;  %v12018_v30 = vpack.c.b16 %v1595_v25, %v1594_v39 }
 0x2da   : > { %1890 = vrot.lane.b32.xlu1 %v11894_v41, %s11386_s27  ;;  %1888 = vrot.lane.b32.xlu2 %v11892_v40, %s11386_s27  ;;  %15997 = vst [vmem:[#allocation68_spill] sm:$0xff] %v11948_v28  ;;  %v11962_v28 = vpop.trf.xlu1 }
 0x2db   : > { %15999 = vst [vmem:[#allocation70_spill] sm:$0xff] %v11962_v28 }
 0x2dc   : > { %16006 = vst [vmem:[#allocation77_spill] sm:$0xff] %v12004_v1 }
 0x2e1   : > { %v11964_v58 = vpop.trf.xlu0 }
 0x2e2   : > { %1954 = vrot.lane.b32.xlu1 %v11894_v41, %s11387_s2  ;;  %1952 = vrot.lane.b32.xlu2 %v11892_v40, %s11387_s2  ;;  %16000 = vst [vmem:[#allocation71_spill] sm:$0xff] %v11964_v58  ;;  %v11978_v17 = vpop.trf.xlu1  ;;  %v10630_v58 = vunpack.i.h.bf16 %v11846_v4  ;;  %v10587_v4 = vunpack.i.l.bf16 %v11818_v51 }
 0x2e3   : > { %16001 = vst [vmem:[#allocation72_spill] sm:$0xff] %v11978_v17 }
 0x2e4   : > { %v1489_v44 = vpack.c.bf16 %v10630_v58, %v10630_v58  ;;  %v1616_v58 = vunpack.c.l.b16 %v1488_v10  ;;  %v1465_v25 = vpack.c.bf16 %v10587_v4, %v10587_v4 }
 0x2e6   : > { %v1617_v56 = vunpack.c.l.b16 %v1489_v44  ;;  %v1593_v44 = vunpack.c.l.b16 %v1465_v25 }
 0x2e8   : > { %v12032_v39 = vpack.c.b16 %v1617_v56, %v1616_v58 }
 0x2e9   : > { %v11980_v16 = vpop.trf.xlu0 }
 0x2ea   : > { %2018 = vrot.lane.b32.xlu1 %v11894_v41, %s11388_s13  ;;  %2016 = vrot.lane.b32.xlu2 %v11892_v40, %s11388_s13  ;;  %16002 = vst [vmem:[#allocation73_spill] sm:$0xff] %v11980_v16 }
 0x2f1   : > { %v11991_v20 = vpop.trf.xlu0 }
 0x2f2   : > { %2082 = vrot.lane.b32.xlu1 %v11894_v41, %s11389_s16  ;;  %2080 = vrot.lane.b32.xlu2 %v11892_v40, %s11389_s16  ;;  %16004 = vst [vmem:[#allocation75_spill] sm:$0xff] %v11991_v20 }
 0x2f9   : > { %v12001_v38 = vpop.trf.xlu0 }
 0x2fa   : > { %1694 = vrot.lane.b32.xlu1 %v11970_v35, %s11384_s7  ;;  %1692 = vrot.lane.b32.xlu2 %v11968_v34, %s11384_s7  ;;  %16005 = vst [vmem:[#allocation76_spill] sm:$0xff] %v12001_v38 }
 0x2fb   : > { %1828 = vrot.lane.b32.xlu0 %v11882_v31, %s11385_s5 }
 0x301   : > { %v12015_v20 = vpop.trf.xlu0 }
 0x302   : > { %1758 = vrot.lane.b32.xlu1 %v11970_v35, %s11383_s4  ;;  %1950 = vrot.lane.b32.xlu2 %v11970_v35, %s11387_s2  ;;  %16007 = vst [vmem:[#allocation78_spill] sm:$0xff] %v12015_v20 }
 0x303   : > { %1972 = vrot.lane.b32.xlu0 %v11982_v13, %s11387_s2 }
 0x309   : > { %v12029_v16 = vpop.trf.xlu0 }
 0x30a   : > { %1822 = vrot.lane.b32.xlu1 %v11970_v35, %s11385_s5  ;;  %1820 = vrot.lane.b32.xlu2 %v11968_v34, %s11385_s5  ;;  %16008 = vst [vmem:[#allocation79_spill] sm:$0xff] %v12029_v16  ;;  %v1592_v16 = vunpack.c.l.b16 %v1464_v29 }
 0x30b   : > { %2012 = vrot.lane.b32.xlu0 %v11968_v34, %s11388_s13 }
 0x30c   : > { %v12044_v10 = vpack.c.b16 %v1593_v44, %v1592_v16 }
 0x311   : > { %v12042_v38 = vpop.trf.xlu0 }
 0x312   : > { %1886 = vrot.lane.b32.xlu1 %v11970_v35, %s11386_s27  ;;  %2078 = vrot.lane.b32.xlu2 %v11970_v35, %s11389_s16  ;;  %16009 = vst [vmem:[#allocation80_spill] sm:$0xff] %v12042_v38 }
 0x313   : > { %1842 = vrot.lane.b32.xlu0 %v12004_v1, %s11385_s5 }
 0x314   : > { %v12012_v60 = vpop.permute.xlu2 %1764 }
 0x319   : > { %v12056_v63 = vpop.trf.xlu0 }
 0x31a   : > { %1756 = vrot.lane.b32.xlu1 %v11968_v34, %s11383_s4  ;;  %1956 = vrot.lane.b32.xlu2 %v11882_v31, %s11387_s2  ;;  %16010 = vst [vmem:[#allocation81_spill] sm:$0xff] %v12056_v63 }
 0x31b   : > { %1882 = vrot.lane.b32.xlu0 %v12018_v30, %s11386_s27 }
 0x31c   : > { %v12026_v7 = vpop.permute.xlu2 %1696 }
 0x321   : > { %v12068_v25 = vpop.trf.xlu0 }
 0x322   : > { %2014 = vrot.lane.b32.xlu1 %v11970_v35, %s11388_s13  ;;  %2020 = vrot.lane.b32.xlu2 %v11882_v31, %s11388_s13  ;;  %16011 = vst [vmem:[#allocation82_spill] sm:$0xff] %v12068_v25 }
 0x323   : > { %1712 = vrot.lane.b32.xlu0 %v12032_v39, %s11384_s7 }
 0x324   : > { %v12040_v20 = vpop.permute.xlu2 %1760 }
 0x329   : > { %v12080_v38 = vpop.trf.xlu0 }
 0x32a   : > { %1884 = vrot.lane.b32.xlu1 %v11968_v34, %s11386_s27  ;;  %2084 = vrot.lane.b32.xlu2 %v11882_v31, %s11389_s16  ;;  %16012 = vst [vmem:[#allocation83_spill] sm:$0xff] %v12080_v38  ;;  %v1487_v38 = vpack.c.bf16 %v10620_v8, %v10620_v8  ;;  %v1614_v8 = vunpack.c.l.b16 %v1486_v11 }
 0x32b   : > { %1752 = vrot.lane.b32.xlu0 %v12044_v10, %s11383_s4 }
 0x32c   : > { %v12052_v4 = vpop.permute.xlu1 %1700  ;;  %v12054_v56 = vpop.permute.xlu2 %1824 }
 0x331   : > { %v12093_v5 = vpop.trf.xlu0 }
 0x332   : > { %1780 = vrot.lane.b32.xlu2 %v11982_v13, %s11383_s4  ;;  %1690 = vrot.lane.b32.xlu1 %v12018_v30, %s11384_s7  ;;  %16013 = vst [vmem:[#allocation84_spill] sm:$0xff] %v12093_v5  ;;  %v1615_v5 = vunpack.c.l.b16 %v1487_v38  ;;  %v1591_v38 = vunpack.c.l.b16 %v1463_v45  ;;  %v10605_v45 = vunpack.i.h.bf16 %v11824_v54 }
 0x333   : > { %2034 = vrot.lane.b32.xlu0 %v12004_v1, %s11388_s13 }
 0x334   : > { %v12064_v16 = vpop.permute.xlu1 %1698  ;;  %v12066_v58 = vpop.permute.xlu2 %1888  ;;  %v12108_v42 = vpack.c.b16 %v1615_v5, %v1614_v8  ;;  %v12120_v11 = vpack.c.b16 %v1591_v38, %v1590_v32  ;;  %v1485_v8 = vpack.c.bf16 %v10610_v57, %v10610_v57  ;;  %v1484_v32 = vpack.c.bf16 %v10605_v45, %v10605_v45 }
 0x336   : > { %v1613_v26 = vunpack.c.l.b16 %v1485_v8  ;;  %v1612_v2 = vunpack.c.l.b16 %v1484_v32 }
 0x338   : > { %v12144_v55 = vpack.c.b16 %v1613_v26, %v1612_v2 }
 0x33a   : > { %1908 = vrot.lane.b32.xlu2 %v11982_v13, %s11386_s27  ;;  %1892 = vrot.lane.b32.xlu1 %v11882_v31, %s11386_s27 }
 0x33b   : > { %2074 = vrot.lane.b32.xlu0 %v12018_v30, %s11389_s16 }
 0x33c   : > { %v12076_v29 = vpop.permute.xlu1 %1762  ;;  %v12078_v44 = vpop.permute.xlu2 %1952 }
 0x342   : > { %1714 = vrot.lane.b32.xlu2 %v12004_v1, %s11384_s7  ;;  %1716 = vrot.lane.b32.xlu1 %v11982_v13, %s11384_s7 }
 0x343   : > { %1904 = vrot.lane.b32.xlu0 %v12032_v39, %s11386_s27 }
 0x344   : > { %v12088_v25 = vpop.permute.xlu1 %1826  ;;  %v12090_v63 = vpop.permute.xlu2 %2016 }
 0x34a   : > { %1754 = vrot.lane.b32.xlu2 %v12018_v30, %s11383_s4  ;;  %1844 = vrot.lane.b32.xlu1 %v11982_v13, %s11385_s5 }
 0x34b   : > { %1944 = vrot.lane.b32.xlu0 %v12044_v10, %s11387_s2 }
 0x34c   : > { %v12102_v36 = vpop.permute.xlu1 %1890  ;;  %v12104_v23 = vpop.permute.xlu2 %2080 }
 0x352   : > { %2036 = vrot.lane.b32.xlu2 %v11982_v13, %s11388_s13  ;;  %1948 = vrot.lane.b32.xlu1 %v11968_v34, %s11387_s2 }
 0x353   : > { %1774 = vrot.lane.b32.xlu0 %v12108_v42, %s11383_s4 }
 0x354   : > { %v12116_v21 = vpop.permute.xlu1 %1954  ;;  %v12118_v18 = vpop.permute.xlu2 %1692 }
 0x35a   : > { %2076 = vrot.lane.b32.xlu2 %v11968_v34, %s11389_s16  ;;  %1778 = vrot.lane.b32.xlu1 %v12004_v1, %s11383_s4 }
 0x35b   : > { %1814 = vrot.lane.b32.xlu0 %v12120_v11, %s11385_s5 }
 0x35c   : > { %v12128_v5 = vpop.permute.xlu1 %2018  ;;  %v12130_v59 = vpop.permute.xlu2 %1950 }
 0x362   : > { %1906 = vrot.lane.b32.xlu2 %v12004_v1, %s11386_s27  ;;  %1818 = vrot.lane.b32.xlu1 %v12018_v30, %s11385_s5 }
 0x363   : > { %2096 = vrot.lane.b32.xlu0 %v12032_v39, %s11389_s16 }
 0x364   : > { %v12140_v14 = vpop.permute.xlu1 %2082  ;;  %v12142_v38 = vpop.permute.xlu2 %1820 }
 0x36a   : > { %1946 = vrot.lane.b32.xlu2 %v12018_v30, %s11387_s2  ;;  %2100 = vrot.lane.b32.xlu1 %v11982_v13, %s11389_s16 }
 0x36b   : > { %1708 = vrot.lane.b32.xlu0 %v12144_v55, %s11384_s7 }
 0x36c   : > { %v12152_v54 = vpop.permute.xlu1 %1694  ;;  %v12154_v57 = vpop.permute.xlu2 %2078 }
 0x36d   : > { %v12156_v45 = vpop.permute.xlu0 %1828 }
 0x372   : > { %1776 = vrot.lane.b32.xlu2 %v12032_v39, %s11383_s4  ;;  %1688 = vrot.lane.b32.xlu1 %v12044_v10, %s11384_s7 }
 0x373   : > { %1772 = vrot.lane.b32.xlu0 %v12144_v55, %s11383_s4 }
 0x374   : > { %v12164_v2 = vpop.permute.xlu1 %1758  ;;  %v12166_v26 = vpop.permute.xlu2 %1956 }
 0x375   : > { %v12168_v8 = vpop.permute.xlu0 %1972 }
 0x376   : > { %16014 = vst [vmem:[#allocation85_spill] sm:$0xff] %v12168_v8  ;;  %v1610_v8 = vunpack.c.l.b16 %v1482_v6 }
 0x378   : > { %v12196_v52 = vpack.c.b16 %v1611_v53, %v1610_v8 }
 0x37a   : > { %1816 = vrot.lane.b32.xlu2 %v12044_v10, %s11385_s5  ;;  %1970 = vrot.lane.b32.xlu1 %v12004_v1, %s11387_s2 }
 0x37b   : > { %1836 = vrot.lane.b32.xlu0 %v12144_v55, %s11385_s5 }
 0x37c   : > { %v12176_v32 = vpop.permute.xlu1 %1822  ;;  %v12178_v62 = vpop.permute.xlu2 %2020 }
 0x37d   : > { %v12181_v0 = vpop.permute.xlu0 %2012 }
 0x382   : > { %2098 = vrot.lane.b32.xlu2 %v12004_v1, %s11389_s16  ;;  %2010 = vrot.lane.b32.xlu1 %v12018_v30, %s11388_s13  ;;  %v10585_v1 = vunpack.i.h.bf16 %v11816_v50  ;;  %v10590_v50 = vunpack.i.h.bf16 %v11818_v51 }
 0x383   : > { %1900 = vrot.lane.b32.xlu0 %v12144_v55, %s11386_s27 }
 0x384   : > { %v12190_v46 = vpop.permute.xlu1 %1886  ;;  %v12192_v15 = vpop.permute.xlu2 %2084 }
 0x385   : > { %v12194_v12 = vpop.permute.xlu0 %1842 }
 0x386   : > { %16015 = vst [vmem:[#allocation86_spill] sm:$0xff] %v12194_v12 }
 0x38a   : > { %1840 = vrot.lane.b32.xlu1 %v12032_v39, %s11385_s5  ;;  %1686 = vrot.lane.b32.xlu2 %v12120_v11, %s11384_s7 }
 0x38b   : > { %1770 = vrot.lane.b32.xlu0 %v12196_v52, %s11383_s4 }
 0x38c   : > { %v12204_v61 = vpop.permute.xlu1 %1756  ;;  %v12206_v3 = vpop.permute.xlu2 %1780 }
 0x38d   : > { %16016 = vst [vmem:[#allocation87_spill] sm:$0xff] %v12206_v3  ;;  %v12208_v37 = vpop.permute.xlu0 %1882 }
 0x392   : > { %1880 = vrot.lane.b32.xlu1 %v12044_v10, %s11386_s27  ;;  %1968 = vrot.lane.b32.xlu2 %v12032_v39, %s11387_s2 }
 0x393   : > { %1834 = vrot.lane.b32.xlu0 %v12196_v52, %s11385_s5 }
 0x394   : > { %v12216_v6 = vpop.permute.xlu1 %2014  ;;  %v12218_v9 = vpop.permute.xlu2 %1908 }
 0x395   : > { %16017 = vst [vmem:[#allocation88_spill] sm:$0xff] %v12218_v9  ;;  %v12220_v8 = vpop.permute.xlu0 %1712  ;;  %v10810_v9 = vunpack.i.l.bf16 %v11962_v28  ;;  %v10815_v28 = vunpack.i.l.bf16 %v11978_v17 }
 0x396   : > { %16018 = vst [vmem:[#allocation89_spill] sm:$0xff] %v12220_v8  ;;  %v2155_v8 = vsel %vm2134_vm0, %v11894_v41, %v12064_v16  ;;  %v2152_v41 = vsel %vm2134_vm0, %v11892_v40, %v12026_v7 }
 0x397   : > { %v1508_v51 = vpack.c.bf16 %v10810_v9, %v10810_v9 }
 0x39a   : > { %1710 = vrot.lane.b32.xlu1 %v12108_v42, %s11384_s7  ;;  %2008 = vrot.lane.b32.xlu2 %v12044_v10, %s11388_s13 }
 0x39b   : > { %1898 = vrot.lane.b32.xlu0 %v12196_v52, %s11386_s27 }
 0x39c   : > { %v12228_v53 = vpop.permute.xlu1 %1884  ;;  %v12230_v12 = vpop.permute.xlu2 %1714 }
 0x39d   : > { %16019 = vst [vmem:[#allocation90_spill] sm:$0xff] %v12230_v12  ;;  %v12232_v24 = vpop.permute.xlu0 %1752  ;;  %v2245_v12 = vsel %vm2231_vm1, %v2155_v8, %v12076_v29  ;;  %v2243_v29 = vsel %vm2231_vm1, %v2152_v41, %v12040_v20 }
 0x39e   : > { %16020 = vst [vmem:[#allocation91_spill] sm:$0xff] %v12232_v24  ;;  %v12245_v24 = vpack.c.bf16 %v10585_v1, %v10585_v1  ;;  %v2310_v1 = vsel %vm2296_vm2, %v2245_v12, %v12088_v25  ;;  %v2308_v17 = vsel %vm2296_vm2, %v2243_v29, %v12054_v56  ;;  %v2158_v12 = vsel %vm2134_vm0, %v11882_v31, %v12052_v4  ;;  %v10406_v56 = vld [vmem:[#allocation6 + $0x30] sm:$0xff]  }
 0x39f   : > { %v2375_v8 = vsel %vm2361_vm3, %v2310_v1, %v12102_v36  ;;  %v2373_v7 = vsel %vm2361_vm3, %v2308_v17, %v12066_v58  ;;  %v2149_v36 = vsel %vm2134_vm0, %v11970_v35, %v12152_v54  ;;  %v1509_v25 = vpack.c.bf16 %v10815_v28, %v10815_v28  ;;  %v10405_v28 = vld [vmem:[#allocation6 + $0x28] sm:$0xff]  }
 0x3a0   : > { %v2440_v40 = vsel %vm2426_vm4, %v2375_v8, %v12116_v21  ;;  %v2438_v9 = vsel %vm2426_vm4, %v2373_v7, %v12078_v44  ;;  %v2241_v31 = vsel %vm2231_vm1, %v2149_v36, %v12164_v2  ;;  %v12286_v4 = vpack.c.bf16 %v10590_v50, %v10590_v50 }
 0x3a1   : > { %v2505_v20 = vsel %vm2491_vm5, %v2440_v40, %v12128_v5  ;;  %v1636_v17 = vunpack.c.l.b16 %v1508_v51  ;;  %v2503_v58 = vsel %vm2491_vm5, %v2438_v9, %v12090_v63  ;;  %v2306_v35 = vsel %vm2296_vm2, %v2241_v31, %v12176_v32 }
 0x3a2   : > { %1750 = vrot.lane.b32.xlu1 %v12120_v11, %s11383_s4  ;;  %1838 = vrot.lane.b32.xlu2 %v12108_v42, %s11385_s5  ;;  %v2576_v21 = vsel %vm2556_vm6, %v2505_v20, %v12140_v14  ;;  %v2573_v44 = vsel %vm2556_vm6, %v2503_v58, %v12104_v23  ;;  %v2247_v5 = vsel %vm2231_vm1, %v2158_v12, %v12012_v60  ;;  %v12304_v63 = vunpack.c.l.bf16 %v10406_v56  ;;  %v10407_v23 = vld [vmem:[#allocation6 + $0x38] sm:$0xff]  }
 0x3a3   : > { %1962 = vrot.lane.b32.xlu0 %v12196_v52, %s11387_s2  ;;  %v2371_v14 = vsel %vm2361_vm3, %v2306_v35, %v12190_v46  ;;  %v2665_v54 = vunpack.c.l.bf16 %v2576_v21  ;;  %v2666_v2 = vunpack.c.h.bf16 %v2576_v21  ;;  %v2312_v32 = vsel %vm2296_vm2, %v2247_v5, %v12156_v45  ;;  %v10404_v35 = vld [vmem:[#allocation6 + $0x20] sm:$0xff]  }
 0x3a4   : > { %v12250_v3 = vpop.permute.xlu2 %1754  ;;  %v12252_v13 = vpop.permute.xlu1 %1690  ;;  %v12310_v1 = vunpack.c.h.bf16 %v10406_v56  ;;  %v1637_v60 = vunpack.c.l.b16 %v1509_v25  ;;  %v12315_v29 = vunpack.c.l.bf16 %v10405_v28  ;;  %v12317_v8 = vunpack.c.h.bf16 %v10405_v28 }
 0x3a5   : > { %v12260_v16 = vpop.permute.xlu0 %2034  ;;  %v2663_v40 = vunpack.c.l.bf16 %v2573_v44  ;;  %v2664_v12 = vunpack.c.h.bf16 %v2573_v44  ;;  %v2436_v45 = vsel %vm2426_vm4, %v2371_v14, %v12130_v59  ;;  %v12327_v56 = vunpack.c.l.bf16 %v10407_v23 }
 0x3a6   : > { %16021 = vst [vmem:[#allocation92_spill] sm:$0xff] %v12315_v29  ;;  %v2501_v20 = vsel %vm2491_vm5, %v2436_v45, %v12216_v6  ;;  %v12329_v25 = vunpack.c.h.bf16 %v10407_v23  ;;  %v2745_v21 = vmul.f32 %v12304_v63, %v2665_v54  ;;  %v2746_v59 = vmul.f32 %v12310_v1, %v2666_v2 }
 0x3a7   : > { %16022 = vst [vmem:[#allocation93_spill] sm:$0xff] %v12317_v8  ;;  %v1608_v31 = vunpack.c.l.b16 %v12245_v24  ;;  %v10800_v28 = vunpack.i.l.bf16 %v11942_v27  ;;  %v10805_v44 = vunpack.i.l.bf16 %v11954_v33  ;;  %v2744_v5 = vmul.f32 %v12317_v8, %v2664_v12 }
 0x3a8   : > { %v2809_v54 = vpack.c.bf16 %v2745_v21, %v2745_v21  ;;  %v2810_v2 = vpack.c.bf16 %v2746_v59, %v2746_v59 }
 0x3a9   : > { %v2808_v21 = vpack.c.bf16 %v2744_v5, %v2744_v5 }
 0x3aa   : > { %2032 = vrot.lane.b32.xlu1 %v12032_v39, %s11388_s13  ;;  %1878 = vrot.lane.b32.xlu2 %v12120_v11, %s11386_s27  ;;  %v4280_v8 = vunpack.c.l.b16 %v2810_v2 }
 0x3ab   : > { %2026 = vrot.lane.b32.xlu0 %v12196_v52, %s11388_s13  ;;  %v4278_v5 = vunpack.c.l.b16 %v2808_v21 }
 0x3ac   : > { %v12308_v50 = vpop.permute.xlu2 %2036  ;;  %v1893_v41 = vpop.permute.xlu1 %1892 }
 0x3ad   : > { %v2377_v51 = vsel %vm2361_vm3, %v2312_v32, %v1893_v41  ;;  %v12313_v46 = vpop.permute.xlu0 %2074  ;;  %v12357_v32 = vunpack.c.l.bf16 %v10404_v35  ;;  %v12359_v41 = vunpack.c.h.bf16 %v10404_v35 }
 0x3ae   : > { %v2442_v7 = vsel %vm2426_vm4, %v2377_v51, %v12166_v26  ;;  %v12336_v26 = vpack.c.b16 %v1637_v60, %v1636_v17  ;;  %v2743_v17 = vmul.f32 %v12315_v29, %v2663_v40  ;;  %v1506_v40 = vpack.c.bf16 %v10800_v28, %v10800_v28 }
 0x3af   : > { %v2507_v36 = vsel %vm2491_vm5, %v2442_v7, %v12178_v62  ;;  %v1609_v62 = vunpack.c.l.b16 %v12286_v4 }
 0x3b0   : > { %v2579_v9 = vsel %vm2556_vm6, %v2507_v36, %v12192_v15  ;;  %v2570_v15 = vsel %vm2556_vm6, %v2501_v20, %v12154_v57 }
 0x3b1   : > { %v2667_v58 = vunpack.c.l.bf16 %v2579_v9  ;;  %v2668_v6 = vunpack.c.h.bf16 %v2579_v9  ;;  %v2661_v23 = vunpack.c.l.bf16 %v2570_v15  ;;  %v2662_v60 = vunpack.c.h.bf16 %v2570_v15 }
 0x3b2   : > { %2072 = vrot.lane.b32.xlu1 %v12044_v10, %s11389_s16  ;;  %1942 = vrot.lane.b32.xlu2 %v12120_v11, %s11387_s2  ;;  %v12363_v20 = vpack.c.b16 %v1609_v62, %v1608_v31  ;;  %v1507_v9 = vpack.c.bf16 %v10805_v44, %v10805_v44  ;;  %v10580_v31 = vunpack.i.h.bf16 %v11814_v49  ;;  %v1634_v62 = vunpack.c.l.b16 %v1506_v40 }
 0x3b3   : > { %1988 = vrot.lane.b32.xlu0 %v12336_v26, %s11387_s2  ;;  %v2747_v24 = vmul.f32 %v12327_v56, %v2667_v58  ;;  %v2748_v4 = vmul.f32 %v12329_v25, %v2668_v6  ;;  %v4279_v58 = vunpack.c.l.b16 %v2809_v54  ;;  %v2807_v6 = vpack.c.bf16 %v2743_v17, %v2743_v17 }
 0x3b4   : > { %v12353_v14 = vpop.permute.xlu2 %2076  ;;  %v12355_v57 = vpop.permute.xlu1 %1716  ;;  %v2741_v35 = vmul.f32 %v12357_v32, %v2661_v23  ;;  %v2742_v29 = vmul.f32 %v12359_v41, %v2662_v60  ;;  %v1635_v28 = vunpack.c.l.b16 %v1507_v9  ;;  %v10575_v23 = vunpack.i.h.bf16 %v11812_v48 }
 0x3b5   : > { %v12361_v51 = vpop.permute.xlu0 %1904  ;;  %v2811_v45 = vpack.c.bf16 %v2747_v24, %v2747_v24  ;;  %v2812_v7 = vpack.c.bf16 %v2748_v4, %v2748_v4  ;;  %v4277_v24 = vunpack.c.l.b16 %v2807_v6  ;;  %v4289_v17 = vpack.c.b16 %v4280_v8, %v4279_v58 }
 0x3b6   : > { %v2805_v54 = vpack.c.bf16 %v2741_v35, %v2741_v35  ;;  %v2806_v2 = vpack.c.bf16 %v2742_v29, %v2742_v29  ;;  %v2146_v60 = vsel %vm2134_vm0, %v11968_v34, %v12118_v18  ;;  %v1479_v49 = vpack.c.bf16 %v10580_v31, %v10580_v31  ;;  %v10403_v34 = vld [vmem:[#allocation6 + $0x18] sm:$0xff]  }
 0x3b7   : > { %v4281_v12 = vunpack.c.l.b16 %v2811_v45  ;;  %v4282_v36 = vunpack.c.l.b16 %v2812_v7  ;;  %v2239_v45 = vsel %vm2231_vm1, %v2146_v60, %v12204_v61  ;;  %v12386_v7 = vpack.c.b16 %v1635_v28, %v1634_v62 }
 0x3b8   : > { %v4288_v40 = vpack.c.b16 %v4278_v5, %v4277_v24  ;;  %v1478_v48 = vpack.c.bf16 %v10575_v23, %v10575_v23  ;;  %v2304_v18 = vsel %vm2296_vm2, %v2239_v45, %v12142_v38  ;;  %v1607_v61 = vunpack.c.l.b16 %v1479_v49 }
 0x3b9   : > { %v4290_v59 = vpack.c.b16 %v4282_v36, %v4281_v12  ;;  %v4275_v12 = vunpack.c.l.b16 %v2805_v54  ;;  %v4276_v36 = vunpack.c.l.b16 %v2806_v2  ;;  %v2369_v29 = vsel %vm2361_vm3, %v2304_v18, %v12228_v53 }
 0x3ba   : > { %1902 = vrot.lane.b32.xlu1 %v12108_v42, %s11386_s27  ;;  %2006 = vrot.lane.b32.xlu2 %v12120_v11, %s11388_s13  ;;  %v10790_v58 = vunpack.i.l.bf16 %v11922_v19  ;;  %v10795_v6 = vunpack.i.l.bf16 %v11932_v22  ;;  %v12407_v31 = vunpack.c.l.bf16 %v10403_v34  ;;  %v12409_v62 = vunpack.c.h.bf16 %v10403_v34 }
 0x3bb   : > { %4299 = vmatpush.bf16.msra.mxu3 %v4290_v59  ;;  %1896 = vrot.lane.b32.xlu0 %v12363_v20, %s11386_s27  ;;  %v4287_v38 = vpack.c.b16 %v4276_v36, %v4275_v12  ;;  %v1606_v53 = vunpack.c.l.b16 %v1478_v48 }
 0x3bc   : > { %v12374_v44 = vpop.permute.xlu2 %1906  ;;  %v12376_v15 = vpop.permute.xlu1 %1844  ;;  %16023 = vst [vmem:[#allocation94_spill] sm:$0xff] %v12407_v31  ;;  %v1504_v54 = vpack.c.bf16 %v10790_v58, %v10790_v58  ;;  %v1505_v2 = vpack.c.bf16 %v10795_v6, %v10795_v6 }
 0x3bd   : > { %v12378_v4 = vpop.permute.xlu0 %1944  ;;  %16024 = vst [vmem:[#allocation95_spill] sm:$0xff] %v12409_v62  ;;  %v12413_v5 = vpack.c.b16 %v1607_v61, %v1606_v53 }
 0x3be   : > { %v1633_v12 = vunpack.c.l.b16 %v1505_v2 }
 0x3bf   : > { %4300 = vmatpush.bf16.msra.mxu3 %v4289_v17 }
 0x3c2   : > { %1966 = vrot.lane.b32.xlu1 %v12108_v42, %s11387_s2  ;;  %2070 = vrot.lane.b32.xlu2 %v12120_v11, %s11389_s16 }
 0x3c3   : > { %4301 = vmatpush.bf16.msra.mxu3 %v4288_v40  ;;  %1858 = vrot.lane.b32.xlu0 %v12386_v7, %s11385_s5  ;;  %v1632_v40 = vunpack.c.l.b16 %v1504_v54 }
 0x3c4   : > { %v12398_v8 = vpop.permute.xlu2 %1946  ;;  %v1949_v9 = vpop.permute.xlu1 %1948 }
 0x3c5   : > { %v2434_v21 = vsel %vm2426_vm4, %v2369_v29, %v1949_v9  ;;  %v12403_v59 = vpop.permute.xlu0 %1774  ;;  %v12429_v61 = vpack.c.b16 %v1633_v12, %v1632_v40 }
 0x3c6   : > { %v2499_v35 = vsel %vm2491_vm5, %v2434_v21, %v12181_v0 }
 0x3c7   : > { %v2567_v28 = vsel %vm2556_vm6, %v2499_v35, %v12353_v14  ;;  %4302 = vmatpush.bf16.msra.mxu3 %v4287_v38 }
 0x3c8   : > { %v2659_v24 = vunpack.c.l.bf16 %v2567_v28  ;;  %v2660_v17 = vunpack.c.h.bf16 %v2567_v28  ;;  %v10780_v28 = vunpack.i.l.bf16 %v11902_v43 }
 0x3ca   : > { %2030 = vrot.lane.b32.xlu1 %v12108_v42, %s11388_s13  ;;  %1706 = vrot.lane.b32.xlu2 %v12196_v52, %s11384_s7  ;;  %v2739_v0 = vmul.f32 %v12407_v31, %v2659_v24  ;;  %v2740_v23 = vmul.f32 %v12409_v62, %v2660_v17  ;;  %v10785_v24 = vunpack.i.l.bf16 %v11912_v47  ;;  %v1502_v54 = vpack.c.bf16 %v10780_v28, %v10780_v28  ;;  %v16036_v62 = vld [vmem:[#allocation77_spill] sm:$0xff] }
 0x3cb   : > { %1766 = vrot.lane.b32.xlu0 %v12413_v5, %s11383_s4 }
 0x3cc   : > { %v12423_v14 = vpop.permute.xlu2 %1776  ;;  %v12425_v60 = vpop.permute.xlu1 %1778  ;;  %v2803_v49 = vpack.c.bf16 %v2739_v0, %v2739_v0  ;;  %v2804_v45 = vpack.c.bf16 %v2740_v23, %v2740_v23  ;;  %v1503_v2 = vpack.c.bf16 %v10785_v24, %v10785_v24  ;;  %v2143_v0 = vsel %vm2134_vm0, %v12018_v30, %v12252_v13 }
 0x3cd   : > { %v12427_v36 = vpop.permute.xlu0 %1814  ;;  %v2237_v12 = vsel %vm2231_vm1, %v2143_v0, %v12250_v3 }
 0x3ce   : > { %v4273_v48 = vunpack.c.l.b16 %v2803_v49  ;;  %v4274_v18 = vunpack.c.l.b16 %v2804_v45  ;;  %v1630_v45 = vunpack.c.l.b16 %v1502_v54  ;;  %v1631_v40 = vunpack.c.l.b16 %v1503_v2 }
 0x3d0   : > { %v4286_v34 = vpack.c.b16 %v4274_v18, %v4273_v48  ;;  %v12485_v30 = vpack.c.b16 %v1631_v40, %v1630_v45 }
 0x3d2   : > { %4303 = vmatpush.bf16.msra.mxu3 %v4286_v34  ;;  %2094 = vrot.lane.b32.xlu1 %v12108_v42, %s11389_s16  ;;  %16025 = vst [vmem:[#allocation96_spill] sm:$0xff] %v12485_v30  ;;  %v10402_v34 = vld [vmem:[#allocation6 + $0x10] sm:$0xff]  }
 0x3d3   : > { %2028 = vrot.lane.b32.xlu2 %v12144_v55, %s11388_s13  ;;  %1728 = vrot.lane.b32.xlu0 %v12429_v61, %s11384_s7  ;;  %v12504_v2 = vunpack.c.h.bf16 %v10402_v34 }
 0x3d4   : > { %v1819_v29 = vpop.permute.xlu1 %1818  ;;  %v12437_v9 = vpop.permute.xlu2 %1816 }
 0x3d5   : > { %v12439_v58 = vpop.permute.xlu0 %2096  ;;  %v2302_v13 = vsel %vm2296_vm2, %v2237_v12, %v1819_v29  ;;  %16028 = vst [vmem:[#allocation99_spill] sm:$0xff] %v12504_v2 }
 0x3d6   : > { %v2367_v18 = vsel %vm2361_vm3, %v2302_v13, %v12208_v37  ;;  %v12502_v37 = vunpack.c.l.bf16 %v10402_v34 }
 0x3d7   : > { %v2432_v3 = vsel %vm2426_vm4, %v2367_v18, %v12398_v8 }
 0x3d8   : > { %16027 = vst [vmem:[#allocation98_spill] sm:$0xff] %v12502_v37 }
 0x3da   : > { %1964 = vrot.lane.b32.xlu1 %v12144_v55, %s11387_s2 }
 0x3db   : > { %2092 = vrot.lane.b32.xlu2 %v12144_v55, %s11389_s16  ;;  %2088 = vrot.lane.b32.xlu0 %v12363_v20, %s11389_s16 }
 0x3dc   : > { %v12447_v6 = vpop.permute.xlu1 %2100  ;;  %v12449_v21 = vpop.permute.xlu2 %2098 }
 0x3dd   : > { %v12451_v38 = vpop.permute.xlu0 %1708 }
 0x3e2   : > { %1732 = vrot.lane.b32.xlu1 %v12336_v26, %s11384_s7 }
 0x3e3   : > { %1704 = vrot.lane.b32.xlu2 %v12363_v20, %s11384_s7  ;;  %2050 = vrot.lane.b32.xlu0 %v12386_v7, %s11388_s13 }
 0x3e4   : > { %v12459_v35 = vpop.permute.xlu1 %1688  ;;  %v12461_v53 = vpop.permute.xlu2 %1686 }
 0x3e5   : > { %v12465_v17 = vpop.permute.xlu0 %1772 }
 0x3ea   : > { %1796 = vrot.lane.b32.xlu1 %v12336_v26, %s11383_s4 }
 0x3eb   : > { %1768 = vrot.lane.b32.xlu2 %v12363_v20, %s11383_s4  ;;  %2114 = vrot.lane.b32.xlu0 %v12386_v7, %s11389_s16 }
 0x3ec   : > { %v12476_v23 = vpop.permute.xlu1 %1970  ;;  %v12478_v49 = vpop.permute.xlu2 %1968 }
 0x3ed   : > { %v12482_v48 = vpop.permute.xlu0 %1836 }
 0x3f2   : > { %1860 = vrot.lane.b32.xlu1 %v12336_v26, %s11385_s5 }
 0x3f3   : > { %1730 = vrot.lane.b32.xlu2 %v12386_v7, %s11384_s7  ;;  %1726 = vrot.lane.b32.xlu0 %v12485_v30, %s11384_s7 }
 0x3f4   : > { %v2011_v28 = vpop.permute.xlu1 %2010  ;;  %v12497_v29 = vpop.permute.xlu2 %2008 }
 0x3f5   : > { %v2497_v24 = vsel %vm2491_vm5, %v2432_v3, %v2011_v28  ;;  %v12500_v54 = vpop.permute.xlu0 %1900  ;;  %v16029_v3 = vld [vmem:[#allocation70_spill] sm:$0xff] }
 0x3f6   : > { %16026 = vst [vmem:[#allocation97_spill] sm:$0xff] %v12500_v54  ;;  %v2564_v0 = vsel %vm2556_vm6, %v2497_v24, %v12313_v46  ;;  %v10813_v28 = vunpack.i.h.bf16 %v16029_v3  ;;  %v16030_v24 = vld [vmem:[#allocation72_spill] sm:$0xff] }
 0x3f7   : > { %v2657_v45 = vunpack.c.l.bf16 %v2564_v0  ;;  %v2658_v40 = vunpack.c.h.bf16 %v2564_v0  ;;  %v10818_v0 = vunpack.i.h.bf16 %v16030_v24  ;;  %v16039_v54 = vld [vmem:[#allocation52_spill] sm:$0xff] }
 0x3f9   : > { %v2737_v12 = vmul.f32 %v12502_v37, %v2657_v45  ;;  %v2738_v8 = vmul.f32 %v12504_v2, %v2658_v40  ;;  %v1524_v2 = vpack.c.bf16 %v10813_v28, %v10813_v28  ;;  %v1525_v37 = vpack.c.bf16 %v10818_v0, %v10818_v0  ;;  %v16034_v0 = vld [vmem:[#allocation87_spill] sm:$0xff] }
 0x3fa   : > { %1924 = vrot.lane.b32.xlu1 %v12336_v26, %s11386_s27 }
 0x3fb   : > { %2090 = vrot.lane.b32.xlu2 %v12196_v52, %s11389_s16  ;;  %1790 = vrot.lane.b32.xlu0 %v12485_v30, %s11383_s4  ;;  %v2801_v13 = vpack.c.bf16 %v2737_v12, %v2737_v12  ;;  %v2802_v18 = vpack.c.bf16 %v2738_v8, %v2738_v8  ;;  %v16042_v30 = vld [vmem:[#allocation86_spill] sm:$0xff] }
 0x3fc   : > { %v12516_v34 = vpop.permute.xlu1 %1840  ;;  %v12518_v46 = vpop.permute.xlu2 %1838 }
 0x3fd   : > { %v12522_v45 = vpop.permute.xlu0 %1770  ;;  %v4271_v40 = vunpack.c.l.b16 %v2801_v13  ;;  %v4272_v47 = vunpack.c.l.b16 %v2802_v18  ;;  %v1652_v13 = vunpack.c.l.b16 %v1524_v2  ;;  %v1653_v18 = vunpack.c.l.b16 %v1525_v37  ;;  %v16033_v37 = vld [vmem:[#allocation74_spill] sm:$0xff] }
 0x3fe   : > { %v2182_v2 = vsel %vm2134_vm0, %v16033_v37, %v12355_v57  ;;  %v2137_v57 = vsel %vm2134_vm0, %v12120_v11, %v12461_v53 }
 0x3ff   : > { %v4285_v43 = vpack.c.b16 %v4272_v47, %v4271_v40  ;;  %v12534_v3 = vpack.c.b16 %v1653_v18, %v1652_v13  ;;  %v2263_v40 = vsel %vm2231_vm1, %v2182_v2, %v16034_v0  ;;  %v8927_v13 = vld [vmem:[%s11705_s19 + $0xa8] sm:$0xf]  ;;  %v10087_v18 = vld [vmem:[%s11705_s19 + $0xb0] sm:$0xf0] }
 0x400   : > { %v2328_v22 = vsel %vm2296_vm2, %v2263_v40, %v12376_v15  ;;  %v8928_v19 = vor.u32 %v10087_v18, %v8927_v13  ;;  %v16035_v0 = vld [vmem:[#allocation90_spill] sm:$0xff]  ;;  %v16037_v40 = vld [vmem:[#allocation88_spill] sm:$0xff] }
 0x401   : > { %4304 = vmatpush.bf16.msra.mxu3 %v4285_v43  ;;  %v2179_v15 = vsel %vm2134_vm0, %v16036_v62, %v16035_v0  ;;  %v2393_v13 = vsel %vm2361_vm3, %v2328_v22, %v16037_v40  ;;  %v10770_v62 = vunpack.i.l.bf16 %v16039_v54  ;;  %v2140_v22 = vsel %vm2134_vm0, %v12044_v10, %v12459_v35  ;;  %v16041_v40 = vld [vmem:[#allocation85_spill] sm:$0xff] }
 0x402   : > { %1832 = vrot.lane.b32.xlu1 %v12363_v20, %s11385_s5  ;;  %1103 = vmatpush.bf16.msra.mxu0 %v8928_v19  ;;  %v2261_v11 = vsel %vm2231_vm1, %v2179_v15, %v12425_v60  ;;  %v8903_v15 = vld [vmem:[%s11705_s19 + $0x78] sm:$0xf] }
 0x403   : > { %2052 = vrot.lane.b32.xlu2 %v12336_v26, %s11388_s13  ;;  %2112 = vrot.lane.b32.xlu0 %v12429_v61, %s11389_s16  ;;  %v2326_v60 = vsel %vm2296_vm2, %v2261_v11, %v16042_v30  ;;  %v12595_v35 = vpack.c.bf16 %v10770_v62, %v10770_v62 }
 0x404   : > { %v12530_v12 = vpop.permute.xlu1 %1880  ;;  %v1879_v8 = vpop.permute.xlu2 %1878 }
 0x405   : > { %v12532_v47 = vpop.permute.xlu0 %1834 }
 0x406   : > { %16031 = vst [vmem:[#allocation70_spill] sm:$0xff] %v12532_v47  ;;  %v10084_v47 = vld [vmem:[%s11705_s19 + $0x98] sm:$0xf0] }
 0x40a   : > { %1794 = vrot.lane.b32.xlu1 %v12386_v7, %s11383_s4 }
 0x40b   : > { %1960 = vrot.lane.b32.xlu2 %v12363_v20, %s11387_s2  ;;  %1748 = vrot.lane.b32.xlu0 %v12534_v3, %s11384_s7 }
 0x40c   : > { %v12542_v43 = vpop.permute.xlu1 %1710  ;;  %v1943_v28 = vpop.permute.xlu2 %1942 }
 0x40d   : > { %v12544_v24 = vpop.permute.xlu0 %1898 }
 0x40e   : > { %16032 = vst [vmem:[#allocation72_spill] sm:$0xff] %v12544_v24  ;;  %v8915_v24 = vld [vmem:[%s11705_s19 + $0x90] sm:$0xf] }
 0x40f   : > { %v8916_v53 = vor.u32 %v10084_v47, %v8915_v24  ;;  %v16043_v47 = vld [vmem:[#allocation91_spill] sm:$0xff] }
 0x410   : > { %v2235_v24 = vsel %vm2231_vm1, %v2140_v22, %v16043_v47 }
 0x411   : > { %1104 = vmatpush.bf16.msra.mxu0 %v8916_v53  ;;  %v2300_v22 = vsel %vm2296_vm2, %v2235_v24, %v12437_v9  ;;  %v1628_v9 = vunpack.c.l.b16 %v12595_v35 }
 0x412   : > { %1702 = vrot.lane.b32.xlu1 %v12413_v5, %s11384_s7 }
 0x413   : > { %1922 = vrot.lane.b32.xlu2 %v12386_v7, %s11386_s27  ;;  %1812 = vrot.lane.b32.xlu0 %v12534_v3, %s11383_s4 }
 0x414   : > { %v1751_v37 = vpop.permute.xlu1 %1750  ;;  %v2007_v2 = vpop.permute.xlu2 %2006 }
 0x415   : > { %v2233_v18 = vsel %vm2231_vm1, %v2137_v57, %v1751_v37  ;;  %v12570_v31 = vpop.permute.xlu0 %1962  ;;  %v16040_v57 = vld [vmem:[#allocation54_spill] sm:$0xff] }
 0x416   : > { %16038 = vst [vmem:[#allocation74_spill] sm:$0xff] %v12570_v31  ;;  %v2298_v19 = vsel %vm2296_vm2, %v2233_v18, %v12427_v36  ;;  %v10775_v37 = vunpack.i.l.bf16 %v16040_v57  ;;  %v2458_v31 = vsel %vm2426_vm4, %v2393_v13, %v16041_v40  ;;  %v10081_v36 = vld [vmem:[%s11705_s19 + $0x80] sm:$0xf0] }
 0x417   : > { %v2363_v0 = vsel %vm2361_vm3, %v2298_v19, %v1879_v8  ;;  %v8904_v10 = vor.u32 %v10081_v36, %v8903_v15  ;;  %v2523_v8 = vsel %vm2491_vm5, %v2458_v31, %v12308_v50  ;;  %v16044_v13 = vld [vmem:[#allocation89_spill] sm:$0xff]  ;;  %v2391_v19 = vsel %vm2361_vm3, %v2326_v60, %v12374_v44 }
 0x418   : > { %v2428_v18 = vsel %vm2426_vm4, %v2363_v0, %v1943_v28  ;;  %v1501_v30 = vpack.c.bf16 %v10775_v37, %v10775_v37  ;;  %v2176_v28 = vsel %vm2134_vm0, %v12032_v39, %v16044_v13  ;;  %v2603_v11 = vsel %vm2556_vm6, %v2523_v8, %v12447_v6  ;;  %v8891_v6 = vld [vmem:[%s11705_s19 + $0x60] sm:$0xf]  ;;  %v10078_v37 = vld [vmem:[%s11705_s19 + $0x68] sm:$0xf0]  ;;  %v10075_v8 = vld [vmem:[%s11705_s19 + $0x50] sm:$0xf0] }
 0x419   : > { %1105 = vmatpush.bf16.msra.mxu0 %v8904_v10  ;;  %v2259_v31 = vsel %vm2231_vm1, %v2176_v28, %v12423_v14  ;;  %v2456_v62 = vsel %vm2426_vm4, %v2391_v19, %v12476_v23  ;;  %v2493_v39 = vsel %vm2491_vm5, %v2428_v18, %v2007_v2  ;;  %v2365_v14 = vsel %vm2361_vm3, %v2300_v22, %v12530_v12  ;;  %v10370_v23 = vld [vmem:[#allocation6] sm:$0xff]   ;;  %v10401_v12 = vld [vmem:[#allocation6 + $0x8] sm:$0xff]  }
 0x41a   : > { %2116 = vrot.lane.b32.xlu1 %v12336_v26, %s11389_s16  ;;  %v2324_v44 = vsel %vm2296_vm2, %v2259_v31, %v12516_v34  ;;  %v8892_v60 = vor.u32 %v10078_v37, %v8891_v6  ;;  %v2683_v15 = vunpack.c.l.bf16 %v2603_v11  ;;  %v2684_v2 = vunpack.c.h.bf16 %v2603_v11  ;;  %v8879_v10 = vld [vmem:[%s11705_s19 + $0x48] sm:$0xf]  ;;  %v8867_v37 = vld [vmem:[%s11705_s19 + $0x30] sm:$0xf] }
 0x41b   : > { %1830 = vrot.lane.b32.xlu2 %v12413_v5, %s11385_s5  ;;  %1876 = vrot.lane.b32.xlu0 %v12534_v3, %s11385_s5  ;;  %v2521_v36 = vsel %vm2491_vm5, %v2456_v62, %v12260_v16  ;;  %v2389_v47 = vsel %vm2361_vm3, %v2324_v44, %v12361_v51  ;;  %v2430_v34 = vsel %vm2426_vm4, %v2365_v14, %v12378_v4  ;;  %v12633_v18 = vunpack.c.l.bf16 %v10370_v23  ;;  %v10072_v44 = vld [vmem:[%s11705_s19 + $0x38] sm:$0xf0] }
 0x41c   : > { %v2033_v53 = vpop.permute.xlu1 %2032  ;;  %v2071_v50 = vpop.permute.xlu2 %2070  ;;  %v1629_v13 = vunpack.c.l.b16 %v1501_v30  ;;  %v12639_v35 = vunpack.c.h.bf16 %v10370_v23  ;;  %v8880_v16 = vor.u32 %v10075_v8, %v8879_v10  ;;  %v10803_v11 = vunpack.i.h.bf16 %v11942_v27 }
 0x41d   : > { %v12617_v0 = vpop.permute.xlu0 %2026  ;;  %v2558_v40 = vsel %vm2556_vm6, %v2493_v39, %v2071_v50  ;;  %1106 = vmatpush.bf16.msra.mxu0 %v8892_v60  ;;  %16045 = vst [vmem:[#allocation87_spill] sm:$0xff] %v12633_v18  ;;  %v10808_v51 = vunpack.i.h.bf16 %v11954_v33  ;;  %v2600_v4 = vsel %vm2556_vm6, %v2521_v36, %v12449_v21  ;;  %v2763_v30 = vmul.f32 %v12327_v56, %v2683_v15 }
 0x41e   : > { %v2653_v24 = vunpack.c.l.bf16 %v2558_v40  ;;  %v2654_v28 = vunpack.c.h.bf16 %v2558_v40  ;;  %16046 = vst [vmem:[#allocation90_spill] sm:$0xff] %v12639_v35  ;;  %v2454_v19 = vsel %vm2426_vm4, %v2389_v47, %v12478_v49  ;;  %v2495_v27 = vsel %vm2491_vm5, %v2430_v34, %v12497_v29 }
 0x41f   : > { %v12656_v21 = vunpack.c.l.bf16 %v10401_v12  ;;  %v12658_v31 = vunpack.c.h.bf16 %v10401_v12  ;;  %v2519_v62 = vsel %vm2491_vm5, %v2454_v19, %v2033_v53  ;;  %v2764_v49 = vmul.f32 %v12329_v25, %v2684_v2 }
 0x420   : > { %v2733_v6 = vmul.f32 %v12633_v18, %v2653_v24  ;;  %v2734_v40 = vmul.f32 %v12639_v35, %v2654_v28  ;;  %v12669_v23 = vpack.c.b16 %v1629_v13, %v1628_v9  ;;  %v2681_v60 = vunpack.c.l.bf16 %v2600_v4  ;;  %v10069_v28 = vld [vmem:[%s11705_s19 + $0x20] sm:$0xf0] }
 0x421   : > { %1107 = vmatpush.bf16.msra.mxu0 %v8880_v16  ;;  %v2682_v53 = vunpack.c.h.bf16 %v2600_v4  ;;  %v8868_v15 = vor.u32 %v10072_v44, %v8867_v37  ;;  %v1522_v36 = vpack.c.bf16 %v10803_v11, %v10803_v11  ;;  %v2597_v47 = vsel %vm2556_vm6, %v2519_v62, %v12439_v58  ;;  %v8855_v16 = vld [vmem:[%s11705_s19 + $0x18] sm:$0xf]  ;;  %v16048_v62 = vld [vmem:[#allocation50_spill] sm:$0xff] }
 0x422   : > { %2024 = vrot.lane.b32.xlu1 %v12363_v20, %s11388_s13  ;;  %v1523_v24 = vpack.c.bf16 %v10808_v51, %v10808_v51  ;;  %v2797_v12 = vpack.c.bf16 %v2733_v6, %v2733_v6  ;;  %v2827_v10 = vpack.c.bf16 %v2763_v30, %v2763_v30  ;;  %v2828_v8 = vpack.c.bf16 %v2764_v49, %v2764_v49 }
 0x423   : > { %1792 = vrot.lane.b32.xlu2 %v12429_v61, %s11383_s4  ;;  %1940 = vrot.lane.b32.xlu0 %v12534_v3, %s11386_s27  ;;  %v2798_v11 = vpack.c.bf16 %v2734_v40, %v2734_v40  ;;  %v8856_v4 = vor.u32 %v10069_v28, %v8855_v16  ;;  %v2679_v19 = vunpack.c.l.bf16 %v2597_v47  ;;  %v2680_v58 = vunpack.c.h.bf16 %v2597_v47 }
 0x424   : > { %v2073_v50 = vpop.permute.xlu1 %2072  ;;  %v12654_v33 = vpop.permute.xlu2 %1706  ;;  %v2761_v51 = vmul.f32 %v12304_v63, %v2681_v60  ;;  %v2762_v30 = vmul.f32 %v12310_v1, %v2682_v53  ;;  %v1650_v44 = vunpack.c.l.b16 %v1522_v36  ;;  %v4350_v47 = vunpack.c.l.b16 %v2828_v8  ;;  %v8843_v60 = vld [vmem:[%s11705_s19] sm:$0xf] }
 0x425   : > { %v2561_v22 = vsel %vm2556_vm6, %v2495_v27, %v2073_v50  ;;  %v12662_v39 = vpop.permute.xlu0 %1988  ;;  %1108 = vmatpush.bf16.msra.mxu0 %v8868_v15  ;;  %v16047_v50 = vld [vmem:[#allocation48_spill] sm:$0xff]  ;;  %v4349_v15 = vunpack.c.l.b16 %v2827_v10  ;;  %v4268_v16 = vunpack.c.l.b16 %v2798_v11 }
 0x426   : > { %v2655_v29 = vunpack.c.l.bf16 %v2561_v22  ;;  %v2656_v14 = vunpack.c.h.bf16 %v2561_v22  ;;  %v10760_v27 = vunpack.i.l.bf16 %v16047_v50  ;;  %v10765_v22 = vunpack.i.l.bf16 %v16048_v62  ;;  %v16049_v62 = vld [vmem:[#allocation92_spill] sm:$0xff] }
 0x427   : > { %v2825_v35 = vpack.c.bf16 %v2761_v51, %v2761_v51  ;;  %v2826_v18 = vpack.c.bf16 %v2762_v30, %v2762_v30  ;;  %v4358_v8 = vpack.c.b16 %v4350_v47, %v4349_v15  ;;  %v16051_v51 = vld [vmem:[#allocation33_spill] sm:$0xff]  ;;  %v16052_v47 = vld [vmem:[#allocation44_spill] sm:$0xff] }
 0x428   : > { %v2735_v34 = vmul.f32 %v12656_v21, %v2655_v29  ;;  %v2736_v2 = vmul.f32 %v12658_v31, %v2656_v14  ;;  %v1651_v29 = vunpack.c.l.b16 %v1523_v24  ;;  %v1498_v24 = vpack.c.bf16 %v10760_v27, %v10760_v27 }
 0x429   : > { %1109 = vmatpush.bf16.msra.mxu0 %v8856_v4  ;;  %v1499_v50 = vpack.c.bf16 %v10765_v22, %v10765_v22  ;;  %v4348_v11 = vunpack.c.l.b16 %v2826_v18  ;;  %v2173_v18 = vsel %vm2134_vm0, %v12108_v42, %v12542_v43 }
 0x42a   : > { %1986 = vrot.lane.b32.xlu1 %v12386_v7, %s11387_s2  ;;  %v2799_v9 = vpack.c.bf16 %v2735_v34, %v2735_v34  ;;  %v2800_v13 = vpack.c.bf16 %v2736_v2, %v2736_v2  ;;  %v10066_v34 = vld [vmem:[%s11705_s19 + $0x8] sm:$0xf0]  ;;  %v4267_v2 = vunpack.c.l.b16 %v2797_v12  ;;  %v12697_v57 = vpack.c.b16 %v1651_v29, %v1650_v44 }
 0x42b   : > { %1856 = vrot.lane.b32.xlu2 %v12429_v61, %s11385_s5  ;;  %1980 = vrot.lane.b32.xlu0 %v12669_v23, %s11387_s2  ;;  %v8844_v28 = vor.u32 %v10066_v34, %v8843_v60  ;;  %v4347_v12 = vunpack.c.l.b16 %v2825_v35  ;;  %v1626_v30 = vunpack.c.l.b16 %v1498_v24  ;;  %v1627_v27 = vunpack.c.l.b16 %v1499_v50  ;;  %v16053_v34 = vld [vmem:[#allocation46_spill] sm:$0xff] }
 0x42c   : > { %v12687_v6 = vpop.permute.xlu1 %1902  ;;  %v4269_v49 = vunpack.c.l.b16 %v2799_v9  ;;  %v4270_v37 = vunpack.c.l.b16 %v2800_v13  ;;  %v2759_v9 = vmul.f32 %v16049_v62, %v2679_v19  ;;  %v16050_v13 = vld [vmem:[#allocation93_spill] sm:$0xff]  ;;  %v4283_v10 = vpack.c.b16 %v4268_v16, %v4267_v2 }
 0x42d   : > { %v12689_v14 = vpop.permute.xlu2 %2028  ;;  %v12691_v40 = vpop.permute.xlu0 %1896  ;;  %v2760_v36 = vmul.f32 %v16050_v13, %v2680_v58  ;;  %1110 = vmatpush.bf16.msra.mxu0 %v8844_v28  ;;  %v12708_v15 = vpack.c.b16 %v1627_v27, %v1626_v30  ;;  %v10750_v60 = vunpack.i.l.bf16 %v16052_v47  ;;  %v2257_v42 = vsel %vm2231_vm1, %v2173_v18, %v12403_v59 }
 0x42e   : > { %v4284_v53 = vpack.c.b16 %v4270_v37, %v4269_v49  ;;  %v2823_v4 = vpack.c.bf16 %v2759_v9, %v2759_v9  ;;  %v4357_v37 = vpack.c.b16 %v4348_v11, %v4347_v12  ;;  %v2322_v9 = vsel %vm2296_vm2, %v2257_v42, %v12518_v46 }
 0x42f   : > { %v2824_v19 = vpack.c.bf16 %v2760_v36, %v2760_v36  ;;  %v1496_v43 = vpack.c.bf16 %v10750_v60, %v10750_v60  ;;  %v2387_v36 = vsel %vm2361_vm3, %v2322_v9, %v12687_v6 }
 0x430   : > { %4305 = vmatpush.bf16.msra.mxu3 %v4284_v53  ;;  %1111 = vmatmul.bf16.vlgmr.msra.gmra.mxu0 %v16051_v51  ;;  %v4345_v44 = vunpack.c.l.b16 %v2823_v4  ;;  %v10755_v53 = vunpack.i.l.bf16 %v16053_v34 }
 0x431   : > { %v4346_v29 = vunpack.c.l.b16 %v2824_v19  ;;  %v1624_v46 = vunpack.c.l.b16 %v1496_v43  ;;  %v2167_v19 = vsel %vm2134_vm0, %v12196_v52, %v12654_v33 }
 0x432   : > { %1894 = vrot.lane.b32.xlu1 %v12413_v5, %s11386_s27  ;;  %v1497_v28 = vpack.c.bf16 %v10755_v53, %v10755_v53 }
 0x433   : > { %1920 = vrot.lane.b32.xlu2 %v12429_v61, %s11386_s27  ;;  %1810 = vrot.lane.b32.xlu0 %v12697_v57, %s11383_s4  ;;  %v4356_v35 = vpack.c.b16 %v4346_v29, %v4345_v44  ;;  %v2170_v44 = vsel %vm2134_vm0, %v12144_v55, %v12451_v38  ;;  %v2253_v29 = vsel %vm2231_vm1, %v2167_v19, %v12522_v45  ;;  %v16056_v55 = vld [vmem:[#allocation97_spill] sm:$0xff]  ;;  %v16057_v45 = vld [vmem:[#allocation70_spill] sm:$0xff] }
 0x434   : > { %v1967_v58 = vpop.permute.xlu1 %1966  ;;  %4306 = vmatpush.bf16.msra.mxu3 %v4283_v10  ;;  %v1625_v12 = vunpack.c.l.b16 %v1497_v28  ;;  %v2255_v18 = vsel %vm2231_vm1, %v2170_v44, %v12465_v17  ;;  %v2318_v17 = vsel %vm2296_vm2, %v2253_v29, %v16057_v45  ;;  %v16060_v19 = vld [vmem:[#allocation94_spill] sm:$0xff]  ;;  %v16062_v44 = vld [vmem:[#allocation35_spill] sm:$0xff] }
 0x435   : > { %v2093_v22 = vpop.permute.xlu2 %2092  ;;  %v12706_v49 = vpop.permute.xlu0 %1858  ;;  %v2452_v24 = vsel %vm2426_vm4, %v2387_v36, %v1967_v58  ;;  %v16063_v29 = vld [vmem:[#allocation62_spill] sm:$0xff] }
 0x438   : > { %4367 = vmatpush.bf16.msrb.mxu3 %v4358_v8  ;;  %v16054_v8 = vld [vmem:[#allocation34_spill] sm:$0xff] }
 0x43a   : > { %1958 = vrot.lane.b32.xlu1 %v12413_v5, %s11387_s2 }
 0x43b   : > { %1984 = vrot.lane.b32.xlu2 %v12429_v61, %s11387_s2  ;;  %1850 = vrot.lane.b32.xlu0 %v12708_v15, %s11385_s5 }
 0x43c   : > { %4368 = vmatpush.bf16.msrb.mxu3 %v4357_v37  ;;  %v2031_v50 = vpop.permute.xlu1 %2030  ;;  %v12750_v37 = vpack.c.b16 %v1625_v12, %v1624_v46  ;;  %v16059_v12 = vld [vmem:[#allocation74_spill] sm:$0xff] }
 0x43d   : > { %v12721_v2 = vpop.permute.xlu2 %1704  ;;  %v12723_v16 = vpop.permute.xlu0 %1766  ;;  %v2517_v59 = vsel %vm2491_vm5, %v2452_v24, %v2031_v50  ;;  %v16055_v50 = vld [vmem:[#allocation96_spill] sm:$0xff] }
 0x440   : > { %4369 = vmatpush.bf16.msrb.mxu3 %v4356_v35  ;;  %1116 = vmatmul.bf16.gmra.mxu0 %v16054_v8  ;;  %v2320_v35 = vsel %vm2296_vm2, %v2255_v18, %v12482_v48  ;;  %v10793_v18 = vunpack.i.h.bf16 %v16063_v29 }
 0x441   : > { %v2385_v38 = vsel %vm2361_vm3, %v2320_v35, %v16056_v55 }
 0x442   : > { %2022 = vrot.lane.b32.xlu1 %v12413_v5, %s11388_s13 }
 0x443   : > { %2048 = vrot.lane.b32.xlu2 %v12429_v61, %s11388_s13  ;;  %2132 = vrot.lane.b32.xlu0 %v12534_v3, %s11389_s16 }
 0x444   : > { %v2095_v10 = vpop.permute.xlu1 %2094 }
 0x445   : > { %v2594_v6 = vsel %vm2556_vm6, %v2517_v59, %v2095_v10  ;;  %v12741_v11 = vpop.permute.xlu2 %1768  ;;  %v12743_v4 = vpop.permute.xlu0 %1728  ;;  %v16058_v59 = vld [vmem:[#allocation72_spill] sm:$0xff] }
 0x446   : > { %v2677_v58 = vunpack.c.l.bf16 %v2594_v6  ;;  %v2678_v51 = vunpack.c.h.bf16 %v2594_v6  ;;  %v2383_v10 = vsel %vm2361_vm3, %v2318_v17, %v16058_v59 }
 0x447   : > { %v2448_v6 = vsel %vm2426_vm4, %v2383_v10, %v16059_v12  ;;  %v16066_v10 = vld [vmem:[#allocation99_spill] sm:$0xff] }
 0x448   : > { %v2757_v30 = vmul.f32 %v12357_v32, %v2677_v58  ;;  %v2758_v27 = vmul.f32 %v12359_v41, %v2678_v51  ;;  %v16061_v51 = vld [vmem:[#allocation95_spill] sm:$0xff]  ;;  %v2513_v35 = vsel %vm2491_vm5, %v2448_v6, %v12617_v0 }
 0x44a   : > { %2086 = vrot.lane.b32.xlu1 %v12413_v5, %s11389_s16  ;;  %v2821_v52 = vpack.c.bf16 %v2757_v30, %v2757_v30  ;;  %v2822_v33 = vpack.c.bf16 %v2758_v27, %v2758_v27 }
 0x44b   : > { %1918 = vrot.lane.b32.xlu2 %v16055_v50, %s11386_s27  ;;  %1720 = vrot.lane.b32.xlu0 %v12750_v37, %s11384_s7 }
 0x44c   : > { %v1965_v60 = vpop.permute.xlu1 %1964  ;;  %v4343_v53 = vunpack.c.l.b16 %v2821_v52  ;;  %v4344_v42 = vunpack.c.l.b16 %v2822_v33  ;;  %v16064_v52 = vld [vmem:[#allocation65_spill] sm:$0xff] }
 0x44d   : > { %v2450_v43 = vsel %vm2426_vm4, %v2385_v38, %v1965_v60  ;;  %v12772_v28 = vpop.permute.xlu2 %1730  ;;  %v12774_v48 = vpop.permute.xlu0 %2088  ;;  %v10798_v33 = vunpack.i.h.bf16 %v16064_v52 }
 0x44e   : > { %v2515_v9 = vsel %vm2491_vm5, %v2450_v43, %v12689_v14  ;;  %v4355_v36 = vpack.c.b16 %v4344_v42, %v4343_v53 }
 0x44f   : > { %v2591_v24 = vsel %vm2556_vm6, %v2515_v9, %v2093_v22  ;;  %v1520_v9 = vpack.c.bf16 %v10793_v18, %v10793_v18 }
 0x450   : > { %4370 = vmatpush.bf16.msrb.mxu3 %v4355_v36  ;;  %v2675_v8 = vunpack.c.l.bf16 %v2591_v24  ;;  %v2676_v46 = vunpack.c.h.bf16 %v2591_v24  ;;  %1121 = vmatmul.bf16.gmra.mxu0 %v16062_v44  ;;  %v1521_v36 = vpack.c.bf16 %v10798_v33, %v10798_v33  ;;  %v16065_v24 = vld [vmem:[#allocation98_spill] sm:$0xff]  ;;  %v16067_v33 = vld [vmem:[#allocation36_spill] sm:$0xff] }
 0x451   : > { %v1648_v6 = vunpack.c.l.b16 %v1520_v9 }
 0x452   : > { %1854 = vrot.lane.b32.xlu1 %v16055_v50, %s11385_s5  ;;  %v2755_v58 = vmul.f32 %v16060_v19, %v2675_v8  ;;  %v2756_v30 = vmul.f32 %v16061_v51, %v2676_v46 }
 0x453   : > { %1982 = vrot.lane.b32.xlu2 %v16055_v50, %s11387_s2  ;;  %2002 = vrot.lane.b32.xlu0 %v12697_v57, %s11387_s2 }
 0x454   : > { %v12791_v14 = vpop.permute.xlu1 %1732  ;;  %v2819_v22 = vpack.c.bf16 %v2755_v58, %v2755_v58  ;;  %v2820_v27 = vpack.c.bf16 %v2756_v30, %v2756_v30  ;;  %v1649_v58 = vunpack.c.l.b16 %v1521_v36  ;;  %v16070_v36 = vld [vmem:[#allocation40_spill] sm:$0xff] }
 0x455   : > { %v2091_v55 = vpop.permute.xlu2 %2090  ;;  %v12799_v45 = vpop.permute.xlu0 %2050 }
 0x456   : > { %v2588_v38 = vsel %vm2556_vm6, %v2513_v35, %v2091_v55  ;;  %v4341_v17 = vunpack.c.l.b16 %v2819_v22  ;;  %v4342_v60 = vunpack.c.l.b16 %v2820_v27  ;;  %v12811_v18 = vpack.c.b16 %v1649_v58, %v1648_v6  ;;  %v16068_v35 = vld [vmem:[#allocation56_spill] sm:$0xff] }
 0x457   : > { %v2673_v53 = vunpack.c.l.bf16 %v2588_v38  ;;  %v2674_v42 = vunpack.c.h.bf16 %v2588_v38  ;;  %v10783_v55 = vunpack.i.h.bf16 %v16068_v35  ;;  %v16069_v38 = vld [vmem:[#allocation59_spill] sm:$0xff] }
 0x458   : > { %v4354_v43 = vpack.c.b16 %v4342_v60, %v4341_v17  ;;  %v10788_v17 = vunpack.i.h.bf16 %v16069_v38 }
 0x459   : > { %v2753_v59 = vmul.f32 %v16065_v24, %v2673_v53  ;;  %v2754_v8 = vmul.f32 %v16066_v10, %v2674_v42  ;;  %v1518_v53 = vpack.c.bf16 %v10783_v55, %v10783_v55 }
 0x45a   : > { %1724 = vrot.lane.b32.xlu1 %v12669_v23, %s11384_s7  ;;  %4371 = vmatpush.bf16.msrb.mxu3 %v4354_v43  ;;  %v1519_v42 = vpack.c.bf16 %v10788_v17, %v10788_v17 }
 0x45b   : > { %2046 = vrot.lane.b32.xlu2 %v16055_v50, %s11388_s13  ;;  %2042 = vrot.lane.b32.xlu0 %v12708_v15, %s11388_s13  ;;  %v2817_v0 = vpack.c.bf16 %v2753_v59, %v2753_v59  ;;  %v2818_v46 = vpack.c.bf16 %v2754_v8, %v2754_v8  ;;  %v10740_v59 = vunpack.i.l.bf16 %v16070_v36  ;;  %v16071_v8 = vld [vmem:[#allocation42_spill] sm:$0xff] }
 0x45c   : > { %v1797_v12 = vpop.permute.xlu1 %1796  ;;  %v1647_v6 = vunpack.c.l.b16 %v1519_v42 }
 0x45d   : > { %v2053_v30 = vpop.permute.xlu2 %2052  ;;  %v4339_v22 = vunpack.c.l.b16 %v2817_v0  ;;  %v4340_v27 = vunpack.c.l.b16 %v2818_v46  ;;  %v12809_v29 = vpop.permute.xlu0 %2114  ;;  %v10745_v0 = vunpack.i.l.bf16 %v16071_v8  ;;  %v1646_v46 = vunpack.c.l.b16 %v1518_v53 }
 0x45f   : > { %v4353_v44 = vpack.c.b16 %v4340_v27, %v4339_v22  ;;  %v1494_v22 = vpack.c.bf16 %v10740_v59, %v10740_v59  ;;  %v1495_v27 = vpack.c.bf16 %v10745_v0, %v10745_v0 }
 0x460   : > { %1126 = vmatmul.bf16.gmra.mxu0 %v16067_v33 }
 0x461   : > { %4372 = vmatpush.bf16.msrb.mxu3 %v4353_v44  ;;  %v12836_v44 = vpack.c.b16 %v1647_v6, %v1646_v46  ;;  %v1622_v55 = vunpack.c.l.b16 %v1494_v22  ;;  %v1623_v38 = vunpack.c.l.b16 %v1495_v27  ;;  %v2206_v46 = vsel %vm2134_vm0, %v12336_v26, %v12791_v14 }
 0x462   : > { %1788 = vrot.lane.b32.xlu1 %v12669_v23, %s11383_s4  ;;  %v2279_v6 = vsel %vm2231_vm1, %v2206_v46, %v1797_v12  ;;  %v2164_v14 = vsel %vm2134_vm0, %v12363_v20, %v12721_v2 }
 0x463   : > { %2110 = vrot.lane.b32.xlu2 %v16055_v50, %s11389_s16  ;;  %1872 = vrot.lane.b32.xlu0 %v12811_v18, %s11385_s5  ;;  %v12848_v53 = vpack.c.b16 %v1623_v38, %v1622_v55 }
 0x464   : > { %v1861_v52 = vpop.permute.xlu1 %1860 }
 0x465   : > { %v12822_v60 = vpop.permute.xlu2 %1960  ;;  %v12824_v43 = vpop.permute.xlu0 %1726  ;;  %v2344_v27 = vsel %vm2296_vm2, %v2279_v6, %v1861_v52 }
 0x46a   : > { %1852 = vrot.lane.b32.xlu1 %v12669_v23, %s11385_s5 }
 0x46b   : > { %1722 = vrot.lane.b32.xlu2 %v12708_v15, %s11384_s7  ;;  %1912 = vrot.lane.b32.xlu0 %v12750_v37, %s11386_s27 }
 0x46c   : > { %v1925_v9 = vpop.permute.xlu1 %1924 }
 0x46d   : > { %v12834_v58 = vpop.permute.xlu2 %1922  ;;  %v12844_v33 = vpop.permute.xlu0 %1790  ;;  %v2409_v38 = vsel %vm2361_vm3, %v2344_v27, %v1925_v9  ;;  %v2251_v9 = vsel %vm2231_vm1, %v2164_v14, %v12741_v11 }
 0x46e   : > { %v2474_v26 = vsel %vm2426_vm4, %v2409_v38, %v12662_v39 }
 0x46f   : > { %v2539_v52 = vsel %vm2491_vm5, %v2474_v26, %v2053_v30 }
 0x472   : > { %1916 = vrot.lane.b32.xlu1 %v12669_v23, %s11386_s27 }
 0x473   : > { %2004 = vrot.lane.b32.xlu2 %v12534_v3, %s11387_s2  ;;  %1742 = vrot.lane.b32.xlu0 %v12836_v44, %s11384_s7 }
 0x474   : > { %v1833_v35 = vpop.permute.xlu1 %1832 }
 0x475   : > { %v12846_v17 = vpop.permute.xlu2 %1830  ;;  %v12856_v0 = vpop.permute.xlu0 %2112  ;;  %v2316_v6 = vsel %vm2296_vm2, %v2251_v9, %v1833_v35 }
 0x476   : > { %v2381_v20 = vsel %vm2361_vm3, %v2316_v6, %v12691_v40  ;;  %v2203_v40 = vsel %vm2134_vm0, %v12386_v7, %v12772_v28 }
 0x477   : > { %v2446_v26 = vsel %vm2426_vm4, %v2381_v20, %v12822_v60  ;;  %v2200_v60 = vsel %vm2134_vm0, %v12429_v61, %v12743_v4 }
 0x47a   : > { %1746 = vrot.lane.b32.xlu1 %v12697_v57, %s11384_s7 }
 0x47b   : > { %2044 = vrot.lane.b32.xlu2 %v12669_v23, %s11388_s13  ;;  %1782 = vrot.lane.b32.xlu0 %v12848_v53, %s11383_s4 }
 0x47c   : > { %v1795_v42 = vpop.permute.xlu1 %1794 }
 0x47d   : > { %v1793_v59 = vpop.permute.xlu2 %1792  ;;  %v12872_v10 = vpop.permute.xlu0 %1748 }
 0x482   : > { %1786 = vrot.lane.b32.xlu1 %v12708_v15, %s11383_s4 }
 0x483   : > { %1874 = vrot.lane.b32.xlu2 %v12697_v57, %s11385_s5  ;;  %2064 = vrot.lane.b32.xlu0 %v12811_v18, %s11388_s13 }
 0x484   : > { %v12868_v22 = vpop.permute.xlu1 %1702 }
 0x485   : > { %v1857_v55 = vpop.permute.xlu2 %1856  ;;  %v12894_v2 = vpop.permute.xlu0 %1812 }
 0x48a   : > { %2068 = vrot.lane.b32.xlu1 %v12534_v3, %s11388_s13 }
 0x48b   : > { %1914 = vrot.lane.b32.xlu2 %v12708_v15, %s11386_s27  ;;  %2104 = vrot.lane.b32.xlu0 %v12750_v37, %s11389_s16 }
 0x48c   : > { %v2117_v12 = vpop.permute.xlu1 %2116 }
 0x48d   : > { %v2627_v39 = vsel %vm2556_vm6, %v2539_v52, %v2117_v12  ;;  %v1921_v46 = vpop.permute.xlu2 %1920  ;;  %v12927_v20 = vpop.permute.xlu0 %1876 }
 0x48e   : > { %v2699_v27 = vunpack.c.l.bf16 %v2627_v39  ;;  %v2700_v38 = vunpack.c.h.bf16 %v2627_v39 }
 0x490   : > { %v2779_v24 = vmul.f32 %v12327_v56, %v2699_v27  ;;  %v2780_v51 = vmul.f32 %v12329_v25, %v2700_v38 }
 0x492   : > { %2108 = vrot.lane.b32.xlu1 %v12669_v23, %s11389_s16  ;;  %v2843_v11 = vpack.c.bf16 %v2779_v24, %v2779_v24  ;;  %v2844_v30 = vpack.c.bf16 %v2780_v51, %v2780_v51  ;;  %v2277_v51 = vsel %vm2231_vm1, %v2203_v40, %v1795_v42  ;;  %v2275_v42 = vsel %vm2231_vm1, %v2200_v60, %v1793_v59 }
 0x493   : > { %1744 = vrot.lane.b32.xlu2 %v12811_v18, %s11384_s7  ;;  %1934 = vrot.lane.b32.xlu0 %v12836_v44, %s11386_s27  ;;  %v2342_v38 = vsel %vm2296_vm2, %v2277_v51, %v12706_v49 }
 0x494   : > { %v2025_v35 = vpop.permute.xlu1 %2024  ;;  %v4417_v14 = vunpack.c.l.b16 %v2843_v11  ;;  %v4418_v12 = vunpack.c.l.b16 %v2844_v30  ;;  %v2407_v59 = vsel %vm2361_vm3, %v2342_v38, %v12834_v58 }
 0x495   : > { %v2511_v52 = vsel %vm2491_vm5, %v2446_v26, %v2025_v35  ;;  %v1985_v24 = vpop.permute.xlu2 %1984 }
 0x496   : > { %v2585_v9 = vsel %vm2556_vm6, %v2511_v52, %v12774_v48  ;;  %v4426_v39 = vpack.c.b16 %v4418_v12, %v4417_v14  ;;  %v2340_v48 = vsel %vm2296_vm2, %v2275_v42, %v1857_v55  ;;  %v10773_v42 = vunpack.i.h.bf16 %v16039_v54 }
 0x497   : > { %v2671_v6 = vunpack.c.l.bf16 %v2585_v9  ;;  %v2672_v27 = vunpack.c.h.bf16 %v2585_v9  ;;  %v2405_v49 = vsel %vm2361_vm3, %v2340_v48, %v1921_v46  ;;  %v16072_v48 = vld [vmem:[#allocation54_spill] sm:$0xff] }
 0x498   : > { %4435 = vmatpush.bf16.msrb.mxu0 %v4426_v39  ;;  %v2470_v30 = vsel %vm2426_vm4, %v2405_v49, %v1985_v24  ;;  %v12954_v49 = vpop.permute.xlu0 %1940 }
 0x499   : > { %v2751_v7 = vmul.f32 %v12656_v21, %v2671_v6  ;;  %v2752_v28 = vmul.f32 %v12658_v31, %v2672_v27 }
 0x49a   : > { %1938 = vrot.lane.b32.xlu1 %v12697_v57, %s11386_s27 }
 0x49b   : > { %1784 = vrot.lane.b32.xlu2 %v12750_v37, %s11383_s4  ;;  %1998 = vrot.lane.b32.xlu0 %v12836_v44, %s11387_s2  ;;  %v2815_v61 = vpack.c.bf16 %v2751_v7, %v2751_v7  ;;  %v2816_v4 = vpack.c.bf16 %v2752_v28, %v2752_v28 }
 0x49c   : > { %v1987_v11 = vpop.permute.xlu1 %1986 }
 0x49d   : > { %v2472_v55 = vsel %vm2426_vm4, %v2407_v59, %v1987_v11  ;;  %v2049_v35 = vpop.permute.xlu2 %2048  ;;  %v4337_v26 = vunpack.c.l.b16 %v2815_v61  ;;  %v4338_v14 = vunpack.c.l.b16 %v2816_v4  ;;  %v10778_v61 = vunpack.i.h.bf16 %v16072_v48 }
 0x49e   : > { %v2537_v12 = vsel %vm2491_vm5, %v2472_v55, %v12799_v45  ;;  %v2535_v40 = vsel %vm2491_vm5, %v2470_v30, %v2049_v35  ;;  %v10753_v48 = vunpack.i.h.bf16 %v16052_v47 }
 0x49f   : > { %v2624_v46 = vsel %vm2556_vm6, %v2537_v12, %v12809_v29  ;;  %v2621_v52 = vsel %vm2556_vm6, %v2535_v40, %v12856_v0  ;;  %v4352_v51 = vpack.c.b16 %v4338_v14, %v4337_v26  ;;  %v1516_v26 = vpack.c.bf16 %v10773_v42, %v10773_v42  ;;  %v16073_v40 = vld [vmem:[#allocation48_spill] sm:$0xff] }
 0x4a0   : > { %v2695_v58 = vunpack.c.l.bf16 %v2621_v52  ;;  %v2696_v9 = vunpack.c.h.bf16 %v2621_v52  ;;  %v2697_v24 = vunpack.c.l.bf16 %v2624_v46  ;;  %v2698_v39 = vunpack.c.h.bf16 %v2624_v46  ;;  %v16074_v52 = vld [vmem:[#allocation50_spill] sm:$0xff] }
 0x4a1   : > { %4373 = vmatpush.bf16.msrb.mxu3 %v4352_v51  ;;  %v1517_v14 = vpack.c.bf16 %v10778_v61, %v10778_v61  ;;  %v10763_v46 = vunpack.i.h.bf16 %v16073_v40  ;;  %v10768_v51 = vunpack.i.h.bf16 %v16074_v52  ;;  %v10758_v61 = vunpack.i.h.bf16 %v16053_v34 }
 0x4a2   : > { %1978 = vrot.lane.b32.xlu1 %v12708_v15, %s11387_s2  ;;  %v2777_v6 = vmul.f32 %v12304_v63, %v2697_v24  ;;  %v2778_v45 = vmul.f32 %v12310_v1, %v2698_v39  ;;  %v2775_v27 = vmul.f32 %v16049_v62, %v2695_v58  ;;  %v2776_v29 = vmul.f32 %v16050_v13, %v2696_v9  ;;  %v12966_v39 = vpop.permute.xlu0 %1980 }
 0x4a3   : > { %2066 = vrot.lane.b32.xlu2 %v12697_v57, %s11388_s13  ;;  %2062 = vrot.lane.b32.xlu0 %v12836_v44, %s11388_s13  ;;  %v1644_v58 = vunpack.c.l.b16 %v1516_v26  ;;  %v1645_v9 = vunpack.c.l.b16 %v1517_v14 }
 0x4a4   : > { %v1895_v0 = vpop.permute.xlu1 %1894  ;;  %v2841_v60 = vpack.c.bf16 %v2777_v6, %v2777_v6  ;;  %v2842_v38 = vpack.c.bf16 %v2778_v45, %v2778_v45  ;;  %v2839_v7 = vpack.c.bf16 %v2775_v27, %v2775_v27  ;;  %v2840_v28 = vpack.c.bf16 %v2776_v29, %v2776_v29  ;;  %v10975_v6 = vld [vmem:[%s11711_s22] sm:$0x7] }
 0x4a5   : > { %v12952_v4 = vpop.permute.xlu2 %1918  ;;  %v12969_v45 = vperm.slane %v10975_v6, 0  ;;  %v1514_v27 = vpack.c.bf16 %v10763_v46, %v10763_v46  ;;  %v1515_v29 = vpack.c.bf16 %v10768_v51, %v10768_v51 }
 0x4a6   : > { %v4415_v11 = vunpack.c.l.b16 %v2841_v60  ;;  %v4416_v59 = vunpack.c.l.b16 %v2842_v38  ;;  %v4413_v55 = vunpack.c.l.b16 %v2839_v7  ;;  %v4414_v35 = vunpack.c.l.b16 %v2840_v28 }
 0x4a7   : > { %v12971_v60 = vpack.c.b16 %v1645_v9, %v1644_v58  ;;  %v2161_v7 = vsel %vm2134_vm0, %v12413_v5, %v12868_v22  ;;  %v1512_v22 = vpack.c.bf16 %v10753_v48, %v10753_v48 }
 0x4a8   : > { %v4425_v30 = vpack.c.b16 %v4416_v59, %v4415_v11  ;;  %v4424_v12 = vpack.c.b16 %v4414_v35, %v4413_v55  ;;  %v1642_v11 = vunpack.c.l.b16 %v1514_v27  ;;  %v1643_v59 = vunpack.c.l.b16 %v1515_v29 }
 0x4a9   : > { %v2249_v55 = vsel %vm2231_vm1, %v2161_v7, %v12723_v16  ;;  %v1513_v35 = vpack.c.bf16 %v10758_v61, %v10758_v61  ;;  %v1640_v51 = vunpack.c.l.b16 %v1512_v22 }
 0x4aa   : > { %1808 = vrot.lane.b32.xlu1 %v12811_v18, %s11383_s4  ;;  %4436 = vmatpush.bf16.msrb.mxu0 %v4425_v30  ;;  %v12987_v26 = vpack.c.b16 %v1643_v59, %v1642_v11  ;;  %v2314_v14 = vsel %vm2296_vm2, %v2249_v55, %v12846_v17  ;;  %v12992_v47 = vpop.permute.xlu0 %1810 }
 0x4ab   : > { %2106 = vrot.lane.b32.xlu2 %v12708_v15, %s11389_s16  ;;  %2126 = vrot.lane.b32.xlu0 %v12836_v44, %s11389_s16  ;;  %v2379_v40 = vsel %vm2361_vm3, %v2314_v14, %v1895_v0  ;;  %v1641_v58 = vunpack.c.l.b16 %v1513_v35 }
 0x4ac   : > { %v1959_v54 = vpop.permute.xlu1 %1958 }
 0x4ad   : > { %v12964_v24 = vpop.permute.xlu2 %1982  ;;  %v1112_v38 = vpop.f32.mrf.mxu0  ;;  %v2444_v16 = vsel %vm2426_vm4, %v2379_v40, %v1959_v54  ;;  %v16075_v54 = vld [vmem:[#allocation87_spill] sm:$0xff]  ;;  %v13006_v11 = vpack.c.b16 %v1641_v58, %v1640_v51 }
 0x4ae   : > { %4437 = vmatpush.bf16.msrb.mxu0 %v4424_v12  ;;  %v1113_v42 = vadd.f32 %v1112_v38, %v12969_v45 }
 0x4b0   : > { %v4237_v5 = vpack.c.bf16 %v1113_v42, %v1113_v42  ;;  %v16076_v42 = vld [vmem:[#allocation90_spill] sm:$0xff] }
 0x4b2   : > { %1848 = vrot.lane.b32.xlu1 %v12750_v37, %s11385_s5  ;;  %v4247_v52 = vunpack.c.l.b16 %v4237_v5  ;;  %v2197_v5 = vsel %vm2134_vm0, %v16055_v50, %v12824_v43  ;;  %v13019_v35 = vpop.permute.xlu0 %1850 }
 0x4b3   : > { %1936 = vrot.lane.b32.xlu2 %v12811_v18, %s11386_s27  ;;  %1996 = vrot.lane.b32.xlu0 %v12971_v60, %s11387_s2  ;;  %v2273_v22 = vsel %vm2231_vm1, %v2197_v5, %v12844_v33 }
 0x4b4   : > { %v2023_v28 = vpop.permute.xlu1 %2022 }
 0x4b5   : > { %v2047_v30 = vpop.permute.xlu2 %2046  ;;  %v1114_v12 = vpop.f32.mrf.mxu0  ;;  %v2509_v17 = vsel %vm2491_vm5, %v2444_v16, %v2023_v28 }
 0x4b6   : > { %v1115_v34 = vadd.f32 %v1114_v12, %v12969_v45 }
 0x4b8   : > { %v4238_v0 = vpack.c.bf16 %v1115_v34, %v1115_v34 }
 0x4ba   : > { %2130 = vrot.lane.b32.xlu1 %v12697_v57, %s11389_s16  ;;  %v4248_v38 = vunpack.c.l.b16 %v4238_v0 }
 0x4bb   : > { %1976 = vrot.lane.b32.xlu2 %v12750_v37, %s11387_s2  ;;  %1866 = vrot.lane.b32.xlu0 %v12987_v26, %s11385_s5 }
 0x4bc   : > { %v2087_v46 = vpop.permute.xlu1 %2086  ;;  %v4249_v61 = vpack.c.b16 %v4248_v38, %v4247_v52  ;;  %v10743_v38 = vunpack.i.h.bf16 %v16070_v36 }
 0x4bd   : > { %v2582_v9 = vsel %vm2556_vm6, %v2509_v17, %v2087_v46  ;;  %v2111_v6 = vpop.permute.xlu2 %2110  ;;  %v1117_v59 = vpop.f32.mrf.mxu0 }
 0x4be   : > { %v2669_v27 = vunpack.c.l.bf16 %v2582_v9  ;;  %v2670_v29 = vunpack.c.h.bf16 %v2582_v9  ;;  %4307 = vmatmul.bf16.vlgmr.msra.gmra.mxu3 %v4249_v61  ;;  %v1118_v34 = vadd.f32 %v1117_v59, %v12969_v45  ;;  %v2133_v61 = vpop.permute.xlu0 %2132 }
 0x4c0   : > { %v2749_v7 = vmul.f32 %v16075_v54, %v2669_v27  ;;  %v2750_v48 = vmul.f32 %v16076_v42, %v2670_v29  ;;  %v4239_v52 = vpack.c.bf16 %v1118_v34, %v1118_v34 }
 0x4c2   : > { %1718 = vrot.lane.b32.xlu1 %v12848_v53, %s11384_s7  ;;  %v2813_v28 = vpack.c.bf16 %v2749_v7, %v2749_v7  ;;  %v2814_v55 = vpack.c.bf16 %v2750_v48, %v2750_v48  ;;  %v10748_v7 = vunpack.i.h.bf16 %v16071_v8 }
 0x4c3   : > { %1806 = vrot.lane.b32.xlu2 %v12836_v44, %s11383_s4  ;;  %1736 = vrot.lane.b32.xlu0 %v13006_v11, %s11384_s7 }
 0x4c4   : > { %v1855_v14 = vpop.permute.xlu1 %1854  ;;  %v4335_v12 = vunpack.c.l.b16 %v2813_v28  ;;  %v4336_v40 = vunpack.c.l.b16 %v2814_v55 }
 0x4c5   : > { %v2338_v16 = vsel %vm2296_vm2, %v2273_v22, %v1855_v14  ;;  %v13023_v17 = vpop.permute.xlu2 %1722  ;;  %v1119_v51 = vpop.f32.mrf.mxu0 }
 0x4c6   : > { %v2403_v50 = vsel %vm2361_vm3, %v2338_v16, %v12952_v4  ;;  %v4351_v43 = vpack.c.b16 %v4336_v40, %v4335_v12  ;;  %v1120_v27 = vadd.f32 %v1119_v51, %v12969_v45  ;;  %v1510_v12 = vpack.c.bf16 %v10743_v38, %v10743_v38 }
 0x4c7   : > { %v2468_v46 = vsel %vm2426_vm4, %v2403_v50, %v12964_v24  ;;  %v1511_v40 = vpack.c.bf16 %v10748_v7, %v10748_v7  ;;  %v2230_v38 = vsel %vm2134_vm0, %v12534_v3, %v12872_v10 }
 0x4c8   : > { %v2533_v33 = vsel %vm2491_vm5, %v2468_v46, %v2047_v30  ;;  %4374 = vmatpush.bf16.msrb.mxu3 %v4351_v43  ;;  %v4240_v29 = vpack.c.bf16 %v1120_v27, %v1120_v27  ;;  %v1638_v8 = vunpack.c.l.b16 %v1510_v12  ;;  %v13048_v43 = vpop.permute.xlu0 %1720  ;;  %v2295_v7 = vsel %vm2231_vm1, %v2230_v38, %v12894_v2 }
 0x4c9   : > { %v2618_v0 = vsel %vm2556_vm6, %v2533_v33, %v2111_v6  ;;  %v4315_v6 = vunpack.c.l.b16 %v4239_v52  ;;  %v1639_v16 = vunpack.c.l.b16 %v1511_v40 }
 0x4ca   : > { %2000 = vrot.lane.b32.xlu1 %v12811_v18, %s11387_s2  ;;  %v2693_v58 = vunpack.c.l.bf16 %v2618_v0  ;;  %v2694_v9 = vunpack.c.h.bf16 %v2618_v0  ;;  %v4316_v55 = vunpack.c.l.b16 %v4240_v29 }
 0x4cb   : > { %1846 = vrot.lane.b32.xlu2 %v12848_v53, %s11385_s5  ;;  %2058 = vrot.lane.b32.xlu0 %v12987_v26, %s11388_s13  ;;  %v13050_v46 = vpack.c.b16 %v1639_v16, %v1638_v8 }
 0x4cc   : > { %v1725_v4 = vpop.permute.xlu1 %1724  ;;  %v2773_v24 = vmul.f32 %v12357_v32, %v2693_v58  ;;  %v2774_v30 = vmul.f32 %v12359_v41, %v2694_v9  ;;  %v4317_v14 = vpack.c.b16 %v4316_v55, %v4315_v6 }
 0x4cd   : > { %v2005_v48 = vpop.permute.xlu2 %2004  ;;  %v2194_v55 = vsel %vm2134_vm0, %v12669_v23, %v1725_v4 }
 0x4ce   : > { %v2837_v59 = vpack.c.bf16 %v2773_v24, %v2773_v24  ;;  %v2838_v28 = vpack.c.bf16 %v2774_v30, %v2774_v30  ;;  %4375 = vmatmul.bf16.vlgmr.msrb.gmra.mxu3 %v4317_v14 }
 0x4d0   : > { %v4411_v5 = vunpack.c.l.b16 %v2837_v59  ;;  %v4412_v22 = vunpack.c.l.b16 %v2838_v28  ;;  %v13060_v0 = vpop.permute.xlu0 %2002  ;;  %v2360_v59 = vsel %vm2296_vm2, %v2295_v7, %v12927_v20 }
 0x4d1   : > { %v2425_v28 = vsel %vm2361_vm3, %v2360_v59, %v12954_v49 }
 0x4d2   : > { %2040 = vrot.lane.b32.xlu1 %v12750_v37, %s11388_s13  ;;  %v4423_v34 = vpack.c.b16 %v4412_v22, %v4411_v5  ;;  %v2490_v3 = vsel %vm2426_vm4, %v2425_v28, %v2005_v48 }
 0x4d3   : > { %2128 = vrot.lane.b32.xlu2 %v12811_v18, %s11389_s16  ;;  %1928 = vrot.lane.b32.xlu0 %v13006_v11, %s11386_s27 }
 0x4d4   : > { %v1789_v36 = vpop.permute.xlu1 %1788  ;;  %4438 = vmatpush.bf16.msrb.mxu0 %v4423_v34 }
 0x4d5   : > { %v2045_v50 = vpop.permute.xlu2 %2044  ;;  %v2271_v10 = vsel %vm2231_vm1, %v2194_v55, %v1789_v36 }
 0x4d8   : > { %v13076_v9 = vpop.permute.xlu0 %2042 }
 0x4da   : > { %1870 = vrot.lane.b32.xlu1 %v12836_v44, %s11385_s5 }
 0x4db   : > { %1740 = vrot.lane.b32.xlu2 %v12971_v60, %s11384_s7  ;;  %1798 = vrot.lane.b32.xlu0 %v13050_v46, %s11383_s4 }
 0x4dc   : > { %v1853_v33 = vpop.permute.xlu1 %1852 }
 0x4dd   : > { %v13058_v52 = vpop.permute.xlu2 %1874  ;;  %v2336_v5 = vsel %vm2296_vm2, %v2271_v10, %v1853_v33 }
 0x4e0   : > { %v13088_v29 = vpop.permute.xlu0 %1872 }
 0x4e2   : > { %1910 = vrot.lane.b32.xlu1 %v12848_v53, %s11386_s27 }
 0x4e3   : > { %1804 = vrot.lane.b32.xlu2 %v12971_v60, %s11383_s4  ;;  %2120 = vrot.lane.b32.xlu0 %v13006_v11, %s11389_s16 }
 0x4e4   : > { %v1917_v51 = vpop.permute.xlu1 %1916 }
 0x4e5   : > { %v13068_v58 = vpop.permute.xlu2 %1914  ;;  %v2401_v14 = vsel %vm2361_vm3, %v2336_v5, %v1917_v51 }
 0x4e6   : > { %v2466_v48 = vsel %vm2426_vm4, %v2401_v14, %v12966_v39 }
 0x4e7   : > { %v2531_v16 = vsel %vm2491_vm5, %v2466_v48, %v2045_v50 }
 0x4e8   : > { %v13113_v4 = vpop.permute.xlu0 %1912 }
 0x4ea   : > { %1974 = vrot.lane.b32.xlu1 %v12848_v53, %s11387_s2 }
 0x4eb   : > { %1868 = vrot.lane.b32.xlu2 %v12971_v60, %s11385_s5  ;;  %2054 = vrot.lane.b32.xlu0 %v13050_v46, %s11388_s13 }
 0x4ec   : > { %v13078_v27 = vpop.permute.xlu1 %1746 }
 0x4ed   : > { %v13080_v24 = vpop.permute.xlu2 %1744 }
 0x4f2   : > { %2038 = vrot.lane.b32.xlu1 %v12848_v53, %s11388_s13 }
 0x4f3   : > { %1932 = vrot.lane.b32.xlu2 %v12971_v60, %s11386_s27 }
 0x4f4   : > { %v1787_v30 = vpop.permute.xlu1 %1786 }
 0x4f5   : > { %v13086_v6 = vpop.permute.xlu2 %1784 }
 0x4fa   : > { %2102 = vrot.lane.b32.xlu1 %v12848_v53, %s11389_s16 }
 0x4fb   : > { %1802 = vrot.lane.b32.xlu2 %v12987_v26, %s11383_s4 }
 0x4fc   : > { %v2069_v2 = vpop.permute.xlu1 %2068 }
 0x4fd   : > { %v2555_v20 = vsel %vm2491_vm5, %v2490_v3, %v2069_v2  ;;  %v13109_v22 = vpop.permute.xlu2 %2066  ;;  %v16077_v3 = vld [vmem:[#allocation95_spill] sm:$0xff]  ;;  %v13127_v2 = vpop.permute.xlu0 %1742 }
 0x4fe   : > { %v2651_v49 = vsel %vm2556_vm6, %v2555_v20, %v2133_v61 }
 0x4ff   : > { %v2715_v12 = vunpack.c.l.bf16 %v2651_v49  ;;  %v2716_v23 = vunpack.c.h.bf16 %v2651_v49 }
 0x501   : > { %v2795_v40 = vmul.f32 %v12327_v56, %v2715_v12  ;;  %v2796_v34 = vmul.f32 %v12329_v25, %v2716_v23  ;;  %v2191_v12 = vsel %vm2134_vm0, %v12708_v15, %v13023_v17 }
 0x502   : > { %1738 = vrot.lane.b32.xlu1 %v12987_v26, %s11384_s7  ;;  %v2269_v23 = vsel %vm2231_vm1, %v2191_v12, %v1787_v30 }
 0x503   : > { %2124 = vrot.lane.b32.xlu2 %v12971_v60, %s11389_s16  ;;  %v2859_v36 = vpack.c.bf16 %v2795_v40, %v2795_v40  ;;  %v2860_v8 = vpack.c.bf16 %v2796_v34, %v2796_v34  ;;  %v2334_v34 = vsel %vm2296_vm2, %v2269_v23, %v13019_v35 }
 0x504   : > { %v2109_v61 = vpop.permute.xlu1 %2108  ;;  %v2399_v15 = vsel %vm2361_vm3, %v2334_v34, %v13068_v58 }
 0x505   : > { %v2615_v33 = vsel %vm2556_vm6, %v2531_v16, %v2109_v61  ;;  %v2107_v51 = vpop.permute.xlu2 %2106  ;;  %v4485_v38 = vunpack.c.l.b16 %v2859_v36  ;;  %v4486_v39 = vunpack.c.l.b16 %v2860_v8  ;;  %v13145_v36 = vpop.permute.xlu0 %1782 }
 0x506   : > { %v2691_v7 = vunpack.c.l.bf16 %v2615_v33  ;;  %v2692_v59 = vunpack.c.h.bf16 %v2615_v33 }
 0x507   : > { %v4494_v28 = vpack.c.b16 %v4486_v39, %v4485_v38  ;;  %v16078_v38 = vld [vmem:[#allocation98_spill] sm:$0xff] }
 0x508   : > { %v2771_v55 = vmul.f32 %v16060_v19, %v2691_v7  ;;  %v2772_v10 = vmul.f32 %v16077_v3, %v2692_v59  ;;  %v16079_v7 = vld [vmem:[#allocation99_spill] sm:$0xff] }
 0x509   : > { %4503 = vmatpush.bf16.msrb.mxu1 %v4494_v28 }
 0x50a   : > { %2060 = vrot.lane.b32.xlu1 %v12971_v60, %s11388_s13  ;;  %v2835_v5 = vpack.c.bf16 %v2771_v55, %v2771_v55  ;;  %v2836_v50 = vpack.c.bf16 %v2772_v10, %v2772_v10 }
 0x50b   : > { %1994 = vrot.lane.b32.xlu2 %v12987_v26, %s11387_s2 }
 0x50c   : > { %v1939_v20 = vpop.permute.xlu1 %1938  ;;  %v4409_v14 = vunpack.c.l.b16 %v2835_v5  ;;  %v4410_v49 = vunpack.c.l.b16 %v2836_v50  ;;  %v2227_v5 = vsel %vm2134_vm0, %v12697_v57, %v13078_v27 }
 0x50d   : > { %v13137_v48 = vpop.permute.xlu2 %1936 }
 0x50e   : > { %v4422_v40 = vpack.c.b16 %v4410_v49, %v4409_v14  ;;  %v2293_v14 = vsel %vm2231_vm1, %v2227_v5, %v12992_v47  ;;  %v2188_v5 = vsel %vm2134_vm0, %v12750_v37, %v13048_v43 }
 0x50f   : > { %v2358_v23 = vsel %vm2296_vm2, %v2293_v14, %v13058_v52 }
 0x510   : > { %4439 = vmatpush.bf16.msrb.mxu0 %v4422_v40  ;;  %v2423_v40 = vsel %vm2361_vm3, %v2358_v23, %v1939_v20 }
 0x511   : > { %v2488_v27 = vsel %vm2426_vm4, %v2423_v40, %v13060_v0 }
 0x512   : > { %1930 = vrot.lane.b32.xlu1 %v12987_v26, %s11386_s27 }
 0x513   : > { %1864 = vrot.lane.b32.xlu2 %v13006_v11, %s11385_s5 }
 0x514   : > { %v1979_v8 = vpop.permute.xlu1 %1978 }
 0x515   : > { %v2464_v17 = vsel %vm2426_vm4, %v2399_v15, %v1979_v8  ;;  %v13153_v35 = vpop.permute.xlu2 %1976  ;;  %v2553_v8 = vsel %vm2491_vm5, %v2488_v27, %v13109_v22 }
 0x516   : > { %v2529_v30 = vsel %vm2491_vm5, %v2464_v17, %v13076_v9  ;;  %v2065_v9 = vpop.permute.xlu0 %2064 }
 0x517   : > { %v2612_v61 = vsel %vm2556_vm6, %v2529_v30, %v2107_v51 }
 0x518   : > { %v2689_v16 = vunpack.c.l.bf16 %v2612_v61  ;;  %v2690_v33 = vunpack.c.h.bf16 %v2612_v61 }
 0x51a   : > { %1800 = vrot.lane.b32.xlu1 %v13006_v11, %s11383_s4  ;;  %v2769_v39 = vmul.f32 %v16078_v38, %v2689_v16  ;;  %v2770_v59 = vmul.f32 %v16079_v7, %v2690_v33 }
 0x51b   : > { %1734 = vrot.lane.b32.xlu2 %v13050_v46, %s11384_s7 }
 0x51c   : > { %v1809_v58 = vpop.permute.xlu1 %1808  ;;  %v2833_v28 = vpack.c.bf16 %v2769_v39, %v2769_v39  ;;  %v2834_v55 = vpack.c.bf16 %v2770_v59, %v2770_v59  ;;  %v2224_v59 = vsel %vm2134_vm0, %v12811_v18, %v13080_v24  ;;  %v2267_v24 = vsel %vm2231_vm1, %v2188_v5, %v13086_v6 }
 0x51d   : > { %v13166_v49 = vpop.permute.xlu2 %1806 }
 0x51e   : > { %v4407_v10 = vunpack.c.l.b16 %v2833_v28  ;;  %v4408_v51 = vunpack.c.l.b16 %v2834_v55  ;;  %v2105_v57 = vpop.permute.xlu0 %2104  ;;  %v2291_v28 = vsel %vm2231_vm1, %v2224_v59, %v1809_v58 }
 0x520   : > { %v4421_v50 = vpack.c.b16 %v4408_v51, %v4407_v10  ;;  %v2356_v51 = vsel %vm2296_vm2, %v2291_v28, %v13088_v29 }
 0x521   : > { %v2421_v18 = vsel %vm2361_vm3, %v2356_v51, %v13137_v48 }
 0x522   : > { %2122 = vrot.lane.b32.xlu1 %v12987_v26, %s11389_s16  ;;  %4440 = vmatpush.bf16.msrb.mxu0 %v4421_v50 }
 0x523   : > { %2056 = vrot.lane.b32.xlu2 %v13006_v11, %s11388_s13 }
 0x524   : > { %v1849_v12 = vpop.permute.xlu1 %1848 }
 0x525   : > { %v13181_v47 = vpop.permute.xlu2 %1846  ;;  %v2332_v23 = vsel %vm2296_vm2, %v2267_v24, %v1849_v12 }
 0x526   : > { %v1935_v30 = vpop.permute.xlu0 %1934  ;;  %v2397_v43 = vsel %vm2361_vm3, %v2332_v23, %v13113_v4 }
 0x52a   : > { %1992 = vrot.lane.b32.xlu1 %v13006_v11, %s11387_s2 }
 0x52b   : > { %1926 = vrot.lane.b32.xlu2 %v13050_v46, %s11386_s27 }
 0x52c   : > { %v2131_v34 = vpop.permute.xlu1 %2130 }
 0x52d   : > { %v2648_v52 = vsel %vm2556_vm6, %v2553_v8, %v2131_v34  ;;  %v2129_v55 = vpop.permute.xlu2 %2128 }
 0x52e   : > { %v2713_v15 = vunpack.c.l.bf16 %v2648_v52  ;;  %v2714_v20 = vunpack.c.h.bf16 %v2648_v52  ;;  %v1999_v50 = vpop.permute.xlu0 %1998  ;;  %v2462_v52 = vsel %vm2426_vm4, %v2397_v43, %v13153_v35  ;;  %v2221_v35 = vsel %vm2134_vm0, %v12836_v44, %v13127_v2 }
 0x52f   : > { %v2289_v51 = vsel %vm2231_vm1, %v2221_v35, %v13166_v49 }
 0x530   : > { %v2793_v17 = vmul.f32 %v12304_v63, %v2713_v15  ;;  %v2794_v0 = vmul.f32 %v12310_v1, %v2714_v20 }
 0x532   : > { %1862 = vrot.lane.b32.xlu1 %v13050_v46, %s11385_s5  ;;  %v2857_v61 = vpack.c.bf16 %v2793_v17, %v2793_v17  ;;  %v2858_v16 = vpack.c.bf16 %v2794_v0, %v2794_v0 }
 0x533   : > { %2118 = vrot.lane.b32.xlu2 %v13050_v46, %s11389_s16 }
 0x534   : > { %v13192_v33 = vpop.permute.xlu1 %1718  ;;  %v4483_v22 = vunpack.c.l.b16 %v2857_v61  ;;  %v4484_v39 = vunpack.c.l.b16 %v2858_v16 }
 0x535   : > { %v13213_v27 = vpop.permute.xlu2 %1740 }
 0x536   : > { %v4493_v10 = vpack.c.b16 %v4484_v39, %v4483_v22  ;;  %v2063_v20 = vpop.permute.xlu0 %2062 }
 0x538   : > { %4504 = vmatpush.bf16.msrb.mxu1 %v4493_v10 }
 0x53a   : > { %1990 = vrot.lane.b32.xlu1 %v13050_v46, %s11387_s2 }
 0x53c   : > { %v2001_v14 = vpop.permute.xlu1 %2000 }
 0x53d   : > { %v2486_v58 = vsel %vm2426_vm4, %v2421_v18, %v2001_v14 }
 0x53e   : > { %v2551_v29 = vsel %vm2491_vm5, %v2486_v58, %v2065_v9  ;;  %v2127_v44 = vpop.permute.xlu0 %2126 }
 0x53f   : > { %v2645_v40 = vsel %vm2556_vm6, %v2551_v29, %v2129_v55  ;;  %v13227_v55 = vpop.permute.xlu2 %1804 }
 0x540   : > { %v2711_v34 = vunpack.c.l.bf16 %v2645_v40  ;;  %v2712_v37 = vunpack.c.h.bf16 %v2645_v40 }
 0x541   : > { %v13223_v16 = vpop.f32.mrf.mxu3 }
 0x542   : > { %v2791_v48 = vmul.f32 %v16049_v62, %v2711_v34  ;;  %v2792_v8 = vmul.f32 %v16050_v13, %v2712_v37 }
 0x544   : > { %v2041_v6 = vpop.permute.xlu1 %2040  ;;  %v2855_v12 = vpack.c.bf16 %v2791_v48, %v2791_v48  ;;  %v2856_v15 = vpack.c.bf16 %v2792_v8, %v2792_v8 }
 0x545   : > { %v2527_v9 = vsel %vm2491_vm5, %v2462_v52, %v2041_v6 }
 0x546   : > { %v2609_v17 = vsel %vm2556_vm6, %v2527_v9, %v2105_v57  ;;  %v4481_v0 = vunpack.c.l.b16 %v2855_v12  ;;  %v4482_v61 = vunpack.c.l.b16 %v2856_v15 }
 0x547   : > { %v2687_v4 = vunpack.c.l.bf16 %v2609_v17  ;;  %v2688_v22 = vunpack.c.h.bf16 %v2609_v17  ;;  %v1869_v43 = vpop.permute.xlu2 %1868 }
 0x548   : > { %v4492_v39 = vpack.c.b16 %v4482_v61, %v4481_v0  ;;  %v1122_v0 = vpop.f32.mrf.mxu0  ;;  %v1997_v61 = vpop.permute.xlu0 %1996 }
 0x549   : > { %v2767_v59 = vmul.f32 %v12656_v21, %v2687_v4  ;;  %v2768_v28 = vmul.f32 %v12658_v31, %v2688_v22  ;;  %v13236_v23 = vpop.f32.mrf.mxu3  ;;  %v2185_v4 = vsel %vm2134_vm0, %v12848_v53, %v13192_v33 }
 0x54a   : > { %4505 = vmatpush.bf16.msrb.mxu1 %v4492_v39  ;;  %4519 = vmax.xlane.f32.xlu0 %v13236_v23  ;;  %v2265_v39 = vsel %vm2231_vm1, %v2185_v4, %v13145_v36 }
 0x54b   : > { %v2831_v10 = vpack.c.bf16 %v2767_v59, %v2767_v59  ;;  %v2832_v57 = vpack.c.bf16 %v2768_v28, %v2768_v28  ;;  %v2330_v35 = vsel %vm2296_vm2, %v2265_v39, %v13181_v47 }
 0x54c   : > { %v1871_v5 = vpop.permute.xlu1 %1870 }
 0x54d   : > { %v2354_v14 = vsel %vm2296_vm2, %v2289_v51, %v1871_v5  ;;  %v4405_v18 = vunpack.c.l.b16 %v2831_v10  ;;  %v4406_v24 = vunpack.c.l.b16 %v2832_v57  ;;  %v1123_v5 = vadd.f32 %v1122_v0, %v12969_v45 }
 0x54e   : > { %v2419_v58 = vsel %vm2361_vm3, %v2354_v14, %v1935_v30 }
 0x54f   : > { %v2484_v29 = vsel %vm2426_vm4, %v2419_v58, %v1999_v50  ;;  %v4420_v40 = vpack.c.b16 %v4406_v24, %v4405_v18  ;;  %v4241_v58 = vpack.c.bf16 %v1123_v5, %v1123_v5 }
 0x550   : > { %v2549_v2 = vsel %vm2491_vm5, %v2484_v29, %v2063_v20  ;;  %v1933_v20 = vpop.permute.xlu2 %1932  ;;  %v1124_v28 = vpop.f32.mrf.mxu0 }
 0x551   : > { %4441 = vmatpush.bf16.msrb.mxu0 %v4420_v40  ;;  %v2642_v49 = vsel %vm2556_vm6, %v2549_v2, %v2127_v44  ;;  %v13244_v15 = vpop.f32.mrf.mxu3  ;;  %v1125_v53 = vadd.f32 %v1124_v28, %v12969_v45  ;;  %v1867_v33 = vpop.permute.xlu0 %1866 }
 0x552   : > { %v2709_v34 = vunpack.c.l.bf16 %v2642_v49  ;;  %v2710_v37 = vunpack.c.h.bf16 %v2642_v49 }
 0x553   : > { %v4242_v29 = vpack.c.bf16 %v1125_v53, %v1125_v53 }
 0x554   : > { %v1911_v48 = vpop.permute.xlu1 %1910  ;;  %v2789_v8 = vmul.f32 %v12357_v32, %v2709_v34  ;;  %v2790_v30 = vmul.f32 %v12359_v41, %v2710_v37  ;;  %v4383_v37 = vunpack.c.l.b16 %v4241_v58 }
 0x555   : > { %v2395_v57 = vsel %vm2361_vm3, %v2330_v35, %v1911_v48  ;;  %v4384_v48 = vunpack.c.l.b16 %v4242_v29 }
 0x556   : > { %v2853_v6 = vpack.c.bf16 %v2789_v8, %v2789_v8  ;;  %v2854_v52 = vpack.c.bf16 %v2790_v30, %v2790_v30 }
 0x558   : > { %v4479_v50 = vunpack.c.l.b16 %v2853_v6  ;;  %v4480_v12 = vunpack.c.l.b16 %v2854_v52  ;;  %v1803_v59 = vpop.permute.xlu2 %1802  ;;  %v2218_v52 = vsel %vm2134_vm0, %v12971_v60, %v13213_v27 }
 0x559   : > { %v13255_v10 = vpop.f32.mrf.mxu3 }
 0x55a   : > { %v4491_v9 = vpack.c.b16 %v4480_v12, %v4479_v50  ;;  %v1737_v50 = vpop.permute.xlu0 %1736 }
 0x55c   : > { %v1975_v17 = vpop.permute.xlu1 %1974  ;;  %4506 = vmatpush.bf16.msrb.mxu1 %v4491_v9  ;;  %4521 = vmax.xlane.f32.xlu2 %v13244_v15  ;;  %v2287_v9 = vsel %vm2231_vm1, %v2218_v52, %v13227_v55 }
 0x55d   : > { %v2460_v51 = vsel %vm2426_vm4, %v2395_v57, %v1975_v17  ;;  %v4385_v17 = vpack.c.b16 %v4384_v48, %v4383_v37  ;;  %v2352_v0 = vsel %vm2296_vm2, %v2287_v9, %v1869_v43 }
 0x55e   : > { %v2417_v4 = vsel %vm2361_vm3, %v2352_v0, %v1933_v20 }
 0x55f   : > { %v2482_v28 = vsel %vm2426_vm4, %v2417_v4, %v1997_v61 }
 0x560   : > { %v2125_v2 = vpop.permute.xlu2 %2124 }
 0x564   : > { %v2039_v22 = vpop.permute.xlu1 %2038  ;;  %4517 = vmax.xlane.f32.xlu1 %v13223_v16 }
 0x565   : > { %v2525_v14 = vsel %vm2491_vm5, %v2460_v51, %v2039_v22  ;;  %v2059_v51 = vpop.permute.xlu0 %2058 }
 0x568   : > { %v1995_v22 = vpop.permute.xlu2 %1994 }
 0x56c   : > { %v2103_v18 = vpop.permute.xlu1 %2102  ;;  %4523 = vmax.xlane.f32.xlu1 %v13255_v10 }
 0x56d   : > { %v2606_v36 = vsel %vm2556_vm6, %v2525_v14, %v2103_v18 }
 0x56e   : > { %v2685_v24 = vunpack.c.l.bf16 %v2606_v36  ;;  %v2686_v47 = vunpack.c.h.bf16 %v2606_v36 }
 0x570   : > { %v2765_v40 = vmul.f32 %v16075_v54, %v2685_v24  ;;  %v2766_v44 = vmul.f32 %v16076_v42, %v2686_v47  ;;  %v1865_v36 = vpop.permute.xlu2 %1864  ;;  %v1929_v47 = vpop.permute.xlu0 %1928 }
 0x572   : > { %v2829_v49 = vpack.c.bf16 %v2765_v40, %v2765_v40  ;;  %v2830_v34 = vpack.c.bf16 %v2766_v44, %v2766_v44 }
 0x574   : > { %v1739_v8 = vpop.permute.xlu1 %1738  ;;  %v4403_v30 = vunpack.c.l.b16 %v2829_v49  ;;  %v4404_v6 = vunpack.c.l.b16 %v2830_v34 }
 0x575   : > { %v2215_v61 = vsel %vm2134_vm0, %v12987_v26, %v1739_v8  ;;  %v2212_v26 = vsel %vm2134_vm0, %v13006_v11, %v1737_v50 }
 0x576   : > { %v4419_v12 = vpack.c.b16 %v4404_v6, %v4403_v30  ;;  %v2285_v58 = vsel %vm2231_vm1, %v2215_v61, %v1803_v59 }
 0x577   : > { %v2350_v40 = vsel %vm2296_vm2, %v2285_v58, %v1867_v33 }
 0x578   : > { %4442 = vmatpush.bf16.msrb.mxu0 %v4419_v12  ;;  %v1799_v34 = vpop.permute.xlu0 %1798 }
 0x57b   : > { %4443 = vmatmul.bf16.vlgmr.msrb.gmra.mxu0 %v4385_v17 }
 0x57c   : > { %v2061_v39 = vpop.permute.xlu1 %2060 }
 0x57d   : > { %v2547_v35 = vsel %vm2491_vm5, %v2482_v28, %v2061_v39  ;;  %v4572_v28 = vld [vmem:[#allocation8 + $0x78] sm:$0xff] }
 0x57e   : > { %v2639_v60 = vsel %vm2556_vm6, %v2547_v35, %v2125_v2  ;;  %v1735_v2 = vpop.permute.xlu2 %1734  ;;  %v4571_v35 = vld [vmem:[#allocation8 + $0x70] sm:$0xff]  ;;  %4573 = vmatpush.msrb.mxu2 %v4572_v28 }
 0x57f   : > { %v2707_v27 = vunpack.c.l.bf16 %v2639_v60  ;;  %v2708_v57 = vunpack.c.h.bf16 %v2639_v60 }
 0x580   : > { %v2121_v60 = vpop.permute.xlu0 %2120  ;;  %4574 = vmatpush.msrb.mxu2 %v4571_v35 }
 0x581   : > { %v2787_v55 = vmul.f32 %v16060_v19, %v2707_v27  ;;  %v2788_v5 = vmul.f32 %v16077_v3, %v2708_v57 }
 0x583   : > { %v2851_v43 = vpack.c.bf16 %v2787_v55, %v2787_v55  ;;  %v2852_v53 = vpack.c.bf16 %v2788_v5, %v2788_v5  ;;  %v4570_v55 = vld [vmem:[#allocation8 + $0x68] sm:$0xff] }
 0x584   : > { %v1931_v14 = vpop.permute.xlu1 %1930  ;;  %4575 = vmatpush.msrb.mxu2 %v4570_v55 }
 0x585   : > { %v4477_v20 = vunpack.c.l.b16 %v2851_v43  ;;  %v4478_v18 = vunpack.c.l.b16 %v2852_v53  ;;  %v2415_v44 = vsel %vm2361_vm3, %v2350_v40, %v1931_v14  ;;  %v4569_v53 = vld [vmem:[#allocation8 + $0x60] sm:$0xff]  ;;  %v1127_v14 = vpop.f32.mrf.mxu0  ;;  %v4567_v40 = vld [vmem:[#allocation8 + $0x50] sm:$0xff] }
 0x586   : > { %v2480_v49 = vsel %vm2426_vm4, %v2415_v44, %v1995_v22  ;;  %v2057_v9 = vpop.permute.xlu2 %2056  ;;  %4576 = vmatpush.msrb.mxu2 %v4569_v53  ;;  %v4562_v53 = vld [vmem:[#allocation8 + $0x28] sm:$0xff] }
 0x587   : > { %v4490_v24 = vpack.c.b16 %v4478_v18, %v4477_v20  ;;  %v2545_v48 = vsel %vm2491_vm5, %v2480_v49, %v2059_v51 }
 0x589   : > { %4507 = vmatpush.bf16.msrb.mxu1 %v4490_v24 }
 0x58c   : > { %v1801_v29 = vpop.permute.xlu1 %1800 }
 0x58d   : > { %v2283_v30 = vsel %vm2231_vm1, %v2212_v26, %v1801_v29  ;;  %v2209_v29 = vsel %vm2134_vm0, %v13050_v46, %v1735_v2  ;;  %v2055_v46 = vpop.permute.xlu0 %2054 }
 0x58e   : > { %v2348_v12 = vsel %vm2296_vm2, %v2283_v30, %v1865_v36  ;;  %v4568_v36 = vld [vmem:[#allocation8 + $0x58] sm:$0xff]  ;;  %v1927_v61 = vpop.permute.xlu2 %1926  ;;  %v4565_v30 = vld [vmem:[#allocation8 + $0x40] sm:$0xff] }
 0x58f   : > { %v2413_v22 = vsel %vm2361_vm3, %v2348_v12, %v1929_v47  ;;  %4577 = vmatpush.msrb.mxu2 %v4568_v36  ;;  %v4563_v12 = vld [vmem:[#allocation8 + $0x30] sm:$0xff]  ;;  %v4558_v36 = vld [vmem:[#allocation8 + $0x8] sm:$0xff] }
 0x591   : > { %4578 = vmatpush.msrb.mxu2 %v4567_v40 }
 0x594   : > { %v2123_v37 = vpop.permute.xlu1 %2122 }
 0x595   : > { %v2636_v8 = vsel %vm2556_vm6, %v2545_v48, %v2123_v37  ;;  %v4566_v37 = vld [vmem:[#allocation8 + $0x48] sm:$0xff]  ;;  %v2281_v48 = vsel %vm2231_vm1, %v2209_v29, %v1799_v34 }
 0x596   : > { %v2705_v59 = vunpack.c.l.bf16 %v2636_v8  ;;  %v2706_v6 = vunpack.c.h.bf16 %v2636_v8  ;;  %4579 = vmatpush.msrb.mxu2 %v4566_v37 }
 0x598   : > { %v2785_v33 = vmul.f32 %v16078_v38, %v2705_v59  ;;  %v2786_v52 = vmul.f32 %v16079_v7, %v2706_v6  ;;  %v4564_v59 = vld [vmem:[#allocation8 + $0x38] sm:$0xff]  ;;  %4580 = vmatpush.msrb.mxu2 %v4565_v30 }
 0x59a   : > { %v2849_v17 = vpack.c.bf16 %v2785_v33, %v2785_v33  ;;  %v2850_v0 = vpack.c.bf16 %v2786_v52, %v2786_v52  ;;  %v1129_v52 = vpop.f32.mrf.mxu0  ;;  %4581 = vmatpush.msrb.mxu2 %v4564_v59 }
 0x59c   : > { %v1993_v4 = vpop.permute.xlu1 %1992  ;;  %v4475_v39 = vunpack.c.l.b16 %v2849_v17  ;;  %v4476_v11 = vunpack.c.l.b16 %v2850_v0  ;;  %v1128_v17 = vadd.f32 %v1127_v14, %v12969_v45  ;;  %4582 = vmatpush.msrb.mxu2 %v4563_v12 }
 0x59d   : > { %v2478_v50 = vsel %vm2426_vm4, %v2413_v22, %v1993_v4  ;;  %v1130_v4 = vadd.f32 %v1129_v52, %v12969_v45  ;;  %v4561_v45 = vld [vmem:[#allocation8 + $0x20] sm:$0xff] }
 0x59e   : > { %v2543_v27 = vsel %vm2491_vm5, %v2478_v50, %v2057_v9  ;;  %v4489_v57 = vpack.c.b16 %v4476_v11, %v4475_v39  ;;  %v2119_v9 = vpop.permute.xlu2 %2118  ;;  %v4243_v28 = vpack.c.bf16 %v1128_v17, %v1128_v17  ;;  %4583 = vmatpush.msrb.mxu2 %v4562_v53 }
 0x59f   : > { %v2633_v51 = vsel %vm2556_vm6, %v2543_v27, %v2121_v60  ;;  %v4244_v35 = vpack.c.bf16 %v1130_v4, %v1130_v4  ;;  %v16086_v4 = vld [vmem:[#allocation61_spill] sm:$0xff] }
 0x5a0   : > { %4508 = vmatpush.bf16.msrb.mxu1 %v4489_v57  ;;  %v2703_v5 = vunpack.c.l.bf16 %v2633_v51  ;;  %v2704_v43 = vunpack.c.h.bf16 %v2633_v51  ;;  %v4451_v55 = vunpack.c.l.b16 %v4243_v28  ;;  %4584 = vmatpush.msrb.mxu2 %v4561_v45 }
 0x5a2   : > { %v2783_v20 = vmul.f32 %v12656_v21, %v2703_v5  ;;  %v2784_v18 = vmul.f32 %v12658_v31, %v2704_v43  ;;  %v4452_v5 = vunpack.c.l.b16 %v4244_v35 }
 0x5a4   : > { %v1863_v24 = vpop.permute.xlu1 %1862  ;;  %v2847_v47 = vpack.c.bf16 %v2783_v20, %v2783_v20  ;;  %v2848_v58 = vpack.c.bf16 %v2784_v18, %v2784_v18  ;;  %v4453_v14 = vpack.c.b16 %v4452_v5, %v4451_v55  ;;  %v4560_v20 = vld [vmem:[#allocation8 + $0x18] sm:$0xff]  ;;  %v4559_v18 = vld [vmem:[#allocation8 + $0x10] sm:$0xff] }
 0x5a5   : > { %v2346_v8 = vsel %vm2296_vm2, %v2281_v48, %v1863_v24  ;;  %4585 = vmatpush.msrb.mxu2 %v4560_v20  ;;  %v16089_v55 = vld [vmem:[#allocation58_spill] sm:$0xff] }
 0x5a6   : > { %v4473_v44 = vunpack.c.l.b16 %v2847_v47  ;;  %v4474_v49 = vunpack.c.l.b16 %v2848_v58  ;;  %v2411_v33 = vsel %vm2361_vm3, %v2346_v8, %v1927_v61  ;;  %v4557_v61 = vld [vmem:[#allocation8] sm:$0xff]  ;;  %v10711_v5 = vunpack.i.l.bf16 %v16089_v55 }
 0x5a7   : > { %4586 = vmatpush.msrb.mxu2 %v4559_v18 }
 0x5a8   : > { %v4488_v26 = vpack.c.b16 %v4474_v49, %v4473_v44  ;;  %v2872_v53 = vpack.c.bf16 %v10711_v5, %v10711_v5 }
 0x5a9   : > { %4587 = vmatpush.msrb.mxu2 %v4558_v36 }
 0x5aa   : > { %4509 = vmatpush.bf16.msrb.mxu1 %v4488_v26  ;;  %v3000_v20 = vunpack.c.l.b16 %v2872_v53 }
 0x5ab   : > { %4588 = vmatpush.msrb.mxu2 %v4557_v61 }
 0x5ac   : > { %v1991_v6 = vpop.permute.xlu1 %1990 }
 0x5ad   : > { %v2476_v2 = vsel %vm2426_vm4, %v2411_v33, %v1991_v6 }
 0x5ae   : > { %v2541_v34 = vsel %vm2491_vm5, %v2476_v2, %v2055_v46  ;;  %v16085_v46 = vld [vmem:[#allocation69_spill] sm:$0xff] }
 0x5af   : > { %v2630_v0 = vsel %vm2556_vm6, %v2541_v34, %v2119_v9  ;;  %v10731_v2 = vunpack.i.l.bf16 %v16085_v46 }
 0x5b0   : > { %v2701_v22 = vunpack.c.l.bf16 %v2630_v0  ;;  %v2702_v39 = vunpack.c.h.bf16 %v2630_v0 }
 0x5b1   : > { %v2876_v9 = vpack.c.bf16 %v10731_v2, %v10731_v2  ;;  %v10719_v2 = vunpack.i.h.bf16 %v16086_v4 }
 0x5b2   : > { %v2781_v11 = vmul.f32 %v16075_v54, %v2701_v22  ;;  %v2782_v50 = vmul.f32 %v16076_v42, %v2702_v39  ;;  %v10716_v22 = vunpack.i.l.bf16 %v16086_v4  ;;  %v16087_v39 = vld [vmem:[#allocation64_spill] sm:$0xff] }
 0x5b3   : > { %v3004_v17 = vunpack.c.l.b16 %v2876_v9 }
 0x5b4   : > { %v2845_v60 = vpack.c.bf16 %v2781_v11, %v2781_v11  ;;  %v2846_v27 = vpack.c.bf16 %v2782_v50, %v2782_v50  ;;  %v10721_v11 = vunpack.i.l.bf16 %v16087_v39  ;;  %v2873_v50 = vpack.c.bf16 %v10716_v22, %v10716_v22 }
 0x5b6   : > { %v4471_v57 = vunpack.c.l.b16 %v2845_v60  ;;  %v4472_v51 = vunpack.c.l.b16 %v2846_v27  ;;  %v2874_v28 = vpack.c.bf16 %v10721_v11, %v10721_v11  ;;  %v3001_v35 = vunpack.c.l.b16 %v2873_v50  ;;  %v16092_v50 = vld [vmem:[#allocation47_spill] sm:$0xff] }
 0x5b7   : > { %v10686_v4 = vunpack.i.l.bf16 %v16092_v50 }
 0x5b8   : > { %v4487_v43 = vpack.c.b16 %v4472_v51, %v4471_v57  ;;  %v3002_v60 = vunpack.c.l.b16 %v2874_v28  ;;  %v16088_v57 = vld [vmem:[#allocation55_spill] sm:$0xff]  ;;  %v16093_v28 = vld [vmem:[#allocation49_spill] sm:$0xff] }
 0x5b9   : > { %v10706_v51 = vunpack.i.l.bf16 %v16088_v57 }
 0x5ba   : > { %4510 = vmatpush.bf16.msrb.mxu1 %v4487_v43  ;;  %v13344_v27 = vpack.c.b16 %v3002_v60, %v3001_v35 }
 0x5bb   : > { %v2871_v43 = vpack.c.bf16 %v10706_v51, %v10706_v51 }
 0x5bd   : > { %4511 = vmatmul.bf16.vlgmr.msrb.gmra.mxu1 %v4453_v14  ;;  %v4520_v47 = vpop.xlane.xlu0 %4519  ;;  %v2999_v14 = vunpack.c.l.b16 %v2871_v43  ;;  %v2867_v43 = vpack.c.bf16 %v10686_v4, %v10686_v4 }
 0x5be   : > { %v4534_v40 = vsub.f32 %v13236_v23, %v4520_v47 }
 0x5bf   : > { %v13355_v18 = vpack.c.b16 %v3000_v20, %v2999_v14 }
 0x5c0   : > { %v4543_v44 = vmul.f32 1.442695, %v4534_v40 }
 0x5cf   : > { %v4522_v49 = vpop.xlane.xlu2 %4521 }
 0x5d0   : > { %v4535_v48 = vsub.f32 %v13244_v15, %v4522_v49 }
 0x5d2   : > { %v4545_v26 = vmul.f32 1.442695, %v4535_v48 }
 0x5d7   : > { %v4518_v24 = vpop.xlane.xlu1 %4517 }
 0x5d8   : > { %v4533_v58 = vsub.f32 %v13223_v16, %v4518_v24  ;;  %v10734_v24 = vunpack.i.h.bf16 %v16085_v46 }
 0x5da   : > { %v4541_v29 = vmul.f32 1.442695, %v4533_v58  ;;  %v2892_v58 = vpack.c.bf16 %v10734_v24, %v10734_v24 }
 0x5dc   : > { %10909 = vpow2.f32 %v4541_v29  ;;  %v16090_v29 = vld [vmem:[#allocation51_spill] sm:$0xff] }
 0x5dd   : > { %10911 = vpow2.f32 %v4543_v44  ;;  %v10696_v40 = vunpack.i.l.bf16 %v16090_v29  ;;  %v16091_v44 = vld [vmem:[#allocation53_spill] sm:$0xff] }
 0x5de   : > { %10913 = vpow2.f32 %v4545_v26  ;;  %v10701_v49 = vunpack.i.l.bf16 %v16091_v44  ;;  %v3020_v26 = vunpack.c.l.b16 %v2892_v58 }
 0x5df   : > { %v4524_v8 = vpop.xlane.xlu1 %4523 }
 0x5e0   : > { %v4536_v16 = vsub.f32 %v13255_v10, %v4524_v8  ;;  %v16084_v10 = vld [vmem:[#allocation67_spill] sm:$0xff]  ;;  %v2869_v8 = vpack.c.bf16 %v10696_v40, %v10696_v40 }
 0x5e1   : > { %v10726_v52 = vunpack.i.l.bf16 %v16084_v10  ;;  %v10729_v61 = vunpack.i.h.bf16 %v16084_v10 }
 0x5e2   : > { %v13312_v37 = vpop.eup %10909  ;;  %v4547_v23 = vmul.f32 1.442695, %v4536_v16  ;;  %v2870_v16 = vpack.c.bf16 %v10701_v49, %v10701_v49  ;;  %v2997_v10 = vunpack.c.l.b16 %v2869_v8  ;;  %v10709_v49 = vunpack.i.h.bf16 %v16088_v57 }
 0x5e3   : > { %16080 = vst [vmem:[#allocation77_spill] sm:$0xff] %v13312_v37  ;;  %4589 = vmatmul.f32.vlgmr.msrb.gmra.mxu2 %v13312_v37  ;;  %v13316_v30 = vpop.eup %10911  ;;  %v2875_v12 = vpack.c.bf16 %v10726_v52, %v10726_v52  ;;  %v2891_v47 = vpack.c.bf16 %v10729_v61, %v10729_v61  ;;  %v2995_v61 = vunpack.c.l.b16 %v2867_v43 }
 0x5e4   : > { %16081 = vst [vmem:[#allocation88_spill] sm:$0xff] %v13316_v30  ;;  %v13320_v59 = vpop.eup %10913  ;;  %10915 = vpow2.f32 %v4547_v23  ;;  %v2998_v52 = vunpack.c.l.b16 %v2870_v16  ;;  %v2887_v8 = vpack.c.bf16 %v10709_v49, %v10709_v49 }
 0x5e5   : > { %16082 = vst [vmem:[#allocation52_spill] sm:$0xff] %v13320_v59  ;;  %v3003_v34 = vunpack.c.l.b16 %v2875_v12  ;;  %v3019_v48 = vunpack.c.l.b16 %v2891_v47  ;;  %v10724_v12 = vunpack.i.h.bf16 %v16087_v39  ;;  %v10691_v39 = vunpack.i.l.bf16 %v16093_v28 }
 0x5e6   : > { %v13380_v46 = vpack.c.b16 %v2998_v52, %v2997_v10  ;;  %v3015_v10 = vunpack.c.l.b16 %v2887_v8 }
 0x5e7   : > { %v13334_v0 = vpack.c.b16 %v3004_v17, %v3003_v34  ;;  %v13372_v23 = vpack.c.b16 %v3020_v26, %v3019_v48  ;;  %v2889_v17 = vpack.c.bf16 %v10719_v2, %v10719_v2  ;;  %v2890_v22 = vpack.c.bf16 %v10724_v12, %v10724_v12 }
 0x5e8   : > { %v2868_v53 = vpack.c.bf16 %v10691_v39, %v10691_v39  ;;  %v10714_v48 = vunpack.i.h.bf16 %v16089_v55 }
 0x5e9   : > { %v3017_v35 = vunpack.c.l.b16 %v2889_v17  ;;  %v3018_v60 = vunpack.c.l.b16 %v2890_v22 }
 0x5ea   : > { %v13323_v6 = vpop.eup %10915  ;;  %v2996_v24 = vunpack.c.l.b16 %v2868_v53  ;;  %v2888_v16 = vpack.c.bf16 %v10714_v48, %v10714_v48  ;;  %v16099_v48 = vld [vmem:[#allocation84_spill] sm:$0xff] }
 0x5eb   : > { %4592 = vmatmul.f32.gmra.mxu2 %v13316_v30  ;;  %16083 = vst [vmem:[#allocation85_spill] sm:$0xff] %v13323_v6  ;;  %v13408_v14 = vpack.c.b16 %v3018_v60, %v3017_v35  ;;  %v10899_v8 = vunpack.i.l.bf16 %v16099_v48 }
 0x5ec   : > { %v13421_v58 = vpack.c.b16 %v2996_v24, %v2995_v61  ;;  %v3016_v52 = vunpack.c.l.b16 %v2888_v16  ;;  %v16098_v24 = vld [vmem:[#allocation83_spill] sm:$0xff] }
 0x5ed   : > { %v10894_v49 = vunpack.i.l.bf16 %v16098_v24 }
 0x5ee   : > { %v13450_v57 = vpack.c.b16 %v3016_v52, %v3015_v10 }
 0x5f3   : > { %4595 = vmatmul.f32.gmra.mxu2 %v13320_v59 }
 0x5f8   : > { %v13325_v15 = vpop.f32.mrf.mxu0 }
 0x5f9   : > { %4525 = vmax.xlane.f32.xlu0 %v13325_v15 }
 0x5fb   : > { %4598 = vmatmul.f32.gmra.mxu2 %v13323_v6 }
 0x600   : > { %v13329_v33 = vpop.f32.mrf.mxu0 }
 0x601   : > { %4527 = vmax.xlane.f32.xlu2 %v13329_v33 }
 0x619   : > { %3099 = vrot.lane.b32.xlu2 %v13334_v0, %s11384_s7 }
 0x621   : > { %3291 = vrot.lane.b32.xlu2 %v13334_v0, %s11386_s27 }
 0x629   : > { %3483 = vrot.lane.b32.xlu2 %v13334_v0, %s11389_s16 }
 0x631   : > { %3225 = vrot.lane.b32.xlu2 %v13344_v27, %s11385_s5 }
 0x639   : > { %3417 = vrot.lane.b32.xlu2 %v13344_v27, %s11388_s13 }
 0x63a   : > { %v13352_v45 = vpop.f32.mrf.mxu1 }
 0x63b   : > { %4529 = vmax.xlane.f32.xlu1 %v13352_v45 }
 0x641   : > { %3159 = vrot.lane.b32.xlu2 %v13355_v18, %s11383_s4 }
 0x642   : > { %v13359_v36 = vpop.f32.mrf.mxu1 }
 0x643   : > { %4531 = vmax.xlane.f32.xlu0 %v13359_v36 }
 0x649   : > { %3351 = vrot.lane.b32.xlu2 %v13355_v18, %s11387_s2 }
 0x651   : > { %3479 = vrot.lane.b32.xlu2 %v13355_v18, %s11389_s16 }
 0x654   : > { %3163 = vrot.lane.b32.xlu1 %v13334_v0, %s11383_s4 }
 0x657   : > { %3227 = vrot.lane.b32.xlu0 %v13334_v0, %s11385_s5 }
 0x659   : > { %3243 = vrot.lane.b32.xlu2 %v13372_v23, %s11385_s5 }
 0x65c   : > { %3419 = vrot.lane.b32.xlu1 %v13334_v0, %s11388_s13 }
 0x65f   : > { %3355 = vrot.lane.b32.xlu0 %v13334_v0, %s11387_s2 }
 0x661   : > { %3221 = vrot.lane.b32.xlu2 %v13380_v46, %s11385_s5 }
 0x664   : > { %3161 = vrot.lane.b32.xlu1 %v13344_v27, %s11383_s4 }
 0x667   : > { %3097 = vrot.lane.b32.xlu0 %v13344_v27, %s11384_s7 }
 0x669   : > { %3435 = vrot.lane.b32.xlu2 %v13372_v23, %s11388_s13 }
 0x66c   : > { %v4526_v9 = vpop.xlane.xlu0 %4525  ;;  %3353 = vrot.lane.b32.xlu1 %v13344_v27, %s11387_s2 }
 0x66d   : > { %v4537_v34 = vsub.f32 %v13325_v15, %v4526_v9 }
 0x66f   : > { %v4549_v11 = vmul.f32 1.442695, %v4537_v34  ;;  %3289 = vrot.lane.b32.xlu0 %v13344_v27, %s11386_s27 }
 0x671   : > { %10917 = vpow2.f32 %v4549_v11  ;;  %3413 = vrot.lane.b32.xlu2 %v13380_v46, %s11388_s13 }
 0x674   : > { %v4528_v51 = vpop.xlane.xlu2 %4527  ;;  %3095 = vrot.lane.b32.xlu1 %v13355_v18, %s11384_s7 }
 0x675   : > { %v4538_v15 = vsub.f32 %v13329_v33, %v4528_v51  ;;  %v10699_v51 = vunpack.i.h.bf16 %v16090_v29 }
 0x677   : > { %v13406_v5 = vpop.eup %10917  ;;  %v4551_v20 = vmul.f32 1.442695, %v4538_v15  ;;  %3481 = vrot.lane.b32.xlu0 %v13344_v27, %s11389_s16  ;;  %v10704_v15 = vunpack.i.h.bf16 %v16091_v44 }
 0x678   : > { %16094 = vst [vmem:[#allocation86_spill] sm:$0xff] %v13406_v5  ;;  %4601 = vmatmul.f32.gmra.mxu2 %v13406_v5 }
 0x679   : > { %10919 = vpow2.f32 %v4551_v20  ;;  %3177 = vrot.lane.b32.xlu2 %v13408_v14, %s11383_s4  ;;  %v2885_v20 = vpack.c.bf16 %v10699_v51, %v10699_v51  ;;  %v2886_v61 = vpack.c.bf16 %v10704_v15, %v10704_v15 }
 0x67b   : > { %v3013_v29 = vunpack.c.l.b16 %v2885_v20  ;;  %v3014_v44 = vunpack.c.l.b16 %v2886_v61 }
 0x67c   : > { %v13415_v47 = vpop.permute.xlu2 %3099  ;;  %3287 = vrot.lane.b32.xlu1 %v13355_v18, %s11386_s27 }
 0x67d   : > { %v3556_v10 = vsel %vm2134_vm0, %v13334_v0, %v13415_v47  ;;  %v13527_v61 = vpack.c.b16 %v3014_v44, %v3013_v29  ;;  %v10902_v29 = vunpack.i.h.bf16 %v16099_v48 }
 0x67f   : > { %v13419_v33 = vpop.eup %10919  ;;  %3223 = vrot.lane.b32.xlu0 %v13355_v18, %s11385_s5 }
 0x680   : > { %16095 = vst [vmem:[#allocation91_spill] sm:$0xff] %v13419_v33  ;;  %4604 = vmatmul.f32.gmra.mxu2 %v13419_v33 }
 0x681   : > { %3155 = vrot.lane.b32.xlu2 %v13421_v58, %s11383_s4 }
 0x684   : > { %v13428_v40 = vpop.permute.xlu2 %3291  ;;  %3115 = vrot.lane.b32.xlu1 %v13372_v23, %s11384_s7 }
 0x687   : > { %3415 = vrot.lane.b32.xlu0 %v13355_v18, %s11388_s13 }
 0x689   : > { %3369 = vrot.lane.b32.xlu2 %v13408_v14, %s11387_s2 }
 0x68c   : > { %v13438_v26 = vpop.permute.xlu2 %3483  ;;  %3093 = vrot.lane.b32.xlu1 %v13380_v46, %s11384_s7 }
 0x68f   : > { %3179 = vrot.lane.b32.xlu0 %v13372_v23, %s11383_s4 }
 0x691   : > { %3347 = vrot.lane.b32.xlu2 %v13421_v58, %s11387_s2 }
 0x694   : > { %v13446_v2 = vpop.permute.xlu2 %3225  ;;  %3307 = vrot.lane.b32.xlu1 %v13372_v23, %s11386_s27 }
 0x697   : > { %3157 = vrot.lane.b32.xlu0 %v13380_v46, %s11383_s4 }
 0x699   : > { %3111 = vrot.lane.b32.xlu2 %v13450_v57, %s11384_s7 }
 0x69c   : > { %v13456_v55 = vpop.permute.xlu2 %3417  ;;  %3285 = vrot.lane.b32.xlu1 %v13380_v46, %s11386_s27 }
 0x69f   : > { %3371 = vrot.lane.b32.xlu0 %v13372_v23, %s11387_s2 }
 0x6a1   : > { %3175 = vrot.lane.b32.xlu2 %v13450_v57, %s11383_s4 }
 0x6a4   : > { %v13464_v12 = vpop.permute.xlu2 %3159  ;;  %3499 = vrot.lane.b32.xlu1 %v13372_v23, %s11389_s16 }
 0x6a7   : > { %3349 = vrot.lane.b32.xlu0 %v13380_v46, %s11387_s2 }
 0x6a9   : > { %3239 = vrot.lane.b32.xlu2 %v13450_v57, %s11385_s5 }
 0x6ac   : > { %v13472_v9 = vpop.permute.xlu2 %3351  ;;  %3477 = vrot.lane.b32.xlu1 %v13380_v46, %s11389_s16 }
 0x6ae   : > { %v4530_v34 = vpop.xlane.xlu1 %4529 }
 0x6af   : > { %v4539_v17 = vsub.f32 %v13352_v45, %v4530_v34  ;;  %3113 = vrot.lane.b32.xlu0 %v13408_v14, %s11384_s7  ;;  %v2907_v34 = vpack.c.bf16 %v10894_v49, %v10894_v49 }
 0x6b1   : > { %v4553_v22 = vmul.f32 1.442695, %v4539_v17  ;;  %3303 = vrot.lane.b32.xlu2 %v13450_v57, %s11386_s27  ;;  %v2908_v17 = vpack.c.bf16 %v10899_v8, %v10899_v8  ;;  %v3035_v0 = vunpack.c.l.b16 %v2907_v34 }
 0x6b3   : > { %10921 = vpow2.f32 %v4553_v22  ;;  %v3036_v47 = vunpack.c.l.b16 %v2908_v17 }
 0x6b4   : > { %v13481_v11 = vpop.permute.xlu2 %3479  ;;  %3241 = vrot.lane.b32.xlu1 %v13408_v14, %s11385_s5 }
 0x6b6   : > { %v4532_v4 = vpop.xlane.xlu0 %4531 }
 0x6b7   : > { %v4540_v39 = vsub.f32 %v13359_v36, %v4532_v4  ;;  %3091 = vrot.lane.b32.xlu0 %v13421_v58, %s11384_s7  ;;  %v16100_v4 = vld [vmem:[#allocation43_spill] sm:$0xff] }
 0x6b9   : > { %v13488_v45 = vpop.eup %10921  ;;  %v4555_v35 = vmul.f32 1.442695, %v4540_v39  ;;  %3367 = vrot.lane.b32.xlu2 %v13450_v57, %s11387_s2  ;;  %v10676_v39 = vunpack.i.l.bf16 %v16100_v4 }
 0x6ba   : > { %16096 = vst [vmem:[#allocation89_spill] sm:$0xff] %v13488_v45  ;;  %4607 = vmatmul.f32.gmra.mxu2 %v13488_v45 }
 0x6bb   : > { %10923 = vpow2.f32 %v4555_v35  ;;  %v16101_v35 = vld [vmem:[#allocation45_spill] sm:$0xff] }
 0x6bc   : > { %v13493_v60 = vpop.permute.xlu2 %3243  ;;  %3219 = vrot.lane.b32.xlu1 %v13421_v58, %s11385_s5  ;;  %v10681_v51 = vunpack.i.l.bf16 %v16101_v35 }
 0x6be   : > { %v2866_v8 = vpack.c.bf16 %v10681_v51, %v10681_v51 }
 0x6bf   : > { %3305 = vrot.lane.b32.xlu0 %v13408_v14, %s11386_s27 }
 0x6c1   : > { %v13499_v36 = vpop.eup %10923  ;;  %3431 = vrot.lane.b32.xlu2 %v13450_v57, %s11388_s13 }
 0x6c2   : > { %16097 = vst [vmem:[#allocation33_spill] sm:$0xff] %v13499_v36  ;;  %4610 = vmatmul.f32.gmra.mxu2 %v13499_v36 }
 0x6c4   : > { %v13506_v43 = vpop.permute.xlu2 %3221  ;;  %3433 = vrot.lane.b32.xlu1 %v13408_v14, %s11388_s13 }
 0x6c6   : > { %v3164_v53 = vpop.permute.xlu1 %3163 }
 0x6c7   : > { %3283 = vrot.lane.b32.xlu0 %v13421_v58, %s11386_s27  ;;  %v3644_v22 = vsel %vm2231_vm1, %v3556_v10, %v3164_v53  ;;  %v2865_v53 = vpack.c.bf16 %v10676_v39, %v10676_v39 }
 0x6c9   : > { %v3228_v16 = vpop.permute.xlu0 %3227  ;;  %3495 = vrot.lane.b32.xlu2 %v13450_v57, %s11389_s16  ;;  %v2993_v51 = vunpack.c.l.b16 %v2865_v53  ;;  %v16103_v53 = vld [vmem:[#allocation41_spill] sm:$0xff] }
 0x6ca   : > { %v3708_v15 = vsel %vm2296_vm2, %v3644_v22, %v3228_v16  ;;  %v10897_v16 = vunpack.i.h.bf16 %v16098_v24 }
 0x6cb   : > { %v3772_v49 = vsel %vm2361_vm3, %v3708_v15, %v13428_v40  ;;  %v13545_v40 = vpack.c.b16 %v3036_v47, %v3035_v0  ;;  %v16102_v0 = vld [vmem:[#allocation39_spill] sm:$0xff] }
 0x6cc   : > { %v13519_v52 = vpop.permute.xlu2 %3435  ;;  %3411 = vrot.lane.b32.xlu1 %v13421_v58, %s11388_s13  ;;  %v2923_v24 = vpack.c.bf16 %v10897_v16, %v10897_v16  ;;  %v10666_v47 = vunpack.i.l.bf16 %v16102_v0 }
 0x6ce   : > { %v3420_v20 = vpop.permute.xlu1 %3419  ;;  %v3051_v16 = vunpack.c.l.b16 %v2923_v24 }
 0x6cf   : > { %3497 = vrot.lane.b32.xlu0 %v13408_v14, %s11389_s16 }
 0x6d1   : > { %v3356_v45 = vpop.permute.xlu0 %3355  ;;  %3109 = vrot.lane.b32.xlu2 %v13527_v61, %s11384_s7 }
 0x6d2   : > { %v3836_v10 = vsel %vm2426_vm4, %v3772_v49, %v3356_v45  ;;  %v2994_v45 = vunpack.c.l.b16 %v2866_v8  ;;  %v2924_v49 = vpack.c.bf16 %v10902_v29, %v10902_v29  ;;  %v10671_v8 = vunpack.i.l.bf16 %v16103_v53 }
 0x6d3   : > { %v3900_v44 = vsel %vm2491_vm5, %v3836_v10, %v3420_v20 }
 0x6d4   : > { %v3971_v34 = vsel %vm2556_vm6, %v3900_v44, %v13438_v26  ;;  %v13541_v17 = vpop.permute.xlu2 %3413  ;;  %3475 = vrot.lane.b32.xlu1 %v13421_v58, %s11389_s16  ;;  %v3052_v29 = vunpack.c.l.b16 %v2924_v49  ;;  %v2864_v59 = vpack.c.bf16 %v10671_v8, %v10671_v8  ;;  %v16104_v49 = vld [vmem:[#allocation81_spill] sm:$0xff] }
 0x6d5   : > { %v4059_v22 = vunpack.c.l.bf16 %v3971_v34  ;;  %v4060_v39 = vunpack.c.h.bf16 %v3971_v34  ;;  %v13555_v34 = vpack.c.b16 %v2994_v45, %v2993_v51 }
 0x6d6   : > { %v3162_v15 = vpop.permute.xlu1 %3161  ;;  %v13563_v6 = vpack.c.b16 %v3052_v29, %v3051_v16 }
 0x6d7   : > { %v4123_v48 = vmul.f32 %v12327_v56, %v4059_v22  ;;  %v4124_v20 = vmul.f32 %v12329_v25, %v4060_v39  ;;  %3131 = vrot.lane.b32.xlu0 %v13545_v40, %s11384_s7 }
 0x6d9   : > { %v4187_v26 = vpack.c.bf16 %v4123_v48, %v4123_v48  ;;  %v4188_v10 = vpack.c.bf16 %v4124_v20, %v4124_v20  ;;  %v3098_v44 = vpop.permute.xlu0 %3097  ;;  %3173 = vrot.lane.b32.xlu2 %v13527_v61, %s11383_s4  ;;  %v2863_v20 = vpack.c.bf16 %v10666_v47, %v10666_v47 }
 0x6da   : > { %v3553_v39 = vsel %vm2134_vm0, %v13344_v27, %v3098_v44 }
 0x6db   : > { %v4674_v22 = vunpack.c.l.b16 %v4187_v26  ;;  %v4675_v36 = vunpack.c.l.b16 %v4188_v10  ;;  %v3642_v51 = vsel %vm2231_vm1, %v3553_v39, %v3162_v15  ;;  %v2991_v27 = vunpack.c.l.b16 %v2863_v20  ;;  %v16105_v10 = vld [vmem:[#allocation82_spill] sm:$0xff] }
 0x6dc   : > { %v13559_v5 = vpop.permute.xlu2 %3177  ;;  %3089 = vrot.lane.b32.xlu1 %v13555_v34, %s11384_s7  ;;  %v3706_v24 = vsel %vm2296_vm2, %v3642_v51, %v13446_v2  ;;  %v10884_v26 = vunpack.i.l.bf16 %v16104_v49  ;;  %v10889_v44 = vunpack.i.l.bf16 %v16105_v10 }
 0x6dd   : > { %v4683_v48 = vpack.c.b16 %v4675_v36, %v4674_v22  ;;  %v2992_v36 = vunpack.c.l.b16 %v2864_v59 }
 0x6de   : > { %v3354_v33 = vpop.permute.xlu1 %3353  ;;  %v2905_v22 = vpack.c.bf16 %v10884_v26, %v10884_v26  ;;  %v2906_v39 = vpack.c.bf16 %v10889_v44, %v10889_v44 }
 0x6df   : > { %3195 = vrot.lane.b32.xlu0 %v13545_v40, %s11383_s4  ;;  %4692 = vmatpush.bf16.xpose.msra.mxu3 %v4683_v48  ;;  %v13580_v29 = vpack.c.b16 %v2992_v36, %v2991_v27 }
 0x6e0   : > { %v3033_v20 = vunpack.c.l.b16 %v2905_v22  ;;  %v3034_v51 = vunpack.c.l.b16 %v2906_v39 }
 0x6e1   : > { %v3290_v45 = vpop.permute.xlu0 %3289  ;;  %3147 = vrot.lane.b32.xlu2 %v13563_v6, %s11384_s7 }
 0x6e2   : > { %v3770_v47 = vsel %vm2361_vm3, %v3706_v24, %v3290_v45 }
 0x6e3   : > { %v3834_v8 = vsel %vm2426_vm4, %v3770_v47, %v3354_v33 }
 0x6e4   : > { %v13575_v15 = vpop.permute.xlu2 %3155  ;;  %3153 = vrot.lane.b32.xlu1 %v13555_v34, %s11383_s4  ;;  %v3898_v2 = vsel %vm2491_vm5, %v3834_v8, %v13456_v55  ;;  %v13595_v55 = vpack.c.b16 %v3034_v51, %v3033_v20 }
 0x6e6   : > { %v3096_v16 = vpop.permute.xlu1 %3095 }
 0x6e7   : > { %3259 = vrot.lane.b32.xlu0 %v13545_v40, %s11385_s5  ;;  %v3550_v44 = vsel %vm2134_vm0, %v13355_v18, %v3096_v16 }
 0x6e9   : > { %v3482_v59 = vpop.permute.xlu0 %3481  ;;  %3151 = vrot.lane.b32.xlu2 %v13580_v29, %s11383_s4 }
 0x6ea   : > { %v3968_v48 = vsel %vm2556_vm6, %v3898_v2, %v3482_v59  ;;  %v3640_v2 = vsel %vm2231_vm1, %v3550_v44, %v13464_v12 }
 0x6eb   : > { %v4057_v33 = vunpack.c.l.bf16 %v3968_v48  ;;  %v4058_v45 = vunpack.c.h.bf16 %v3968_v48 }
 0x6ec   : > { %v13589_v27 = vpop.permute.xlu2 %3369  ;;  %3217 = vrot.lane.b32.xlu1 %v13555_v34, %s11385_s5 }
 0x6ed   : > { %v4121_v24 = vmul.f32 %v12304_v63, %v4057_v33  ;;  %v4122_v36 = vmul.f32 %v12310_v1, %v4058_v45 }
 0x6ee   : > { %v3288_v26 = vpop.permute.xlu1 %3287 }
 0x6ef   : > { %v4185_v47 = vpack.c.bf16 %v4121_v24, %v4121_v24  ;;  %v4186_v8 = vpack.c.bf16 %v4122_v36, %v4122_v36  ;;  %3323 = vrot.lane.b32.xlu0 %v13545_v40, %s11386_s27 }
 0x6f1   : > { %v4672_v22 = vunpack.c.l.b16 %v4185_v47  ;;  %v4673_v39 = vunpack.c.l.b16 %v4186_v8  ;;  %v3224_v59 = vpop.permute.xlu0 %3223  ;;  %3321 = vrot.lane.b32.xlu2 %v13595_v55, %s11386_s27 }
 0x6f2   : > { %v3704_v48 = vsel %vm2296_vm2, %v3640_v2, %v3224_v59 }
 0x6f3   : > { %v4682_v20 = vpack.c.b16 %v4673_v39, %v4672_v22  ;;  %v3768_v18 = vsel %vm2361_vm3, %v3704_v48, %v3288_v26 }
 0x6f4   : > { %v13606_v51 = vpop.permute.xlu2 %3347  ;;  %3281 = vrot.lane.b32.xlu1 %v13555_v34, %s11386_s27  ;;  %v3832_v45 = vsel %vm2426_vm4, %v3768_v18, %v13472_v9 }
 0x6f5   : > { %4693 = vmatpush.bf16.xpose.msra.mxu3 %v4682_v20 }
 0x6f6   : > { %v3116_v16 = vpop.permute.xlu1 %3115 }
 0x6f7   : > { %3387 = vrot.lane.b32.xlu0 %v13545_v40, %s11387_s2 }
 0x6f9   : > { %v3416_v33 = vpop.permute.xlu0 %3415  ;;  %3365 = vrot.lane.b32.xlu2 %v13527_v61, %s11387_s2 }
 0x6fa   : > { %v3896_v12 = vsel %vm2491_vm5, %v3832_v45, %v3416_v33  ;;  %v10689_v45 = vunpack.i.h.bf16 %v16092_v50 }
 0x6fb   : > { %v3965_v24 = vsel %vm2556_vm6, %v3896_v12, %v13481_v11  ;;  %v10694_v12 = vunpack.i.h.bf16 %v16093_v28 }
 0x6fc   : > { %v4055_v36 = vunpack.c.l.bf16 %v3965_v24  ;;  %v4056_v44 = vunpack.c.h.bf16 %v3965_v24  ;;  %v13620_v47 = vpop.permute.xlu2 %3111  ;;  %3345 = vrot.lane.b32.xlu1 %v13555_v34, %s11387_s2 }
 0x6fe   : > { %v3094_v26 = vpop.permute.xlu1 %3093  ;;  %v4119_v8 = vmul.f32 %v16049_v62, %v4055_v36  ;;  %v4120_v9 = vmul.f32 %v16050_v13, %v4056_v44  ;;  %v3580_v36 = vsel %vm2134_vm0, %v13372_v23, %v3116_v16 }
 0x6ff   : > { %3451 = vrot.lane.b32.xlu0 %v13545_v40, %s11388_s13 }
 0x700   : > { %v4183_v22 = vpack.c.bf16 %v4119_v8, %v4119_v8  ;;  %v4184_v39 = vpack.c.bf16 %v4120_v9, %v4120_v9  ;;  %v2883_v9 = vpack.c.bf16 %v10689_v45, %v10689_v45 }
 0x701   : > { %v3180_v59 = vpop.permute.xlu0 %3179  ;;  %3339 = vrot.lane.b32.xlu2 %v13563_v6, %s11386_s27 }
 0x702   : > { %v4670_v11 = vunpack.c.l.b16 %v4183_v22  ;;  %v4671_v2 = vunpack.c.l.b16 %v4184_v39  ;;  %v3660_v44 = vsel %vm2231_vm1, %v3580_v36, %v3180_v59  ;;  %v2884_v22 = vpack.c.bf16 %v10694_v12, %v10694_v12 }
 0x703   : > { %v3724_v50 = vsel %vm2296_vm2, %v3660_v44, %v13493_v60  ;;  %v3547_v59 = vsel %vm2134_vm0, %v13380_v46, %v3094_v26 }
 0x704   : > { %v13630_v48 = vpop.permute.xlu2 %3175  ;;  %3409 = vrot.lane.b32.xlu1 %v13555_v34, %s11388_s13  ;;  %v4681_v20 = vpack.c.b16 %v4671_v2, %v4670_v11  ;;  %v3011_v11 = vunpack.c.l.b16 %v2883_v9  ;;  %v3012_v2 = vunpack.c.l.b16 %v2884_v22 }
 0x706   : > { %4694 = vmatpush.bf16.xpose.msra.mxu3 %v4681_v20  ;;  %v3308_v18 = vpop.permute.xlu1 %3307  ;;  %v13664_v12 = vpack.c.b16 %v3012_v2, %v3011_v11 }
 0x707   : > { %3515 = vrot.lane.b32.xlu0 %v13545_v40, %s11389_s16  ;;  %v3788_v39 = vsel %vm2361_vm3, %v3724_v50, %v3308_v18 }
 0x709   : > { %v3158_v33 = vpop.permute.xlu0 %3157  ;;  %3343 = vrot.lane.b32.xlu2 %v13580_v29, %s11387_s2 }
 0x70a   : > { %v3638_v60 = vsel %vm2231_vm1, %v3547_v59, %v3158_v33  ;;  %v16106_v33 = vld [vmem:[#allocation37_spill] sm:$0xff] }
 0x70b   : > { %v3702_v9 = vsel %vm2296_vm2, %v3638_v60, %v13506_v43  ;;  %v10656_v50 = vunpack.i.l.bf16 %v16106_v33 }
 0x70c   : > { %v13640_v24 = vpop.permute.xlu2 %3239  ;;  %3473 = vrot.lane.b32.xlu1 %v13555_v34, %s11389_s16 }
 0x70e   : > { %v3286_v8 = vpop.permute.xlu1 %3285 }
 0x70f   : > { %3129 = vrot.lane.b32.xlu0 %v13595_v55, %s11384_s7  ;;  %v3766_v46 = vsel %vm2361_vm3, %v3702_v9, %v3286_v8 }
 0x711   : > { %v3372_v28 = vpop.permute.xlu0 %3371  ;;  %3513 = vrot.lane.b32.xlu2 %v13595_v55, %s11389_s16 }
 0x712   : > { %v3852_v23 = vsel %vm2426_vm4, %v3788_v39, %v3372_v28  ;;  %v16107_v28 = vld [vmem:[#allocation38_spill] sm:$0xff] }
 0x713   : > { %v3916_v20 = vsel %vm2491_vm5, %v3852_v23, %v13519_v52  ;;  %v10661_v39 = vunpack.i.l.bf16 %v16107_v28 }
 0x714   : > { %v13655_v16 = vpop.permute.xlu2 %3303  ;;  %3087 = vrot.lane.b32.xlu1 %v13580_v29, %s11384_s7 }
 0x716   : > { %v3500_v45 = vpop.permute.xlu1 %3499 }
 0x717   : > { %v3995_v18 = vsel %vm2556_vm6, %v3916_v20, %v3500_v45  ;;  %3193 = vrot.lane.b32.xlu0 %v13595_v55, %s11383_s4  ;;  %v2861_v45 = vpack.c.bf16 %v10656_v50, %v10656_v50 }
 0x718   : > { %v4075_v36 = vunpack.c.l.bf16 %v3995_v18  ;;  %v4076_v44 = vunpack.c.h.bf16 %v3995_v18  ;;  %v2862_v18 = vpack.c.bf16 %v10661_v39, %v10661_v39  ;;  %v16108_v39 = vld [vmem:[#allocation79_spill] sm:$0xff] }
 0x719   : > { %v3350_v22 = vpop.permute.xlu0 %3349  ;;  %3107 = vrot.lane.b32.xlu2 %v13664_v12, %s11384_s7 }
 0x71a   : > { %v4139_v52 = vmul.f32 %v12327_v56, %v4075_v36  ;;  %v4140_v26 = vmul.f32 %v12329_v25, %v4076_v44  ;;  %v3830_v11 = vsel %vm2426_vm4, %v3766_v46, %v3350_v22  ;;  %v2990_v50 = vunpack.c.l.b16 %v2862_v18 }
 0x71b   : > { %v3894_v8 = vsel %vm2491_vm5, %v3830_v11, %v13541_v17  ;;  %v2989_v17 = vunpack.c.l.b16 %v2861_v45  ;;  %v10874_v11 = vunpack.i.l.bf16 %v16108_v39 }
 0x71c   : > { %v4203_v2 = vpack.c.bf16 %v4139_v52, %v4139_v52  ;;  %v4204_v23 = vpack.c.bf16 %v4140_v26, %v4140_v26  ;;  %v13679_v59 = vpop.permute.xlu2 %3367  ;;  %3257 = vrot.lane.b32.xlu1 %v13595_v55, %s11385_s5 }
 0x71d   : > { %v13696_v30 = vpack.c.b16 %v2990_v50, %v2989_v17 }
 0x71e   : > { %v4742_v43 = vunpack.c.l.b16 %v4203_v2  ;;  %v4743_v60 = vunpack.c.l.b16 %v4204_v23  ;;  %v3478_v20 = vpop.permute.xlu1 %3477  ;;  %v16109_v2 = vld [vmem:[#allocation80_spill] sm:$0xff] }
 0x71f   : > { %v3962_v36 = vsel %vm2556_vm6, %v3894_v8, %v3478_v20  ;;  %3237 = vrot.lane.b32.xlu0 %v13527_v61, %s11385_s5  ;;  %v10879_v23 = vunpack.i.l.bf16 %v16109_v2 }
 0x720   : > { %v4053_v44 = vunpack.c.l.bf16 %v3962_v36  ;;  %v4054_v9 = vunpack.c.h.bf16 %v3962_v36  ;;  %v4751_v22 = vpack.c.b16 %v4743_v60, %v4742_v43 }
 0x721   : > { %v3114_v46 = vpop.permute.xlu0 %3113  ;;  %3531 = vrot.lane.b32.xlu2 %v13563_v6, %s11389_s16 }
 0x722   : > { %v4117_v52 = vmul.f32 %v12357_v32, %v4053_v44  ;;  %v4118_v26 = vmul.f32 %v12359_v41, %v4054_v9  ;;  %4760 = vmatpush.bf16.xpose.msra.mxu0 %v4751_v22  ;;  %v2903_v44 = vpack.c.bf16 %v10874_v11, %v10874_v11  ;;  %v2904_v9 = vpack.c.bf16 %v10879_v23, %v10879_v23 }
 0x723   : > { %v10887_v11 = vunpack.i.h.bf16 %v16104_v49  ;;  %v10892_v23 = vunpack.i.h.bf16 %v16105_v10  ;;  %v3574_v49 = vsel %vm2134_vm0, %v13450_v57, %v13620_v47 }
 0x724   : > { %v4181_v8 = vpack.c.bf16 %v4117_v52, %v4117_v52  ;;  %v4182_v20 = vpack.c.bf16 %v4118_v26, %v4118_v26  ;;  %v3432_v37 = vpop.permute.xlu2 %3431  ;;  %3301 = vrot.lane.b32.xlu1 %v13527_v61, %s11386_s27  ;;  %v3031_v22 = vunpack.c.l.b16 %v2903_v44  ;;  %v3032_v52 = vunpack.c.l.b16 %v2904_v9 }
 0x725   : > { %v2922_v44 = vpack.c.bf16 %v10892_v23, %v10892_v23  ;;  %v3577_v9 = vsel %vm2134_vm0, %v13408_v14, %v3114_v46  ;;  %v3656_v10 = vsel %vm2231_vm1, %v3574_v49, %v13630_v48 }
 0x726   : > { %v4668_v43 = vunpack.c.l.b16 %v4181_v8  ;;  %v4669_v60 = vunpack.c.l.b16 %v4182_v20  ;;  %v3242_v36 = vpop.permute.xlu1 %3241  ;;  %v13704_v17 = vpack.c.b16 %v3032_v52, %v3031_v22  ;;  %v3658_v23 = vsel %vm2231_vm1, %v3577_v9, %v13559_v5 }
 0x727   : > { %3211 = vrot.lane.b32.xlu0 %v13563_v6, %s11383_s4  ;;  %v3050_v52 = vunpack.c.l.b16 %v2922_v44  ;;  %v3722_v57 = vsel %vm2296_vm2, %v3658_v23, %v3242_v36 }
 0x728   : > { %v4680_v45 = vpack.c.b16 %v4669_v60, %v4668_v43  ;;  %v2921_v60 = vpack.c.bf16 %v10887_v11, %v10887_v11  ;;  %v3720_v11 = vsel %vm2296_vm2, %v3656_v10, %v13640_v24 }
 0x729   : > { %v3092_v18 = vpop.permute.xlu0 %3091  ;;  %3085 = vrot.lane.b32.xlu2 %v13696_v30, %s11384_s7  ;;  %v3784_v14 = vsel %vm2361_vm3, %v3720_v11, %v13655_v16 }
 0x72a   : > { %4695 = vmatpush.bf16.xpose.msra.mxu3 %v4680_v45  ;;  %v3049_v22 = vunpack.c.l.b16 %v2921_v60  ;;  %v3848_v48 = vsel %vm2426_vm4, %v3784_v14, %v13679_v59  ;;  %v3544_v46 = vsel %vm2134_vm0, %v13421_v58, %v3092_v18 }
 0x72b   : > { %v3912_v5 = vsel %vm2491_vm5, %v3848_v48, %v3432_v37  ;;  %v3636_v36 = vsel %vm2231_vm1, %v3544_v46, %v13575_v15 }
 0x72c   : > { %v3496_v26 = vpop.permute.xlu2 %3495  ;;  %3275 = vrot.lane.b32.xlu1 %v13563_v6, %s11385_s5  ;;  %v13744_v44 = vpack.c.b16 %v3050_v52, %v3049_v22 }
 0x72d   : > { %v3989_v16 = vsel %vm2556_vm6, %v3912_v5, %v3496_v26 }
 0x72e   : > { %v3220_v8 = vpop.permute.xlu1 %3219  ;;  %v4071_v37 = vunpack.c.l.bf16 %v3989_v16  ;;  %v4072_v49 = vunpack.c.h.bf16 %v3989_v16 }
 0x72f   : > { %3215 = vrot.lane.b32.xlu0 %v13580_v29, %s11385_s5  ;;  %v3700_v58 = vsel %vm2296_vm2, %v3636_v36, %v3220_v8 }
 0x730   : > { %v4135_v52 = vmul.f32 %v16049_v62, %v4071_v37  ;;  %v4136_v23 = vmul.f32 %v16050_v13, %v4072_v49 }
 0x731   : > { %v3306_v50 = vpop.permute.xlu0 %3305  ;;  %3255 = vrot.lane.b32.xlu2 %v13704_v17, %s11385_s5 }
 0x732   : > { %v3786_v24 = vsel %vm2361_vm3, %v3722_v57, %v3306_v50 }
 0x733   : > { %v3850_v59 = vsel %vm2426_vm4, %v3786_v24, %v13589_v27 }
 0x734   : > { %v13712_v20 = vpop.permute.xlu2 %3109  ;;  %3279 = vrot.lane.b32.xlu1 %v13580_v29, %s11386_s27 }
 0x736   : > { %v3434_v43 = vpop.permute.xlu1 %3433 }
 0x737   : > { %3385 = vrot.lane.b32.xlu0 %v13595_v55, %s11387_s2  ;;  %v3914_v18 = vsel %vm2491_vm5, %v3850_v59, %v3434_v43  ;;  %v4199_v59 = vpack.c.bf16 %v4135_v52, %v4135_v52 }
 0x739   : > { %v3284_v45 = vpop.permute.xlu0 %3283  ;;  %3299 = vrot.lane.b32.xlu2 %v13664_v12, %s11386_s27 }
 0x73a   : > { %v3764_v26 = vsel %vm2361_vm3, %v3700_v58, %v3284_v45  ;;  %v4200_v58 = vpack.c.bf16 %v4136_v23, %v4136_v23 }
 0x73b   : > { %v3828_v27 = vsel %vm2426_vm4, %v3764_v26, %v13606_v51 }
 0x73c   : > { %v13734_v47 = vpop.permute.xlu2 %3173  ;;  %3449 = vrot.lane.b32.xlu1 %v13595_v55, %s11388_s13 }
 0x73e   : > { %v3412_v60 = vpop.permute.xlu1 %3411 }
 0x73f   : > { %3429 = vrot.lane.b32.xlu0 %v13527_v61, %s11388_s13  ;;  %v3892_v45 = vsel %vm2491_vm5, %v3828_v27, %v3412_v60  ;;  %v4739_v27 = vunpack.c.l.b16 %v4200_v58 }
 0x741   : > { %v3498_v50 = vpop.permute.xlu0 %3497  ;;  %3273 = vrot.lane.b32.xlu2 %v13744_v44, %s11385_s5 }
 0x742   : > { %v3992_v9 = vsel %vm2556_vm6, %v3914_v18, %v3498_v50 }
 0x743   : > { %v4073_v10 = vunpack.c.l.bf16 %v3992_v9  ;;  %v4074_v22 = vunpack.c.h.bf16 %v3992_v9 }
 0x744   : > { %v13759_v15 = vpop.permute.xlu2 %3147  ;;  %3493 = vrot.lane.b32.xlu1 %v13527_v61, %s11389_s16 }
 0x745   : > { %v4137_v8 = vmul.f32 %v12304_v63, %v4073_v10  ;;  %v4138_v43 = vmul.f32 %v12310_v1, %v4074_v22  ;;  %v4738_v22 = vunpack.c.l.b16 %v4199_v59 }
 0x746   : > { %v3476_v11 = vpop.permute.xlu1 %3475 }
 0x747   : > { %v4201_v14 = vpack.c.bf16 %v4137_v8, %v4137_v8  ;;  %v4202_v57 = vpack.c.bf16 %v4138_v43, %v4138_v43  ;;  %v3959_v48 = vsel %vm2556_vm6, %v3892_v45, %v3476_v11  ;;  %3403 = vrot.lane.b32.xlu0 %v13563_v6, %s11387_s2  ;;  %v4749_v52 = vpack.c.b16 %v4739_v27, %v4738_v22 }
 0x748   : > { %v4051_v46 = vunpack.c.l.bf16 %v3959_v48  ;;  %v4052_v51 = vunpack.c.h.bf16 %v3959_v48 }
 0x749   : > { %v4740_v24 = vunpack.c.l.b16 %v4201_v14  ;;  %v4741_v5 = vunpack.c.l.b16 %v4202_v57  ;;  %v3132_v16 = vpop.permute.xlu0 %3131  ;;  %3277 = vrot.lane.b32.xlu2 %v13696_v30, %s11386_s27 }
 0x74a   : > { %v4115_v60 = vmul.f32 %v16060_v19, %v4051_v46  ;;  %v4116_v36 = vmul.f32 %v16077_v3, %v4052_v51  ;;  %v16110_v46 = vld [vmem:[#allocation76_spill] sm:$0xff] }
 0x74b   : > { %v4750_v18 = vpack.c.b16 %v4741_v5, %v4740_v24  ;;  %v10864_v51 = vunpack.i.l.bf16 %v16110_v46  ;;  %v16111_v24 = vld [vmem:[#allocation78_spill] sm:$0xff] }
 0x74c   : > { %v4179_v50 = vpack.c.bf16 %v4115_v60, %v4115_v60  ;;  %v4180_v37 = vpack.c.bf16 %v4116_v36, %v4116_v36  ;;  %v13777_v26 = vpop.permute.xlu2 %3151  ;;  %3467 = vrot.lane.b32.xlu1 %v13563_v6, %s11388_s13  ;;  %v10869_v5 = vunpack.i.l.bf16 %v16111_v24 }
 0x74d   : > { %4761 = vmatpush.bf16.xpose.msra.mxu0 %v4750_v18  ;;  %v2901_v59 = vpack.c.bf16 %v10864_v51, %v10864_v51 }
 0x74e   : > { %v4666_v9 = vunpack.c.l.b16 %v4179_v50  ;;  %v4667_v49 = vunpack.c.l.b16 %v4180_v37  ;;  %v3090_v10 = vpop.permute.xlu1 %3089  ;;  %v2902_v58 = vpack.c.bf16 %v10869_v5, %v10869_v5 }
 0x74f   : > { %3407 = vrot.lane.b32.xlu0 %v13580_v29, %s11388_s13  ;;  %v3029_v50 = vunpack.c.l.b16 %v2901_v59 }
 0x750   : > { %v4679_v8 = vpack.c.b16 %v4667_v49, %v4666_v9  ;;  %v3030_v37 = vunpack.c.l.b16 %v2902_v58 }
 0x751   : > { %v3196_v43 = vpop.permute.xlu0 %3195  ;;  %3447 = vrot.lane.b32.xlu2 %v13704_v17, %s11388_s13 }
 0x752   : > { %4696 = vmatpush.bf16.xpose.msra.mxu3 %v4679_v8  ;;  %v13815_v22 = vpack.c.b16 %v3030_v37, %v3029_v50  ;;  %v3604_v8 = vsel %vm2134_vm0, %v13545_v40, %v3132_v16  ;;  %v3541_v40 = vsel %vm2134_vm0, %v13555_v34, %v3090_v10 }
 0x753   : > { %v3676_v51 = vsel %vm2231_vm1, %v3604_v8, %v3196_v43 }
 0x754   : > { %v13785_v45 = vpop.permute.xlu2 %3321  ;;  %3471 = vrot.lane.b32.xlu1 %v13580_v29, %s11389_s16  ;;  %16112 = vst [vmem:[#allocation44_spill] sm:$0xff] %v13815_v22 }
 0x755   : > { %4762 = vmatpush.bf16.xpose.msra.mxu0 %v4749_v52 }
 0x756   : > { %v3154_v11 = vpop.permute.xlu1 %3153 }
 0x757   : > { %3127 = vrot.lane.b32.xlu0 %v13704_v17, %s11384_s7  ;;  %v3634_v43 = vsel %vm2231_vm1, %v3541_v40, %v3154_v11 }
 0x759   : > { %v3260_v23 = vpop.permute.xlu0 %3259  ;;  %3491 = vrot.lane.b32.xlu2 %v13664_v12, %s11389_s16 }
 0x75a   : > { %v3740_v5 = vsel %vm2296_vm2, %v3676_v51, %v3260_v23 }
 0x75c   : > { %v13793_v14 = vpop.permute.xlu2 %3365  ;;  %3191 = vrot.lane.b32.xlu1 %v13704_v17, %s11383_s4 }
 0x75e   : > { %v3218_v57 = vpop.permute.xlu1 %3217 }
 0x75f   : > { %3171 = vrot.lane.b32.xlu0 %v13664_v12, %s11383_s4 }
 0x761   : > { %v3324_v48 = vpop.permute.xlu0 %3323  ;;  %3465 = vrot.lane.b32.xlu2 %v13744_v44, %s11388_s13 }
 0x762   : > { %v3804_v58 = vsel %vm2361_vm3, %v3740_v5, %v3324_v48  ;;  %v3698_v48 = vsel %vm2296_vm2, %v3634_v43, %v3218_v57 }
 0x764   : > { %v13803_v60 = vpop.permute.xlu2 %3339  ;;  %3235 = vrot.lane.b32.xlu1 %v13664_v12, %s11385_s5 }
 0x766   : > { %v3282_v36 = vpop.permute.xlu1 %3281 }
 0x767   : > { %3145 = vrot.lane.b32.xlu0 %v13744_v44, %s11384_s7  ;;  %v3762_v5 = vsel %vm2361_vm3, %v3698_v48, %v3282_v36 }
 0x769   : > { %v3388_v18 = vpop.permute.xlu0 %3387  ;;  %3469 = vrot.lane.b32.xlu2 %v13696_v30, %s11389_s16 }
 0x76a   : > { %v3868_v50 = vsel %vm2426_vm4, %v3804_v58, %v3388_v18 }
 0x76c   : > { %v13811_v9 = vpop.permute.xlu2 %3343  ;;  %3209 = vrot.lane.b32.xlu1 %v13744_v44, %s11383_s4 }
 0x76e   : > { %v3346_v49 = vpop.permute.xlu1 %3345 }
 0x76f   : > { %3149 = vrot.lane.b32.xlu0 %v13696_v30, %s11383_s4  ;;  %v3826_v34 = vsel %vm2426_vm4, %v3762_v5, %v3346_v49 }
 0x771   : > { %v3452_v27 = vpop.permute.xlu0 %3451  ;;  %3189 = vrot.lane.b32.xlu2 %v13815_v22, %s11383_s4 }
 0x772   : > { %v3932_v16 = vsel %vm2491_vm5, %v3868_v50, %v3452_v27 }
 0x774   : > { %v13823_v52 = vpop.permute.xlu2 %3513  ;;  %3213 = vrot.lane.b32.xlu1 %v13696_v30, %s11385_s5 }
 0x776   : > { %v3410_v59 = vpop.permute.xlu1 %3409 }
 0x777   : > { %3319 = vrot.lane.b32.xlu0 %v13704_v17, %s11386_s27  ;;  %v3890_v11 = vsel %vm2491_vm5, %v3826_v34, %v3410_v59 }
 0x779   : > { %v3516_v37 = vpop.permute.xlu0 %3515  ;;  %3253 = vrot.lane.b32.xlu2 %v13815_v22, %s11385_s5 }
 0x77a   : > { %v4019_v23 = vsel %vm2556_vm6, %v3932_v16, %v3516_v37 }
 0x77b   : > { %v4091_v8 = vunpack.c.l.bf16 %v4019_v23  ;;  %v4092_v51 = vunpack.c.h.bf16 %v4019_v23 }
 0x77c   : > { %v13842_v18 = vpop.permute.xlu2 %3107  ;;  %3383 = vrot.lane.b32.xlu1 %v13704_v17, %s11387_s2 }
 0x77d   : > { %v4155_v10 = vmul.f32 %v12327_v56, %v4091_v8  ;;  %v4156_v27 = vmul.f32 %v12329_v25, %v4092_v51 }
 0x77e   : > { %v3474_v58 = vpop.permute.xlu1 %3473 }
 0x77f   : > { %v4219_v50 = vpack.c.bf16 %v4155_v10, %v4155_v10  ;;  %v4220_v57 = vpack.c.bf16 %v4156_v27, %v4156_v27  ;;  %v3956_v40 = vsel %vm2556_vm6, %v3890_v11, %v3474_v58  ;;  %3363 = vrot.lane.b32.xlu0 %v13664_v12, %s11387_s2 }
 0x780   : > { %v4049_v36 = vunpack.c.l.bf16 %v3956_v40  ;;  %v4050_v16 = vunpack.c.h.bf16 %v3956_v40  ;;  %v10679_v40 = vunpack.i.h.bf16 %v16100_v4 }
 0x781   : > { %v4810_v37 = vunpack.c.l.b16 %v4219_v50  ;;  %v4811_v43 = vunpack.c.l.b16 %v4220_v57  ;;  %v3130_v23 = vpop.permute.xlu0 %3129  ;;  %3317 = vrot.lane.b32.xlu2 %v13815_v22, %s11386_s27 }
 0x782   : > { %v4113_v49 = vmul.f32 %v16078_v38, %v4049_v36  ;;  %v4114_v59 = vmul.f32 %v16079_v7, %v4050_v16  ;;  %v10684_v36 = vunpack.i.h.bf16 %v16101_v35 }
 0x783   : > { %v4819_v48 = vpack.c.b16 %v4811_v43, %v4810_v37  ;;  %v16113_v37 = vld [vmem:[#allocation73_spill] sm:$0xff] }
 0x784   : > { %v4177_v8 = vpack.c.bf16 %v4113_v49, %v4113_v49  ;;  %v4178_v51 = vpack.c.bf16 %v4114_v59, %v4114_v59  ;;  %v13857_v5 = vpop.permute.xlu2 %3531  ;;  %3427 = vrot.lane.b32.xlu1 %v13664_v12, %s11388_s13  ;;  %v10854_v43 = vunpack.i.l.bf16 %v16113_v37  ;;  %v16114_v49 = vld [vmem:[#allocation75_spill] sm:$0xff] }
 0x785   : > { %4828 = vmatpush.bf16.xpose.msra.mxu1 %v4819_v48  ;;  %v10859_v59 = vunpack.i.l.bf16 %v16114_v49 }
 0x786   : > { %v4664_v34 = vunpack.c.l.b16 %v4177_v8  ;;  %v4665_v10 = vunpack.c.l.b16 %v4178_v51  ;;  %v13861_v27 = vpop.permute.xlu1 %3087  ;;  %v2881_v8 = vpack.c.bf16 %v10679_v40, %v10679_v40  ;;  %v2882_v51 = vpack.c.bf16 %v10684_v36, %v10684_v36 }
 0x787   : > { %3337 = vrot.lane.b32.xlu0 %v13744_v44, %s11386_s27  ;;  %v2900_v4 = vpack.c.bf16 %v10859_v59, %v10859_v59  ;;  %v10877_v59 = vunpack.i.h.bf16 %v16108_v39  ;;  %v3601_v39 = vsel %vm2134_vm0, %v13595_v55, %v3130_v23 }
 0x788   : > { %v4678_v11 = vpack.c.b16 %v4665_v10, %v4664_v34  ;;  %v2899_v10 = vpack.c.bf16 %v10854_v43, %v10854_v43  ;;  %v3009_v35 = vunpack.c.l.b16 %v2881_v8  ;;  %v10882_v8 = vunpack.i.h.bf16 %v16109_v2 }
 0x789   : > { %v3194_v58 = vpop.permute.xlu0 %3193  ;;  %3381 = vrot.lane.b32.xlu2 %v13815_v22, %s11387_s2  ;;  %v3028_v13 = vunpack.c.l.b16 %v2900_v4  ;;  %v2919_v4 = vpack.c.bf16 %v10877_v59, %v10877_v59 }
 0x78a   : > { %4697 = vmatpush.bf16.xpose.msra.mxu3 %v4678_v11  ;;  %v3010_v11 = vunpack.c.l.b16 %v2882_v51  ;;  %v3027_v38 = vunpack.c.l.b16 %v2899_v10 }
 0x78b   : > { %v3047_v2 = vunpack.c.l.b16 %v2919_v4 }
 0x78c   : > { %v13867_v50 = vpop.permute.xlu2 %3085  ;;  %3401 = vrot.lane.b32.xlu1 %v13744_v44, %s11387_s2  ;;  %v13891_v40 = vpack.c.b16 %v3010_v11, %v3009_v35  ;;  %v13893_v43 = vpack.c.b16 %v3028_v13, %v3027_v38  ;;  %v2920_v13 = vpack.c.bf16 %v10882_v8, %v10882_v8  ;;  %v3674_v11 = vsel %vm2231_vm1, %v3601_v39, %v3194_v58 }
 0x78d   : > { %v3571_v58 = vsel %vm2134_vm0, %v13527_v61, %v13712_v20 }
 0x78e   : > { %v3258_v57 = vpop.permute.xlu1 %3257  ;;  %v3048_v35 = vunpack.c.l.b16 %v2920_v13 }
 0x78f   : > { %3341 = vrot.lane.b32.xlu0 %v13696_v30, %s11387_s2  ;;  %v3738_v42 = vsel %vm2296_vm2, %v3674_v11, %v3258_v57  ;;  %v3654_v57 = vsel %vm2231_vm1, %v3571_v58, %v13734_v47 }
 0x790   : > { %v13921_v8 = vpack.c.b16 %v3048_v35, %v3047_v2  ;;  %v3802_v55 = vsel %vm2361_vm3, %v3738_v42, %v13785_v45 }
 0x791   : > { %v3238_v16 = vpop.permute.xlu0 %3237  ;;  %3445 = vrot.lane.b32.xlu2 %v13815_v22, %s11388_s13 }
 0x792   : > { %v3718_v42 = vsel %vm2296_vm2, %v3654_v57, %v3238_v16 }
 0x794   : > { %v13879_v48 = vpop.permute.xlu2 %3255  ;;  %3405 = vrot.lane.b32.xlu1 %v13696_v30, %s11388_s13 }
 0x796   : > { %v3302_v34 = vpop.permute.xlu1 %3301 }
 0x797   : > { %3511 = vrot.lane.b32.xlu0 %v13704_v17, %s11389_s16  ;;  %v3782_v61 = vsel %vm2361_vm3, %v3718_v42, %v3302_v34 }
 0x798   : > { %v3846_v47 = vsel %vm2426_vm4, %v3782_v61, %v13793_v14 }
 0x799   : > { %v3212_v7 = vpop.permute.xlu0 %3211  ;;  %3509 = vrot.lane.b32.xlu2 %v13815_v22, %s11389_s16 }
 0x79c   : > { %v13887_v62 = vpop.permute.xlu2 %3299  ;;  %3125 = vrot.lane.b32.xlu1 %v13815_v22, %s11384_s7 }
 0x79e   : > { %v3276_v36 = vpop.permute.xlu1 %3275 }
 0x79f   : > { %3105 = vrot.lane.b32.xlu0 %v13891_v40, %s11384_s7 }
 0x7a1   : > { %v13899_v51 = vpop.permute.xlu0 %3215  ;;  %3123 = vrot.lane.b32.xlu2 %v13893_v43, %s11384_s7 }
 0x7a4   : > { %v13903_v10 = vpop.permute.xlu2 %3273  ;;  %3169 = vrot.lane.b32.xlu1 %v13891_v40, %s11383_s4 }
 0x7a6   : > { %v13907_v38 = vpop.permute.xlu1 %3279 }
 0x7a7   : > { %3529 = vrot.lane.b32.xlu0 %v13744_v44, %s11389_s16 }
 0x7a9   : > { %v3386_v22 = vpop.permute.xlu0 %3385  ;;  %3187 = vrot.lane.b32.xlu2 %v13893_v43, %s11383_s4 }
 0x7aa   : > { %v3866_v23 = vsel %vm2426_vm4, %v3802_v55, %v3386_v22 }
 0x7ac   : > { %v13917_v59 = vpop.permute.xlu2 %3277  ;;  %3233 = vrot.lane.b32.xlu1 %v13891_v40, %s11385_s5 }
 0x7ae   : > { %v3450_v4 = vpop.permute.xlu1 %3449 }
 0x7af   : > { %v3930_v13 = vsel %vm2491_vm5, %v3866_v23, %v3450_v4  ;;  %3143 = vrot.lane.b32.xlu0 %v13921_v8, %s11384_s7 }
 0x7b0   : > { %v4016_v39 = vsel %vm2556_vm6, %v3930_v13, %v13823_v52  ;;  %v3628_v13 = vsel %vm2134_vm0, %v13563_v6, %v13759_v15 }
 0x7b1   : > { %v4089_v45 = vunpack.c.l.bf16 %v4016_v39  ;;  %v4090_v22 = vunpack.c.h.bf16 %v4016_v39  ;;  %v3430_v2 = vpop.permute.xlu0 %3429  ;;  %3251 = vrot.lane.b32.xlu2 %v13893_v43, %s11385_s5  ;;  %v3692_v14 = vsel %vm2231_vm1, %v3628_v13, %v3212_v7  ;;  %v3538_v7 = vsel %vm2134_vm0, %v13580_v29, %v13861_v27 }
 0x7b2   : > { %v3910_v55 = vsel %vm2491_vm5, %v3846_v47, %v3430_v2 }
 0x7b3   : > { %v4153_v20 = vmul.f32 %v12304_v63, %v4089_v45  ;;  %v4154_v35 = vmul.f32 %v12310_v1, %v4090_v22  ;;  %v3756_v22 = vsel %vm2296_vm2, %v3692_v14, %v3276_v36 }
 0x7b4   : > { %v13942_v11 = vpop.permute.xlu2 %3447  ;;  %3297 = vrot.lane.b32.xlu1 %v13891_v40, %s11386_s27  ;;  %v3820_v6 = vsel %vm2361_vm3, %v3756_v22, %v13803_v60 }
 0x7b5   : > { %v4217_v52 = vpack.c.bf16 %v4153_v20, %v4153_v20  ;;  %v4218_v16 = vpack.c.bf16 %v4154_v35, %v4154_v35 }
 0x7b6   : > { %v3494_v23 = vpop.permute.xlu1 %3493 }
 0x7b7   : > { %v3986_v4 = vsel %vm2556_vm6, %v3910_v55, %v3494_v23  ;;  %3207 = vrot.lane.b32.xlu0 %v13921_v8, %s11383_s4  ;;  %v4808_v34 = vunpack.c.l.b16 %v4217_v52  ;;  %v4809_v58 = vunpack.c.l.b16 %v4218_v16  ;;  %v3632_v23 = vsel %vm2231_vm1, %v3538_v7, %v13777_v26 }
 0x7b8   : > { %v4069_v57 = vunpack.c.l.bf16 %v3986_v4  ;;  %v4070_v39 = vunpack.c.h.bf16 %v3986_v4  ;;  %v3696_v60 = vsel %vm2296_vm2, %v3632_v23, %v13899_v51 }
 0x7b9   : > { %v3404_v42 = vpop.permute.xlu0 %3403  ;;  %3315 = vrot.lane.b32.xlu2 %v13893_v43, %s11386_s27  ;;  %v4818_v45 = vpack.c.b16 %v4809_v58, %v4808_v34  ;;  %v3760_v13 = vsel %vm2361_vm3, %v3696_v60, %v13907_v38 }
 0x7ba   : > { %v4133_v2 = vmul.f32 %v12357_v32, %v4069_v57  ;;  %v4134_v61 = vmul.f32 %v12359_v41, %v4070_v39  ;;  %v3884_v52 = vsel %vm2426_vm4, %v3820_v6, %v3404_v42  ;;  %v3824_v14 = vsel %vm2426_vm4, %v3760_v13, %v13811_v9 }
 0x7bb   : > { %4829 = vmatpush.bf16.xpose.msra.mxu1 %v4818_v45  ;;  %v10669_v42 = vunpack.i.h.bf16 %v16102_v0  ;;  %v10674_v45 = vunpack.i.h.bf16 %v16103_v53 }
 0x7bc   : > { %v4197_v20 = vpack.c.bf16 %v4133_v2, %v4133_v2  ;;  %v4198_v35 = vpack.c.bf16 %v4134_v61, %v4134_v61  ;;  %v13961_v47 = vpop.permute.xlu2 %3491  ;;  %3361 = vrot.lane.b32.xlu1 %v13891_v40, %s11387_s2 }
 0x7bd   : > { %v2879_v9 = vpack.c.bf16 %v10669_v42, %v10669_v42  ;;  %v2880_v53 = vpack.c.bf16 %v10674_v45, %v10674_v45 }
 0x7be   : > { %v4736_v15 = vunpack.c.l.b16 %v4197_v20  ;;  %v4737_v36 = vunpack.c.l.b16 %v4198_v35  ;;  %v3468_v16 = vpop.permute.xlu1 %3467 }
 0x7bf   : > { %v3948_v55 = vsel %vm2491_vm5, %v3884_v52, %v3468_v16  ;;  %3271 = vrot.lane.b32.xlu0 %v13921_v8, %s11385_s5  ;;  %v16116_v52 = vld [vmem:[#allocation71_spill] sm:$0xff]  ;;  %v3008_v60 = vunpack.c.l.b16 %v2880_v53 }
 0x7c0   : > { %v4043_v4 = vsel %vm2556_vm6, %v3948_v55, %v13857_v5  ;;  %v4748_v29 = vpack.c.b16 %v4737_v36, %v4736_v15  ;;  %v16115_v15 = vld [vmem:[#allocation68_spill] sm:$0xff]  ;;  %v10849_v16 = vunpack.i.l.bf16 %v16116_v52 }
 0x7c1   : > { %v4107_v27 = vunpack.c.l.bf16 %v4043_v4  ;;  %v4108_v34 = vunpack.c.h.bf16 %v4043_v4  ;;  %v3408_v58 = vpop.permute.xlu0 %3407  ;;  %3379 = vrot.lane.b32.xlu2 %v13893_v43, %s11387_s2  ;;  %v10844_v36 = vunpack.i.l.bf16 %v16115_v15 }
 0x7c2   : > { %4763 = vmatpush.bf16.xpose.msra.mxu0 %v4748_v29  ;;  %v3888_v38 = vsel %vm2491_vm5, %v3824_v14, %v3408_v58  ;;  %v3007_v29 = vunpack.c.l.b16 %v2879_v9 }
 0x7c3   : > { %v4171_v57 = vmul.f32 %v12327_v56, %v4107_v27  ;;  %v4172_v26 = vmul.f32 %v12329_v25, %v4108_v34  ;;  %v2897_v13 = vpack.c.bf16 %v10844_v36, %v10844_v36 }
 0x7c4   : > { %v13986_v39 = vpop.permute.xlu2 %3465  ;;  %3425 = vrot.lane.b32.xlu1 %v13891_v40, %s11388_s13 }
 0x7c5   : > { %v4235_v5 = vpack.c.bf16 %v4171_v57, %v4171_v57  ;;  %v4236_v51 = vpack.c.bf16 %v4172_v26, %v4172_v26  ;;  %v2898_v57 = vpack.c.bf16 %v10849_v16, %v10849_v16  ;;  %v3025_v14 = vunpack.c.l.b16 %v2897_v13 }
 0x7c6   : > { %v3472_v22 = vpop.permute.xlu1 %3471 }
 0x7c7   : > { %v4878_v56 = vunpack.c.l.b16 %v4235_v5  ;;  %v4879_v2 = vunpack.c.l.b16 %v4236_v51  ;;  %v3953_v25 = vsel %vm2556_vm6, %v3888_v38, %v3472_v22  ;;  %3335 = vrot.lane.b32.xlu0 %v13921_v8, %s11386_s27  ;;  %v14016_v51 = vpack.c.b16 %v3008_v60, %v3007_v29 }
 0x7c8   : > { %v4047_v61 = vunpack.c.l.bf16 %v3953_v25  ;;  %v4048_v20 = vunpack.c.h.bf16 %v3953_v25  ;;  %v3026_v42 = vunpack.c.l.b16 %v2898_v57  ;;  %v3568_v29 = vsel %vm2134_vm0, %v13664_v12, %v13842_v18  ;;  %v4590_v12 = vpop.f32.mrf.mxu2 }
 0x7c9   : > { %v13998_v35 = vpop.permute.xlu0 %3127  ;;  %3443 = vrot.lane.b32.xlu2 %v13893_v43, %s11388_s13  ;;  %v4887_v0 = vpack.c.b16 %v4879_v2, %v4878_v56  ;;  %v10867_v56 = vunpack.i.h.bf16 %v16110_v46  ;;  %v10872_v2 = vunpack.i.h.bf16 %v16111_v24 }
 0x7ca   : > { %v4111_v7 = vmul.f32 %v12656_v21, %v4047_v61  ;;  %v4112_v6 = vmul.f32 %v12658_v31, %v4048_v20  ;;  %v14022_v22 = vpack.c.b16 %v3026_v42, %v3025_v14 }
 0x7cb   : > { %4896 = vmatpush.bf16.xpose.msra.mxu2 %v4887_v0  ;;  %v2917_v20 = vpack.c.bf16 %v10867_v56, %v10867_v56  ;;  %v2918_v0 = vpack.c.bf16 %v10872_v2, %v10872_v2 }
 0x7cc   : > { %v4175_v55 = vpack.c.bf16 %v4111_v7, %v4111_v7  ;;  %v4176_v23 = vpack.c.bf16 %v4112_v6, %v4112_v6  ;;  %v14006_v4 = vpop.permute.xlu2 %3469  ;;  %3489 = vrot.lane.b32.xlu1 %v13891_v40, %s11389_s16 }
 0x7cd   : > { %v3045_v53 = vunpack.c.l.b16 %v2917_v20  ;;  %v3046_v7 = vunpack.c.l.b16 %v2918_v0 }
 0x7ce   : > { %v4662_v27 = vunpack.c.l.b16 %v4175_v55  ;;  %v4663_v34 = vunpack.c.l.b16 %v4176_v23  ;;  %v14010_v58 = vpop.permute.xlu1 %3191 }
 0x7cf   : > { %3399 = vrot.lane.b32.xlu0 %v13921_v8, %s11387_s2  ;;  %v14042_v6 = vpack.c.b16 %v3046_v7, %v3045_v53  ;;  %v10659_v53 = vunpack.i.h.bf16 %v16106_v33 }
 0x7d0   : > { %v4677_v26 = vpack.c.b16 %v4663_v34, %v4662_v27 }
 0x7d1   : > { %v3172_v5 = vpop.permute.xlu0 %3171  ;;  %3507 = vrot.lane.b32.xlu2 %v13893_v43, %s11389_s16 }
 0x7d2   : > { %4698 = vmatpush.bf16.xpose.msra.mxu3 %v4677_v26  ;;  %v3652_v60 = vsel %vm2231_vm1, %v3568_v29, %v3172_v5 }
 0x7d4   : > { %v14018_v45 = vpop.permute.xlu2 %3189  ;;  %3103 = vrot.lane.b32.xlu1 %v14016_v51, %s11384_s7 }
 0x7d6   : > { %v3236_v38 = vpop.permute.xlu1 %3235 }
 0x7d7   : > { %3463 = vrot.lane.b32.xlu0 %v13921_v8, %s11388_s13  ;;  %v3716_v34 = vsel %vm2296_vm2, %v3652_v60, %v3236_v38 }
 0x7d8   : > { %v3780_v57 = vsel %vm2361_vm3, %v3716_v34, %v13887_v62 }
 0x7d9   : > { %v3146_v25 = vpop.permute.xlu0 %3145  ;;  %3121 = vrot.lane.b32.xlu2 %v14022_v22, %s11384_s7 }
 0x7da   : > { %v3625_v42 = vsel %vm2134_vm0, %v13744_v44, %v3146_v25  ;;  %v10664_v44 = vunpack.i.h.bf16 %v16107_v28  ;;  %v3535_v28 = vsel %vm2134_vm0, %v13696_v30, %v13867_v50  ;;  %v10857_v50 = vunpack.i.h.bf16 %v16113_v37 }
 0x7dc   : > { %v14030_v61 = vpop.permute.xlu2 %3253  ;;  %3167 = vrot.lane.b32.xlu1 %v14016_v51, %s11383_s4 }
 0x7de   : > { %v3210_v9 = vpop.permute.xlu1 %3209 }
 0x7df   : > { %3527 = vrot.lane.b32.xlu0 %v13921_v8, %s11389_s16  ;;  %v3690_v62 = vsel %vm2231_vm1, %v3625_v42, %v3210_v9 }
 0x7e1   : > { %v3150_v46 = vpop.permute.xlu0 %3149  ;;  %3185 = vrot.lane.b32.xlu2 %v14022_v22, %s11383_s4 }
 0x7e2   : > { %v3630_v42 = vsel %vm2231_vm1, %v3535_v28, %v3150_v46 }
 0x7e4   : > { %v14038_v24 = vpop.permute.xlu2 %3317  ;;  %3231 = vrot.lane.b32.xlu1 %v14016_v51, %s11385_s5 }
 0x7e6   : > { %v3214_v36 = vpop.permute.xlu1 %3213 }
 0x7e7   : > { %3141 = vrot.lane.b32.xlu0 %v14042_v6, %s11384_s7 }
 0x7e9   : > { %v14046_v16 = vpop.permute.xlu0 %3319  ;;  %3249 = vrot.lane.b32.xlu2 %v14022_v22, %s11385_s5 }
 0x7ec   : > { %v14050_v55 = vpop.permute.xlu2 %3381  ;;  %3295 = vrot.lane.b32.xlu1 %v14016_v51, %s11386_s27 }
 0x7ee   : > { %v14054_v23 = vpop.permute.xlu1 %3383 }
 0x7ef   : > { %3205 = vrot.lane.b32.xlu0 %v14042_v6, %s11383_s4 }
 0x7f1   : > { %v3364_v27 = vpop.permute.xlu0 %3363  ;;  %3313 = vrot.lane.b32.xlu2 %v14022_v22, %s11386_s27 }
 0x7f2   : > { %v3844_v26 = vsel %vm2426_vm4, %v3780_v57, %v3364_v27  ;;  %v2877_v57 = vpack.c.bf16 %v10659_v53, %v10659_v53 }
 0x7f4   : > { %v14065_v13 = vpop.permute.xlu2 %3445  ;;  %3359 = vrot.lane.b32.xlu1 %v14016_v51, %s11387_s2 }
 0x7f6   : > { %v3428_v14 = vpop.permute.xlu1 %3427 }
 0x7f7   : > { %v3908_v18 = vsel %vm2491_vm5, %v3844_v26, %v3428_v14  ;;  %3269 = vrot.lane.b32.xlu0 %v14042_v6, %s11385_s5  ;;  %v2878_v14 = vpack.c.bf16 %v10664_v44, %v10664_v44 }
 0x7f8   : > { %v3983_v5 = vsel %vm2556_vm6, %v3908_v18, %v13961_v47  ;;  %v3754_v47 = vsel %vm2296_vm2, %v3690_v62, %v13903_v10  ;;  %v3598_v10 = vsel %vm2134_vm0, %v13704_v17, %v13998_v35  ;;  %v4593_v18 = vpop.f32.mrf.mxu2  ;;  %v10862_v17 = vunpack.i.h.bf16 %v16114_v49 }
 0x7f9   : > { %v4067_v38 = vunpack.c.l.bf16 %v3983_v5  ;;  %v4068_v56 = vunpack.c.h.bf16 %v3983_v5  ;;  %v3338_v2 = vpop.permute.xlu0 %3337  ;;  %3377 = vrot.lane.b32.xlu2 %v14022_v22, %s11387_s2  ;;  %v3672_v5 = vsel %vm2231_vm1, %v3598_v10, %v14010_v58  ;;  %v3694_v35 = vsel %vm2296_vm2, %v3630_v42, %v3214_v36 }
 0x7fa   : > { %v3818_v9 = vsel %vm2361_vm3, %v3754_v47, %v3338_v2  ;;  %10925 = vrcp.f32 %v4593_v18  ;;  %v3006_v46 = vunpack.c.l.b16 %v2878_v14  ;;  %v3758_v49 = vsel %vm2361_vm3, %v3694_v35, %v13917_v59  ;;  %v16119_v14 = vld [vmem:[#allocation90_spill] sm:$0xff] }
 0x7fb   : > { %v4131_v20 = vmul.f32 %v16060_v19, %v4067_v38  ;;  %v4132_v0 = vmul.f32 %v16077_v3, %v4068_v56  ;;  %v3736_v56 = vsel %vm2296_vm2, %v3672_v5, %v13879_v48  ;;  %10927 = vrcp.f32 %v4590_v12  ;;  %v16117_v12 = vld [vmem:[#allocation63_spill] sm:$0xff] }
 0x7fc   : > { %v14085_v7 = vpop.permute.xlu2 %3509  ;;  %3423 = vrot.lane.b32.xlu1 %v14016_v51, %s11388_s13  ;;  %v3800_v37 = vsel %vm2361_vm3, %v3736_v56, %v14046_v16  ;;  %v2915_v36 = vpack.c.bf16 %v10857_v50, %v10857_v50  ;;  %v2916_v2 = vpack.c.bf16 %v10862_v17, %v10862_v17  ;;  %v10834_v53 = vunpack.i.l.bf16 %v16117_v12  ;;  %v16122_v17 = vld [vmem:[#allocation93_spill] sm:$0xff] }
 0x7fd   : > { %v4195_v25 = vpack.c.bf16 %v4131_v20, %v4131_v20  ;;  %v4196_v29 = vpack.c.bf16 %v4132_v0, %v4132_v0  ;;  %v3864_v62 = vsel %vm2426_vm4, %v3800_v37, %v14054_v23  ;;  %v16123_v37 = vld [vmem:[#allocation77_spill] sm:$0xff] }
 0x7fe   : > { %v3402_v60 = vpop.permute.xlu1 %3401  ;;  %v3928_v23 = vsel %vm2491_vm5, %v3864_v62, %v13942_v11  ;;  %v2895_v5 = vpack.c.bf16 %v10834_v53, %v10834_v53  ;;  %v16120_v11 = vld [vmem:[#allocation88_spill] sm:$0xff] }
 0x7ff   : > { %v3882_v27 = vsel %vm2426_vm4, %v3818_v9, %v3402_v60  ;;  %3333 = vrot.lane.b32.xlu0 %v14042_v6, %s11386_s27  ;;  %v4734_v33 = vunpack.c.l.b16 %v4195_v25  ;;  %v4735_v34 = vunpack.c.l.b16 %v4196_v29  ;;  %v16118_v9 = vld [vmem:[#allocation66_spill] sm:$0xff] }
 0x800   : > { %v14104_v26 = vsel %vm2491_vm5, %v3882_v27, %v13986_v39  ;;  %v3005_v39 = vunpack.c.l.b16 %v2877_v57  ;;  %v10926_v29 = vpop.eup %10925  ;;  %v10839_v60 = vunpack.i.l.bf16 %v16118_v9  ;;  %v3043_v27 = vunpack.c.l.b16 %v2915_v36 }
 0x801   : > { %v3342_v38 = vpop.permute.xlu0 %3341  ;;  %3441 = vrot.lane.b32.xlu2 %v14022_v22, %s11388_s13  ;;  %v4747_v30 = vpack.c.b16 %v4735_v34, %v4734_v33  ;;  %v3044_v33 = vunpack.c.l.b16 %v2916_v2  ;;  %v10928_v57 = vpop.eup %10927 }
 0x802   : > { %v3822_v48 = vsel %vm2426_vm4, %v3758_v49, %v3342_v38  ;;  %v14133_v44 = vpack.c.b16 %v3006_v46, %v3005_v39  ;;  %v4623_v38 = vmul.f32 %v10926_v29, %v16120_v11  ;;  %v2896_v56 = vpack.c.bf16 %v10839_v60, %v10839_v60 }
 0x803   : > { %4764 = vmatpush.bf16.xpose.msra.mxu0 %v4747_v30  ;;  %v16121_v30 = vld [vmem:[#allocation92_spill] sm:$0xff]  ;;  %v14150_v46 = vpack.c.b16 %v3044_v33, %v3043_v27  ;;  %v4622_v49 = vmul.f32 %v10928_v57, %v16123_v37 }
 0x804   : > { %v14116_v58 = vpop.permute.xlu2 %3123  ;;  %3487 = vrot.lane.b32.xlu1 %v14016_v51, %s11389_s16  ;;  %v3024_v33 = vunpack.c.l.b16 %v2896_v56 }
 0x806   : > { %v3406_v20 = vpop.permute.xlu1 %3405 }
 0x807   : > { %v3886_v0 = vsel %vm2491_vm5, %v3822_v48, %v3406_v20  ;;  %3397 = vrot.lane.b32.xlu0 %v14042_v6, %s11387_s2  ;;  %v16124_v20 = vld [vmem:[#allocation44_spill] sm:$0xff] }
 0x808   : > { %v3950_v16 = vsel %vm2556_vm6, %v3886_v0, %v14006_v4 }
 0x809   : > { %v4045_v59 = vunpack.c.l.bf16 %v3950_v16  ;;  %v4046_v47 = vunpack.c.h.bf16 %v3950_v16  ;;  %v3512_v25 = vpop.permute.xlu0 %3511  ;;  %3505 = vrot.lane.b32.xlu2 %v14022_v22, %s11389_s16  ;;  %v3023_v16 = vunpack.c.l.b16 %v2895_v5 }
 0x80a   : > { %v4013_v34 = vsel %vm2556_vm6, %v3928_v23, %v3512_v25  ;;  %v4631_v25 = vpack.c.bf16 %v4623_v38, %v4623_v38 }
 0x80b   : > { %v4087_v4 = vunpack.c.l.bf16 %v4013_v34  ;;  %v4088_v28 = vunpack.c.h.bf16 %v4013_v34  ;;  %v4109_v10 = vmul.f32 %v16075_v54, %v4045_v59  ;;  %v4110_v18 = vmul.f32 %v16119_v14, %v4046_v47 }
 0x80c   : > { %v14143_v42 = vpop.permute.xlu2 %3187  ;;  %3101 = vrot.lane.b32.xlu1 %v14133_v44, %s11384_s7  ;;  %v10847_v34 = vunpack.i.h.bf16 %v16115_v15  ;;  %v4641_v5 = vunpack.c.l.b16 %v4631_v25 }
 0x80d   : > { %v4151_v50 = vmul.f32 %v16121_v30, %v4087_v4  ;;  %v4152_v35 = vmul.f32 %v16122_v17, %v4088_v28  ;;  %v4173_v39 = vpack.c.bf16 %v4109_v10, %v4109_v10  ;;  %v4174_v2 = vpack.c.bf16 %v4110_v18, %v4110_v18 }
 0x80e   : > { %v3126_v36 = vpop.permute.xlu1 %3125  ;;  %v4630_v28 = vpack.c.bf16 %v4622_v49, %v4622_v49 }
 0x80f   : > { %v4215_v62 = vpack.c.bf16 %v4151_v50, %v4151_v50  ;;  %v4216_v48 = vpack.c.bf16 %v4152_v35, %v4152_v35  ;;  %v3595_v0 = vsel %vm2134_vm0, %v16124_v20, %v3126_v36  ;;  %3461 = vrot.lane.b32.xlu0 %v14042_v6, %s11388_s13  ;;  %v4660_v53 = vunpack.c.l.b16 %v4173_v39 }
 0x810   : > { %v3670_v59 = vsel %vm2231_vm1, %v3595_v0, %v14018_v45  ;;  %v4661_v47 = vunpack.c.l.b16 %v4174_v2  ;;  %v10852_v45 = vunpack.i.h.bf16 %v16116_v52  ;;  %v2913_v50 = vpack.c.bf16 %v10847_v34, %v10847_v34 }
 0x811   : > { %v4806_v23 = vunpack.c.l.b16 %v4215_v62  ;;  %v4807_v29 = vunpack.c.l.b16 %v4216_v48  ;;  %v3734_v60 = vsel %vm2296_vm2, %v3670_v59, %v14030_v61  ;;  %v14161_v27 = vpop.permute.xlu0 %3105  ;;  %3523 = vrot.lane.b32.xlu2 %v14150_v46, %s11389_s16  ;;  %v4640_v39 = vunpack.c.l.b16 %v4630_v28 }
 0x812   : > { %v3798_v57 = vsel %vm2361_vm3, %v3734_v60, %v14038_v24  ;;  %v4676_v4 = vpack.c.b16 %v4661_v47, %v4660_v53  ;;  %v2914_v35 = vpack.c.bf16 %v10852_v45, %v10852_v45  ;;  %v3041_v62 = vunpack.c.l.b16 %v2913_v50 }
 0x813   : > { %v3862_v10 = vsel %vm2426_vm4, %v3798_v57, %v14050_v55  ;;  %v4817_v18 = vpack.c.b16 %v4807_v29, %v4806_v23  ;;  %v14181_v55 = vpack.c.b16 %v3024_v33, %v3023_v16 }
 0x814   : > { %4699 = vmatpush.bf16.xpose.msra.mxu3 %v4676_v4  ;;  %v14171_v61 = vpop.permute.xlu2 %3251  ;;  %3165 = vrot.lane.b32.xlu1 %v14133_v44, %s11383_s4  ;;  %v3926_v15 = vsel %vm2491_vm5, %v3862_v10, %v14065_v13  ;;  %v3042_v48 = vunpack.c.l.b16 %v2914_v35  ;;  %v16125_v10 = vld [vmem:[#allocation57_spill] sm:$0xff]  ;;  %v3592_v35 = vsel %vm2134_vm0, %v13893_v43, %v14116_v58  ;;  %v10837_v43 = vunpack.i.h.bf16 %v16117_v12 }
 0x815   : > { %4830 = vmatpush.bf16.xpose.msra.mxu1 %v4817_v18  ;;  %v4010_v24 = vsel %vm2556_vm6, %v3926_v15, %v14085_v7  ;;  %v4642_v7 = vpack.c.b16 %v4641_v5, %v4640_v39  ;;  %v10824_v18 = vunpack.i.l.bf16 %v16125_v10  ;;  %v16126_v15 = vld [vmem:[#allocation60_spill] sm:$0xff]  ;;  %v3668_v39 = vsel %vm2231_vm1, %v3592_v35, %v14143_v42 }
 0x816   : > { %v14179_v52 = vpop.permute.xlu1 %3169  ;;  %v4085_v11 = vunpack.c.l.bf16 %v4010_v24  ;;  %v4086_v38 = vunpack.c.h.bf16 %v4010_v24  ;;  %v10829_v5 = vunpack.i.l.bf16 %v16126_v15  ;;  %v10842_v58 = vunpack.i.h.bf16 %v16118_v9 }
 0x817   : > { %3525 = vrot.lane.b32.xlu0 %v14042_v6, %s11389_s16 }
 0x818   : > { %v4149_v56 = vmul.f32 %v12357_v32, %v4085_v11  ;;  %v4150_v13 = vmul.f32 %v12359_v41, %v4086_v38  ;;  %v2893_v11 = vpack.c.bf16 %v10824_v18, %v10824_v18  ;;  %v2894_v50 = vpack.c.bf16 %v10829_v5, %v10829_v5 }
 0x819   : > { %v3530_v37 = vpop.permute.xlu0 %3529  ;;  %3247 = vrot.lane.b32.xlu2 %v14181_v55, %s11385_s5 }
 0x81a   : > { %v4040_v49 = vsel %vm2556_vm6, %v14104_v26, %v3530_v37  ;;  %v4213_v36 = vpack.c.bf16 %v4149_v56, %v4149_v56  ;;  %v4214_v2 = vpack.c.bf16 %v4150_v13, %v4150_v13  ;;  %v14195_v26 = vpack.c.b16 %v3042_v48, %v3041_v62 }
 0x81b   : > { %v4105_v20 = vunpack.c.l.bf16 %v4040_v49  ;;  %v4106_v0 = vunpack.c.h.bf16 %v4040_v49  ;;  %4700 = vmatmul.bf16.vlgmr.msra.gmra.mxu3 %v4642_v7  ;;  %v3732_v56 = vsel %vm2296_vm2, %v3668_v39, %v14171_v61  ;;  %v3021_v37 = vunpack.c.l.b16 %v2893_v11  ;;  %v16127_v39 = vld [vmem:[#allocation98_spill] sm:$0xff] }
 0x81c   : > { %v3316_v53 = vpop.permute.xlu2 %3315  ;;  %3229 = vrot.lane.b32.xlu1 %v14133_v44, %s11385_s5  ;;  %v4804_v16 = vunpack.c.l.b16 %v4213_v36  ;;  %v4805_v59 = vunpack.c.l.b16 %v4214_v2  ;;  %v3022_v49 = vunpack.c.l.b16 %v2894_v50 }
 0x81d   : > { %v4169_v47 = vmul.f32 %v12304_v63, %v4105_v20  ;;  %v4170_v25 = vmul.f32 %v12310_v1, %v4106_v0  ;;  %v3796_v7 = vsel %vm2361_vm3, %v3732_v56, %v3316_v53  ;;  %v2911_v53 = vpack.c.bf16 %v10837_v43, %v10837_v43  ;;  %v16128_v56 = vld [vmem:[#allocation99_spill] sm:$0xff] }
 0x81e   : > { %v3234_v23 = vpop.permute.xlu1 %3233  ;;  %v4816_v29 = vpack.c.b16 %v4805_v59, %v4804_v16  ;;  %v14236_v0 = vpack.c.b16 %v3022_v49, %v3021_v37  ;;  %v2912_v16 = vpack.c.bf16 %v10842_v58, %v10842_v58  ;;  %v3565_v59 = vsel %vm2134_vm0, %v13891_v40, %v14161_v27 }
 0x81f   : > { %v4233_v60 = vpack.c.bf16 %v4169_v47, %v4169_v47  ;;  %v4234_v33 = vpack.c.bf16 %v4170_v25, %v4170_v25  ;;  %3139 = vrot.lane.b32.xlu0 %v14150_v46, %s11384_s7  ;;  %v3650_v25 = vsel %vm2231_vm1, %v3565_v59, %v14179_v52  ;;  %v10827_v59 = vunpack.i.h.bf16 %v16125_v10 }
 0x820   : > { %4831 = vmatpush.bf16.xpose.msra.mxu1 %v4816_v29 }
 0x821   : > { %v4876_v34 = vunpack.c.l.b16 %v4233_v60  ;;  %v4877_v57 = vunpack.c.l.b16 %v4234_v33  ;;  %v14199_v4 = vpop.permute.xlu0 %3143  ;;  %3265 = vrot.lane.b32.xlu2 %v14195_v26, %s11385_s5  ;;  %v3039_v33 = vunpack.c.l.b16 %v2911_v53 }
 0x823   : > { %v4886_v63 = vpack.c.b16 %v4877_v57, %v4876_v34  ;;  %v3040_v34 = vunpack.c.l.b16 %v2912_v16  ;;  %v3714_v57 = vsel %vm2296_vm2, %v3650_v25, %v3234_v23 }
 0x824   : > { %v3380_v45 = vpop.permute.xlu2 %3379  ;;  %3293 = vrot.lane.b32.xlu1 %v14133_v44, %s11386_s27 }
 0x825   : > { %4897 = vmatpush.bf16.xpose.msra.mxu2 %v4886_v63  ;;  %v3860_v36 = vsel %vm2426_vm4, %v3796_v7, %v3380_v45  ;;  %v14257_v11 = vpack.c.b16 %v3040_v34, %v3039_v33 }
 0x826   : > { %v3298_v1 = vpop.permute.xlu1 %3297 }
 0x827   : > { %3203 = vrot.lane.b32.xlu0 %v14150_v46, %s11383_s4  ;;  %v3778_v63 = vsel %vm2361_vm3, %v3714_v57, %v3298_v1  ;;  %v2909_v57 = vpack.c.bf16 %v10827_v59, %v10827_v59 }
 0x829   : > { %v14207_v28 = vpop.permute.xlu0 %3207  ;;  %3439 = vrot.lane.b32.xlu2 %v14181_v55, %s11388_s13 }
 0x82c   : > { %v3444_v24 = vpop.permute.xlu2 %3443  ;;  %3357 = vrot.lane.b32.xlu1 %v14133_v44, %s11387_s2 }
 0x82d   : > { %v3924_v42 = vsel %vm2491_vm5, %v3860_v36, %v3444_v24 }
 0x82e   : > { %v3362_v38 = vpop.permute.xlu1 %3361 }
 0x82f   : > { %3267 = vrot.lane.b32.xlu0 %v14150_v46, %s11385_s5  ;;  %v3842_v40 = vsel %vm2426_vm4, %v3778_v63, %v3362_v38 }
 0x831   : > { %v14224_v13 = vpop.permute.xlu0 %3271  ;;  %3457 = vrot.lane.b32.xlu2 %v14195_v26, %s11388_s13 }
 0x834   : > { %v3508_v2 = vpop.permute.xlu2 %3507  ;;  %3421 = vrot.lane.b32.xlu1 %v14133_v44, %s11388_s13 }
 0x835   : > { %v4007_v61 = vsel %vm2556_vm6, %v3924_v42, %v3508_v2 }
 0x836   : > { %v4083_v62 = vunpack.c.l.bf16 %v4007_v61  ;;  %v4084_v48 = vunpack.c.h.bf16 %v4007_v61  ;;  %v3426_v20 = vpop.permute.xlu1 %3425 }
 0x837   : > { %3331 = vrot.lane.b32.xlu0 %v14150_v46, %s11386_s27  ;;  %v3906_v27 = vsel %vm2491_vm5, %v3842_v40, %v3426_v20 }
 0x838   : > { %v4147_v12 = vmul.f32 %v16060_v19, %v4083_v62  ;;  %v4148_v9 = vmul.f32 %v16077_v3, %v4084_v48  ;;  %v3622_v62 = vsel %vm2134_vm0, %v13921_v8, %v14199_v4 }
 0x839   : > { %v3336_v47 = vpop.permute.xlu0 %3335  ;;  %3181 = vrot.lane.b32.xlu2 %v14236_v0, %s11383_s4  ;;  %v3688_v20 = vsel %vm2231_vm1, %v3622_v62, %v14207_v28 }
 0x83a   : > { %v4211_v29 = vpack.c.bf16 %v4147_v12, %v4147_v12  ;;  %v4212_v60 = vpack.c.bf16 %v4148_v9, %v4148_v9  ;;  %v3752_v53 = vsel %vm2296_vm2, %v3688_v20, %v14224_v13  ;;  %v10832_v13 = vunpack.i.h.bf16 %v16126_v15 }
 0x83b   : > { %v3816_v12 = vsel %vm2361_vm3, %v3752_v53, %v3336_v47 }
 0x83c   : > { %v4802_v45 = vunpack.c.l.b16 %v4211_v29  ;;  %v4803_v18 = vunpack.c.l.b16 %v4212_v60  ;;  %v14251_v5 = vpop.permute.xlu2 %3121  ;;  %3485 = vrot.lane.b32.xlu1 %v14133_v44, %s11389_s16  ;;  %v2910_v63 = vpack.c.bf16 %v10832_v13, %v10832_v13 }
 0x83e   : > { %v3490_v52 = vpop.permute.xlu1 %3489  ;;  %v4815_v24 = vpack.c.b16 %v4803_v18, %v4802_v45 }
 0x83f   : > { %v3980_v50 = vsel %vm2556_vm6, %v3906_v27, %v3490_v52  ;;  %3395 = vrot.lane.b32.xlu0 %v14150_v46, %s11387_s2  ;;  %v3037_v27 = vunpack.c.l.b16 %v2909_v57  ;;  %v3038_v52 = vunpack.c.l.b16 %v2910_v63 }
 0x840   : > { %v4065_v23 = vunpack.c.l.bf16 %v3980_v50  ;;  %v4066_v1 = vunpack.c.h.bf16 %v3980_v50  ;;  %4832 = vmatpush.bf16.xpose.msra.mxu1 %v4815_v24 }
 0x841   : > { %v3400_v35 = vpop.permute.xlu0 %3399  ;;  %3199 = vrot.lane.b32.xlu2 %v14257_v11, %s11383_s4  ;;  %v14307_v50 = vpack.c.b16 %v3038_v52, %v3037_v27 }
 0x842   : > { %v4129_v38 = vmul.f32 %v16127_v39, %v4065_v23  ;;  %v4130_v37 = vmul.f32 %v16128_v56, %v4066_v1  ;;  %v3880_v9 = vsel %vm2426_vm4, %v3816_v12, %v3400_v35 }
 0x844   : > { %v4193_v7 = vpack.c.bf16 %v4129_v38, %v4129_v38  ;;  %v4194_v49 = vpack.c.bf16 %v4130_v37, %v4130_v37  ;;  %v3186_v43 = vpop.permute.xlu2 %3185  ;;  %3119 = vrot.lane.b32.xlu1 %v14181_v55, %s11384_s7  ;;  %v3589_v38 = vsel %vm2134_vm0, %v14022_v22, %v14251_v5 }
 0x845   : > { %v3666_v37 = vsel %vm2231_vm1, %v3589_v38, %v3186_v43  ;;  %v10095_v43 = vld [vmem:[%s11713_s30 + $0x30] sm:$0xff] }
 0x846   : > { %v4732_v58 = vunpack.c.l.b16 %v4193_v7  ;;  %v4733_v36 = vunpack.c.l.b16 %v4194_v49  ;;  %v14268_v42 = vpop.permute.xlu1 %3103  ;;  %v10096_v7 = vld [vmem:[%s11713_s30 + $0x38] sm:$0xff] }
 0x847   : > { %3459 = vrot.lane.b32.xlu0 %v14150_v46, %s11388_s13  ;;  %4982 = vmatpush.bf16.msrb.mxu3 %v10096_v7 }
 0x848   : > { %v4746_v2 = vpack.c.b16 %v4733_v36, %v4732_v58 }
 0x849   : > { %v3464_v61 = vpop.permute.xlu0 %3463  ;;  %3373 = vrot.lane.b32.xlu2 %v14236_v0, %s11387_s2 }
 0x84a   : > { %4765 = vmatpush.bf16.xpose.msra.mxu0 %v4746_v2  ;;  %v3944_v8 = vsel %vm2491_vm5, %v3880_v9, %v3464_v61  ;;  %v10094_v9 = vld [vmem:[%s11713_s30 + $0x28] sm:$0xff] }
 0x84b   : > { %4983 = vmatpush.bf16.msrb.mxu3 %v10095_v43 }
 0x84c   : > { %v3250_v48 = vpop.permute.xlu2 %3249  ;;  %3137 = vrot.lane.b32.xlu1 %v14195_v26, %s11384_s7 }
 0x84d   : > { %v3730_v49 = vsel %vm2296_vm2, %v3666_v37, %v3250_v48  ;;  %v10090_v37 = vld [vmem:[%s11713_s30 + $0x8] sm:$0xff] }
 0x84e   : > { %v14283_v16 = vpop.permute.xlu1 %3167 }
 0x84f   : > { %3183 = vrot.lane.b32.xlu0 %v14181_v55, %s11383_s4  ;;  %4984 = vmatpush.bf16.msrb.mxu3 %v10094_v9 }
 0x851   : > { %v3528_v4 = vpop.permute.xlu0 %3527  ;;  %3391 = vrot.lane.b32.xlu2 %v14257_v11, %s11387_s2 }
 0x852   : > { %v4037_v28 = vsel %vm2556_vm6, %v3944_v8, %v3528_v4  ;;  %v3562_v8 = vsel %vm2134_vm0, %v14016_v51, %v14268_v42 }
 0x853   : > { %v4103_v25 = vunpack.c.l.bf16 %v4037_v28  ;;  %v4104_v29 = vunpack.c.h.bf16 %v4037_v28  ;;  %v3648_v28 = vsel %vm2231_vm1, %v3562_v8, %v14283_v16 }
 0x854   : > { %v3314_v47 = vpop.permute.xlu2 %3313  ;;  %3311 = vrot.lane.b32.xlu1 %v14181_v55, %s11386_s27 }
 0x855   : > { %v4167_v60 = vmul.f32 %v16121_v30, %v4103_v25  ;;  %v4168_v33 = vmul.f32 %v16122_v17, %v4104_v29  ;;  %v3794_v36 = vsel %vm2361_vm3, %v3730_v49, %v3314_v47 }
 0x856   : > { %v3232_v34 = vpop.permute.xlu1 %3231 }
 0x857   : > { %v4231_v45 = vpack.c.bf16 %v4167_v60, %v4167_v60  ;;  %v4232_v18 = vpack.c.bf16 %v4168_v33, %v4168_v33  ;;  %3201 = vrot.lane.b32.xlu0 %v14195_v26, %s11383_s4  ;;  %v3712_v25 = vsel %vm2296_vm2, %v3648_v28, %v3232_v34  ;;  %v10093_v33 = vld [vmem:[%s11713_s30 + $0x20] sm:$0xff] }
 0x858   : > { %4985 = vmatpush.bf16.msrb.mxu3 %v10093_v33 }
 0x859   : > { %v4874_v10 = vunpack.c.l.b16 %v4231_v45  ;;  %v4875_v15 = vunpack.c.l.b16 %v4232_v18  ;;  %v14301_v40 = vpop.permute.xlu0 %3141  ;;  %3519 = vrot.lane.b32.xlu2 %v14257_v11, %s11389_s16  ;;  %v10092_v18 = vld [vmem:[%s11713_s30 + $0x18] sm:$0xff] }
 0x85a   : > { %v3619_v49 = vsel %vm2134_vm0, %v14042_v6, %v14301_v40 }
 0x85b   : > { %v4885_v30 = vpack.c.b16 %v4875_v15, %v4874_v10 }
 0x85c   : > { %v3378_v17 = vpop.permute.xlu2 %3377  ;;  %3329 = vrot.lane.b32.xlu1 %v14195_v26, %s11386_s27  ;;  %4986 = vmatpush.bf16.msrb.mxu3 %v10092_v18 }
 0x85d   : > { %4898 = vmatpush.bf16.xpose.msra.mxu2 %v4885_v30  ;;  %v3858_v2 = vsel %vm2426_vm4, %v3794_v36, %v3378_v17  ;;  %v10091_v17 = vld [vmem:[%s11713_s30 + $0x10] sm:$0xff]  ;;  %v10089_v36 = vld [vmem:[%s11713_s30] sm:$0xff] }
 0x85e   : > { %v3296_v24 = vpop.permute.xlu1 %3295 }
 0x85f   : > { %3375 = vrot.lane.b32.xlu0 %v14181_v55, %s11387_s2  ;;  %v3776_v29 = vsel %vm2361_vm3, %v3712_v25, %v3296_v24 }
 0x860   : > { %4987 = vmatpush.bf16.msrb.mxu3 %v10091_v17 }
 0x861   : > { %v14311_v23 = vpop.permute.xlu0 %3205  ;;  %3261 = vrot.lane.b32.xlu2 %v14307_v50, %s11385_s5 }
 0x864   : > { %v3442_v1 = vpop.permute.xlu2 %3441  ;;  %3503 = vrot.lane.b32.xlu1 %v14181_v55, %s11389_s16  ;;  %4988 = vmatpush.bf16.msrb.mxu3 %v10090_v37 }
 0x865   : > { %v3922_v22 = vsel %vm2491_vm5, %v3858_v2, %v3442_v1  ;;  %v3686_v2 = vsel %vm2231_vm1, %v3619_v49, %v14311_v23 }
 0x866   : > { %v3360_v35 = vpop.permute.xlu1 %3359 }
 0x867   : > { %3393 = vrot.lane.b32.xlu0 %v14195_v26, %s11387_s2  ;;  %v3840_v51 = vsel %vm2426_vm4, %v3776_v29, %v3360_v35 }
 0x868   : > { %4989 = vmatpush.bf16.msrb.mxu3 %v10089_v36 }
 0x869   : > { %v14325_v58 = vpop.permute.xlu0 %3269  ;;  %3453 = vrot.lane.b32.xlu2 %v14307_v50, %s11388_s13 }
 0x86c   : > { %v3506_v5 = vpop.permute.xlu2 %3505  ;;  %3521 = vrot.lane.b32.xlu1 %v14195_v26, %s11389_s16 }
 0x86d   : > { %v4004_v61 = vsel %vm2556_vm6, %v3922_v22, %v3506_v5  ;;  %v3750_v22 = vsel %vm2296_vm2, %v3686_v2, %v14325_v58 }
 0x86e   : > { %v4081_v62 = vunpack.c.l.bf16 %v4004_v61  ;;  %v4082_v48 = vunpack.c.h.bf16 %v4004_v61  ;;  %v3424_v20 = vpop.permute.xlu1 %3423 }
 0x86f   : > { %3117 = vrot.lane.b32.xlu0 %v14236_v0, %s11384_s7  ;;  %v3904_v42 = vsel %vm2491_vm5, %v3840_v51, %v3424_v20 }
 0x870   : > { %v4145_v53 = vmul.f32 %v16127_v39, %v4081_v62  ;;  %v4146_v12 = vmul.f32 %v16128_v56, %v4082_v48 }
 0x871   : > { %v3334_v4 = vpop.permute.xlu0 %3333 }
 0x872   : > { %v4209_v59 = vpack.c.bf16 %v4145_v53, %v4145_v53  ;;  %v4210_v13 = vpack.c.bf16 %v4146_v12, %v4146_v12  ;;  %v3814_v43 = vsel %vm2361_vm3, %v3750_v22, %v3334_v4  ;;  %v16130_v22 = vld [vmem:[#allocation52_spill] sm:$0xff] }
 0x874   : > { %v4800_v47 = vunpack.c.l.b16 %v4209_v59  ;;  %v4801_v60 = vunpack.c.l.b16 %v4210_v13  ;;  %3245 = vrot.lane.b32.xlu1 %v14236_v0, %s11385_s5 }
 0x876   : > { %v3488_v57 = vpop.permute.xlu1 %3487  ;;  %v4814_v16 = vpack.c.b16 %v4801_v60, %v4800_v47  ;;  %v3524_v60 = vpop.permute.xlu2 %3523 }
 0x877   : > { %v3977_v63 = vsel %vm2556_vm6, %v3904_v42, %v3488_v57  ;;  %3135 = vrot.lane.b32.xlu0 %v14257_v11, %s11384_s7 }
 0x878   : > { %v4063_v34 = vunpack.c.l.bf16 %v3977_v63  ;;  %v4064_v45 = vunpack.c.h.bf16 %v3977_v63  ;;  %4833 = vmatpush.bf16.xpose.msra.mxu1 %v4814_v16 }
 0x879   : > { %v3398_v10 = vpop.permute.xlu0 %3397 }
 0x87a   : > { %v4127_v15 = vmul.f32 %v12656_v21, %v4063_v34  ;;  %v4128_v27 = vmul.f32 %v12658_v31, %v4064_v45  ;;  %v3878_v61 = vsel %vm2426_vm4, %v3814_v43, %v3398_v10 }
 0x87c   : > { %v4191_v52 = vpack.c.bf16 %v4127_v15, %v4127_v15  ;;  %v4192_v30 = vpack.c.bf16 %v4128_v27, %v4128_v27  ;;  %3263 = vrot.lane.b32.xlu1 %v14257_v11, %s11385_s5 }
 0x87e   : > { %v4730_v24 = vunpack.c.l.b16 %v4191_v52  ;;  %v4731_v1 = vunpack.c.l.b16 %v4192_v30  ;;  %v3102_v35 = vpop.permute.xlu1 %3101  ;;  %v3248_v52 = vpop.permute.xlu2 %3247 }
 0x87f   : > { %3309 = vrot.lane.b32.xlu0 %v14236_v0, %s11386_s27  ;;  %v3559_v16 = vsel %vm2134_vm0, %v14133_v44, %v3102_v35 }
 0x880   : > { %v4745_v38 = vpack.c.b16 %v4731_v1, %v4730_v24 }
 0x881   : > { %v3462_v7 = vpop.permute.xlu0 %3461 }
 0x882   : > { %4766 = vmatpush.bf16.xpose.msra.mxu0 %v4745_v38  ;;  %v3942_v6 = vsel %vm2491_vm5, %v3878_v61, %v3462_v7  ;;  %v16129_v7 = vld [vmem:[#allocation85_spill] sm:$0xff] }
 0x884   : > { %3437 = vrot.lane.b32.xlu1 %v14236_v0, %s11388_s13 }
 0x886   : > { %v3166_v5 = vpop.permute.xlu1 %3165 }
 0x887   : > { %3327 = vrot.lane.b32.xlu0 %v14257_v11, %s11386_s27  ;;  %v3646_v34 = vsel %vm2231_vm1, %v3559_v16, %v3166_v5 }
 0x889   : > { %v3526_v40 = vpop.permute.xlu0 %3525 }
 0x88a   : > { %v4034_v62 = vsel %vm2556_vm6, %v3942_v6, %v3526_v40 }
 0x88b   : > { %v4101_v48 = vunpack.c.l.bf16 %v4034_v62  ;;  %v4102_v20 = vunpack.c.h.bf16 %v4034_v62 }
 0x88c   : > { %3455 = vrot.lane.b32.xlu1 %v14257_v11, %s11388_s13 }
 0x88d   : > { %v4165_v23 = vmul.f32 %v12357_v32, %v4101_v48  ;;  %v4166_v58 = vmul.f32 %v12359_v41, %v4102_v20  ;;  %v4596_v41 = vpop.f32.mrf.mxu2 }
 0x88e   : > { %v3230_v53 = vpop.permute.xlu1 %3229 }
 0x88f   : > { %v4229_v12 = vpack.c.bf16 %v4165_v23, %v4165_v23  ;;  %v4230_v9 = vpack.c.bf16 %v4166_v58, %v4166_v58  ;;  %3501 = vrot.lane.b32.xlu0 %v14236_v0, %s11389_s16  ;;  %v3710_v45 = vsel %vm2296_vm2, %v3646_v34, %v3230_v53 }
 0x891   : > { %v4872_v8 = vunpack.c.l.b16 %v4229_v12  ;;  %v4873_v4 = vunpack.c.l.b16 %v4230_v9  ;;  %v3140_v28 = vpop.permute.xlu0 %3139  ;;  %v3266_v12 = vpop.permute.xlu2 %3265 }
 0x892   : > { %v3616_v43 = vsel %vm2134_vm0, %v14150_v46, %v3140_v28 }
 0x893   : > { %v4884_v59 = vpack.c.b16 %v4873_v4, %v4872_v8 }
 0x894   : > { %3197 = vrot.lane.b32.xlu1 %v14307_v50, %s11383_s4 }
 0x895   : > { %4899 = vmatpush.bf16.xpose.msra.mxu2 %v4884_v59  ;;  %v4599_v42 = vpop.f32.mrf.mxu2 }
 0x896   : > { %v3294_v13 = vpop.permute.xlu1 %3293  ;;  %10929 = vrcp.f32 %v4599_v42 }
 0x897   : > { %3133 = vrot.lane.b32.xlu0 %v14307_v50, %s11384_s7  ;;  %10931 = vrcp.f32 %v4596_v41  ;;  %v3774_v18 = vsel %vm2361_vm3, %v3710_v45, %v3294_v13 }
 0x899   : > { %v3204_v32 = vpop.permute.xlu0 %3203 }
 0x89a   : > { %v3684_v61 = vsel %vm2231_vm1, %v3616_v43, %v3204_v32 }
 0x89c   : > { %3389 = vrot.lane.b32.xlu1 %v14307_v50, %s11387_s2  ;;  %v10930_v17 = vpop.eup %10929 }
 0x89d   : > { %v10932_v35 = vpop.eup %10931  ;;  %v4625_v49 = vmul.f32 %v10930_v17, %v16129_v7 }
 0x89e   : > { %v4701_v25 = vpop.f32.mrf.mxu3  ;;  %v3358_v29 = vpop.permute.xlu1 %3357  ;;  %v4624_v5 = vmul.f32 %v10932_v35, %v16130_v22 }
 0x89f   : > { %3325 = vrot.lane.b32.xlu0 %v14307_v50, %s11386_s27  ;;  %v3838_v10 = vsel %vm2426_vm4, %v3774_v18, %v3358_v29  ;;  %v4633_v48 = vpack.c.bf16 %v4625_v49, %v4625_v49 }
 0x8a0   : > { %v4632_v53 = vpack.c.bf16 %v4624_v5, %v4624_v5 }
 0x8a1   : > { %v3268_v47 = vpop.permute.xlu0 %3267  ;;  %v4709_v28 = vunpack.c.l.b16 %v4633_v48 }
 0x8a2   : > { %v3748_v20 = vsel %vm2296_vm2, %v3684_v61, %v3268_v47  ;;  %v4708_v32 = vunpack.c.l.b16 %v4632_v53 }
 0x8a4   : > { %v4710_v47 = vpack.c.b16 %v4709_v28, %v4708_v32 }
 0x8a6   : > { %v4703_v33 = vpop.f32.mrf.mxu3  ;;  %v3422_v51 = vpop.permute.xlu1 %3421 }
 0x8a7   : > { %v4910_v57 = vpack.c.bf16 %v4703_v33, %v4701_v25  ;;  %3517 = vrot.lane.b32.xlu0 %v14307_v50, %s11389_s16  ;;  %v3902_v15 = vsel %vm2491_vm5, %v3838_v10, %v3422_v51 }
 0x8a9   : > { %4990 = vmatmul.bf16.vlgmr.msrb.gmra.mxu3 %v4910_v57  ;;  %v3332_v63 = vpop.permute.xlu0 %3331 }
 0x8aa   : > { %v3812_v23 = vsel %vm2361_vm3, %v3748_v20, %v3332_v63  ;;  %v3440_v63 = vpop.permute.xlu2 %3439 }
 0x8ae   : > { %v3486_v27 = vpop.permute.xlu1 %3485 }
 0x8af   : > { %v3974_v30 = vsel %vm2556_vm6, %v3902_v15, %v3486_v27 }
 0x8b0   : > { %v4061_v44 = vunpack.c.l.bf16 %v3974_v30  ;;  %v4062_v24 = vunpack.c.h.bf16 %v3974_v30 }
 0x8b1   : > { %v3396_v1 = vpop.permute.xlu0 %3395 }
 0x8b2   : > { %v4125_v38 = vmul.f32 %v16075_v54, %v4061_v44  ;;  %v4126_v37 = vmul.f32 %v16119_v14, %v4062_v24  ;;  %v3876_v9 = vsel %vm2426_vm4, %v3812_v23, %v3396_v1  ;;  %v3458_v18 = vpop.permute.xlu2 %3457 }
 0x8b4   : > { %v4189_v36 = vpack.c.bf16 %v4125_v38, %v4125_v38  ;;  %v4190_v2 = vpack.c.bf16 %v4126_v37, %v4126_v37 }
 0x8b6   : > { %v4728_v6 = vunpack.c.l.b16 %v4189_v36  ;;  %v4729_v40 = vunpack.c.l.b16 %v4190_v2  ;;  %v3120_v62 = vpop.permute.xlu1 %3119 }
 0x8b7   : > { %v3586_v10 = vsel %vm2134_vm0, %v14181_v55, %v3120_v62 }
 0x8b8   : > { %v4744_v58 = vpack.c.b16 %v4729_v40, %v4728_v6 }
 0x8b9   : > { %v3460_v8 = vpop.permute.xlu0 %3459 }
 0x8ba   : > { %v3940_v4 = vsel %vm2491_vm5, %v3876_v9, %v3460_v8  ;;  %4767 = vmatpush.bf16.xpose.msra.mxu0 %v4744_v58  ;;  %v3182_v38 = vpop.permute.xlu2 %3181 }
 0x8bb   : > { %v4031_v46 = vsel %vm2556_vm6, %v3940_v4, %v3524_v60 }
 0x8bc   : > { %v4099_v59 = vunpack.c.l.bf16 %v4031_v46  ;;  %v4100_v13 = vunpack.c.h.bf16 %v4031_v46 }
 0x8be   : > { %v3138_v41 = vpop.permute.xlu1 %3137  ;;  %v4163_v25 = vmul.f32 %v16060_v19, %v4099_v59  ;;  %v4164_v29 = vmul.f32 %v16077_v3, %v4100_v13 }
 0x8bf   : > { %v3613_v44 = vsel %vm2134_vm0, %v14195_v26, %v3138_v41 }
 0x8c0   : > { %v4227_v33 = vpack.c.bf16 %v4163_v25, %v4163_v25  ;;  %v4228_v51 = vpack.c.bf16 %v4164_v29, %v4164_v29 }
 0x8c1   : > { %v3184_v42 = vpop.permute.xlu0 %3183  ;;  %4768 = vmatmul.bf16.vlgmr.msra.gmra.mxu0 %v4710_v47  ;;  %v4602_v47 = vpop.f32.mrf.mxu2 }
 0x8c2   : > { %v4870_v57 = vunpack.c.l.b16 %v4227_v33  ;;  %v4871_v16 = vunpack.c.l.b16 %v4228_v51  ;;  %v3664_v19 = vsel %vm2231_vm1, %v3586_v10, %v3184_v42  ;;  %v3200_v53 = vpop.permute.xlu2 %3199 }
 0x8c3   : > { %v3728_v3 = vsel %vm2296_vm2, %v3664_v19, %v3248_v52 }
 0x8c4   : > { %v4883_v34 = vpack.c.b16 %v4871_v16, %v4870_v57 }
 0x8c6   : > { %4900 = vmatpush.bf16.xpose.msra.mxu2 %v4883_v34  ;;  %v3312_v60 = vpop.permute.xlu1 %3311 }
 0x8c7   : > { %v3792_v30 = vsel %vm2361_vm3, %v3728_v3, %v3312_v60 }
 0x8c9   : > { %v3202_v45 = vpop.permute.xlu0 %3201 }
 0x8ca   : > { %v3682_v24 = vsel %vm2231_vm1, %v3613_v44, %v3202_v45  ;;  %v3374_v25 = vpop.permute.xlu2 %3373 }
 0x8cb   : > { %v3746_v52 = vsel %vm2296_vm2, %v3682_v24, %v3266_v12 }
 0x8ce   : > { %v3330_v15 = vpop.permute.xlu1 %3329 }
 0x8cf   : > { %v3810_v36 = vsel %vm2361_vm3, %v3746_v52, %v3330_v15 }
 0x8d1   : > { %v3376_v27 = vpop.permute.xlu0 %3375 }
 0x8d2   : > { %v3856_v17 = vsel %vm2426_vm4, %v3792_v30, %v3376_v27  ;;  %v3392_v51 = vpop.permute.xlu2 %3391 }
 0x8d3   : > { %v3920_v1 = vsel %vm2491_vm5, %v3856_v17, %v3440_v63  ;;  %v4605_v63 = vpop.f32.mrf.mxu2 }
 0x8d4   : > { %10933 = vrcp.f32 %v4605_v63 }
 0x8d5   : > { %10935 = vrcp.f32 %v4602_v47 }
 0x8d6   : > { %v3504_v35 = vpop.permute.xlu1 %3503 }
 0x8d7   : > { %v4001_v55 = vsel %vm2556_vm6, %v3920_v1, %v3504_v35 }
 0x8d8   : > { %v4079_v37 = vunpack.c.l.bf16 %v4001_v55  ;;  %v4080_v7 = vunpack.c.h.bf16 %v4001_v55 }
 0x8d9   : > { %v3394_v49 = vpop.permute.xlu0 %3393 }
 0x8da   : > { %v4143_v2 = vmul.f32 %v12656_v21, %v4079_v37  ;;  %v4144_v22 = vmul.f32 %v12658_v31, %v4080_v7  ;;  %v3874_v26 = vsel %vm2426_vm4, %v3810_v36, %v3394_v49  ;;  %v10934_v35 = vpop.eup %10933 }
 0x8db   : > { %v3938_v40 = vsel %vm2491_vm5, %v3874_v26, %v3458_v18  ;;  %v10936_v52 = vpop.eup %10935  ;;  %v16131_v26 = vld [vmem:[#allocation91_spill] sm:$0xff] }
 0x8dc   : > { %v4207_v5 = vpack.c.bf16 %v4143_v2, %v4143_v2  ;;  %v4208_v43 = vpack.c.bf16 %v4144_v22, %v4144_v22 }
 0x8de   : > { %v4798_v61 = vunpack.c.l.b16 %v4207_v5  ;;  %v4799_v6 = vunpack.c.l.b16 %v4208_v43  ;;  %v3522_v62 = vpop.permute.xlu1 %3521  ;;  %v4627_v5 = vmul.f32 %v10934_v35, %v16131_v26 }
 0x8df   : > { %v4028_v48 = vsel %vm2556_vm6, %v3938_v40, %v3522_v62  ;;  %v16132_v62 = vld [vmem:[#allocation86_spill] sm:$0xff] }
 0x8e0   : > { %v4097_v20 = vunpack.c.l.bf16 %v4028_v48  ;;  %v4098_v23 = vunpack.c.h.bf16 %v4028_v48  ;;  %v4813_v58 = vpack.c.b16 %v4799_v6, %v4798_v61  ;;  %v4626_v48 = vmul.f32 %v10936_v52, %v16132_v62 }
 0x8e1   : > { %v3118_v12 = vpop.permute.xlu0 %3117 }
 0x8e2   : > { %v4161_v9 = vmul.f32 %v16127_v39, %v4097_v20  ;;  %v4162_v8 = vmul.f32 %v16128_v56, %v4098_v23  ;;  %4834 = vmatpush.bf16.xpose.msra.mxu1 %v4813_v58  ;;  %v3583_v56 = vsel %vm2134_vm0, %v14236_v0, %v3118_v12  ;;  %v3520_v0 = vpop.permute.xlu2 %3519  ;;  %v4608_v20 = vpop.f32.mrf.mxu2 }
 0x8e3   : > { %v3662_v60 = vsel %vm2231_vm1, %v3583_v56, %v3182_v38 }
 0x8e4   : > { %v4225_v4 = vpack.c.bf16 %v4161_v9, %v4161_v9  ;;  %v4226_v46 = vpack.c.bf16 %v4162_v8, %v4162_v8  ;;  %v4634_v8 = vpack.c.bf16 %v4626_v48, %v4626_v48  ;;  %v11390_v48 = vmov 128.0  }
 0x8e6   : > { %v4868_v28 = vunpack.c.l.b16 %v4225_v4  ;;  %v4869_v59 = vunpack.c.l.b16 %v4226_v46  ;;  %v3246_v13 = vpop.permute.xlu1 %3245 }
 0x8e7   : > { %v3726_v18 = vsel %vm2296_vm2, %v3662_v60, %v3246_v13  ;;  %v4776_v13 = vunpack.c.l.b16 %v4634_v8 }
 0x8e8   : > { %v4882_v32 = vpack.c.b16 %v4869_v59, %v4868_v28 }
 0x8e9   : > { %v3136_v41 = vpop.permute.xlu0 %3135 }
 0x8ea   : > { %4901 = vmatpush.bf16.xpose.msra.mxu2 %v4882_v32  ;;  %v3610_v42 = vsel %vm2134_vm0, %v14257_v11, %v3136_v41  ;;  %v3262_v46 = vpop.permute.xlu2 %3261  ;;  %v4611_v41 = vpop.f32.mrf.mxu2 }
 0x8eb   : > { %v3680_v57 = vsel %vm2231_vm1, %v3610_v42, %v3200_v53  ;;  %v4635_v53 = vpack.c.bf16 %v4627_v5, %v4627_v5  ;;  %10937 = vrcp.f32 %v4611_v41 }
 0x8ec   : > { %10939 = vrcp.f32 %v4608_v20 }
 0x8ed   : > { %v4777_v28 = vunpack.c.l.b16 %v4635_v53  ;;  %10941 = vrcp.f32 %v11390_v48  ;;  %v9363_v48 = vld [vmem:[%s11719_s10 + $0x308] sm:$0xf] }
 0x8ee   : > { %v3264_v29 = vpop.permute.xlu1 %3263 }
 0x8ef   : > { %v3744_v34 = vsel %vm2296_vm2, %v3680_v57, %v3264_v29  ;;  %v4778_v29 = vpack.c.b16 %v4777_v28, %v4776_v13 }
 0x8f1   : > { %v3310_v33 = vpop.permute.xlu0 %3309  ;;  %v10938_v57 = vpop.eup %10937 }
 0x8f2   : > { %v3790_v10 = vsel %vm2361_vm3, %v3726_v18, %v3310_v33  ;;  %v16133_v18 = vld [vmem:[#allocation33_spill] sm:$0xff] }
 0x8f3   : > { %v3854_v3 = vsel %vm2426_vm4, %v3790_v10, %v3374_v25  ;;  %v4629_v10 = vmul.f32 %v10938_v57, %v16133_v18 }
 0x8f6   : > { %v3438_v39 = vpop.permute.xlu1 %3437 }
 0x8f7   : > { %v3918_v30 = vsel %vm2491_vm5, %v3854_v3, %v3438_v39 }
 0x8f9   : > { %v3328_v16 = vpop.permute.xlu0 %3327 }
 0x8fa   : > { %v3808_v45 = vsel %vm2361_vm3, %v3744_v34, %v3328_v16  ;;  %v10940_v34 = vpop.eup %10939 }
 0x8fb   : > { %v3872_v11 = vsel %vm2426_vm4, %v3808_v45, %v3392_v51  ;;  %v10942_v20 = vpop.eup %10941 }
 0x8fc   : > { %vm5042_vm7 = vweird.f32 %v10942_v20 }
 0x8fe   : > { %v3456_v19 = vpop.permute.xlu1 %3455 }
 0x8ff   : > { %v3936_v15 = vsel %vm2491_vm5, %v3872_v11, %v3456_v19 }
 0x900   : > { %v4025_v27 = vsel %vm2556_vm6, %v3936_v15, %v3520_v0  ;;  %v16134_v0 = vld [vmem:[#allocation89_spill] sm:$0xff] }
 0x901   : > { %v4095_v17 = vunpack.c.l.bf16 %v4025_v27  ;;  %v4096_v44 = vunpack.c.h.bf16 %v4025_v27  ;;  %v3502_v24 = vpop.permute.xlu0 %3501  ;;  %v4628_v15 = vmul.f32 %v10940_v34, %v16134_v0 }
 0x902   : > { %v3998_v1 = vsel %vm2556_vm6, %v3918_v30, %v3502_v24  ;;  %v4637_v30 = vpack.c.bf16 %v4629_v10, %v4629_v10  ;;  %v10982_v10 = vld [vmem:[#allocation2 + $0x28] sm:$0xff] }
 0x903   : > { %v4077_v38 = vunpack.c.l.bf16 %v3998_v1  ;;  %v4078_v55 = vunpack.c.h.bf16 %v3998_v1  ;;  %v4159_v37 = vmul.f32 %v12656_v21, %v4095_v17  ;;  %v4160_v7 = vmul.f32 %v12658_v31, %v4096_v44 }
 0x904   : > { %v4636_v44 = vpack.c.bf16 %v4628_v15, %v4628_v15  ;;  %v4845_v24 = vunpack.c.l.b16 %v4637_v30  ;;  %v10983_v30 = vld [vmem:[#allocation2 + $0x38] sm:$0xff] }
 0x905   : > { %v4141_v49 = vmul.f32 %v16075_v54, %v4077_v38  ;;  %v4142_v36 = vmul.f32 %v16119_v14, %v4078_v55  ;;  %v4223_v2 = vpack.c.bf16 %v4159_v37, %v4159_v37  ;;  %v4224_v22 = vpack.c.bf16 %v4160_v7, %v4160_v7  ;;  %v10976_v55 = vld [vmem:[#allocation2 + $0x30] sm:$0xff] }
 0x906   : > { %v3198_v12 = vpop.permute.xlu1 %3197  ;;  %v4844_v1 = vunpack.c.l.b16 %v4636_v44 }
 0x907   : > { %v4205_v43 = vpack.c.bf16 %v4141_v49, %v4141_v49  ;;  %v4206_v61 = vpack.c.bf16 %v4142_v36, %v4142_v36  ;;  %v4866_v6 = vunpack.c.l.b16 %v4223_v2  ;;  %v4867_v40 = vunpack.c.l.b16 %v4224_v22  ;;  %v10977_v49 = vld [vmem:[#allocation2] sm:$0xff] }
 0x909   : > { %v4796_v23 = vunpack.c.l.b16 %v4205_v43  ;;  %v4797_v21 = vunpack.c.l.b16 %v4206_v61  ;;  %v3134_v58 = vpop.permute.xlu0 %3133  ;;  %v4881_v31 = vpack.c.b16 %v4867_v40, %v4866_v6 }
 0x90a   : > { %v3607_v4 = vsel %vm2134_vm0, %v14307_v50, %v3134_v58  ;;  %v3454_v50 = vpop.permute.xlu2 %3453 }
 0x90b   : > { %4902 = vmatpush.bf16.xpose.msra.mxu2 %v4881_v31  ;;  %v4812_v9 = vpack.c.b16 %v4797_v21, %v4796_v23  ;;  %v3678_v59 = vsel %vm2231_vm1, %v3607_v4, %v3198_v12  ;;  %v5038_v23 = vmul.f32 128.0, %v10942_v20  ;;  %v10978_v12 = vld [vmem:[#allocation2 + $0x18] sm:$0xff] }
 0x90c   : > { %v3742_v25 = vsel %vm2296_vm2, %v3678_v59, %v3262_v46 }
 0x90d   : > { %4835 = vmatpush.bf16.xpose.msra.mxu1 %v4812_v9  ;;  %v5039_v21 = vsub.f32 1.0, %v5038_v23 }
 0x90e   : > { %v3390_v33 = vpop.permute.xlu1 %3389 }
 0x90f   : > { %v5040_v58 = vmul.f32 %v10942_v20, %v5039_v21 }
 0x911   : > { %v3326_v32 = vpop.permute.xlu0 %3325  ;;  %v5041_v8 = vadd.f32 %v10942_v20, %v5040_v58  ;;  %v10194_v58 = vld [vmem:[%s11719_s10 + $0x30c] sm:$0xf] }
 0x912   : > { %v3806_v47 = vsel %vm2361_vm3, %v3742_v25, %v3326_v32  ;;  %v10979_v32 = vld [vmem:[#allocation2 + $0x10] sm:$0xff] }
 0x913   : > { %v3870_v51 = vsel %vm2426_vm4, %v3806_v47, %v3390_v33  ;;  %v14483_v4 = vsel %vm5042_vm7, %v10942_v20, %v5041_v8  ;;  %v10202_v20 = vld [vmem:[%s11719_s10 + $0x344] sm:$0xf0]  ;;  %v10185_v8 = vld [vmem:[%s11719_s10 + $0x2bc] sm:$0xf0] }
 0x914   : > { %4836 = vmatmul.bf16.vlgmr.msra.gmra.mxu1 %v4778_v29  ;;  %v3934_v39 = vsel %vm2491_vm5, %v3870_v51, %v3454_v50  ;;  %16136 = vst [vmem:[#allocation46_spill] sm:$0xff] %v14483_v4  ;;  %v9364_v21 = vor.u32 %v10202_v20, %v9363_v48  ;;  %v10130_v48 = vld [vmem:[%s11719_s10 + $0x10c] sm:$0xf] }
 0x915   : > { %v9109_v20 = vld [vmem:[%s11719_s10 + $0x148] sm:$0xf0] }
 0x919   : > { %v3518_v42 = vpop.permute.xlu0 %3517 }
 0x91a   : > { %v4022_v56 = vsel %vm2556_vm6, %v3934_v39, %v3518_v42  ;;  %v10980_v42 = vld [vmem:[#allocation2 + $0x8] sm:$0xff] }
 0x91b   : > { %v4093_v16 = vunpack.c.l.bf16 %v4022_v56  ;;  %v4094_v63 = vunpack.c.h.bf16 %v4022_v56 }
 0x91d   : > { %v4157_v60 = vmul.f32 %v16075_v54, %v4093_v16  ;;  %v4158_v45 = vmul.f32 %v16119_v14, %v4094_v63  ;;  %v14478_v54 = vld [vmem:[%s887_s8] ss:$0 sm:$0xff]  ;;  %v4846_v14 = vpack.c.b16 %v4845_v24, %v4844_v1 }
 0x91e   : > { %v10981_v63 = vld [vmem:[#allocation2 + $0x20] sm:$0xff] }
 0x91f   : > { %v4221_v11 = vpack.c.bf16 %v4157_v60, %v4157_v60  ;;  %v4222_v19 = vpack.c.bf16 %v4158_v45, %v4158_v45 }
 0x921   : > { %v4864_v3 = vunpack.c.l.b16 %v4221_v11  ;;  %v4865_v27 = vunpack.c.l.b16 %v4222_v19 }
 0x923   : > { %v4880_v17 = vpack.c.b16 %v4865_v27, %v4864_v3 }
 0x925   : > { %4903 = vmatpush.bf16.xpose.msra.mxu2 %v4880_v17 }
 0x92c   : > { %v4991_v35 = vpop.f32.mrf.mxu3  ;;  %4904 = vmatmul.bf16.vlgmr.msra.gmra.mxu2 %v4846_v14 }
 0x92d   : > { %v4992_v38 = vadd.f32 %v14478_v54, %v4991_v35  ;;  %v9419_v35 = vld [vmem:[%s11719_s10 + $0x380] sm:$0xf] }
 0x92f   : > { %v5011_v37 = vadd.f32 %v10976_v55, %v4992_v38  ;;  %v10217_v38 = vld [vmem:[%s11719_s10 + $0x3bc] sm:$0xf0]  ;;  %v10209_v55 = vld [vmem:[%s11719_s10 + $0x384] sm:$0xf] }
 0x931   : > { %5021 = vadd.xlane.f32.xlu1 %v5011_v37 }
 0x934   : > { %v4993_v7 = vpop.f32.mrf.mxu3 }
 0x935   : > { %v4994_v52 = vadd.f32 %v14478_v54, %v4993_v7  ;;  %v9421_v7 = vld [vmem:[%s11719_s10 + $0x3c0] sm:$0xf0] }
 0x937   : > { %v5012_v36 = vadd.f32 %v10977_v49, %v4994_v52  ;;  %v10210_v52 = vld [vmem:[%s11719_s10 + $0x38c] sm:$0xf] }
 0x938   : > { %v9429_v49 = vld [vmem:[%s11719_s10 + $0x3c8] sm:$0xf0] }
 0x939   : > { %5023 = vadd.xlane.f32.xlu2 %v5012_v36 }
 0x93e   : > { %v4769_v2 = vpop.f32.mrf.mxu0 }
 0x946   : > { %v4771_v22 = vpop.f32.mrf.mxu0 }
 0x947   : > { %v4911_v26 = vpack.c.bf16 %v4771_v22, %v4769_v2  ;;  %v9432_v2 = vor.u32 %v10210_v52, %v9429_v49  ;;  %v9427_v22 = vld [vmem:[%s11719_s10 + $0x388] sm:$0xf]  ;;  %v10146_v52 = vld [vmem:[%s11719_s10 + $0x18c] sm:$0xf] }
 0x948   : > { %v9173_v49 = vld [vmem:[%s11719_s10 + $0x1c8] sm:$0xf0] }
 0x949   : > { %4995 = vmatmul.bf16.gmra.mxu3 %v4911_v26  ;;  %v10218_v26 = vld [vmem:[%s11719_s10 + $0x3c4] sm:$0xf0] }
 0x94a   : > { %6105 = vmatpush.bf16.msra.mxu3 %v9432_v2  ;;  %v9099_v2 = vld [vmem:[%s11719_s10 + $0x100] sm:$0xf] }
 0x991   : > { %v4837_v5 = vpop.f32.mrf.mxu1 }
 0x999   : > { %v4839_v43 = vpop.f32.mrf.mxu1 }
 0x99a   : > { %v4912_v61 = vpack.c.bf16 %v4839_v43, %v4837_v5  ;;  %v9428_v5 = vor.u32 %v10218_v26, %v9427_v22  ;;  %v9355_v43 = vld [vmem:[%s11719_s10 + $0x300] sm:$0xf]  ;;  %v10129_v26 = vld [vmem:[%s11719_s10 + $0x104] sm:$0xf] }
 0x99b   : > { %v10137_v22 = vld [vmem:[%s11719_s10 + $0x13c] sm:$0xf0] }
 0x99c   : > { %5000 = vmatmul.bf16.gmra.mxu3 %v4912_v61  ;;  %v10201_v61 = vld [vmem:[%s11719_s10 + $0x33c] sm:$0xf0]  ;;  %6076 = vmatpush.bf16.msrb.mxu2 %v9428_v5  ;;  %v9100_v5 = vor.u32 %v10137_v22, %v9099_v2 }
 0x9a0   : > { %6077 = vmatpush.bf16.msrb.mxu2 %v9364_v21  ;;  %v9035_v21 = vld [vmem:[%s11719_s10 + $0x80] sm:$0xf] }
 0x9a4   : > { %v5022_v46 = vpop.xlane.xlu1 %5021 }
 0x9a5   : > { %v5044_v13 = vmul.f32 %v14483_v4, %v5022_v46  ;;  %v10177_v46 = vld [vmem:[%s11719_s10 + $0x284] sm:$0xf] }
 0x9a7   : > { %v14487_v25 = vsub.f32 %v5011_v37, %v5044_v13  ;;  %v9420_v37 = vor.u32 %v10217_v38, %v9419_v35  ;;  %v9299_v13 = vld [vmem:[%s11719_s10 + $0x288] sm:$0xf]  ;;  %v9165_v35 = vld [vmem:[%s11719_s10 + $0x1c0] sm:$0xf0] }
 0x9a8   : > { %v9171_v38 = vld [vmem:[%s11719_s10 + $0x188] sm:$0xf] }
 0x9a9   : > { %v5060_v29 = vmul.f32 %v14487_v25, %v14487_v25  ;;  %6018 = vmatpush.bf16.msrb.mxu0 %v9420_v37 }
 0x9ac   : > { %v5024_v47 = vpop.xlane.xlu2 %5023 }
 0x9ad   : > { %v5045_v50 = vmul.f32 %v14483_v4, %v5024_v47  ;;  %v10178_v47 = vld [vmem:[%s11719_s10 + $0x28c] sm:$0xf] }
 0x9af   : > { %v4905_v6 = vpop.f32.mrf.mxu2  ;;  %v14496_v56 = vsub.f32 %v5012_v36, %v5045_v50  ;;  %v9424_v36 = vor.u32 %v10209_v55, %v9421_v7  ;;  %v10154_v55 = vld [vmem:[%s11719_s10 + $0x1c4] sm:$0xf0] }
 0x9b0   : > { %v9172_v7 = vor.u32 %v10154_v55, %v9171_v38 }
 0x9b1   : > { %v5061_v60 = vmul.f32 %v14496_v56, %v14496_v56  ;;  %6047 = vmatpush.bf16.msrb.mxu1 %v9424_v36  ;;  %v9176_v36 = vor.u32 %v10146_v52, %v9173_v49 }
 0x9b7   : > { %v4907_v40 = vpop.f32.mrf.mxu2 }
 0x9b8   : > { %v4913_v62 = vpack.c.bf16 %v4907_v40, %v4905_v6  ;;  %v10193_v6 = vld [vmem:[%s11719_s10 + $0x304] sm:$0xf]  ;;  %v9356_v40 = vor.u32 %v10201_v61, %v9355_v43  ;;  %v9107_v61 = vld [vmem:[%s11719_s10 + $0x108] sm:$0xf] }
 0x9b9   : > { %v9101_v43 = vld [vmem:[%s11719_s10 + $0x140] sm:$0xf0] }
 0x9ba   : > { %5005 = vmatmul.bf16.gmra.mxu3 %v4913_v62  ;;  %v9357_v62 = vld [vmem:[%s11719_s10 + $0x340] sm:$0xf0]  ;;  %6019 = vmatpush.bf16.msrb.mxu0 %v9356_v40  ;;  %v9104_v40 = vor.u32 %v10129_v26, %v9101_v43 }
 0x9bb   : > { %v9360_v23 = vor.u32 %v10193_v6, %v9357_v62  ;;  %v10138_v6 = vld [vmem:[%s11719_s10 + $0x144] sm:$0xf0] }
 0x9bc   : > { %v9108_v62 = vor.u32 %v10138_v6, %v9107_v61 }
 0x9bd   : > { %6048 = vmatpush.bf16.msrb.mxu1 %v9360_v23  ;;  %v9112_v23 = vor.u32 %v10130_v48, %v9109_v20 }
 0x9cc   : > { %v4996_v31 = vpop.f32.mrf.mxu3 }
 0x9cd   : > { %v4997_v53 = vadd.f32 %v14478_v54, %v4996_v31  ;;  %v9365_v31 = vld [vmem:[%s11719_s10 + $0x348] sm:$0xf0] }
 0x9cf   : > { %v5013_v9 = vadd.f32 %v10978_v12, %v4997_v53  ;;  %v9368_v53 = vor.u32 %v10194_v58, %v9365_v31  ;;  %v10121_v58 = vld [vmem:[%s11719_s10 + $0xbc] sm:$0xf0]  ;;  %v10113_v31 = vld [vmem:[%s11719_s10 + $0x84] sm:$0xf] }
 0x9d1   : > { %5025 = vadd.xlane.f32.xlu0 %v5013_v9  ;;  %6106 = vmatpush.bf16.msra.mxu3 %v9368_v53  ;;  %v9036_v53 = vor.u32 %v10121_v58, %v9035_v21 }
 0x9d4   : > { %v4998_v28 = vpop.f32.mrf.mxu3 }
 0x9d5   : > { %v4999_v59 = vadd.f32 %v14478_v54, %v4998_v28 }
 0x9d7   : > { %v5014_v41 = vadd.f32 %v10979_v32, %v4999_v59  ;;  %v9293_v59 = vld [vmem:[%s11719_s10 + $0x2c0] sm:$0xf0]  ;;  %v10186_v32 = vld [vmem:[%s11719_s10 + $0x2c4] sm:$0xf0] }
 0x9d9   : > { %5027 = vadd.xlane.f32.xlu1 %v5014_v41 }
 0x9e1   : > { %5068 = vadd.xlane.f32.xlu1 %v5060_v29  ;;  %v9300_v29 = vor.u32 %v10186_v32, %v9299_v13  ;;  %v10114_v13 = vld [vmem:[%s11719_s10 + $0x8c] sm:$0xf] }
 0x9e2   : > { %v9045_v32 = vld [vmem:[%s11719_s10 + $0xc8] sm:$0xf0] }
 0x9e3   : > { %6078 = vmatpush.bf16.msrb.mxu2 %v9300_v29 }
 0xa1f   : > { %v5001_v33 = vpop.f32.mrf.mxu3 }
 0xa20   : > { %v5002_v51 = vadd.f32 %v14478_v54, %v5001_v33  ;;  %v9301_v33 = vld [vmem:[%s11719_s10 + $0x2c8] sm:$0xf0] }
 0xa21   : > { %v9304_v50 = vor.u32 %v10178_v47, %v9301_v33  ;;  %v9048_v47 = vor.u32 %v10114_v13, %v9045_v32  ;;  %v8971_v33 = vld [vmem:[%s11719_s10] sm:$0xf] }
 0xa22   : > { %v14493_v39 = vadd.f32 %v10980_v42, %v5002_v51  ;;  %v9227_v42 = vld [vmem:[%s11719_s10 + $0x200] sm:$0xf] }
 0xa23   : > { %6107 = vmatpush.bf16.msra.mxu3 %v9304_v50  ;;  %v10097_v50 = vld [vmem:[%s11719_s10 + $0x4] sm:$0xf] }
 0xa24   : > { %5029 = vadd.xlane.f32.xlu2 %v14493_v39 }
 0xa27   : > { %v5003_v57 = vpop.f32.mrf.mxu3 }
 0xa28   : > { %v5004_v16 = vadd.f32 %v14478_v54, %v5003_v57  ;;  %v10169_v57 = vld [vmem:[%s11719_s10 + $0x23c] sm:$0xf0] }
 0xa2a   : > { %v14499_v34 = vadd.f32 %v10981_v63, %v5004_v16  ;;  %v10161_v16 = vld [vmem:[%s11719_s10 + $0x204] sm:$0xf]  ;;  %v9228_v63 = vor.u32 %v10169_v57, %v9227_v42 }
 0xa2c   : > { %5031 = vadd.xlane.f32.xlu0 %v14499_v34  ;;  %5070 = vadd.xlane.f32.xlu2 %v5061_v60  ;;  %v9229_v60 = vld [vmem:[%s11719_s10 + $0x240] sm:$0xf0] }
 0xa3d   : > { %v5006_v45 = vpop.f32.mrf.mxu3 }
 0xa3e   : > { %v5007_v18 = vadd.f32 %v14478_v54, %v5006_v45  ;;  %v9235_v45 = vld [vmem:[%s11719_s10 + $0x208] sm:$0xf] }
 0xa40   : > { %v14505_v11 = vadd.f32 %v10982_v10, %v5007_v18  ;;  %v10170_v18 = vld [vmem:[%s11719_s10 + $0x244] sm:$0xf0]  ;;  %v9232_v10 = vor.u32 %v10161_v16, %v9229_v60  ;;  %v8973_v16 = vld [vmem:[%s11719_s10 + $0x40] sm:$0xf0] }
 0xa41   : > { %v10106_v60 = vld [vmem:[%s11719_s10 + $0x44] sm:$0xf0] }
 0xa42   : > { %5033 = vadd.xlane.f32.xlu0 %v14505_v11 }
 0xa44   : > { %v5026_v19 = vpop.xlane.xlu0 %5025 }
 0xa45   : > { %v5046_v0 = vmul.f32 %v14483_v4, %v5026_v19  ;;  %v5008_v15 = vpop.f32.mrf.mxu3  ;;  %v9236_v19 = vor.u32 %v10170_v18, %v9235_v45  ;;  %v8976_v18 = vor.u32 %v10097_v50, %v8973_v16 }
 0xa46   : > { %v5009_v3 = vadd.f32 %v14478_v54, %v5008_v15  ;;  %v9237_v15 = vld [vmem:[%s11719_s10 + $0x248] sm:$0xf0] }
 0xa47   : > { %v14510_v27 = vsub.f32 %v5013_v9, %v5046_v0  ;;  %v9291_v9 = vld [vmem:[%s11719_s10 + $0x280] sm:$0xf]  ;;  %v10162_v0 = vld [vmem:[%s11719_s10 + $0x20c] sm:$0xf]  ;;  %6079 = vmatpush.bf16.msrb.mxu2 %v9236_v19 }
 0xa48   : > { %v14512_v17 = vadd.f32 %v10983_v30, %v5009_v3  ;;  %v9292_v28 = vor.u32 %v10185_v8, %v9291_v9  ;;  %v9240_v30 = vor.u32 %v10162_v0, %v9237_v15  ;;  %v9043_v9 = vld [vmem:[%s11719_s10 + $0x88] sm:$0xf]  ;;  %v10098_v19 = vld [vmem:[%s11719_s10 + $0xc] sm:$0xf] }
 0xa49   : > { %v5062_v44 = vmul.f32 %v14510_v27, %v14510_v27  ;;  %v10122_v8 = vld [vmem:[%s11719_s10 + $0xc4] sm:$0xf0]  ;;  %v8981_v0 = vld [vmem:[%s11719_s10 + $0x48] sm:$0xf0] }
 0xa4a   : > { %5035 = vadd.xlane.f32.xlu1 %v14512_v17  ;;  %6020 = vmatpush.bf16.msrb.mxu0 %v9292_v28 }
 0xa4b   : > { %5072 = vadd.xlane.f32.xlu2 %v5062_v44  ;;  %v9163_v44 = vld [vmem:[%s11719_s10 + $0x180] sm:$0xf]  ;;  %6108 = vmatpush.bf16.msra.mxu3 %v9240_v30  ;;  %v8984_v30 = vor.u32 %v10098_v19, %v8981_v0 }
 0xa4c   : > { %v5028_v24 = vpop.xlane.xlu1 %5027  ;;  %6080 = vmatpush.bf16.msrb.mxu2 %v9172_v7 }
 0xa4d   : > { %v5047_v1 = vmul.f32 %v14483_v4, %v5028_v24  ;;  %v10153_v24 = vld [vmem:[%s11719_s10 + $0x1bc] sm:$0xf0] }
 0xa4e   : > { %6021 = vmatpush.bf16.msrb.mxu0 %v9228_v63  ;;  %v8979_v63 = vld [vmem:[%s11719_s10 + $0x8] sm:$0xf] }
 0xa4f   : > { %v14518_v54 = vsub.f32 %v5014_v41, %v5047_v1  ;;  %v9296_v41 = vor.u32 %v10177_v46, %v9293_v59  ;;  %v10145_v1 = vld [vmem:[%s11719_s10 + $0x184] sm:$0xf]  ;;  %6109 = vmatpush.bf16.msra.mxu3 %v9176_v36  ;;  %v9044_v59 = vor.u32 %v10122_v8, %v9043_v9 }
 0xa50   : > { %v9168_v37 = vor.u32 %v10145_v1, %v9165_v35  ;;  %6081 = vmatpush.bf16.msrb.mxu2 %v9108_v62 }
 0xa51   : > { %v5063_v14 = vmul.f32 %v14518_v54, %v14518_v54  ;;  %6049 = vmatpush.bf16.msrb.mxu1 %v9296_v41 }
 0xa53   : > { %5074 = vadd.xlane.f32.xlu0 %v5063_v14  ;;  %v9164_v14 = vor.u32 %v10153_v24, %v9163_v44  ;;  %6110 = vmatpush.bf16.msra.mxu3 %v9112_v23 }
 0xa54   : > { %v5069_v12 = vpop.xlane.xlu1 %5068  ;;  %6082 = vmatpush.bf16.msrb.mxu2 %v9044_v59 }
 0xa55   : > { %v5084_v51 = vmul.f32 %v5069_v12, %v14483_v4  ;;  %6050 = vmatpush.bf16.msrb.mxu1 %v9232_v10  ;;  %6022 = vmatpush.bf16.msrb.mxu0 %v9164_v14  ;;  %v9037_v12 = vld [vmem:[%s11719_s10 + $0xc0] sm:$0xf0]  ;;  %v8980_v10 = vor.u32 %v10106_v60, %v8979_v63 }
 0xa56   : > { %v9040_v28 = vor.u32 %v10113_v31, %v9037_v12 }
 0xa57   : > { %v14555_v3 = vadd.f32 1e-05, %v5084_v51  ;;  %v10105_v51 = vld [vmem:[%s11719_s10 + $0x3c] sm:$0xf0]  ;;  %6111 = vmatpush.bf16.msra.mxu3 %v9048_v47 }
 0xa58   : > { %v8972_v57 = vor.u32 %v10105_v51, %v8971_v33  ;;  %6083 = vmatpush.bf16.msrb.mxu2 %v8980_v10 }
 0xa59   : > { %6051 = vmatpush.bf16.msrb.mxu1 %v9168_v37  ;;  %10943 = vrsqrt.f32 %v14555_v3  ;;  %6023 = vmatpush.bf16.msrb.mxu0 %v9100_v5  ;;  %vm5106_vm9 = vweird.f32 %v14555_v3  ;;  %v14610_v5 = vld [vmem:[%s893_s18] ss:$0 sm:$0xff] }
 0xa5b   : > { %6112 = vmatpush.bf16.msra.mxu3 %v8984_v30 }
 0xa5d   : > { %6052 = vmatpush.bf16.msrb.mxu1 %v9104_v40  ;;  %6024 = vmatpush.bf16.msrb.mxu0 %v9036_v53 }
 0xa5f   : > { %v10944_v41 = vpop.eup %10943 }
 0xa60   : > { %v5101_v45 = vmul.f32 %v10944_v41, %v14555_v3  ;;  %vm5107_vm8 = vweird.f32 %v10944_v41  ;;  %v14618_v3 = vld [vmem:[%s896_s24] ss:$0 sm:$0xff] }
 0xa61   : > { %6053 = vmatpush.bf16.msrb.mxu1 %v9040_v28  ;;  %6025 = vmatpush.bf16.msrb.mxu0 %v8972_v57  ;;  %vm5108_vm10 = vmor %vm5106_vm9, %vm5107_vm8 }
 0xa65   : > { %6054 = vmatpush.bf16.msrb.mxu1 %v8976_v18 }
 0xa97   : > { %v5030_v46 = vpop.xlane.xlu2 %5029 }
 0xa98   : > { %v5048_v29 = vmul.f32 %v14483_v4, %v5030_v46 }
 0xa9a   : > { %v14587_v42 = vsub.f32 %v14493_v39, %v5048_v29  ;;  %v5102_v39 = vmul.f32 %v10944_v41, %v5101_v45 }
 0xa9c   : > { %v5064_v15 = vmul.f32 %v14587_v42, %v14587_v42  ;;  %v5103_v55 = vmul.f32 0.5, %v5102_v39 }
 0xa9e   : > { %5076 = vadd.xlane.f32.xlu1 %v5064_v15  ;;  %v5104_v7 = vsub.f32 1.5, %v5103_v55 }
 0xa9f   : > { %v5032_v44 = vpop.xlane.xlu0 %5031  ;;  %v5071_v24 = vpop.xlane.xlu2 %5070 }
 0xaa0   : > { %v5049_v1 = vmul.f32 %v14483_v4, %v5032_v44  ;;  %v5085_v14 = vmul.f32 %v5071_v24, %v14483_v4  ;;  %v5105_v49 = vmul.f32 %v10944_v41, %v5104_v7 }
 0xaa2   : > { %v14600_v35 = vsub.f32 %v14499_v34, %v5049_v1  ;;  %v5093_v38 = vadd.f32 1e-05, %v5085_v14  ;;  %v5109_v34 = vsel %vm5108_vm10, %v10944_v41, %v5105_v49  ;;  %v9435_v14 = vld [vmem:[%s11719_s10 + $0x390] sm:$0xf] }
 0xaa3   : > { %v5180_v43 = vmul.f32 %v5109_v34, %v14487_v25 }
 0xaa4   : > { %10945 = vrsqrt.f32 %v5093_v38  ;;  %v5065_v37 = vmul.f32 %v14600_v35, %v14600_v35  ;;  %vm5116_vm12 = vweird.f32 %v5093_v38 }
 0xaa5   : > { %v5191_v62 = vmul.f32 %v14610_v5, %v5180_v43 }
 0xaa6   : > { %5078 = vadd.xlane.f32.xlu2 %v5065_v37 }
 0xaa7   : > { %v14628_v21 = vadd.f32 %v14618_v3, %v5191_v62  ;;  %v10211_v62 = vld [vmem:[%s11719_s10 + $0x394] sm:$0xf] }
 0xaa9   : > { %16139 = vst [vmem:[#allocation34_spill] sm:$0xff] %v14628_v21 }
 0xaaa   : > { %v10946_v52 = vpop.eup %10945 }
 0xaab   : > { %v5111_v36 = vmul.f32 %v10946_v52, %v5093_v38  ;;  %vm5117_vm11 = vweird.f32 %v10946_v52  ;;  %v10219_v38 = vld [vmem:[%s11719_s10 + $0x3cc] sm:$0xf0] }
 0xaac   : > { %vm5118_vm13 = vmor %vm5116_vm12, %vm5117_vm11  ;;  %v9436_v55 = vor.u32 %v10219_v38, %v9435_v14  ;;  %v9309_v38 = vld [vmem:[%s11719_s10 + $0x2d0] sm:$0xf0] }
 0xaad   : > { %v5112_v2 = vmul.f32 %v10946_v52, %v5111_v36 }
 0xaae   : > { %6134 = vmatpush.bf16.msra.mxu0 %v9436_v55  ;;  %v10180_v55 = vld [vmem:[%s11719_s10 + $0x29c] sm:$0xf] }
 0xaaf   : > { %v5113_v22 = vmul.f32 0.5, %v5112_v2 }
 0xab1   : > { %v5114_v26 = vsub.f32 1.5, %v5113_v22 }
 0xab3   : > { %v5115_v61 = vmul.f32 %v10946_v52, %v5114_v26 }
 0xab5   : > { %v5119_v6 = vsel %vm5118_vm13, %v10946_v52, %v5115_v61  ;;  %v5034_v40 = vpop.xlane.xlu0 %5033 }
 0xab6   : > { %v5181_v48 = vmul.f32 %v5119_v6, %v14496_v56  ;;  %v5050_v20 = vmul.f32 %v14483_v4, %v5034_v40  ;;  %v9443_v6 = vld [vmem:[%s11719_s10 + $0x398] sm:$0xf] }
 0xab7   : > { %v10220_v40 = vld [vmem:[%s11719_s10 + $0x3d4] sm:$0xf0] }
 0xab8   : > { %v5192_v23 = vmul.f32 %v14610_v5, %v5181_v48  ;;  %v14625_v25 = vsub.f32 %v14505_v11, %v5050_v20  ;;  %v9444_v48 = vor.u32 %v10220_v40, %v9443_v6  ;;  %v9437_v20 = vld [vmem:[%s11719_s10 + $0x3d0] sm:$0xf0]  ;;  %v9251_v6 = vld [vmem:[%s11719_s10 + $0x218] sm:$0xf] }
 0xaba   : > { %v14631_v58 = vadd.f32 %v14618_v3, %v5192_v23  ;;  %v5066_v31 = vmul.f32 %v14625_v25, %v14625_v25  ;;  %v10212_v23 = vld [vmem:[%s11719_s10 + $0x39c] sm:$0xf]  ;;  %6192 = vmatpush.bf16.msra.mxu2 %v9444_v48  ;;  %v9179_v48 = vld [vmem:[%s11719_s10 + $0x190] sm:$0xf] }
 0xabc   : > { %16140 = vst [vmem:[#allocation96_spill] sm:$0xff] %v14631_v58  ;;  %v14637_v53 = vpack.c.bf16 %v14631_v58, %v14628_v21  ;;  %5080 = vadd.xlane.f32.xlu0 %v5066_v31  ;;  %v9115_v31 = vld [vmem:[%s11719_s10 + $0x110] sm:$0xf]  ;;  %v10226_v58 = vld [vmem:[%s11727_s25 + $0x8] sm:$0xff] }
 0xabd   : > { %v5036_v56 = vpop.xlane.xlu1 %5035  ;;  %v10234_v21 = vld [vmem:[%s11727_s25 + $0x48] sm:$0xff] }
 0xabe   : > { %v5051_v12 = vmul.f32 %v14483_v4, %v5036_v56  ;;  %v5073_v9 = vpop.xlane.xlu2 %5072  ;;  %6026 = vmatmul.bf16.vlgmr.msrb.gmra.mxu0 %v14637_v53  ;;  %6055 = vmatmul.bf16.vlgmr.msrb.gmra.mxu1 %v14637_v53 }
 0xabf   : > { %v5086_v11 = vmul.f32 %v5073_v9, %v14483_v4  ;;  %6084 = vmatmul.bf16.vlgmr.msrb.gmra.mxu2 %v14637_v53  ;;  %6113 = vmatmul.bf16.vlgmr.msra.gmra.mxu3 %v14637_v53  ;;  %v9445_v9 = vld [vmem:[%s11719_s10 + $0x3d8] sm:$0xf0] }
 0xac0   : > { %v14646_v8 = vsub.f32 %v14512_v17, %v5051_v12  ;;  %v9440_v12 = vor.u32 %v10211_v62, %v9437_v20  ;;  %v10155_v20 = vld [vmem:[%s11719_s10 + $0x1cc] sm:$0xf0] }
 0xac1   : > { %v5094_v46 = vadd.f32 1e-05, %v5086_v11 }
 0xac2   : > { %v5067_v28 = vmul.f32 %v14646_v8, %v14646_v8  ;;  %6163 = vmatpush.bf16.msra.mxu1 %v9440_v12  ;;  %v10164_v12 = vld [vmem:[%s11719_s10 + $0x21c] sm:$0xf] }
 0xac3   : > { %10947 = vrsqrt.f32 %v5094_v46  ;;  %vm5126_vm15 = vweird.f32 %v5094_v46 }
 0xac4   : > { %5082 = vadd.xlane.f32.xlu1 %v5067_v28 }
 0xac6   : > { %v5075_v59 = vpop.xlane.xlu0 %5074 }
 0xac7   : > { %v5087_v13 = vmul.f32 %v5075_v59, %v14483_v4  ;;  %v9371_v59 = vld [vmem:[%s11719_s10 + $0x310] sm:$0xf] }
 0xac9   : > { %v10948_v32 = vpop.eup %10947  ;;  %v5095_v41 = vadd.f32 1e-05, %v5087_v13  ;;  %v10203_v13 = vld [vmem:[%s11719_s10 + $0x34c] sm:$0xf0] }
 0xaca   : > { %v5121_v29 = vmul.f32 %v10948_v32, %v5094_v46  ;;  %vm5127_vm14 = vweird.f32 %v10948_v32  ;;  %v9448_v46 = vor.u32 %v10212_v23, %v9445_v9 }
 0xacb   : > { %10949 = vrsqrt.f32 %v5095_v41  ;;  %vm5128_vm0 = vmor %vm5126_vm15, %vm5127_vm14  ;;  %vm5136_vm2 = vweird.f32 %v5095_v41 }
 0xacc   : > { %v5122_v47 = vmul.f32 %v10948_v32, %v5121_v29  ;;  %v10204_v29 = vld [vmem:[%s11719_s10 + $0x354] sm:$0xf0]  ;;  %6221 = vmatpush.bf16.msrb.mxu3 %v9448_v46 }
 0xace   : > { %v5123_v33 = vmul.f32 0.5, %v5122_v47  ;;  %v10195_v47 = vld [vmem:[%s11719_s10 + $0x314] sm:$0xf] }
 0xad0   : > { %v5124_v51 = vsub.f32 1.5, %v5123_v33 }
 0xad1   : > { %v10950_v50 = vpop.eup %10949 }
 0xad2   : > { %v5125_v57 = vmul.f32 %v10948_v32, %v5124_v51  ;;  %v5131_v17 = vmul.f32 %v10950_v50, %v5095_v41  ;;  %vm5137_vm1 = vweird.f32 %v10950_v50  ;;  %v9379_v41 = vld [vmem:[%s11719_s10 + $0x318] sm:$0xf] }
 0xad3   : > { %vm5138_vm3 = vmor %vm5136_vm2, %vm5137_vm1 }
 0xad4   : > { %v5132_v16 = vmul.f32 %v10950_v50, %v5131_v17  ;;  %v5129_v63 = vsel %vm5128_vm0, %v10948_v32, %v5125_v57  ;;  %v9372_v32 = vor.u32 %v10203_v13, %v9371_v59  ;;  %v9373_v57 = vld [vmem:[%s11719_s10 + $0x350] sm:$0xf0]  ;;  %v10196_v17 = vld [vmem:[%s11719_s10 + $0x31c] sm:$0xf] }
 0xad5   : > { %v5182_v18 = vmul.f32 %v5129_v63, %v14510_v27  ;;  %v9381_v63 = vld [vmem:[%s11719_s10 + $0x358] sm:$0xf0]  ;;  %v10147_v59 = vld [vmem:[%s11719_s10 + $0x194] sm:$0xf] }
 0xad6   : > { %v5133_v60 = vmul.f32 0.5, %v5132_v16  ;;  %6135 = vmatpush.bf16.msra.mxu0 %v9372_v32  ;;  %v9376_v16 = vor.u32 %v10195_v47, %v9373_v57  ;;  %v9181_v13 = vld [vmem:[%s11719_s10 + $0x1d0] sm:$0xf0]  ;;  %v10148_v57 = vld [vmem:[%s11719_s10 + $0x19c] sm:$0xf] }
 0xad7   : > { %v5193_v0 = vmul.f32 %v14610_v5, %v5182_v18  ;;  %v10187_v18 = vld [vmem:[%s11719_s10 + $0x2cc] sm:$0xf0]  ;;  %v9184_v47 = vor.u32 %v10147_v59, %v9181_v13  ;;  %v10108_v13 = vld [vmem:[%s11719_s10 + $0x54] sm:$0xf0] }
 0xad8   : > { %v5134_v45 = vsub.f32 1.5, %v5133_v60  ;;  %6164 = vmatpush.bf16.msra.mxu1 %v9376_v16  ;;  %v10131_v16 = vld [vmem:[%s11719_s10 + $0x114] sm:$0xf] }
 0xad9   : > { %v14656_v39 = vadd.f32 %v14618_v3, %v5193_v0  ;;  %v9315_v0 = vld [vmem:[%s11719_s10 + $0x298] sm:$0xf] }
 0xada   : > { %v5135_v10 = vmul.f32 %v10950_v50, %v5134_v45 }
 0xadb   : > { %16141 = vst [vmem:[#allocation97_spill] sm:$0xff] %v14656_v39 }
 0xadc   : > { %v5139_v19 = vsel %vm5138_vm3, %v10950_v50, %v5135_v10  ;;  %v9380_v50 = vor.u32 %v10204_v29, %v9379_v41  ;;  %v9384_v10 = vor.u32 %v10196_v17, %v9381_v63  ;;  %v10139_v41 = vld [vmem:[%s11719_s10 + $0x14c] sm:$0xf0]  ;;  %v9189_v17 = vld [vmem:[%s11719_s10 + $0x1d8] sm:$0xf0]  ;;  %v9117_v63 = vld [vmem:[%s11719_s10 + $0x150] sm:$0xf0] }
 0xadd   : > { %v5183_v15 = vmul.f32 %v5139_v19, %v14518_v54 }
 0xade   : > { %6193 = vmatpush.bf16.msra.mxu2 %v9380_v50  ;;  %6222 = vmatpush.bf16.msrb.mxu3 %v9384_v10  ;;  %v9051_v10 = vld [vmem:[%s11719_s10 + $0x90] sm:$0xf] }
 0xadf   : > { %v5194_v30 = vmul.f32 %v14610_v5, %v5183_v15  ;;  %v10188_v15 = vld [vmem:[%s11719_s10 + $0x2d4] sm:$0xf0] }
 0xae0   : > { %v9316_v14 = vor.u32 %v10188_v15, %v9315_v0  ;;  %v9192_v15 = vor.u32 %v10148_v57, %v9189_v17 }
 0xae1   : > { %v14659_v44 = vadd.f32 %v14618_v3, %v5194_v30  ;;  %v10179_v30 = vld [vmem:[%s11719_s10 + $0x294] sm:$0xf] }
 0xae2   : > { %6194 = vmatpush.bf16.msra.mxu2 %v9316_v14  ;;  %v9125_v14 = vld [vmem:[%s11719_s10 + $0x158] sm:$0xf0] }
 0xae3   : > { %16142 = vst [vmem:[#allocation70_spill] sm:$0xff] %v14659_v44  ;;  %v14663_v27 = vpack.c.bf16 %v14659_v44, %v14656_v39 }
 0xae5   : > { %6031 = vmatmul.bf16.gmra.mxu0 %v14663_v27  ;;  %6060 = vmatmul.bf16.gmra.mxu1 %v14663_v27 }
 0xae6   : > { %6089 = vmatmul.bf16.gmra.mxu2 %v14663_v27  ;;  %6118 = vmatmul.bf16.gmra.mxu3 %v14663_v27 }
 0xb11   : > { %v5077_v54 = vpop.xlane.xlu1 %5076 }
 0xb12   : > { %v5088_v24 = vmul.f32 %v5077_v54, %v14483_v4 }
 0xb14   : > { %v5096_v1 = vadd.f32 1e-05, %v5088_v24 }
 0xb16   : > { %10951 = vrsqrt.f32 %v5096_v1  ;;  %vm5146_vm5 = vweird.f32 %v5096_v1 }
 0xb19   : > { %v5079_v37 = vpop.xlane.xlu2 %5078 }
 0xb1a   : > { %v5089_v7 = vmul.f32 %v5079_v37, %v14483_v4  ;;  %v9317_v37 = vld [vmem:[%s11719_s10 + $0x2d8] sm:$0xf0] }
 0xb1c   : > { %v10952_v52 = vpop.eup %10951  ;;  %v5097_v49 = vadd.f32 1e-05, %v5089_v7 }
 0xb1d   : > { %v5141_v36 = vmul.f32 %v10952_v52, %v5096_v1  ;;  %vm5147_vm4 = vweird.f32 %v10952_v52 }
 0xb1e   : > { %10953 = vrsqrt.f32 %v5097_v49  ;;  %vm14678_vm6 = vmor %vm5146_vm5, %vm5147_vm4  ;;  %vm5156_vm8 = vweird.f32 %v5097_v49 }
 0xb1f   : > { %v5142_v2 = vmul.f32 %v10952_v52, %v5141_v36  ;;  %v9320_v36 = vor.u32 %v10180_v55, %v9317_v37  ;;  %v9053_v55 = vld [vmem:[%s11719_s10 + $0xd0] sm:$0xf0] }
 0xb21   : > { %v5143_v34 = vmul.f32 0.5, %v5142_v2  ;;  %6223 = vmatpush.bf16.msrb.mxu3 %v9320_v36 }
 0xb23   : > { %v5144_v22 = vsub.f32 1.5, %v5143_v34 }
 0xb24   : > { %v10954_v26 = vpop.eup %10953 }
 0xb25   : > { %v5145_v43 = vmul.f32 %v10952_v52, %v5144_v22  ;;  %v5151_v61 = vmul.f32 %v10954_v26, %v5097_v49  ;;  %vm5157_vm7 = vweird.f32 %v10954_v26  ;;  %v9312_v49 = vor.u32 %v10179_v30, %v9309_v38  ;;  %v9243_v22 = vld [vmem:[%s11719_s10 + $0x210] sm:$0xf]  ;;  %v10115_v38 = vld [vmem:[%s11719_s10 + $0x94] sm:$0xf] }
 0xb26   : > { %vm14695_vm9 = vmor %vm5156_vm8, %vm5157_vm7  ;;  %v9120_v30 = vor.u32 %v10131_v16, %v9117_v63 }
 0xb27   : > { %v5152_v56 = vmul.f32 %v10954_v26, %v5151_v61  ;;  %v5149_v11 = vsel %vm14678_vm6, %v10952_v52, %v5145_v43  ;;  %6165 = vmatpush.bf16.msra.mxu1 %v9312_v49  ;;  %v9245_v61 = vld [vmem:[%s11719_s10 + $0x250] sm:$0xf0] }
 0xb28   : > { %v5184_v33 = vmul.f32 %v5149_v11, %v14587_v42  ;;  %v9307_v42 = vld [vmem:[%s11719_s10 + $0x290] sm:$0xf]  ;;  %v9180_v11 = vor.u32 %v10155_v20, %v9179_v48 }
 0xb29   : > { %v5153_v28 = vmul.f32 0.5, %v5152_v56  ;;  %v9308_v19 = vor.u32 %v10187_v18, %v9307_v42  ;;  %v10172_v56 = vld [vmem:[%s11719_s10 + $0x254] sm:$0xf0]  ;;  %v9116_v42 = vor.u32 %v10139_v41, %v9115_v31  ;;  %v8987_v20 = vld [vmem:[%s11719_s10 + $0x10] sm:$0xf] }
 0xb2a   : > { %v5195_v54 = vmul.f32 %v14610_v5, %v5184_v33  ;;  %v9252_v46 = vor.u32 %v10172_v56, %v9251_v6  ;;  %v9187_v33 = vld [vmem:[%s11719_s10 + $0x198] sm:$0xf]  ;;  %v10099_v31 = vld [vmem:[%s11719_s10 + $0x14] sm:$0xf]  ;;  %v8997_v41 = vld [vmem:[%s11719_s10 + $0x58] sm:$0xf0] }
 0xb2b   : > { %v5154_v51 = vsub.f32 1.5, %v5153_v28  ;;  %6136 = vmatpush.bf16.msra.mxu0 %v9308_v19  ;;  %v9253_v28 = vld [vmem:[%s11719_s10 + $0x258] sm:$0xf0]  ;;  %v10123_v19 = vld [vmem:[%s11719_s10 + $0xcc] sm:$0xf0] }
 0xb2c   : > { %v14721_v40 = vadd.f32 %v14618_v3, %v5195_v54  ;;  %v9256_v29 = vor.u32 %v10164_v12, %v9253_v28  ;;  %6195 = vmatpush.bf16.msra.mxu2 %v9252_v46  ;;  %v9123_v54 = vld [vmem:[%s11719_s10 + $0x118] sm:$0xf]  ;;  %v8989_v46 = vld [vmem:[%s11719_s10 + $0x50] sm:$0xf0] }
 0xb2d   : > { %v5155_v60 = vmul.f32 %v10954_v26, %v5154_v51  ;;  %v10156_v51 = vld [vmem:[%s11719_s10 + $0x1d4] sm:$0xf0] }
 0xb2e   : > { %16147 = vst [vmem:[#allocation72_spill] sm:$0xff] %v14721_v40  ;;  %v9188_v18 = vor.u32 %v10156_v51, %v9187_v33  ;;  %6224 = vmatpush.bf16.msrb.mxu3 %v9256_v29  ;;  %v8995_v28 = vld [vmem:[%s11719_s10 + $0x18] sm:$0xf] }
 0xb2f   : > { %v5159_v24 = vsel %vm14695_vm9, %v10954_v26, %v5155_v60  ;;  %v5081_v1 = vpop.xlane.xlu0 %5080  ;;  %v10171_v26 = vld [vmem:[%s11719_s10 + $0x24c] sm:$0xf0] }
 0xb30   : > { %v5185_v7 = vmul.f32 %v5159_v24, %v14600_v35  ;;  %v5090_v52 = vmul.f32 %v5081_v1, %v14483_v4  ;;  %v9244_v43 = vor.u32 %v10171_v26, %v9243_v22  ;;  %v10163_v35 = vld [vmem:[%s11719_s10 + $0x214] sm:$0xf]  ;;  %v10140_v24 = vld [vmem:[%s11719_s10 + $0x154] sm:$0xf0]  ;;  %v10132_v1 = vld [vmem:[%s11719_s10 + $0x11c] sm:$0xf]  ;;  %6196 = vmatpush.bf16.msra.mxu2 %v9188_v18 }
 0xb31   : > { %v9248_v23 = vor.u32 %v10163_v35, %v9245_v61  ;;  %v9128_v36 = vor.u32 %v10132_v1, %v9125_v14  ;;  %v9059_v22 = vld [vmem:[%s11719_s10 + $0x98] sm:$0xf]  ;;  %v9061_v35 = vld [vmem:[%s11719_s10 + $0xd8] sm:$0xf0]  ;;  %v10222_v14 = vld [vmem:[%s11719_s10 + $0x3e4] sm:$0xf0] }
 0xb32   : > { %v5196_v2 = vmul.f32 %v14610_v5, %v5185_v7  ;;  %v14713_v34 = vadd.f32 1e-05, %v5090_v52  ;;  %6137 = vmatpush.bf16.msra.mxu0 %v9244_v43  ;;  %v9052_v7 = vor.u32 %v10123_v19, %v9051_v10  ;;  %v9124_v52 = vor.u32 %v10140_v24, %v9123_v54  ;;  %6225 = vmatpush.bf16.msrb.mxu3 %v9192_v15  ;;  %v10124_v26 = vld [vmem:[%s11719_s10 + $0xd4] sm:$0xf0]  ;;  %v10116_v43 = vld [vmem:[%s11719_s10 + $0x9c] sm:$0xf] }
 0xb33   : > { %6166 = vmatpush.bf16.msra.mxu1 %v9248_v23  ;;  %v9060_v48 = vor.u32 %v10124_v26, %v9059_v22  ;;  %v10107_v23 = vld [vmem:[%s11719_s10 + $0x4c] sm:$0xf0]  ;;  %v9459_v24 = vld [vmem:[%s11719_s10 + $0x3a8] sm:$0xf] }
 0xb34   : > { %v14724_v62 = vadd.f32 %v14618_v3, %v5196_v2  ;;  %10955 = vrsqrt.f32 %v14713_v34  ;;  %v9056_v2 = vor.u32 %v10115_v38, %v9053_v55  ;;  %6197 = vmatpush.bf16.msra.mxu2 %v9124_v52  ;;  %v8988_v59 = vor.u32 %v10107_v23, %v8987_v20  ;;  %v10213_v38 = vld [vmem:[%s11719_s10 + $0x3a4] sm:$0xf]  ;;  %v9259_v52 = vld [vmem:[%s11719_s10 + $0x220] sm:$0xf] }
 0xb35   : > { %vm5166_vm11 = vweird.f32 %v14713_v34  ;;  %v9453_v55 = vld [vmem:[%s11719_s10 + $0x3e0] sm:$0xf0]  ;;  %v9195_v20 = vld [vmem:[%s11719_s10 + $0x1a0] sm:$0xf] }
 0xb36   : > { %16148 = vst [vmem:[#allocation74_spill] sm:$0xff] %v14724_v62  ;;  %v14734_v9 = vpack.c.bf16 %v14724_v62, %v14721_v40  ;;  %6138 = vmatpush.bf16.msra.mxu0 %v9180_v11  ;;  %6226 = vmatpush.bf16.msrb.mxu3 %v9128_v36  ;;  %v9064_v11 = vor.u32 %v10116_v43, %v9061_v35  ;;  %v9395_v36 = vld [vmem:[%s11719_s10 + $0x328] sm:$0xf]  ;;  %v10214_v43 = vld [vmem:[%s11719_s10 + $0x3ac] sm:$0xf] }
 0xb37   : > { %v5083_v32 = vpop.xlane.xlu1 %5082  ;;  %6167 = vmatpush.bf16.msra.mxu1 %v9184_v47  ;;  %v8992_v47 = vor.u32 %v10099_v31, %v8989_v46  ;;  %v9461_v35 = vld [vmem:[%s11719_s10 + $0x3e8] sm:$0xf0]  ;;  %v10157_v31 = vld [vmem:[%s11719_s10 + $0x1dc] sm:$0xf0] }
 0xb38   : > { %v5091_v50 = vmul.f32 %v5083_v32, %v14483_v4  ;;  %6036 = vmatmul.bf16.gmra.mxu0 %v14734_v9  ;;  %6065 = vmatmul.bf16.gmra.mxu1 %v14734_v9  ;;  %v10100_v32 = vld [vmem:[%s11719_s10 + $0x1c] sm:$0xf]  ;;  %v10238_v4 = vld [vmem:[%s11727_s25 + $0x68] sm:$0xff] }
 0xb39   : > { %6094 = vmatmul.bf16.gmra.mxu2 %v14734_v9  ;;  %6123 = vmatmul.bf16.gmra.mxu3 %v14734_v9  ;;  %v9000_v57 = vor.u32 %v10100_v32, %v8997_v41  ;;  %v9325_v41 = vld [vmem:[%s11719_s10 + $0x2e0] sm:$0xf0]  ;;  %v10242_v62 = vld [vmem:[%s11727_s25 + $0x88] sm:$0xff] }
 0xb3a   : > { %v14751_v60 = vpop.eup %10955  ;;  %v14753_v45 = vadd.f32 1e-05, %v5091_v50  ;;  %6139 = vmatpush.bf16.msra.mxu0 %v9116_v42  ;;  %6198 = vmatpush.bf16.msra.mxu2 %v9060_v48  ;;  %v8996_v50 = vor.u32 %v10108_v13, %v8995_v28  ;;  %v10221_v42 = vld [vmem:[%s11719_s10 + $0x3dc] sm:$0xf0]  ;;  %v9464_v48 = vor.u32 %v10214_v43, %v9461_v35  ;;  %v10198_v28 = vld [vmem:[%s11719_s10 + $0x32c] sm:$0xf] }
 0xb3b   : > { %v5161_v0 = vmul.f32 %v14751_v60, %v14713_v34  ;;  %6168 = vmatpush.bf16.msra.mxu1 %v9120_v30  ;;  %vm5167_vm10 = vweird.f32 %v14751_v60  ;;  %6227 = vmatpush.bf16.msrb.mxu3 %v9064_v11  ;;  %v9387_v30 = vld [vmem:[%s11719_s10 + $0x320] sm:$0xf]  ;;  %v9196_v11 = vor.u32 %v10157_v31, %v9195_v20  ;;  %v10181_v13 = vld [vmem:[%s11719_s10 + $0x2a4] sm:$0xf]  ;;  %v10134_v43 = vld [vmem:[%s11719_s10 + $0x12c] sm:$0xf] }
 0xb3c   : > { %10957 = vrsqrt.f32 %v14753_v45  ;;  %vm5168_vm12 = vmor %vm5166_vm11, %vm5167_vm10  ;;  %vm5176_vm14 = vweird.f32 %v14753_v45  ;;  %v9141_v35 = vld [vmem:[%s11719_s10 + $0x168] sm:$0xf0]  ;;  %v9075_v20 = vld [vmem:[%s11719_s10 + $0xa8] sm:$0xf] }
 0xb3d   : > { %v5162_v37 = vmul.f32 %v14751_v60, %v5161_v0  ;;  %v10118_v31 = vld [vmem:[%s11719_s10 + $0xac] sm:$0xf] }
 0xb3e   : > { %6140 = vmatpush.bf16.msra.mxu0 %v9052_v7  ;;  %6199 = vmatpush.bf16.msra.mxu2 %v8996_v50  ;;  %v9456_v7 = vor.u32 %v10213_v38, %v9453_v55  ;;  %v10141_v50 = vld [vmem:[%s11719_s10 + $0x15c] sm:$0xf0]  ;;  %v10250_v40 = vld [vmem:[%s11727_s25 + $0xc8] sm:$0xff] }
 0xb3f   : > { %v5163_v49 = vmul.f32 0.5, %v5162_v37  ;;  %6169 = vmatpush.bf16.msra.mxu1 %v9056_v2  ;;  %6228 = vmatpush.bf16.msrb.mxu3 %v9000_v57  ;;  %v9460_v37 = vor.u32 %v10222_v14, %v9459_v24  ;;  %v10206_v2 = vld [vmem:[%s11719_s10 + $0x364] sm:$0xf0]  ;;  %v10165_v57 = vld [vmem:[%s11719_s10 + $0x224] sm:$0xf] }
 0xb40   : > { %v9396_v22 = vor.u32 %v10206_v2, %v9395_v36  ;;  %v10150_v24 = vld [vmem:[%s11719_s10 + $0x1ac] sm:$0xf]  ;;  %v9067_v55 = vld [vmem:[%s11719_s10 + $0xa0] sm:$0xf]  ;;  %v9139_v36 = vld [vmem:[%s11719_s10 + $0x128] sm:$0xf] }
 0xb41   : > { %v5164_v61 = vsub.f32 1.5, %v5163_v49  ;;  %v10173_v49 = vld [vmem:[%s11719_s10 + $0x25c] sm:$0xf0]  ;;  %v10142_v2 = vld [vmem:[%s11719_s10 + $0x164] sm:$0xf0] }
 0xb42   : > { %v10958_v6 = vpop.eup %10957  ;;  %6141 = vmatpush.bf16.msra.mxu0 %v8988_v59  ;;  %6308 = vmatpush.bf16.msrb.mxu2 %v9460_v37  ;;  %v9260_v26 = vor.u32 %v10173_v49, %v9259_v52  ;;  %v9397_v59 = vld [vmem:[%s11719_s10 + $0x368] sm:$0xf0]  ;;  %v10125_v37 = vld [vmem:[%s11719_s10 + $0xdc] sm:$0xf0]  ;;  %v9133_v49 = vld [vmem:[%s11719_s10 + $0x160] sm:$0xf0] }
 0xb43   : > { %v5165_v56 = vmul.f32 %v14751_v60, %v5164_v61  ;;  %v5171_v12 = vmul.f32 %v10958_v6, %v14753_v45  ;;  %6170 = vmatpush.bf16.msra.mxu1 %v8992_v47  ;;  %vm5177_vm13 = vweird.f32 %v10958_v6  ;;  %v10197_v61 = vld [vmem:[%s11719_s10 + $0x324] sm:$0xf]  ;;  %6337 = vmatpush.bf16.msra.mxu3 %v9464_v48  ;;  %v9400_v32 = vor.u32 %v10198_v28, %v9397_v59  ;;  %v9333_v47 = vld [vmem:[%s11719_s10 + $0x2e8] sm:$0xf0] }
 0xb44   : > { %vm5178_vm15 = vmor %vm5176_vm14, %vm5177_vm13  ;;  %v9068_v52 = vor.u32 %v10125_v37, %v9067_v55  ;;  %v9069_v48 = vld [vmem:[%s11719_s10 + $0xe0] sm:$0xf0]  ;;  %v14899_v55 = vpop.f32.mrf.mxu3  ;;  %v10216_v37 = vld [vmem:[%s11719_s10 + $0x3bc] sm:$0xf] }
 0xb45   : > { %v5172_v29 = vmul.f32 %v10958_v6, %v5171_v12  ;;  %v5169_v33 = vsel %vm5168_vm12, %v14751_v60, %v5165_v56  ;;  %v9451_v60 = vld [vmem:[%s11719_s10 + $0x3a0] sm:$0xf]  ;;  %v9331_v56 = vld [vmem:[%s11719_s10 + $0x2a8] sm:$0xf] }
 0xb46   : > { %v5186_v16 = vmul.f32 %v5169_v33, %v14625_v25  ;;  %v9452_v19 = vor.u32 %v10221_v42, %v9451_v60  ;;  %6309 = vmatpush.bf16.msrb.mxu2 %v9396_v22  ;;  %v10190_v12 = vld [vmem:[%s11719_s10 + $0x2e4] sm:$0xf0]  ;;  %v9328_v33 = vor.u32 %v10181_v13, %v9325_v41  ;;  %v9005_v41 = vld [vmem:[%s11719_s10 + $0x60] sm:$0xf0] }
 0xb47   : > { %v5173_v51 = vmul.f32 0.5, %v5172_v29  ;;  %6279 = vmatpush.bf16.msrb.mxu1 %v9456_v7  ;;  %v9332_v46 = vor.u32 %v10190_v12, %v9331_v56  ;;  %v10182_v29 = vld [vmem:[%s11719_s10 + $0x2ac] sm:$0xf]  ;;  %6338 = vmatpush.bf16.msra.mxu3 %v9400_v32  ;;  %v10174_v60 = vld [vmem:[%s11719_s10 + $0x264] sm:$0xf0] }
 0xb48   : > { %v5197_v18 = vmul.f32 %v14610_v5, %v5186_v16  ;;  %6250 = vmatpush.bf16.msrb.mxu0 %v9452_v19  ;;  %v9261_v16 = vld [vmem:[%s11719_s10 + $0x260] sm:$0xf0]  ;;  %v9269_v19 = vld [vmem:[%s11719_s10 + $0x268] sm:$0xf0]  ;;  %v9003_v12 = vld [vmem:[%s11719_s10 + $0x20] sm:$0xf] }
 0xb49   : > { %v5174_v17 = vsub.f32 1.5, %v5173_v51  ;;  %v9131_v51 = vld [vmem:[%s11719_s10 + $0x120] sm:$0xf]  ;;  %v9264_v42 = vor.u32 %v10165_v57, %v9261_v16  ;;  %v10133_v7 = vld [vmem:[%s11719_s10 + $0x124] sm:$0xf] }
 0xb4a   : > { %v14792_v0 = vadd.f32 %v14618_v3, %v5197_v18  ;;  %6310 = vmatpush.bf16.msrb.mxu2 %v9332_v46  ;;  %v9136_v22 = vor.u32 %v10133_v7, %v9133_v49  ;;  %v9077_v56 = vld [vmem:[%s11719_s10 + $0xe8] sm:$0xf0]  ;;  %v10109_v46 = vld [vmem:[%s11719_s10 + $0x5c] sm:$0xf0]  ;;  %v10101_v32 = vld [vmem:[%s11719_s10 + $0x24] sm:$0xf] }
 0xb4b   : > { %v5175_v34 = vmul.f32 %v10958_v6, %v5174_v17  ;;  %v9132_v17 = vor.u32 %v10141_v50, %v9131_v51  ;;  %v9080_v59 = vor.u32 %v10118_v31, %v9077_v56  ;;  %v9004_v13 = vor.u32 %v10109_v46, %v9003_v12  ;;  %v10102_v51 = vld [vmem:[%s11719_s10 + $0x2c] sm:$0xf]  ;;  %v9467_v16 = vld [vmem:[%s11719_s10 + $0x3b0] sm:$0xf]  ;;  %v9477_v7 = vld [vmem:[%s11719_s10 + $0x3f8] sm:$0xf0] }
 0xb4c   : > { %16149 = vst [vmem:[#allocation94_spill] sm:$0xff] %v14792_v0  ;;  %v9013_v50 = vld [vmem:[%s11719_s10 + $0x68] sm:$0xf0]  ;;  %v10159_v31 = vld [vmem:[%s11719_s10 + $0x1ec] sm:$0xf0] }
 0xb4d   : > { %v5179_v63 = vsel %vm5178_vm15, %v10958_v6, %v5175_v34  ;;  %v9389_v6 = vld [vmem:[%s11719_s10 + $0x360] sm:$0xf0]  ;;  %v9267_v34 = vld [vmem:[%s11719_s10 + $0x228] sm:$0xf]  ;;  %v9347_v56 = vld [vmem:[%s11719_s10 + $0x2b8] sm:$0xf] }
 0xb4e   : > { %v5187_v10 = vmul.f32 %v5179_v63, %v14646_v8  ;;  %v10205_v8 = vld [vmem:[%s11719_s10 + $0x35c] sm:$0xf0]  ;;  %v9392_v23 = vor.u32 %v10197_v61, %v9389_v6  ;;  %v9336_v63 = vor.u32 %v10182_v29, %v9333_v47  ;;  %v9268_v18 = vor.u32 %v10174_v60, %v9267_v34  ;;  %v10117_v61 = vld [vmem:[%s11719_s10 + $0xa4] sm:$0xf]  ;;  %v9011_v29 = vld [vmem:[%s11719_s10 + $0x28] sm:$0xf] }
 0xb4f   : > { %v9388_v54 = vor.u32 %v10205_v8, %v9387_v30  ;;  %v10149_v30 = vld [vmem:[%s11719_s10 + $0x1a4] sm:$0xf]  ;;  %v9144_v6 = vor.u32 %v10134_v43, %v9141_v35  ;;  %v9008_v47 = vor.u32 %v10101_v32, %v9005_v41  ;;  %v10223_v34 = vld [vmem:[%s11719_s10 + $0x3ec] sm:$0xf0]  ;;  %v10208_v35 = vld [vmem:[%s11719_s10 + $0x374] sm:$0xf0] }
 0xb50   : > { %v5198_v25 = vmul.f32 %v14610_v5, %v5187_v10  ;;  %v9323_v5 = vld [vmem:[%s11719_s10 + $0x2a0] sm:$0xf]  ;;  %6280 = vmatpush.bf16.msrb.mxu1 %v9392_v23  ;;  %v10166_v10 = vld [vmem:[%s11719_s10 + $0x22c] sm:$0xf]  ;;  %6311 = vmatpush.bf16.msrb.mxu2 %v9268_v18  ;;  %v9197_v8 = vld [vmem:[%s11719_s10 + $0x1e0] sm:$0xf0]  ;;  %v9468_v60 = vor.u32 %v10223_v34, %v9467_v16 }
 0xb51   : > { %6251 = vmatpush.bf16.msrb.mxu0 %v9388_v54  ;;  %6339 = vmatpush.bf16.msra.mxu3 %v9336_v63  ;;  %v9203_v54 = vld [vmem:[%s11719_s10 + $0x1a8] sm:$0xf]  ;;  %v9403_v63 = vld [vmem:[%s11719_s10 + $0x330] sm:$0xf]  ;;  %v10200_v46 = vld [vmem:[%s11719_s10 + $0x33c] sm:$0xf] }
 0xb52   : > { %v14795_v45 = vadd.f32 %v14618_v3, %v5198_v25  ;;  %v10189_v3 = vld [vmem:[%s11719_s10 + $0x2dc] sm:$0xf0]  ;;  %v9272_v25 = vor.u32 %v10166_v10, %v9269_v19  ;;  %v10126_v23 = vld [vmem:[%s11719_s10 + $0xe4] sm:$0xf0]  ;;  %v14887_v10 = vpop.f32.mrf.mxu0  ;;  %v14889_v19 = vpop.f32.mrf.mxu1  ;;  %v10183_v32 = vld [vmem:[%s11719_s10 + $0x2b4] sm:$0xf] }
 0xb53   : > { %v9324_v1 = vor.u32 %v10189_v3, %v9323_v5  ;;  %v9200_v5 = vor.u32 %v10149_v30, %v9197_v8  ;;  %v10158_v3 = vld [vmem:[%s11719_s10 + $0x1e4] sm:$0xf0]  ;;  %v9076_v28 = vor.u32 %v10126_v23, %v9075_v20  ;;  %v10191_v30 = vld [vmem:[%s11719_s10 + $0x2ec] sm:$0xf0]  ;;  %v9475_v8 = vld [vmem:[%s11719_s10 + $0x3b8] sm:$0xf] }
 0xb54   : > { %16150 = vst [vmem:[#allocation35_spill] sm:$0xff] %v14795_v45  ;;  %v14799_v15 = vpack.c.bf16 %v14795_v45, %v14792_v0  ;;  %6281 = vmatpush.bf16.msrb.mxu1 %v9328_v33  ;;  %v9204_v14 = vor.u32 %v10158_v3, %v9203_v54  ;;  %v10110_v33 = vld [vmem:[%s11719_s10 + $0x64] sm:$0xf0]  ;;  %v10215_v3 = vld [vmem:[%s11719_s10 + $0x3b4] sm:$0xf]  ;;  %v10237_v0 = vld [vmem:[%s11727_s25 + $0x60] sm:$0xff] }
 0xb55   : > { %6252 = vmatpush.bf16.msrb.mxu0 %v9324_v1  ;;  %6340 = vmatpush.bf16.msra.mxu3 %v9272_v25  ;;  %v9205_v1 = vld [vmem:[%s11719_s10 + $0x1e8] sm:$0xf0]  ;;  %v9012_v57 = vor.u32 %v10110_v33, %v9011_v29  ;;  %v9339_v25 = vld [vmem:[%s11719_s10 + $0x2b0] sm:$0xf]  ;;  %v9341_v41 = vld [vmem:[%s11719_s10 + $0x2f0] sm:$0xf0] }
 0xb56   : > { %6041 = vmatmul.bf16.gmra.mxu0 %v14799_v15  ;;  %6070 = vmatmul.bf16.gmra.mxu1 %v14799_v15  ;;  %v9208_v38 = vor.u32 %v10150_v24, %v9205_v1  ;;  %v9340_v54 = vor.u32 %v10191_v30, %v9339_v25  ;;  %v9469_v24 = vld [vmem:[%s11719_s10 + $0x3f0] sm:$0xf0]  ;;  %v9211_v23 = vld [vmem:[%s11719_s10 + $0x1b0] sm:$0xf]  ;;  %v10184_v29 = vld [vmem:[%s11719_s10 + $0x2bc] sm:$0xf] }
 0xb57   : > { %6099 = vmatmul.bf16.gmra.mxu2 %v14799_v15  ;;  %6128 = vmatmul.bf16.gmra.mxu3 %v14799_v15  ;;  %v9212_v12 = vor.u32 %v10159_v31, %v9211_v23  ;;  %v9349_v33 = vld [vmem:[%s11719_s10 + $0x2f8] sm:$0xf0]  ;;  %v10167_v34 = vld [vmem:[%s11719_s10 + $0x234] sm:$0xf]  ;;  %v9155_v31 = vld [vmem:[%s11719_s10 + $0x138] sm:$0xf] }
 0xb58   : > { %6282 = vmatpush.bf16.msrb.mxu1 %v9264_v42  ;;  %6312 = vmatpush.bf16.msrb.mxu2 %v9204_v14  ;;  %v10207_v42 = vld [vmem:[%s11719_s10 + $0x36c] sm:$0xf0]  ;;  %v9472_v14 = vor.u32 %v10215_v3, %v9469_v24  ;;  %v10168_v25 = vld [vmem:[%s11719_s10 + $0x23c] sm:$0xf]  ;;  %v9149_v23 = vld [vmem:[%s11719_s10 + $0x170] sm:$0xf0] }
 0xb59   : > { %6253 = vmatpush.bf16.msrb.mxu0 %v9260_v26  ;;  %6341 = vmatpush.bf16.msra.mxu3 %v9208_v38  ;;  %v9140_v26 = vor.u32 %v10142_v2, %v9139_v36  ;;  %v9404_v18 = vor.u32 %v10207_v42, %v9403_v63  ;;  %v14897_v38 = vpop.f32.mrf.mxu2  ;;  %v9275_v36 = vld [vmem:[%s11719_s10 + $0x230] sm:$0xf]  ;;  %v9277_v63 = vld [vmem:[%s11719_s10 + $0x270] sm:$0xf0]  ;;  %v9285_v30 = vld [vmem:[%s11719_s10 + $0x278] sm:$0xf0] }
 0xb5a   : > { %v14907_v49 = vpop.f32.mrf.mxu1  ;;  %v10175_v2 = vld [vmem:[%s11719_s10 + $0x26c] sm:$0xf0]  ;;  %v9280_v42 = vor.u32 %v10167_v34, %v9277_v63  ;;  %v10254_v45 = vld [vmem:[%s11727_s25 + $0xe8] sm:$0xff] }
 0xb5b   : > { %v9276_v43 = vor.u32 %v10175_v2, %v9275_v36  ;;  %v9147_v24 = vld [vmem:[%s11719_s10 + $0x130] sm:$0xf]  ;;  %v9219_v36 = vld [vmem:[%s11719_s10 + $0x1b8] sm:$0xf] }
 0xb5c   : > { %6283 = vmatpush.bf16.msrb.mxu1 %v9200_v5  ;;  %6313 = vmatpush.bf16.msrb.mxu2 %v9140_v26  ;;  %v10224_v5 = vld [vmem:[%s11719_s10 + $0x3f4] sm:$0xf0]  ;;  %v9480_v26 = vor.u32 %v10216_v37, %v9477_v7  ;;  %v9213_v7 = vld [vmem:[%s11719_s10 + $0x1f0] sm:$0xf0] }
 0xb5d   : > { %6254 = vmatpush.bf16.msrb.mxu0 %v9196_v11  ;;  %v9072_v11 = vor.u32 %v10117_v61, %v9069_v48  ;;  %6342 = vmatpush.bf16.msra.mxu3 %v9144_v6  ;;  %v9476_v1 = vor.u32 %v10224_v5, %v9475_v8  ;;  %v10199_v61 = vld [vmem:[%s11719_s10 + $0x334] sm:$0xf]  ;;  %v10160_v2 = vld [vmem:[%s11719_s10 + $0x1f4] sm:$0xf0] }
 0xb5e   : > { %v9405_v6 = vld [vmem:[%s11719_s10 + $0x370] sm:$0xf0] }
 0xb5f   : > { %v9408_v20 = vor.u32 %v10199_v61, %v9405_v6 }
 0xb60   : > { %6284 = vmatpush.bf16.msrb.mxu1 %v9136_v22  ;;  %6314 = vmatpush.bf16.msrb.mxu2 %v9076_v28  ;;  %v9411_v22 = vld [vmem:[%s11719_s10 + $0x338] sm:$0xf]  ;;  %v9413_v28 = vld [vmem:[%s11719_s10 + $0x378] sm:$0xf0] }
 0xb61   : > { %6255 = vmatpush.bf16.msrb.mxu0 %v9132_v17  ;;  %6343 = vmatpush.bf16.msra.mxu3 %v9080_v59  ;;  %v9016_v17 = vor.u32 %v10102_v51, %v9013_v50  ;;  %v9412_v48 = vor.u32 %v10208_v35, %v9411_v22  ;;  %v9352_v51 = vor.u32 %v10184_v29, %v9349_v33  ;;  %v14927_v50 = vpop.f32.mrf.mxu2  ;;  %v9221_v35 = vld [vmem:[%s11719_s10 + $0x1f8] sm:$0xf0]  ;;  %v9091_v33 = vld [vmem:[%s11719_s10 + $0xb8] sm:$0xf] }
 0xb62   : > { %v14933_v16 = vpop.f32.mrf.mxu1 }
 0xb64   : > { %6285 = vmatpush.bf16.msrb.mxu1 %v9072_v11  ;;  %6315 = vmatpush.bf16.msrb.mxu2 %v9012_v57  ;;  %v10192_v11 = vld [vmem:[%s11719_s10 + $0x2f4] sm:$0xf0]  ;;  %v14929_v57 = vpop.f32.mrf.mxu3 }
 0xb65   : > { %6256 = vmatpush.bf16.msrb.mxu0 %v9068_v52  ;;  %6344 = vmatpush.bf16.msra.mxu3 %v9016_v17  ;;  %v14905_v52 = vpop.f32.mrf.mxu0  ;;  %v9348_v59 = vor.u32 %v10192_v11, %v9347_v56  ;;  %v10136_v11 = vld [vmem:[%s11719_s10 + $0x13c] sm:$0xf] }
 0xb66   : > { %6142 = vmatmul.bf16.vlgmr.msra.gmra.mxu0 %v14637_v53  ;;  %6171 = vmatmul.bf16.vlgmr.msra.gmra.mxu1 %v14637_v53 }
 0xb67   : > { %6200 = vmatmul.bf16.vlgmr.msra.gmra.mxu2 %v14637_v53  ;;  %6229 = vmatmul.bf16.vlgmr.msrb.gmra.mxu3 %v14637_v53 }
 0xb68   : > { %6286 = vmatpush.bf16.msrb.mxu1 %v9008_v47  ;;  %6424 = vmatpush.bf16.msra.mxu2 %v9476_v1  ;;  %v9344_v47 = vor.u32 %v10183_v32, %v9341_v41  ;;  %v10143_v1 = vld [vmem:[%s11719_s10 + $0x16c] sm:$0xf0]  ;;  %v10119_v41 = vld [vmem:[%s11719_s10 + $0xb4] sm:$0xf] }
 0xb69   : > { %6257 = vmatpush.bf16.msrb.mxu0 %v9004_v13  ;;  %6453 = vmatpush.bf16.msrb.mxu3 %v9480_v26  ;;  %v9416_v13 = vor.u32 %v10200_v46, %v9413_v28  ;;  %v14941_v5 = vpop.f32.mrf.mxu2  ;;  %v9148_v37 = vor.u32 %v10143_v1, %v9147_v24  ;;  %v9220_v26 = vor.u32 %v10160_v2, %v9219_v36  ;;  %v9157_v46 = vld [vmem:[%s11719_s10 + $0x178] sm:$0xf0]  ;;  %v10127_v32 = vld [vmem:[%s11719_s10 + $0xec] sm:$0xf0]  ;;  %v9027_v36 = vld [vmem:[%s11719_s10 + $0x38] sm:$0xf] }
 0xb6a   : > { %v14959_v6 = vpop.f32.mrf.mxu1  ;;  %v9019_v24 = vld [vmem:[%s11719_s10 + $0x30] sm:$0xf]  ;;  %v10112_v2 = vld [vmem:[%s11719_s10 + $0x74] sm:$0xf0] }
 0xb6b   : > { %v10111_v1 = vld [vmem:[%s11719_s10 + $0x6c] sm:$0xf0] }
 0xb6c   : > { %6395 = vmatpush.bf16.msra.mxu1 %v9472_v14  ;;  %6425 = vmatpush.bf16.msra.mxu2 %v9412_v48  ;;  %v14943_v3 = vpop.f32.mrf.mxu3  ;;  %v10151_v14 = vld [vmem:[%s11719_s10 + $0x1b4] sm:$0xf] }
 0xb6d   : > { %6366 = vmatpush.bf16.msra.mxu0 %v9468_v60  ;;  %6454 = vmatpush.bf16.msrb.mxu3 %v9416_v13  ;;  %v14931_v17 = vpop.f32.mrf.mxu0  ;;  %v9283_v60 = vld [vmem:[%s11719_s10 + $0x238] sm:$0xf]  ;;  %v9216_v22 = vor.u32 %v10151_v14, %v9213_v7  ;;  %v9083_v13 = vld [vmem:[%s11719_s10 + $0xb0] sm:$0xf]  ;;  %v10103_v14 = vld [vmem:[%s11719_s10 + $0x34] sm:$0xf] }
 0xb6e   : > { %v9084_v29 = vor.u32 %v10127_v32, %v9083_v13  ;;  %v9021_v7 = vld [vmem:[%s11719_s10 + $0x70] sm:$0xf0] }
 0xb6f   : > { %v15009_v13 = vld [vmem:[%s11721_s20] sm:$0xff] }
 0xb70   : > { %6396 = vmatpush.bf16.msra.mxu1 %v9408_v20  ;;  %6426 = vmatpush.bf16.msra.mxu2 %v9348_v59  ;;  %v10135_v20 = vld [vmem:[%s11719_s10 + $0x134] sm:$0xf]  ;;  %v9160_v59 = vor.u32 %v10136_v11, %v9157_v46  ;;  %v15014_v32 = vperm.slane %v15009_v13, 0 }
 0xb71   : > { %6367 = vmatpush.bf16.msra.mxu0 %v9404_v18  ;;  %6455 = vmatpush.bf16.msrb.mxu3 %v9352_v51  ;;  %v10176_v18 = vld [vmem:[%s11719_s10 + $0x274] sm:$0xf0]  ;;  %v9152_v56 = vor.u32 %v10135_v20, %v9149_v23  ;;  %v14972_v51 = vpop.f32.mrf.mxu2 }
 0xb72   : > { %v9284_v8 = vor.u32 %v10176_v18, %v9283_v60  ;;  %v10128_v60 = vld [vmem:[%s11719_s10 + $0xf4] sm:$0xf0] }
 0xb74   : > { %6397 = vmatpush.bf16.msra.mxu1 %v9344_v47  ;;  %6427 = vmatpush.bf16.msra.mxu2 %v9284_v8  ;;  %v9085_v47 = vld [vmem:[%s11719_s10 + $0xf0] sm:$0xf0]  ;;  %v14974_v34 = vpop.f32.mrf.mxu3  ;;  %v9093_v8 = vld [vmem:[%s11719_s10 + $0xf8] sm:$0xf0] }
 0xb75   : > { %6368 = vmatpush.bf16.msra.mxu0 %v9340_v54  ;;  %v9288_v54 = vor.u32 %v10168_v25, %v9285_v30  ;;  %v14957_v61 = vpop.f32.mrf.mxu0  ;;  %v9088_v63 = vor.u32 %v10119_v41, %v9085_v47  ;;  %v9092_v30 = vor.u32 %v10128_v60, %v9091_v33  ;;  %v10231_v41 = vld [vmem:[%s11727_s25 + $0x30] sm:$0xff] }
 0xb76   : > { %6147 = vmatmul.bf16.gmra.mxu0 %v14663_v27  ;;  %6176 = vmatmul.bf16.gmra.mxu1 %v14663_v27 }
 0xb77   : > { %6205 = vmatmul.bf16.gmra.mxu2 %v14663_v27  ;;  %6234 = vmatmul.bf16.gmra.mxu3 %v14663_v27 }
 0xb78   : > { %6398 = vmatpush.bf16.msra.mxu1 %v9280_v42  ;;  %6456 = vmatpush.bf16.msrb.mxu3 %v9288_v54  ;;  %v10120_v42 = vld [vmem:[%s11719_s10 + $0xbc] sm:$0xf] }
 0xb79   : > { %6369 = vmatpush.bf16.msra.mxu0 %v9276_v43  ;;  %v10152_v43 = vld [vmem:[%s11719_s10 + $0x1bc] sm:$0xf]  ;;  %6428 = vmatpush.bf16.msra.mxu2 %v9220_v26  ;;  %v9096_v54 = vor.u32 %v10120_v42, %v9093_v8  ;;  %v9028_v26 = vor.u32 %v10112_v2, %v9027_v36 }
 0xb7a   : > { %v9224_v48 = vor.u32 %v10152_v43, %v9221_v35  ;;  %v10104_v43 = vld [vmem:[%s11719_s10 + $0x3c] sm:$0xf] }
 0xb7b   : > { %v9029_v35 = vld [vmem:[%s11719_s10 + $0x78] sm:$0xf0] }
 0xb7c   : > { %6399 = vmatpush.bf16.msra.mxu1 %v9216_v22  ;;  %6457 = vmatpush.bf16.msrb.mxu3 %v9224_v48  ;;  %v9024_v22 = vor.u32 %v10103_v14, %v9021_v7  ;;  %v9032_v48 = vor.u32 %v10104_v43, %v9029_v35  ;;  %v10230_v7 = vld [vmem:[%s11727_s25 + $0x28] sm:$0xff]  ;;  %v10248_v36 = vld [vmem:[%s11727_s25 + $0xb8] sm:$0xff] }
 0xb7d   : > { %6370 = vmatpush.bf16.msra.mxu0 %v9212_v12  ;;  %v10144_v12 = vld [vmem:[%s11719_s10 + $0x174] sm:$0xf0] }
 0xb7e   : > { %v9156_v28 = vor.u32 %v10144_v12, %v9155_v31  ;;  %v10232_v12 = vld [vmem:[%s11727_s25 + $0x38] sm:$0xff] }
 0xb7f   : > { %v10240_v2 = vld [vmem:[%s11727_s25 + $0x78] sm:$0xff] }
 0xb80   : > { %6400 = vmatpush.bf16.msra.mxu1 %v9152_v56  ;;  %6429 = vmatpush.bf16.msra.mxu2 %v9156_v28 }
 0xb81   : > { %6371 = vmatpush.bf16.msra.mxu0 %v9148_v37  ;;  %6458 = vmatpush.bf16.msrb.mxu3 %v9160_v59  ;;  %v9020_v37 = vor.u32 %v10111_v1, %v9019_v24 }
 0xb84   : > { %6401 = vmatpush.bf16.msra.mxu1 %v9088_v63  ;;  %6430 = vmatpush.bf16.msra.mxu2 %v9092_v30 }
 0xb85   : > { %6372 = vmatpush.bf16.msra.mxu0 %v9084_v29  ;;  %6459 = vmatpush.bf16.msrb.mxu3 %v9096_v54  ;;  %v15020_v29 = vperm.slane %v15009_v13, 1 }
 0xb86   : > { %6152 = vmatmul.bf16.gmra.mxu0 %v14734_v9  ;;  %6181 = vmatmul.bf16.gmra.mxu1 %v14734_v9 }
 0xb87   : > { %6210 = vmatmul.bf16.gmra.mxu2 %v14734_v9  ;;  %6239 = vmatmul.bf16.gmra.mxu3 %v14734_v9 }
 0xb88   : > { %6402 = vmatpush.bf16.msra.mxu1 %v9024_v22  ;;  %6431 = vmatpush.bf16.msra.mxu2 %v9028_v26  ;;  %v15030_v22 = vperm.slane %v15009_v13, 2  ;;  %v15033_v26 = vperm.slane %v15009_v13, 3 }
 0xb89   : > { %6373 = vmatpush.bf16.msra.mxu0 %v9020_v37  ;;  %6460 = vmatpush.bf16.msrb.mxu3 %v9032_v48 }
 0xb96   : > { %6157 = vmatmul.bf16.gmra.mxu0 %v14799_v15  ;;  %6186 = vmatmul.bf16.gmra.mxu1 %v14799_v15 }
 0xb97   : > { %6215 = vmatmul.bf16.gmra.mxu2 %v14799_v15  ;;  %6244 = vmatmul.bf16.gmra.mxu3 %v14799_v15 }
 0xba6   : > { %6258 = vmatmul.bf16.vlgmr.msrb.gmra.mxu0 %v14637_v53  ;;  %6287 = vmatmul.bf16.vlgmr.msrb.gmra.mxu1 %v14637_v53 }
 0xba7   : > { %6316 = vmatmul.bf16.vlgmr.msrb.gmra.mxu2 %v14637_v53  ;;  %6345 = vmatmul.bf16.vlgmr.msra.gmra.mxu3 %v14637_v53 }
 0xba8   : > { %7702 = vmatpush.bf16.msrb.mxu0 %v10232_v12  ;;  %7760 = vmatpush.bf16.msrb.mxu2 %v10248_v36 }
 0xba9   : > { %7731 = vmatpush.bf16.msrb.mxu1 %v10240_v2 }
 0xbac   : > { %7703 = vmatpush.bf16.msrb.mxu0 %v10231_v41 }
 0xbb0   : > { %7704 = vmatpush.bf16.msrb.mxu0 %v10230_v7  ;;  %v10256_v7 = vld [vmem:[%s11727_s25 + $0xf8] sm:$0xff] }
 0xbb1   : > { %7789 = vmatpush.bf16.msra.mxu3 %v10256_v7  ;;  %v10246_v7 = vld [vmem:[%s11727_s25 + $0xa8] sm:$0xff] }
 0xbb5   : > { %v14978_v18 = vpop.f32.mrf.mxu0  ;;  %v14980_v25 = vpop.f32.mrf.mxu1 }
 0xbb6   : > { %6263 = vmatmul.bf16.gmra.mxu0 %v14663_v27  ;;  %6292 = vmatmul.bf16.gmra.mxu1 %v14663_v27 }
 0xbb7   : > { %6321 = vmatmul.bf16.gmra.mxu2 %v14663_v27  ;;  %6350 = vmatmul.bf16.gmra.mxu3 %v14663_v27 }
 0xbbc   : > { %v14995_v20 = vpop.f32.mrf.mxu2  ;;  %v14997_v23 = vpop.f32.mrf.mxu3 }
 0xbbd   : > { %v14999_v31 = vpop.f32.mrf.mxu0  ;;  %v15001_v56 = vpop.f32.mrf.mxu1 }
 0xbc4   : > { %v15004_v11 = vpop.f32.mrf.mxu2  ;;  %v15006_v46 = vpop.f32.mrf.mxu3 }
 0xbc6   : > { %6268 = vmatmul.bf16.gmra.mxu0 %v14734_v9  ;;  %6297 = vmatmul.bf16.gmra.mxu1 %v14734_v9 }
 0xbc7   : > { %6326 = vmatmul.bf16.gmra.mxu2 %v14734_v9  ;;  %6355 = vmatmul.bf16.gmra.mxu3 %v14734_v9 }
 0xbd3   : > { %v6042_v28 = vpop.f32.mrf.mxu0  ;;  %v6071_v59 = vpop.f32.mrf.mxu1 }
 0xbd4   : > { %v6043_v47 = vadd.f32 %v6042_v28, %v15014_v32  ;;  %v6072_v33 = vadd.f32 %v6071_v59, %v15020_v29 }
 0xbd6   : > { %6273 = vmatmul.bf16.gmra.mxu0 %v14799_v15  ;;  %6302 = vmatmul.bf16.gmra.mxu1 %v14799_v15  ;;  %v6578_v24 = vmax.f32 %v6043_v47, 0.0  ;;  %v6579_v1 = vmax.f32 %v6072_v33, 0.0 }
 0xbd7   : > { %6331 = vmatmul.bf16.gmra.mxu2 %v14799_v15  ;;  %6360 = vmatmul.bf16.gmra.mxu3 %v14799_v15 }
 0xbda   : > { %v6100_v63 = vpop.f32.mrf.mxu2  ;;  %v6129_v60 = vpop.f32.mrf.mxu3 }
 0xbdb   : > { %v6044_v42 = vpop.f32.mrf.mxu0  ;;  %v6073_v30 = vpop.f32.mrf.mxu1  ;;  %v6101_v48 = vadd.f32 %v6100_v63, %v15030_v22  ;;  %v6130_v12 = vadd.f32 %v6129_v60, %v15033_v26 }
 0xbdc   : > { %v6045_v8 = vadd.f32 %v6044_v42, %v15014_v32  ;;  %v6074_v54 = vadd.f32 %v6073_v30, %v15020_v29  ;;  %v15044_v30 = vperm.slane %v15009_v13, 4 }
 0xbdd   : > { %v6581_v63 = vmax.f32 %v6130_v12, 0.0 }
 0xbde   : > { %v6594_v14 = vmax.f32 %v6045_v8, 0.0  ;;  %v6595_v37 = vmax.f32 %v6074_v54, 0.0  ;;  %v6580_v8 = vmax.f32 %v6101_v48, 0.0 }
 0xbe0   : > { %v15035_v43 = vpack.c.bf16 %v6594_v14, %v6578_v24  ;;  %v15037_v35 = vpack.c.bf16 %v6595_v37, %v6579_v1  ;;  %v15047_v24 = vperm.slane %v15009_v13, 5  ;;  %v10229_v1 = vld [vmem:[%s11727_s25 + $0x20] sm:$0xff]  ;;  %v10247_v14 = vld [vmem:[%s11727_s25 + $0xb0] sm:$0xff] }
 0xbe1   : > { %v10239_v37 = vld [vmem:[%s11727_s25 + $0x70] sm:$0xff]  ;;  %7705 = vmatpush.bf16.msrb.mxu0 %v10229_v1  ;;  %7761 = vmatpush.bf16.msrb.mxu2 %v10247_v14 }
 0xbe2   : > { %v6102_v28 = vpop.f32.mrf.mxu2  ;;  %v6131_v59 = vpop.f32.mrf.mxu3  ;;  %7732 = vmatpush.bf16.msrb.mxu1 %v10239_v37  ;;  %v10228_v37 = vld [vmem:[%s11727_s25 + $0x18] sm:$0xff] }
 0xbe3   : > { %v6103_v41 = vadd.f32 %v6102_v28, %v15030_v22  ;;  %v6132_v47 = vadd.f32 %v6131_v59, %v15033_v26  ;;  %v6143_v33 = vpop.f32.mrf.mxu0  ;;  %v6172_v42 = vpop.f32.mrf.mxu1 }
 0xbe4   : > { %v6144_v48 = vadd.f32 %v6143_v33, %v15044_v30  ;;  %v6173_v12 = vadd.f32 %v6172_v42, %v15047_v24  ;;  %v15067_v33 = vperm.slane %v15009_v13, 6 }
 0xbe5   : > { %v6596_v54 = vmax.f32 %v6103_v41, 0.0  ;;  %v6597_v60 = vmax.f32 %v6132_v47, 0.0  ;;  %v10255_v47 = vld [vmem:[%s11727_s25 + $0xf0] sm:$0xff]  ;;  %7706 = vmatpush.bf16.msrb.mxu0 %v10228_v37  ;;  %7762 = vmatpush.bf16.msrb.mxu2 %v10246_v7 }
 0xbe6   : > { %6374 = vmatmul.bf16.vlgmr.msra.gmra.mxu0 %v14637_v53  ;;  %6403 = vmatmul.bf16.vlgmr.msra.gmra.mxu1 %v14637_v53  ;;  %v6487_v42 = vmax.f32 %v6173_v12, 0.0 }
 0xbe7   : > { %6432 = vmatmul.bf16.vlgmr.msra.gmra.mxu2 %v14637_v53  ;;  %6461 = vmatmul.bf16.vlgmr.msrb.gmra.mxu3 %v14637_v53  ;;  %v15057_v36 = vpack.c.bf16 %v6596_v54, %v6580_v8  ;;  %v15059_v2 = vpack.c.bf16 %v6597_v60, %v6581_v63  ;;  %v6486_v54 = vmax.f32 %v6144_v48, 0.0  ;;  %v15070_v60 = vperm.slane %v15009_v13, 7 }
 0xbe8   : > { %7790 = vmatpush.bf16.msra.mxu3 %v10255_v47  ;;  %7733 = vmatpush.bf16.msrb.mxu1 %v10238_v4 }
 0xbea   : > { %v6201_v28 = vpop.f32.mrf.mxu2  ;;  %v6230_v59 = vpop.f32.mrf.mxu3 }
 0xbeb   : > { %v6145_v53 = vpop.f32.mrf.mxu0  ;;  %v6174_v41 = vpop.f32.mrf.mxu1  ;;  %v6202_v13 = vadd.f32 %v6201_v28, %v15067_v33 }
 0xbec   : > { %v6146_v8 = vadd.f32 %v6145_v53, %v15044_v30  ;;  %v6175_v63 = vadd.f32 %v6174_v41, %v15047_v24  ;;  %v6231_v41 = vadd.f32 %v6230_v59, %v15070_v60  ;;  %7791 = vmatpush.bf16.msra.mxu3 %v10254_v45  ;;  %7734 = vmatpush.bf16.msrb.mxu1 %v10237_v0  ;;  %v10227_v45 = vld [vmem:[%s11727_s25 + $0x10] sm:$0xff]  ;;  %v10252_v0 = vld [vmem:[%s11727_s25 + $0xd8] sm:$0xff] }
 0xbed   : > { %v6488_v37 = vmax.f32 %v6202_v13, 0.0  ;;  %v10236_v13 = vld [vmem:[%s11727_s25 + $0x58] sm:$0xff]  ;;  %7707 = vmatpush.bf16.msrb.mxu0 %v10227_v45 }
 0xbee   : > { %v6502_v1 = vmax.f32 %v6146_v8, 0.0  ;;  %v6503_v14 = vmax.f32 %v6175_v63, 0.0  ;;  %v6489_v28 = vmax.f32 %v6231_v41, 0.0  ;;  %v10244_v41 = vld [vmem:[%s11727_s25 + $0x98] sm:$0xff] }
 0xbf0   : > { %v15076_v53 = vpack.c.bf16 %v6502_v1, %v6486_v54  ;;  %v15078_v48 = vpack.c.bf16 %v6503_v14, %v6487_v42  ;;  %v10245_v42 = vld [vmem:[%s11727_s25 + $0xa0] sm:$0xff]  ;;  %7735 = vmatpush.bf16.msrb.mxu1 %v10236_v13 }
 0xbf1   : > { %v10253_v14 = vld [vmem:[%s11727_s25 + $0xe0] sm:$0xff]  ;;  %7763 = vmatpush.bf16.msrb.mxu2 %v10245_v42  ;;  %7708 = vmatpush.bf16.msrb.mxu0 %v10226_v58 }
 0xbf2   : > { %v6203_v12 = vpop.f32.mrf.mxu2  ;;  %v6232_v47 = vpop.f32.mrf.mxu3  ;;  %7792 = vmatpush.bf16.msra.mxu3 %v10253_v14 }
 0xbf3   : > { %v6204_v8 = vadd.f32 %v6203_v12, %v15067_v33  ;;  %v6233_v63 = vadd.f32 %v6232_v47, %v15070_v60  ;;  %v6148_v54 = vpop.f32.mrf.mxu0  ;;  %v6177_v1 = vpop.f32.mrf.mxu1 }
 0xbf4   : > { %v6149_v47 = vadd.f32 %v6148_v54, %v15044_v30  ;;  %v10251_v54 = vld [vmem:[%s11727_s25 + $0xd0] sm:$0xff] }
 0xbf5   : > { %v6504_v59 = vmax.f32 %v6204_v8, 0.0  ;;  %v6505_v4 = vmax.f32 %v6233_v63, 0.0  ;;  %7764 = vmatpush.bf16.msrb.mxu2 %v10244_v41  ;;  %v6178_v8 = vadd.f32 %v6177_v1, %v15047_v24 }
 0xbf6   : > { %6379 = vmatmul.bf16.gmra.mxu0 %v14663_v27  ;;  %6408 = vmatmul.bf16.gmra.mxu1 %v14663_v27  ;;  %v6518_v45 = vmax.f32 %v6149_v47, 0.0 }
 0xbf7   : > { %v15090_v7 = vpack.c.bf16 %v6504_v59, %v6488_v37  ;;  %v15092_v12 = vpack.c.bf16 %v6505_v4, %v6489_v28  ;;  %6437 = vmatmul.bf16.gmra.mxu2 %v14663_v27  ;;  %6466 = vmatmul.bf16.gmra.mxu3 %v14663_v27  ;;  %v10235_v27 = vld [vmem:[%s11727_s25 + $0x50] sm:$0xff]  ;;  %v6519_v1 = vmax.f32 %v6178_v8, 0.0 }
 0xbf8   : > { %v10243_v59 = vld [vmem:[%s11727_s25 + $0x90] sm:$0xff]  ;;  %7793 = vmatpush.bf16.msra.mxu3 %v10252_v0  ;;  %7736 = vmatpush.bf16.msrb.mxu1 %v10235_v27 }
 0xbf9   : > { %7765 = vmatpush.bf16.msrb.mxu2 %v10243_v59 }
 0xbfa   : > { %v6206_v63 = vpop.f32.mrf.mxu2  ;;  %v6235_v42 = vpop.f32.mrf.mxu3 }
 0xbfb   : > { %v6150_v37 = vpop.f32.mrf.mxu0  ;;  %v6179_v28 = vpop.f32.mrf.mxu1  ;;  %v6207_v47 = vadd.f32 %v6206_v63, %v15067_v33  ;;  %v6236_v8 = vadd.f32 %v6235_v42, %v15070_v60 }
 0xbfc   : > { %v6151_v4 = vadd.f32 %v6150_v37, %v15044_v30  ;;  %v6180_v14 = vadd.f32 %v6179_v28, %v15047_v24  ;;  %7794 = vmatpush.bf16.msra.mxu3 %v10251_v54  ;;  %7737 = vmatpush.bf16.msrb.mxu1 %v10234_v21  ;;  %v10225_v54 = vld [vmem:[%s11727_s25] sm:$0xff] }
 0xbfd   : > { %7766 = vmatpush.bf16.msrb.mxu2 %v10242_v62  ;;  %v6521_v44 = vmax.f32 %v6236_v8, 0.0  ;;  %7709 = vmatpush.bf16.msrb.mxu0 %v10225_v54 }
 0xbfe   : > { %v6534_v13 = vmax.f32 %v6151_v4, 0.0  ;;  %v6535_v41 = vmax.f32 %v6180_v14, 0.0 }
 0xc00   : > { %v15110_v37 = vpack.c.bf16 %v6534_v13, %v6518_v45  ;;  %v15112_v0 = vpack.c.bf16 %v6535_v41, %v6519_v1  ;;  %v10233_v45 = vld [vmem:[%s11727_s25 + $0x40] sm:$0xff]  ;;  %7795 = vmatpush.bf16.msra.mxu3 %v10250_v40  ;;  %v6520_v41 = vmax.f32 %v6207_v47, 0.0 }
 0xc01   : > { %v10241_v13 = vld [vmem:[%s11727_s25 + $0x80] sm:$0xff]  ;;  %7738 = vmatpush.bf16.msrb.mxu1 %v10233_v45 }
 0xc02   : > { %v6208_v28 = vpop.f32.mrf.mxu2  ;;  %v6237_v27 = vpop.f32.mrf.mxu3  ;;  %v10249_v1 = vld [vmem:[%s11727_s25 + $0xc0] sm:$0xff]  ;;  %7767 = vmatpush.bf16.msrb.mxu2 %v10241_v13 }
 0xc03   : > { %v6209_v59 = vadd.f32 %v6208_v28, %v15067_v33  ;;  %v6238_v58 = vadd.f32 %v6237_v27, %v15070_v60  ;;  %v6153_v4 = vpop.f32.mrf.mxu0  ;;  %v6182_v14 = vpop.f32.mrf.mxu1 }
 0xc04   : > { %7796 = vmatpush.bf16.msra.mxu3 %v10249_v1  ;;  %v6154_v62 = vadd.f32 %v6153_v4, %v15044_v30  ;;  %v6183_v42 = vadd.f32 %v6182_v14, %v15047_v24 }
 0xc05   : > { %v6536_v63 = vmax.f32 %v6209_v59, 0.0  ;;  %v6537_v39 = vmax.f32 %v6238_v58, 0.0 }
 0xc06   : > { %6384 = vmatmul.bf16.gmra.mxu0 %v14734_v9  ;;  %6413 = vmatmul.bf16.gmra.mxu1 %v14734_v9  ;;  %v6551_v54 = vmax.f32 %v6183_v42, 0.0 }
 0xc07   : > { %6442 = vmatmul.bf16.gmra.mxu2 %v14734_v9  ;;  %6471 = vmatmul.bf16.gmra.mxu3 %v14734_v9  ;;  %v15126_v21 = vpack.c.bf16 %v6536_v63, %v6520_v41  ;;  %v15128_v40 = vpack.c.bf16 %v6537_v39, %v6521_v44  ;;  %v6550_v9 = vmax.f32 %v6154_v62, 0.0  ;;  %v10264_v39 = vld [vmem:[%s11727_s25 + $0x138] sm:$0xff] }
 0xc08   : > { %7818 = vmatpush.bf16.msra.mxu0 %v10264_v39 }
 0xc0a   : > { %v6211_v47 = vpop.f32.mrf.mxu2  ;;  %v6240_v8 = vpop.f32.mrf.mxu3 }
 0xc0b   : > { %v6155_v28 = vpop.f32.mrf.mxu0  ;;  %v6184_v27 = vpop.f32.mrf.mxu1  ;;  %v6212_v4 = vadd.f32 %v6211_v47, %v15067_v33  ;;  %v6241_v14 = vadd.f32 %v6240_v8, %v15070_v60  ;;  %v10263_v47 = vld [vmem:[%s11727_s25 + $0x130] sm:$0xff] }
 0xc0c   : > { %v6156_v59 = vadd.f32 %v6155_v28, %v15044_v30  ;;  %v6185_v58 = vadd.f32 %v6184_v27, %v15047_v24  ;;  %7819 = vmatpush.bf16.msra.mxu0 %v10263_v47 }
 0xc0e   : > { %v6566_v45 = vmax.f32 %v6156_v59, 0.0  ;;  %v6567_v41 = vmax.f32 %v6185_v58, 0.0  ;;  %v6552_v59 = vmax.f32 %v6212_v4, 0.0  ;;  %v6553_v58 = vmax.f32 %v6241_v14, 0.0 }
 0xc10   : > { %v15135_v44 = vpack.c.bf16 %v6566_v45, %v6550_v9  ;;  %v15137_v13 = vpack.c.bf16 %v6567_v41, %v6551_v54 }
 0xc12   : > { %16151 = vst [vmem:[#allocation62_spill] sm:$0xff] %v15137_v13  ;;  %v6213_v1 = vpop.f32.mrf.mxu2  ;;  %v6242_v63 = vpop.f32.mrf.mxu3 }
 0xc13   : > { %v6214_v28 = vadd.f32 %v6213_v1, %v15067_v33  ;;  %v6243_v62 = vadd.f32 %v6242_v63, %v15070_v60  ;;  %v6158_v42 = vpop.f32.mrf.mxu0  ;;  %v6187_v27 = vpop.f32.mrf.mxu1  ;;  %v6030_v1 = vadd.f32 %v14905_v52, %v15014_v32  ;;  %v6059_v63 = vadd.f32 %v14907_v49, %v15020_v29 }
 0xc14   : > { %v6159_v41 = vadd.f32 %v6158_v42, %v15044_v30  ;;  %v6188_v39 = vadd.f32 %v6187_v27, %v15047_v24  ;;  %v6117_v42 = vadd.f32 %v14929_v57, %v15033_v26  ;;  %v6028_v52 = vadd.f32 %v14887_v10, %v15014_v32 }
 0xc15   : > { %v6568_v9 = vmax.f32 %v6214_v28, 0.0  ;;  %v6569_v45 = vmax.f32 %v6243_v62, 0.0  ;;  %v6088_v62 = vadd.f32 %v14927_v50, %v15030_v22  ;;  %v6057_v49 = vadd.f32 %v14889_v19, %v15020_v29 }
 0xc16   : > { %6389 = vmatmul.bf16.gmra.mxu0 %v14799_v15  ;;  %6418 = vmatmul.bf16.gmra.mxu1 %v14799_v15  ;;  %v6115_v50 = vadd.f32 %v14899_v55, %v15033_v26 }
 0xc17   : > { %6447 = vmatmul.bf16.gmra.mxu2 %v14799_v15  ;;  %6476 = vmatmul.bf16.gmra.mxu3 %v14799_v15  ;;  %v15148_v8 = vpack.c.bf16 %v6568_v9, %v6552_v59  ;;  %v15150_v54 = vpack.c.bf16 %v6569_v45, %v6553_v58  ;;  %v6086_v58 = vadd.f32 %v14897_v38, %v15030_v22  ;;  %v6582_v9 = vmax.f32 %v6159_v41, 0.0 }
 0xc18   : > { %v6583_v45 = vmax.f32 %v6188_v39, 0.0  ;;  %v6500_v10 = vmax.f32 %v6088_v62, 0.0  ;;  %v6482_v41 = vmax.f32 %v6028_v52, 0.0 }
 0xc19   : > { %16152 = vst [vmem:[#allocation65_spill] sm:$0xff] %v15148_v8  ;;  %v6501_v8 = vmax.f32 %v6117_v42, 0.0  ;;  %v6484_v13 = vmax.f32 %v6086_v58, 0.0 }
 0xc1a   : > { %16153 = vst [vmem:[#allocation36_spill] sm:$0xff] %v15150_v54  ;;  %v6216_v4 = vpop.f32.mrf.mxu2  ;;  %v6245_v14 = vpop.f32.mrf.mxu3  ;;  %v6499_v54 = vmax.f32 %v6059_v63, 0.0 }
 0xc1b   : > { %v6160_v15 = vpop.f32.mrf.mxu0  ;;  %v6189_v28 = vpop.f32.mrf.mxu1  ;;  %v6217_v55 = vadd.f32 %v6216_v4, %v15067_v33  ;;  %v6246_v39 = vadd.f32 %v6245_v14, %v15070_v60  ;;  %v6612_v14 = vpack.c.bf16 %v6500_v10, %v6484_v13 }
 0xc1c   : > { %v6161_v27 = vadd.f32 %v6160_v15, %v15044_v30  ;;  %v6190_v59 = vadd.f32 %v6189_v28, %v15047_v24  ;;  %v10262_v30 = vld [vmem:[%s11727_s25 + $0x128] sm:$0xff]  ;;  %v10280_v15 = vld [vmem:[%s11727_s25 + $0x1b8] sm:$0xff]  ;;  %v6498_v28 = vmax.f32 %v6030_v1, 0.0  ;;  %v6485_v1 = vmax.f32 %v6115_v50, 0.0 }
 0xc1d   : > { %v10272_v24 = vld [vmem:[%s11727_s25 + $0x178] sm:$0xff]  ;;  %7820 = vmatpush.bf16.msra.mxu0 %v10262_v30  ;;  %7876 = vmatpush.bf16.msra.mxu2 %v10280_v15  ;;  %v6584_v58 = vmax.f32 %v6217_v55, 0.0  ;;  %v6585_v50 = vmax.f32 %v6246_v39, 0.0 }
 0xc1e   : > { %v6598_v47 = vmax.f32 %v6161_v27, 0.0  ;;  %v6599_v57 = vmax.f32 %v6190_v59, 0.0  ;;  %v15182_v27 = vld [vmem:[%s11721_s20 + $0x8] sm:$0xff]  ;;  %7847 = vmatpush.bf16.msra.mxu1 %v10272_v24  ;;  %v6483_v59 = vmax.f32 %v6057_v49, 0.0  ;;  %v6610_v42 = vpack.c.bf16 %v6498_v28, %v6482_v41 }
 0xc1f   : > { %v15187_v49 = vperm.slane %v15182_v27, 0  ;;  %v15190_v24 = vperm.slane %v15182_v27, 1  ;;  %v10288_v28 = vld [vmem:[%s11727_s25 + $0x1f8] sm:$0xff] }
 0xc20   : > { %v15175_v19 = vpack.c.bf16 %v6598_v47, %v6582_v9  ;;  %v15177_v38 = vpack.c.bf16 %v6599_v57, %v6583_v45  ;;  %v6611_v4 = vpack.c.bf16 %v6499_v54, %v6483_v59  ;;  %v6613_v57 = vpack.c.bf16 %v6501_v8, %v6485_v1  ;;  %v10271_v54 = vld [vmem:[%s11727_s25 + $0x170] sm:$0xff]  ;;  %7905 = vmatpush.bf16.msrb.mxu3 %v10288_v28 }
 0xc21   : > { %v6033_v59 = vadd.f32 %v14931_v17, %v15014_v32  ;;  %v6062_v1 = vadd.f32 %v14933_v16, %v15020_v29  ;;  %v6122_v17 = vadd.f32 %v14974_v34, %v15033_v26 }
 0xc22   : > { %v6218_v63 = vpop.f32.mrf.mxu2  ;;  %v6247_v62 = vpop.f32.mrf.mxu3  ;;  %7848 = vmatpush.bf16.msra.mxu1 %v10271_v54 }
 0xc23   : > { %v6219_v9 = vadd.f32 %v6218_v63, %v15067_v33  ;;  %v6248_v45 = vadd.f32 %v6247_v62, %v15070_v60  ;;  %v6259_v52 = vpop.f32.mrf.mxu0  ;;  %v6288_v47 = vpop.f32.mrf.mxu1  ;;  %v10261_v33 = vld [vmem:[%s11727_s25 + $0x120] sm:$0xff]  ;;  %v10279_v60 = vld [vmem:[%s11727_s25 + $0x1b0] sm:$0xff]  ;;  %v6035_v63 = vadd.f32 %v14957_v61, %v15014_v32  ;;  %v6064_v62 = vadd.f32 %v14959_v6, %v15020_v29 }
 0xc24   : > { %7821 = vmatpush.bf16.msra.mxu0 %v10261_v33  ;;  %7877 = vmatpush.bf16.msra.mxu2 %v10279_v60  ;;  %v6260_v10 = vadd.f32 %v6259_v52, %v15187_v49  ;;  %v6289_v41 = vadd.f32 %v6288_v47, %v15190_v24  ;;  %v6093_v52 = vadd.f32 %v14972_v51, %v15030_v22  ;;  %v6533_v28 = vmax.f32 %v6122_v17, 0.0 }
 0xc25   : > { %v6600_v30 = vmax.f32 %v6219_v9, 0.0  ;;  %v6601_v15 = vmax.f32 %v6248_v45, 0.0  ;;  %v10287_v45 = vld [vmem:[%s11727_s25 + $0x1f0] sm:$0xff]  ;;  %v6091_v6 = vadd.f32 %v14941_v5, %v15030_v22  ;;  %v6120_v51 = vadd.f32 %v14943_v3, %v15033_v26  ;;  %v10286_v5 = vld [vmem:[%s11727_s25 + $0x1e8] sm:$0xff] }
 0xc26   : > { %7710 = vmatmul.bf16.vlgmr.msrb.gmra.mxu0 %v6610_v42  ;;  %7739 = vmatmul.bf16.vlgmr.msrb.gmra.mxu1 %v6611_v4  ;;  %v6490_v47 = vmax.f32 %v6260_v10, 0.0  ;;  %v15220_v4 = vperm.slane %v15182_v27, 2  ;;  %v6491_v34 = vmax.f32 %v6289_v41, 0.0  ;;  %v6530_v33 = vmax.f32 %v6035_v63, 0.0 }
 0xc27   : > { %7768 = vmatmul.bf16.vlgmr.msrb.gmra.mxu2 %v6612_v14  ;;  %7797 = vmatmul.bf16.vlgmr.msra.gmra.mxu3 %v6613_v57  ;;  %v15196_v13 = vpack.c.bf16 %v6600_v30, %v6584_v58  ;;  %v15198_v8 = vpack.c.bf16 %v6601_v15, %v6585_v50  ;;  %v15223_v14 = vperm.slane %v15182_v27, 3  ;;  %v10260_v50 = vld [vmem:[%s11727_s25 + $0x118] sm:$0xff]  ;;  %v10278_v30 = vld [vmem:[%s11727_s25 + $0x1a8] sm:$0xff]  ;;  %v6531_v60 = vmax.f32 %v6064_v62, 0.0 }
 0xc28   : > { %7906 = vmatpush.bf16.msrb.mxu3 %v10287_v45  ;;  %v10270_v15 = vld [vmem:[%s11727_s25 + $0x168] sm:$0xff]  ;;  %v6532_v54 = vmax.f32 %v6093_v52, 0.0  ;;  %7822 = vmatpush.bf16.msra.mxu0 %v10260_v50  ;;  %v6515_v63 = vmax.f32 %v6062_v1, 0.0  ;;  %v6516_v62 = vmax.f32 %v6091_v6, 0.0  ;;  %v6517_v45 = vmax.f32 %v6120_v51, 0.0  ;;  %v10285_v1 = vld [vmem:[%s11727_s25 + $0x1e0] sm:$0xff] }
 0xc29   : > { %7878 = vmatpush.bf16.msra.mxu2 %v10278_v30  ;;  %7849 = vmatpush.bf16.msra.mxu1 %v10270_v15 }
 0xc2a   : > { %v6317_v55 = vpop.f32.mrf.mxu2  ;;  %v6346_v39 = vpop.f32.mrf.mxu3  ;;  %v6628_v50 = vpack.c.bf16 %v6532_v54, %v6516_v62  ;;  %v10284_v54 = vld [vmem:[%s11727_s25 + $0x1d8] sm:$0xff]  ;;  %v6069_v62 = vadd.f32 %v15001_v56, %v15020_v29  ;;  %v6038_v56 = vadd.f32 %v14978_v18, %v15014_v32 }
 0xc2b   : > { %v6261_v42 = vpop.f32.mrf.mxu0  ;;  %v6290_v9 = vpop.f32.mrf.mxu1  ;;  %v6318_v3 = vadd.f32 %v6317_v55, %v15220_v4  ;;  %v6347_v41 = vadd.f32 %v6346_v39, %v15223_v14  ;;  %v10277_v55 = vld [vmem:[%s11727_s25 + $0x1a0] sm:$0xff]  ;;  %v6627_v39 = vpack.c.bf16 %v6531_v60, %v6515_v63  ;;  %v10276_v60 = vld [vmem:[%s11727_s25 + $0x198] sm:$0xff]  ;;  %v6040_v63 = vadd.f32 %v14999_v31, %v15014_v32 }
 0xc2c   : > { %v6262_v16 = vadd.f32 %v6261_v42, %v15187_v49  ;;  %v6291_v61 = vadd.f32 %v6290_v9, %v15190_v24  ;;  %7907 = vmatpush.bf16.msrb.mxu3 %v10286_v5  ;;  %v6514_v9 = vmax.f32 %v6033_v59, 0.0  ;;  %v6629_v59 = vpack.c.bf16 %v6533_v28, %v6517_v45  ;;  %v10259_v5 = vld [vmem:[%s11727_s25 + $0x110] sm:$0xff] }
 0xc2d   : > { %v6492_v6 = vmax.f32 %v6318_v3, 0.0  ;;  %v6493_v51 = vmax.f32 %v6347_v41, 0.0  ;;  %7879 = vmatpush.bf16.msra.mxu2 %v10277_v55  ;;  %7823 = vmatpush.bf16.msra.mxu0 %v10259_v5  ;;  %v6127_v55 = vadd.f32 %v15006_v46, %v15033_v26  ;;  %v6125_v46 = vadd.f32 %v14997_v23, %v15033_v26 }
 0xc2e   : > { %v6506_v57 = vmax.f32 %v6262_v16, 0.0  ;;  %v6507_v58 = vmax.f32 %v6291_v61, 0.0  ;;  %v6562_v18 = vmax.f32 %v6040_v63, 0.0  ;;  %v6563_v32 = vmax.f32 %v6069_v62, 0.0 }
 0xc30   : > { %v15231_v10 = vpack.c.bf16 %v6506_v57, %v6490_v47  ;;  %v15233_v42 = vpack.c.bf16 %v6507_v58, %v6491_v34  ;;  %v10269_v57 = vld [vmem:[%s11727_s25 + $0x160] sm:$0xff]  ;;  %v6626_v58 = vpack.c.bf16 %v6530_v33, %v6514_v9  ;;  %v10268_v33 = vld [vmem:[%s11727_s25 + $0x158] sm:$0xff]  ;;  %7908 = vmatpush.bf16.msrb.mxu3 %v10285_v1 }
 0xc31   : > { %7850 = vmatpush.bf16.msra.mxu1 %v10269_v57  ;;  %7880 = vmatpush.bf16.msra.mxu2 %v10276_v60  ;;  %v10275_v57 = vld [vmem:[%s11727_s25 + $0x190] sm:$0xff] }
 0xc32   : > { %v6319_v52 = vpop.f32.mrf.mxu2  ;;  %v6348_v17 = vpop.f32.mrf.mxu3 }
 0xc33   : > { %v6320_v16 = vadd.f32 %v6319_v52, %v15220_v4  ;;  %v6349_v61 = vadd.f32 %v6348_v17, %v15223_v14  ;;  %v6264_v47 = vpop.f32.mrf.mxu0  ;;  %v6293_v34 = vpop.f32.mrf.mxu1 }
 0xc34   : > { %v6265_v28 = vadd.f32 %v6264_v47, %v15187_v49  ;;  %v6294_v3 = vadd.f32 %v6293_v34, %v15190_v24  ;;  %v6098_v47 = vadd.f32 %v15004_v11, %v15030_v22  ;;  %7909 = vmatpush.bf16.msrb.mxu3 %v10284_v54  ;;  %v6096_v11 = vadd.f32 %v14995_v20, %v15030_v22  ;;  %v10282_v20 = vld [vmem:[%s11727_s25 + $0x1c8] sm:$0xff] }
 0xc35   : > { %v6508_v30 = vmax.f32 %v6320_v16, 0.0  ;;  %v6509_v15 = vmax.f32 %v6349_v61, 0.0  ;;  %7851 = vmatpush.bf16.msra.mxu1 %v10268_v33  ;;  %v10267_v61 = vld [vmem:[%s11727_s25 + $0x150] sm:$0xff]  ;;  %7881 = vmatpush.bf16.msra.mxu2 %v10275_v57  ;;  %v6546_v33 = vmax.f32 %v6038_v56, 0.0  ;;  %v10257_v57 = vld [vmem:[%s11727_s25 + $0x100] sm:$0xff] }
 0xc36   : > { %7715 = vmatmul.bf16.gmra.mxu0 %v6626_v58  ;;  %7744 = vmatmul.bf16.gmra.mxu1 %v6627_v39  ;;  %v10283_v58 = vld [vmem:[%s11727_s25 + $0x1d0] sm:$0xff]  ;;  %v6067_v39 = vadd.f32 %v14980_v25, %v15020_v29  ;;  %v6564_v5 = vmax.f32 %v6098_v47, 0.0  ;;  %v6565_v25 = vmax.f32 %v6127_v55, 0.0  ;;  %v6548_v54 = vmax.f32 %v6096_v11, 0.0 }
 0xc37   : > { %v15243_v52 = vpack.c.bf16 %v6508_v30, %v6492_v6  ;;  %v15245_v17 = vpack.c.bf16 %v6509_v15, %v6493_v51  ;;  %7773 = vmatmul.bf16.gmra.mxu2 %v6628_v50  ;;  %7802 = vmatmul.bf16.gmra.mxu3 %v6629_v59  ;;  %v6522_v50 = vmax.f32 %v6265_v28, 0.0  ;;  %v6523_v59 = vmax.f32 %v6294_v3, 0.0  ;;  %v10258_v51 = vld [vmem:[%s11727_s25 + $0x108] sm:$0xff] }
 0xc38   : > { %v10266_v30 = vld [vmem:[%s11727_s25 + $0x148] sm:$0xff]  ;;  %7824 = vmatpush.bf16.msra.mxu0 %v10258_v51  ;;  %7910 = vmatpush.bf16.msrb.mxu3 %v10283_v58  ;;  %v6547_v60 = vmax.f32 %v6067_v39, 0.0  ;;  %v6549_v28 = vmax.f32 %v6125_v46, 0.0  ;;  %v6642_v47 = vpack.c.bf16 %v6562_v18, %v6546_v33  ;;  %v6644_v55 = vpack.c.bf16 %v6564_v5, %v6548_v54  ;;  %v10281_v58 = vld [vmem:[%s11727_s25 + $0x1c0] sm:$0xff]  ;;  %v10296_v33 = vld [vmem:[%s11727_s25 + $0x238] sm:$0xff] }
 0xc39   : > { %7852 = vmatpush.bf16.msra.mxu1 %v10267_v61  ;;  %v10274_v15 = vld [vmem:[%s11727_s25 + $0x188] sm:$0xff] }
 0xc3a   : > { %v6322_v41 = vpop.f32.mrf.mxu2  ;;  %v6351_v9 = vpop.f32.mrf.mxu3  ;;  %7882 = vmatpush.bf16.msra.mxu2 %v10274_v15 }
 0xc3b   : > { %v6266_v45 = vpop.f32.mrf.mxu0  ;;  %v6295_v16 = vpop.f32.mrf.mxu1  ;;  %v6323_v23 = vadd.f32 %v6322_v41, %v15220_v4  ;;  %v6352_v26 = vadd.f32 %v6351_v9, %v15223_v14  ;;  %v10265_v41 = vld [vmem:[%s11727_s25 + $0x140] sm:$0xff]  ;;  %v6643_v9 = vpack.c.bf16 %v6563_v32, %v6547_v60 }
 0xc3c   : > { %v6267_v34 = vadd.f32 %v6266_v45, %v15187_v49  ;;  %v6296_v31 = vadd.f32 %v6295_v16, %v15190_v24  ;;  %7911 = vmatpush.bf16.msrb.mxu3 %v10282_v20  ;;  %7825 = vmatpush.bf16.msra.mxu0 %v10257_v57 }
 0xc3d   : > { %7853 = vmatpush.bf16.msra.mxu1 %v10266_v30  ;;  %v6524_v56 = vmax.f32 %v6323_v23, 0.0  ;;  %v6525_v39 = vmax.f32 %v6352_v26, 0.0 }
 0xc3e   : > { %v6538_v1 = vmax.f32 %v6267_v34, 0.0  ;;  %v6539_v6 = vmax.f32 %v6296_v31, 0.0  ;;  %v6645_v34 = vpack.c.bf16 %v6565_v25, %v6549_v28  ;;  %v10273_v31 = vld [vmem:[%s11727_s25 + $0x180] sm:$0xff] }
 0xc3f   : > { %7883 = vmatpush.bf16.msra.mxu2 %v10273_v31 }
 0xc40   : > { %v15277_v29 = vpack.c.bf16 %v6538_v1, %v6522_v50  ;;  %v15279_v22 = vpack.c.bf16 %v6539_v6, %v6523_v59  ;;  %7912 = vmatpush.bf16.msrb.mxu3 %v10281_v58  ;;  %7934 = vmatpush.bf16.msrb.mxu0 %v10296_v33 }
 0xc41   : > { %7854 = vmatpush.bf16.msra.mxu1 %v10265_v41 }
 0xc42   : > { %v6324_v3 = vpop.f32.mrf.mxu2  ;;  %v6353_v63 = vpop.f32.mrf.mxu3 }
 0xc43   : > { %v6325_v62 = vadd.f32 %v6324_v3, %v15220_v4  ;;  %v6354_v45 = vadd.f32 %v6353_v63, %v15223_v14  ;;  %v6269_v16 = vpop.f32.mrf.mxu0  ;;  %v6298_v61 = vpop.f32.mrf.mxu1 }
 0xc44   : > { %v6270_v1 = vadd.f32 %v6269_v16, %v15187_v49  ;;  %v6299_v6 = vadd.f32 %v6298_v61, %v15190_v24 }
 0xc45   : > { %v6540_v11 = vmax.f32 %v6325_v62, 0.0  ;;  %v6541_v50 = vmax.f32 %v6354_v45, 0.0 }
 0xc46   : > { %7720 = vmatmul.bf16.gmra.mxu0 %v6642_v47  ;;  %7749 = vmatmul.bf16.gmra.mxu1 %v6643_v9  ;;  %v6554_v25 = vmax.f32 %v6270_v1, 0.0  ;;  %v6555_v20 = vmax.f32 %v6299_v6, 0.0 }
 0xc47   : > { %7778 = vmatmul.bf16.gmra.mxu2 %v6644_v55  ;;  %7807 = vmatmul.bf16.gmra.mxu3 %v6645_v34  ;;  %v15289_v46 = vpack.c.bf16 %v6540_v11, %v6524_v56  ;;  %v15291_v59 = vpack.c.bf16 %v6541_v50, %v6525_v39  ;;  %v10295_v34 = vld [vmem:[%s11727_s25 + $0x230] sm:$0xff] }
 0xc48   : > { %7935 = vmatpush.bf16.msrb.mxu0 %v10295_v34  ;;  %v10320_v34 = vld [vmem:[%s11727_s25 + $0x2f8] sm:$0xff] }
 0xc49   : > { %8021 = vmatpush.bf16.msra.mxu3 %v10320_v34  ;;  %v10291_v34 = vld [vmem:[%s11727_s25 + $0x210] sm:$0xff] }
 0xc4a   : > { %v6327_v51 = vpop.f32.mrf.mxu2  ;;  %v6356_v30 = vpop.f32.mrf.mxu3 }
 0xc4b   : > { %v6271_v15 = vpop.f32.mrf.mxu0  ;;  %v6300_v18 = vpop.f32.mrf.mxu1  ;;  %v6328_v28 = vadd.f32 %v6327_v51, %v15220_v4  ;;  %v6357_v3 = vadd.f32 %v6356_v30, %v15223_v14 }
 0xc4c   : > { %v6272_v32 = vadd.f32 %v6271_v15, %v15187_v49  ;;  %v6301_v5 = vadd.f32 %v6300_v18, %v15190_v24  ;;  %v10294_v15 = vld [vmem:[%s11727_s25 + $0x228] sm:$0xff]  ;;  %v10312_v18 = vld [vmem:[%s11727_s25 + $0x2b8] sm:$0xff] }
 0xc4d   : > { %v6556_v41 = vmax.f32 %v6328_v28, 0.0  ;;  %v6557_v47 = vmax.f32 %v6357_v3, 0.0  ;;  %7936 = vmatpush.bf16.msrb.mxu0 %v10294_v15  ;;  %7992 = vmatpush.bf16.msrb.mxu2 %v10312_v18  ;;  %v10310_v15 = vld [vmem:[%s11727_s25 + $0x2a8] sm:$0xff] }
 0xc4e   : > { %v6570_v23 = vmax.f32 %v6272_v32, 0.0  ;;  %v6571_v26 = vmax.f32 %v6301_v5, 0.0  ;;  %v10304_v32 = vld [vmem:[%s11727_s25 + $0x278] sm:$0xff]  ;;  %v10302_v18 = vld [vmem:[%s11727_s25 + $0x268] sm:$0xff] }
 0xc4f   : > { %7963 = vmatpush.bf16.msrb.mxu1 %v10304_v32  ;;  %v10318_v32 = vld [vmem:[%s11727_s25 + $0x2e8] sm:$0xff] }
 0xc50   : > { %v15298_v60 = vpack.c.bf16 %v6570_v23, %v6554_v25  ;;  %v15300_v54 = vpack.c.bf16 %v6571_v26, %v6555_v20 }
 0xc52   : > { %v6329_v63 = vpop.f32.mrf.mxu2  ;;  %v6358_v62 = vpop.f32.mrf.mxu3 }
 0xc53   : > { %v6330_v45 = vadd.f32 %v6329_v63, %v15220_v4  ;;  %v6359_v16 = vadd.f32 %v6358_v62, %v15223_v14  ;;  %v6274_v61 = vpop.f32.mrf.mxu0  ;;  %v6303_v57 = vpop.f32.mrf.mxu1  ;;  %v15331_v63 = vperm.slane %v15182_v27, 4 }
 0xc54   : > { %v6275_v56 = vadd.f32 %v6274_v61, %v15187_v49  ;;  %v6304_v39 = vadd.f32 %v6303_v57, %v15190_v24  ;;  %v15334_v57 = vperm.slane %v15182_v27, 5 }
 0xc55   : > { %v6572_v9 = vmax.f32 %v6330_v45, 0.0  ;;  %v6573_v55 = vmax.f32 %v6359_v16, 0.0 }
 0xc56   : > { %7725 = vmatmul.bf16.gmra.mxu0 %v15035_v43  ;;  %7754 = vmatmul.bf16.gmra.mxu1 %v15037_v35  ;;  %v6586_v1 = vmax.f32 %v6275_v56, 0.0  ;;  %v6587_v6 = vmax.f32 %v6304_v39, 0.0 }
 0xc57   : > { %7783 = vmatmul.bf16.gmra.mxu2 %v15057_v36  ;;  %7812 = vmatmul.bf16.gmra.mxu3 %v15059_v2  ;;  %v15311_v31 = vpack.c.bf16 %v6572_v9, %v6556_v41  ;;  %v15313_v58 = vpack.c.bf16 %v6573_v55, %v6557_v47  ;;  %v10311_v41 = vld [vmem:[%s11727_s25 + $0x2b0] sm:$0xff] }
 0xc58   : > { %v10303_v47 = vld [vmem:[%s11727_s25 + $0x270] sm:$0xff]  ;;  %7993 = vmatpush.bf16.msrb.mxu2 %v10311_v41 }
 0xc59   : > { %7964 = vmatpush.bf16.msrb.mxu1 %v10303_v47 }
 0xc5a   : > { %v6332_v43 = vpop.f32.mrf.mxu2  ;;  %v6361_v11 = vpop.f32.mrf.mxu3 }
 0xc5b   : > { %v6276_v35 = vpop.f32.mrf.mxu0  ;;  %v6305_v50 = vpop.f32.mrf.mxu1  ;;  %v6333_v20 = vadd.f32 %v6332_v43, %v15220_v4  ;;  %v6362_v23 = vadd.f32 %v6361_v11, %v15223_v14  ;;  %v10319_v11 = vld [vmem:[%s11727_s25 + $0x2f0] sm:$0xff] }
 0xc5c   : > { %v6277_v36 = vadd.f32 %v6276_v35, %v15187_v49  ;;  %v6306_v2 = vadd.f32 %v6305_v50, %v15190_v24  ;;  %8022 = vmatpush.bf16.msra.mxu3 %v10319_v11  ;;  %7994 = vmatpush.bf16.msrb.mxu2 %v10310_v15 }
 0xc5d   : > { %v6588_v62 = vmax.f32 %v6333_v20, 0.0  ;;  %v6589_v45 = vmax.f32 %v6362_v23, 0.0  ;;  %7965 = vmatpush.bf16.msrb.mxu1 %v10302_v18  ;;  %v10290_v18 = vld [vmem:[%s11727_s25 + $0x208] sm:$0xff] }
 0xc5e   : > { %v6602_v51 = vmax.f32 %v6277_v36, 0.0  ;;  %v6603_v30 = vmax.f32 %v6306_v2, 0.0  ;;  %v15358_v2 = vperm.slane %v15182_v27, 6 }
 0xc60   : > { %v15322_v5 = vpack.c.bf16 %v6602_v51, %v6586_v1  ;;  %v15324_v25 = vpack.c.bf16 %v6603_v30, %v6587_v6  ;;  %v10292_v30 = vld [vmem:[%s11727_s25 + $0x218] sm:$0xff]  ;;  %8023 = vmatpush.bf16.msra.mxu3 %v10318_v32  ;;  %v10298_v32 = vld [vmem:[%s11727_s25 + $0x248] sm:$0xff] }
 0xc62   : > { %v6334_v49 = vpop.f32.mrf.mxu2  ;;  %v6363_v24 = vpop.f32.mrf.mxu3 }
 0xc63   : > { %v6335_v26 = vadd.f32 %v6334_v49, %v15220_v4  ;;  %v6364_v33 = vadd.f32 %v6363_v24, %v15223_v14  ;;  %v6375_v28 = vpop.f32.mrf.mxu0  ;;  %v6404_v3 = vpop.f32.mrf.mxu1  ;;  %v15341_v4 = vperm.slane %v15182_v27, 7  ;;  %v10293_v14 = vld [vmem:[%s11727_s25 + $0x220] sm:$0xff] }
 0xc64   : > { %7937 = vmatpush.bf16.msrb.mxu0 %v10293_v14 }
 0xc65   : > { %v6604_v16 = vmax.f32 %v6335_v26, 0.0  ;;  %v6605_v61 = vmax.f32 %v6364_v33, 0.0 }
 0xc66   : > { %7826 = vmatmul.bf16.vlgmr.msra.gmra.mxu0 %v15076_v53  ;;  %7855 = vmatmul.bf16.vlgmr.msra.gmra.mxu1 %v15078_v48  ;;  %v6376_v53 = vadd.f32 %v6375_v28, %v15331_v63  ;;  %v6405_v48 = vadd.f32 %v6404_v3, %v15334_v57 }
 0xc67   : > { %7884 = vmatmul.bf16.vlgmr.msra.gmra.mxu2 %v15090_v7  ;;  %7913 = vmatmul.bf16.vlgmr.msrb.gmra.mxu3 %v15092_v12  ;;  %v15346_v9 = vpack.c.bf16 %v6604_v16, %v6588_v62  ;;  %v15348_v55 = vpack.c.bf16 %v6605_v61, %v6589_v45  ;;  %v10301_v62 = vld [vmem:[%s11727_s25 + $0x260] sm:$0xff] }
 0xc68   : > { %v6494_v36 = vmax.f32 %v6376_v53, 0.0  ;;  %v6495_v1 = vmax.f32 %v6405_v48, 0.0  ;;  %7938 = vmatpush.bf16.msrb.mxu0 %v10292_v30  ;;  %v10309_v45 = vld [vmem:[%s11727_s25 + $0x2a0] sm:$0xff]  ;;  %7966 = vmatpush.bf16.msrb.mxu1 %v10301_v62 }
 0xc69   : > { %v10317_v16 = vld [vmem:[%s11727_s25 + $0x2e0] sm:$0xff]  ;;  %7995 = vmatpush.bf16.msrb.mxu2 %v10309_v45 }
 0xc6a   : > { %v6433_v7 = vpop.f32.mrf.mxu2  ;;  %v6462_v12 = vpop.f32.mrf.mxu3  ;;  %8024 = vmatpush.bf16.msra.mxu3 %v10317_v16 }
 0xc6b   : > { %v6463_v56 = vadd.f32 %v6462_v12, %v15341_v4  ;;  %v6377_v39 = vpop.f32.mrf.mxu0  ;;  %v6406_v43 = vpop.f32.mrf.mxu1  ;;  %v6434_v27 = vadd.f32 %v6433_v7, %v15358_v2  ;;  %v10300_v7 = vld [vmem:[%s11727_s25 + $0x258] sm:$0xff] }
 0xc6c   : > { %v6378_v35 = vadd.f32 %v6377_v39, %v15331_v63  ;;  %v6407_v50 = vadd.f32 %v6406_v43, %v15334_v57  ;;  %v10308_v12 = vld [vmem:[%s11727_s25 + $0x298] sm:$0xff]  ;;  %7939 = vmatpush.bf16.msrb.mxu0 %v10291_v34  ;;  %7967 = vmatpush.bf16.msrb.mxu1 %v10300_v7  ;;  %v10305_v34 = vld [vmem:[%s11727_s25 + $0x280] sm:$0xff] }
 0xc6d   : > { %v6496_v61 = vmax.f32 %v6434_v27, 0.0  ;;  %v6497_v14 = vmax.f32 %v6463_v56, 0.0  ;;  %v10316_v56 = vld [vmem:[%s11727_s25 + $0x2d8] sm:$0xff]  ;;  %7996 = vmatpush.bf16.msrb.mxu2 %v10308_v12  ;;  %v10306_v27 = vld [vmem:[%s11727_s25 + $0x288] sm:$0xff]  ;;  %v10313_v7 = vld [vmem:[%s11727_s25 + $0x2c0] sm:$0xff] }
 0xc6e   : > { %v6510_v6 = vmax.f32 %v6378_v35, 0.0  ;;  %v6511_v51 = vmax.f32 %v6407_v50, 0.0  ;;  %v10307_v35 = vld [vmem:[%s11727_s25 + $0x290] sm:$0xff]  ;;  %8025 = vmatpush.bf16.msra.mxu3 %v10316_v56 }
 0xc70   : > { %v15364_v20 = vpack.c.bf16 %v6510_v6, %v6494_v36  ;;  %v15366_v23 = vpack.c.bf16 %v6511_v51, %v6495_v1  ;;  %v10315_v1 = vld [vmem:[%s11727_s25 + $0x2d0] sm:$0xff]  ;;  %7940 = vmatpush.bf16.msrb.mxu0 %v10290_v18 }
 0xc71   : > { %7997 = vmatpush.bf16.msrb.mxu2 %v10307_v35 }
 0xc72   : > { %v6435_v49 = vpop.f32.mrf.mxu2  ;;  %v6464_v24 = vpop.f32.mrf.mxu3  ;;  %8026 = vmatpush.bf16.msra.mxu3 %v10315_v1 }
 0xc73   : > { %v6436_v26 = vadd.f32 %v6435_v49, %v15358_v2  ;;  %v6465_v33 = vadd.f32 %v6464_v24, %v15341_v4  ;;  %v6380_v28 = vpop.f32.mrf.mxu0  ;;  %v6409_v3 = vpop.f32.mrf.mxu1  ;;  %v10314_v49 = vld [vmem:[%s11727_s25 + $0x2c8] sm:$0xff] }
 0xc75   : > { %v6512_v41 = vmax.f32 %v6436_v26, 0.0  ;;  %v6513_v47 = vmax.f32 %v6465_v33, 0.0  ;;  %7998 = vmatpush.bf16.msrb.mxu2 %v10306_v27 }
 0xc76   : > { %7831 = vmatmul.bf16.gmra.mxu0 %v15110_v37  ;;  %7860 = vmatmul.bf16.gmra.mxu1 %v15112_v0  ;;  %v6381_v37 = vadd.f32 %v6380_v28, %v15331_v63  ;;  %v6410_v0 = vadd.f32 %v6409_v3, %v15334_v57 }
 0xc77   : > { %v15377_v53 = vpack.c.bf16 %v6512_v41, %v6496_v61  ;;  %v15379_v48 = vpack.c.bf16 %v6513_v47, %v6497_v14  ;;  %7889 = vmatmul.bf16.gmra.mxu2 %v15126_v21  ;;  %7918 = vmatmul.bf16.gmra.mxu3 %v15128_v40  ;;  %v10299_v40 = vld [vmem:[%s11727_s25 + $0x250] sm:$0xff]  ;;  %v10289_v41 = vld [vmem:[%s11727_s25 + $0x200] sm:$0xff] }
 0xc78   : > { %v6526_v6 = vmax.f32 %v6381_v37, 0.0  ;;  %7968 = vmatpush.bf16.msrb.mxu1 %v10299_v40  ;;  %v6527_v51 = vmax.f32 %v6410_v0, 0.0  ;;  %v10297_v47 = vld [vmem:[%s11727_s25 + $0x240] sm:$0xff]  ;;  %8027 = vmatpush.bf16.msra.mxu3 %v10314_v49  ;;  %v10328_v49 = vld [vmem:[%s11727_s25 + $0x338] sm:$0xff] }
 0xc79   : > { %7941 = vmatpush.bf16.msrb.mxu0 %v10289_v41  ;;  %7999 = vmatpush.bf16.msrb.mxu2 %v10305_v34 }
 0xc7a   : > { %v6438_v39 = vpop.f32.mrf.mxu2  ;;  %v6467_v43 = vpop.f32.mrf.mxu3 }
 0xc7b   : > { %v6382_v21 = vpop.f32.mrf.mxu0  ;;  %v6411_v11 = vpop.f32.mrf.mxu1  ;;  %v6439_v33 = vadd.f32 %v6438_v39, %v15358_v2  ;;  %v6468_v28 = vadd.f32 %v6467_v43, %v15341_v4  ;;  %v16154_v39 = vld [vmem:[#allocation62_spill] sm:$0xff] }
 0xc7c   : > { %v6383_v50 = vadd.f32 %v6382_v21, %v15331_v63  ;;  %v6412_v36 = vadd.f32 %v6411_v11, %v15334_v57  ;;  %7969 = vmatpush.bf16.msrb.mxu1 %v10298_v32  ;;  %v16155_v21 = vld [vmem:[#allocation65_spill] sm:$0xff]  ;;  %v16156_v11 = vld [vmem:[#allocation36_spill] sm:$0xff]  ;;  %8028 = vmatpush.bf16.msra.mxu3 %v10313_v7 }
 0xc7d   : > { %v6528_v12 = vmax.f32 %v6439_v33, 0.0  ;;  %v6529_v56 = vmax.f32 %v6468_v28, 0.0  ;;  %8050 = vmatpush.bf16.msra.mxu0 %v10328_v49 }
 0xc7e   : > { %v6542_v30 = vmax.f32 %v6383_v50, 0.0  ;;  %v6543_v15 = vmax.f32 %v6412_v36, 0.0 }
 0xc80   : > { %v15397_v24 = vpack.c.bf16 %v6542_v30, %v6526_v6  ;;  %v15399_v26 = vpack.c.bf16 %v6543_v15, %v6527_v51  ;;  %7970 = vmatpush.bf16.msrb.mxu1 %v10297_v47 }
 0xc82   : > { %v6440_v3 = vpop.f32.mrf.mxu2  ;;  %v6469_v62 = vpop.f32.mrf.mxu3 }
 0xc83   : > { %v6441_v45 = vadd.f32 %v6440_v3, %v15358_v2  ;;  %v6470_v16 = vadd.f32 %v6469_v62, %v15341_v4  ;;  %v6385_v61 = vpop.f32.mrf.mxu0  ;;  %v6414_v14 = vpop.f32.mrf.mxu1 }
 0xc84   : > { %v6386_v35 = vadd.f32 %v6385_v61, %v15331_v63  ;;  %v6415_v50 = vadd.f32 %v6414_v14, %v15334_v57 }
 0xc85   : > { %v6544_v37 = vmax.f32 %v6441_v45, 0.0  ;;  %v6545_v0 = vmax.f32 %v6470_v16, 0.0 }
 0xc86   : > { %7836 = vmatmul.bf16.gmra.mxu0 %v15135_v44  ;;  %7865 = vmatmul.bf16.gmra.mxu1 %v16154_v39  ;;  %v6558_v15 = vmax.f32 %v6386_v35, 0.0  ;;  %v6559_v18 = vmax.f32 %v6415_v50, 0.0 }
 0xc87   : > { %v15411_v43 = vpack.c.bf16 %v6545_v0, %v6529_v56  ;;  %7894 = vmatmul.bf16.gmra.mxu2 %v16155_v21  ;;  %7923 = vmatmul.bf16.gmra.mxu3 %v16156_v11  ;;  %v15415_v40 = vpack.c.bf16 %v6544_v37, %v6528_v12  ;;  %v10327_v37 = vld [vmem:[%s11727_s25 + $0x330] sm:$0xff] }
 0xc88   : > { %8051 = vmatpush.bf16.msra.mxu0 %v10327_v37  ;;  %v10343_v37 = vld [vmem:[%s11727_s25 + $0x3b0] sm:$0xff] }
 0xc8a   : > { %v6443_v36 = vpop.f32.mrf.mxu2  ;;  %v6472_v1 = vpop.f32.mrf.mxu3 }
 0xc8b   : > { %v6387_v44 = vpop.f32.mrf.mxu0  ;;  %v6416_v6 = vpop.f32.mrf.mxu1  ;;  %v6444_v3 = vadd.f32 %v6443_v36, %v15358_v2  ;;  %v6473_v62 = vadd.f32 %v6472_v1, %v15341_v4 }
 0xc8c   : > { %v6388_v51 = vadd.f32 %v6387_v44, %v15331_v63  ;;  %v6417_v30 = vadd.f32 %v6416_v6, %v15334_v57 }
 0xc8d   : > { %v6560_v34 = vmax.f32 %v6444_v3, 0.0  ;;  %v6561_v7 = vmax.f32 %v6473_v62, 0.0 }
 0xc8e   : > { %v6574_v32 = vmax.f32 %v6388_v51, 0.0  ;;  %v6575_v27 = vmax.f32 %v6417_v30, 0.0  ;;  %v10326_v51 = vld [vmem:[%s11727_s25 + $0x328] sm:$0xff]  ;;  %v10344_v30 = vld [vmem:[%s11727_s25 + $0x3b8] sm:$0xff] }
 0xc8f   : > { %8052 = vmatpush.bf16.msra.mxu0 %v10326_v51  ;;  %8108 = vmatpush.bf16.msra.mxu2 %v10344_v30 }
 0xc90   : > { %v15422_v33 = vpack.c.bf16 %v6574_v32, %v6558_v15  ;;  %v15424_v28 = vpack.c.bf16 %v6575_v27, %v6559_v18  ;;  %v10336_v15 = vld [vmem:[%s11727_s25 + $0x378] sm:$0xff] }
 0xc91   : > { %v15451_v18 = vld [vmem:[%s890_s11] ss:$0 sm:$0xff]  ;;  %8079 = vmatpush.bf16.msra.mxu1 %v10336_v15 }
 0xc92   : > { %v6445_v45 = vpop.f32.mrf.mxu2  ;;  %v6474_v16 = vpop.f32.mrf.mxu3 }
 0xc93   : > { %v6446_v61 = vadd.f32 %v6445_v45, %v15358_v2  ;;  %v6475_v14 = vadd.f32 %v6474_v16, %v15341_v4  ;;  %v6390_v41 = vpop.f32.mrf.mxu0  ;;  %v6419_v47 = vpop.f32.mrf.mxu1  ;;  %8109 = vmatpush.bf16.msra.mxu2 %v10343_v37  ;;  %v15515_v37 = vld [vmem:[%s11727_s25 + $0x3d0] sm:$0xff] }
 0xc94   : > { %v6391_v21 = vadd.f32 %v6390_v41, %v15331_v63 }
 0xc95   : > { %v6576_v12 = vmax.f32 %v6446_v61, 0.0  ;;  %v6577_v56 = vmax.f32 %v6475_v14, 0.0 }
 0xc96   : > { %7841 = vmatmul.bf16.gmra.mxu0 %v15175_v19  ;;  %7870 = vmatmul.bf16.gmra.mxu1 %v15177_v38  ;;  %v6420_v19 = vadd.f32 %v6419_v47, %v15334_v57  ;;  %v6590_v36 = vmax.f32 %v6391_v21, 0.0 }
 0xc97   : > { %7899 = vmatmul.bf16.gmra.mxu2 %v15196_v13  ;;  %7928 = vmatmul.bf16.gmra.mxu3 %v15198_v8  ;;  %v15435_v0 = vpack.c.bf16 %v6577_v56, %v6561_v7  ;;  %v15437_v39 = vpack.c.bf16 %v6576_v12, %v6560_v34  ;;  %v10325_v56 = vld [vmem:[%s11727_s25 + $0x320] sm:$0xff] }
 0xc98   : > { %v6591_v1 = vmax.f32 %v6420_v19, 0.0  ;;  %8053 = vmatpush.bf16.msra.mxu0 %v10325_v56 }
 0xc9a   : > { %v6448_v11 = vpop.f32.mrf.mxu2  ;;  %v6477_v38 = vpop.f32.mrf.mxu3 }
 0xc9b   : > { %v6392_v35 = vpop.f32.mrf.mxu0  ;;  %v6421_v50 = vpop.f32.mrf.mxu1  ;;  %v6478_v27 = vadd.f32 %v6477_v38, %v15341_v4  ;;  %v15478_v38 = vld [vmem:[%s11727_s25 + $0x3f0] sm:$0xff] }
 0xc9c   : > { %v6393_v13 = vadd.f32 %v6392_v35, %v15331_v63  ;;  %v6422_v8 = vadd.f32 %v6421_v50, %v15334_v57  ;;  %v6449_v57 = vadd.f32 %v6448_v11, %v15358_v2 }
 0xc9d   : > { %v6593_v47 = vmax.f32 %v6478_v27, 0.0  ;;  %v10333_v27 = vld [vmem:[%s11727_s25 + $0x360] sm:$0xff] }
 0xc9e   : > { %v6606_v44 = vmax.f32 %v6393_v13, 0.0  ;;  %v6607_v6 = vmax.f32 %v6422_v8, 0.0  ;;  %v6592_v41 = vmax.f32 %v6449_v57, 0.0  ;;  %v10324_v8 = vld [vmem:[%s11727_s25 + $0x318] sm:$0xff] }
 0xc9f   : > { %8054 = vmatpush.bf16.msra.mxu0 %v10324_v8 }
 0xca0   : > { %v15453_v32 = vpack.c.bf16 %v6606_v44, %v6590_v36  ;;  %v15455_v63 = vpack.c.bf16 %v6607_v6, %v6591_v1  ;;  %v10342_v36 = vld [vmem:[%s11727_s25 + $0x3a8] sm:$0xff] }
 0xca1   : > { %v10334_v1 = vld [vmem:[%s11727_s25 + $0x368] sm:$0xff]  ;;  %8110 = vmatpush.bf16.msra.mxu2 %v10342_v36 }
 0xca2   : > { %v6450_v49 = vpop.f32.mrf.mxu2  ;;  %v6479_v3 = vpop.f32.mrf.mxu3  ;;  %v15488_v44 = vld [vmem:[%s11727_s25 + $0x3e8] sm:$0xff] }
 0xca3   : > { %v6451_v62 = vadd.f32 %v6450_v49, %v15358_v2  ;;  %v6480_v45 = vadd.f32 %v6479_v3, %v15341_v4  ;;  %v7711_v16 = vpop.f32.mrf.mxu0  ;;  %v7740_v61 = vpop.f32.mrf.mxu1  ;;  %v10335_v4 = vld [vmem:[%s11727_s25 + $0x370] sm:$0xff]  ;;  %v15470_v2 = vld [vmem:[%s11727_s25 + $0x3f8] sm:$0xff]  ;;  %v10341_v49 = vld [vmem:[%s11727_s25 + $0x3a0] sm:$0xff] }
 0xca4   : > { %v7712_v14 = vadd.f32 %v15451_v18, %v7711_v16  ;;  %8080 = vmatpush.bf16.msra.mxu1 %v10335_v4  ;;  %10408 = vmatpush.bf16.msrb.mxu3 %v15470_v2 }
 0xca5   : > { %v6608_v34 = vmax.f32 %v6451_v62, 0.0  ;;  %v6609_v7 = vmax.f32 %v6480_v45, 0.0  ;;  %v15495_v62 = vld [vmem:[%s11727_s25 + $0x3e0] sm:$0xff]  ;;  %8111 = vmatpush.bf16.msra.mxu2 %v10341_v49 }
 0xca6   : > { %v7741_v12 = vadd.f32 %v7740_v61, %v7712_v14  ;;  %7942 = vmatmul.bf16.vlgmr.msrb.gmra.mxu0 %v15231_v10  ;;  %7971 = vmatmul.bf16.vlgmr.msrb.gmra.mxu1 %v15233_v42  ;;  %v10323_v61 = vld [vmem:[%s11727_s25 + $0x310] sm:$0xff]  ;;  %v10332_v14 = vld [vmem:[%s11727_s25 + $0x358] sm:$0xff] }
 0xca7   : > { %8000 = vmatmul.bf16.vlgmr.msrb.gmra.mxu2 %v15243_v52  ;;  %8029 = vmatmul.bf16.vlgmr.msra.gmra.mxu3 %v15245_v17  ;;  %v15472_v21 = vpack.c.bf16 %v6609_v7, %v6593_v47  ;;  %v15474_v19 = vpack.c.bf16 %v6608_v34, %v6592_v41  ;;  %v10340_v41 = vld [vmem:[%s11727_s25 + $0x398] sm:$0xff] }
 0xca8   : > { %10409 = vmatpush.bf16.msrb.mxu3 %v15478_v38  ;;  %8081 = vmatpush.bf16.msra.mxu1 %v10334_v1  ;;  %v15508_v47 = vld [vmem:[%s11727_s25 + $0x3d8] sm:$0xff] }
 0xca9   : > { %8055 = vmatpush.bf16.msra.mxu0 %v10323_v61  ;;  %8112 = vmatpush.bf16.msra.mxu2 %v10340_v41 }
 0xcaa   : > { %v7769_v10 = vpop.f32.mrf.mxu2  ;;  %v7798_v42 = vpop.f32.mrf.mxu3 }
 0xcab   : > { %v7770_v52 = vadd.f32 %v7769_v10, %v7741_v12  ;;  %v7713_v17 = vpop.f32.mrf.mxu0  ;;  %v7742_v11 = vpop.f32.mrf.mxu1  ;;  %v10339_v12 = vld [vmem:[%s11727_s25 + $0x390] sm:$0xff] }
 0xcac   : > { %v7714_v35 = vadd.f32 %v15451_v18, %v7713_v17  ;;  %10410 = vmatpush.bf16.msrb.mxu3 %v15488_v44  ;;  %8082 = vmatpush.bf16.msra.mxu1 %v10333_v27  ;;  %v10338_v17 = vld [vmem:[%s11727_s25 + $0x388] sm:$0xff] }
 0xcad   : > { %v15481_v50 = vadd.f32 %v7798_v42, %v7770_v52  ;;  %8113 = vmatpush.bf16.msra.mxu2 %v10339_v12  ;;  %v10322_v42 = vld [vmem:[%s11727_s25 + $0x308] sm:$0xff] }
 0xcae   : > { %v7743_v13 = vadd.f32 %v7742_v11, %v7714_v35  ;;  %v10330_v52 = vld [vmem:[%s11727_s25 + $0x348] sm:$0xff]  ;;  %8056 = vmatpush.bf16.msra.mxu0 %v10322_v42 }
 0xcaf   : > { %v10346_v11 = vld [vmem:[%s11727_s25 + $0x3c8] sm:$0xff] }
 0xcb0   : > { %10411 = vmatpush.bf16.msrb.mxu3 %v15495_v62  ;;  %8083 = vmatpush.bf16.msra.mxu1 %v10332_v14 }
 0xcb1   : > { %8114 = vmatpush.bf16.msra.mxu2 %v10338_v17 }
 0xcb2   : > { %v7771_v6 = vpop.f32.mrf.mxu2  ;;  %v7800_v51 = vpop.f32.mrf.mxu3 }
 0xcb3   : > { %v7772_v30 = vadd.f32 %v7771_v6, %v7743_v13  ;;  %v7716_v15 = vpop.f32.mrf.mxu0  ;;  %v7745_v57 = vpop.f32.mrf.mxu1  ;;  %v10321_v6 = vld [vmem:[%s11727_s25 + $0x300] sm:$0xff] }
 0xcb4   : > { %v7717_v3 = vadd.f32 %v15451_v18, %v7716_v15  ;;  %10412 = vmatpush.bf16.msrb.mxu3 %v15508_v47  ;;  %v10337_v15 = vld [vmem:[%s11727_s25 + $0x380] sm:$0xff]  ;;  %8057 = vmatpush.bf16.msra.mxu0 %v10321_v6 }
 0xcb5   : > { %v15497_v45 = vadd.f32 %v7800_v51, %v7772_v30  ;;  %v10329_v51 = vld [vmem:[%s11727_s25 + $0x340] sm:$0xff]  ;;  %8115 = vmatpush.bf16.msra.mxu2 %v10337_v15 }
 0xcb6   : > { %v7746_v16 = vadd.f32 %v7745_v57, %v7717_v3  ;;  %7947 = vmatmul.bf16.gmra.mxu0 %v15277_v29  ;;  %7976 = vmatmul.bf16.gmra.mxu1 %v15279_v22  ;;  %v10345_v57 = vld [vmem:[%s11727_s25 + $0x3c0] sm:$0xff] }
 0xcb7   : > { %8005 = vmatmul.bf16.gmra.mxu2 %v15289_v46  ;;  %8034 = vmatmul.bf16.gmra.mxu3 %v15291_v59  ;;  %v10331_v59 = vld [vmem:[%s11727_s25 + $0x350] sm:$0xff] }
 0xcb8   : > { %8084 = vmatpush.bf16.msra.mxu1 %v10331_v59  ;;  %10413 = vmatpush.bf16.msrb.mxu3 %v15515_v37 }
 0xcb9   : > { %8137 = vmatpush.bf16.msrb.mxu0 %v15470_v2 }
 0xcba   : > { %v7774_v29 = vpop.f32.mrf.mxu2  ;;  %v7803_v22 = vpop.f32.mrf.mxu3 }
 0xcbb   : > { %v7775_v34 = vadd.f32 %v7774_v29, %v7746_v16  ;;  %v7718_v7 = vpop.f32.mrf.mxu0  ;;  %v7747_v46 = vpop.f32.mrf.mxu1 }
 0xcbc   : > { %v7719_v56 = vadd.f32 %v15451_v18, %v7718_v7  ;;  %8085 = vmatpush.bf16.msra.mxu1 %v10330_v52  ;;  %10414 = vmatpush.bf16.msrb.mxu3 %v10346_v11 }
 0xcbd   : > { %v15517_v4 = vadd.f32 %v7803_v22, %v7775_v34  ;;  %8138 = vmatpush.bf16.msrb.mxu0 %v15478_v38 }
 0xcbe   : > { %v7748_v10 = vadd.f32 %v7747_v46, %v7719_v56 }
 0xcc0   : > { %8086 = vmatpush.bf16.msra.mxu1 %v10329_v51  ;;  %10415 = vmatpush.bf16.msrb.mxu3 %v10345_v57 }
 0xcc1   : > { %8139 = vmatpush.bf16.msrb.mxu0 %v15488_v44 }
 0xcc2   : > { %v7776_v35 = vpop.f32.mrf.mxu2  ;;  %v7805_v13 = vpop.f32.mrf.mxu3 }
 0xcc3   : > { %v7777_v8 = vadd.f32 %v7776_v35, %v7748_v10  ;;  %v7721_v36 = vpop.f32.mrf.mxu0  ;;  %v7750_v1 = vpop.f32.mrf.mxu1 }
 0xcc4   : > { %v7722_v30 = vadd.f32 %v15451_v18, %v7721_v36 }
 0xcc5   : > { %v15529_v27 = vadd.f32 %v7805_v13, %v7777_v8  ;;  %8140 = vmatpush.bf16.msrb.mxu0 %v15495_v62 }
 0xcc6   : > { %v7751_v49 = vadd.f32 %v7750_v1, %v7722_v30  ;;  %7952 = vmatmul.bf16.gmra.mxu0 %v15298_v60  ;;  %7981 = vmatmul.bf16.gmra.mxu1 %v15300_v54 }
 0xcc7   : > { %8010 = vmatmul.bf16.gmra.mxu2 %v15311_v31  ;;  %8039 = vmatmul.bf16.gmra.mxu3 %v15313_v58 }
 0xcc9   : > { %8141 = vmatpush.bf16.msrb.mxu0 %v15508_v47 }
 0xcca   : > { %v7779_v3 = vpop.f32.mrf.mxu2  ;;  %v7808_v16 = vpop.f32.mrf.mxu3 }
 0xccb   : > { %v7780_v61 = vadd.f32 %v7779_v3, %v7751_v49  ;;  %v7723_v14 = vpop.f32.mrf.mxu0  ;;  %v7752_v41 = vpop.f32.mrf.mxu1 }
 0xccc   : > { %v7724_v29 = vadd.f32 %v15451_v18, %v7723_v14 }
 0xccd   : > { %v15537_v22 = vadd.f32 %v7808_v16, %v7780_v61  ;;  %8142 = vmatpush.bf16.msrb.mxu0 %v15515_v37 }
 0xcce   : > { %v7753_v60 = vadd.f32 %v7752_v41, %v7724_v29 }
 0xcd1   : > { %8143 = vmatpush.bf16.msrb.mxu0 %v10346_v11 }
 0xcd2   : > { %v7781_v54 = vpop.f32.mrf.mxu2  ;;  %v7810_v31 = vpop.f32.mrf.mxu3 }
 0xcd3   : > { %v7782_v58 = vadd.f32 %v7781_v54, %v7753_v60  ;;  %v7726_v34 = vpop.f32.mrf.mxu0  ;;  %v7755_v7 = vpop.f32.mrf.mxu1 }
 0xcd4   : > { %v7727_v2 = vadd.f32 %v15451_v18, %v7726_v34 }
 0xcd5   : > { %v15542_v46 = vadd.f32 %v7810_v31, %v7782_v58  ;;  %8144 = vmatpush.bf16.msrb.mxu0 %v10345_v57 }
 0xcd6   : > { %v7756_v59 = vadd.f32 %v7755_v7, %v7727_v2  ;;  %7957 = vmatmul.bf16.gmra.mxu0 %v15322_v5  ;;  %7986 = vmatmul.bf16.gmra.mxu1 %v15324_v25 }
 0xcd7   : > { %8015 = vmatmul.bf16.gmra.mxu2 %v15346_v9  ;;  %8044 = vmatmul.bf16.gmra.mxu3 %v15348_v55 }
 0xcda   : > { %v7784_v38 = vpop.f32.mrf.mxu2  ;;  %v7813_v44 = vpop.f32.mrf.mxu3 }
 0xcdb   : > { %v7785_v12 = vadd.f32 %v7784_v38, %v7756_v59  ;;  %v7728_v56 = vpop.f32.mrf.mxu0  ;;  %v7757_v10 = vpop.f32.mrf.mxu1 }
 0xcdc   : > { %v7729_v42 = vadd.f32 %v15451_v18, %v7728_v56 }
 0xcdd   : > { %v15551_v52 = vadd.f32 %v7813_v44, %v7785_v12 }
 0xcde   : > { %v7758_v5 = vadd.f32 %v7757_v10, %v7729_v42 }
 0xce2   : > { %v7786_v25 = vpop.f32.mrf.mxu2  ;;  %v7815_v62 = vpop.f32.mrf.mxu3 }
 0xce3   : > { %v7787_v9 = vadd.f32 %v7786_v25, %v7758_v5  ;;  %v7827_v17 = vpop.f32.mrf.mxu0  ;;  %v7856_v55 = vpop.f32.mrf.mxu1 }
 0xce4   : > { %v7828_v47 = vadd.f32 %v7827_v17, %v15481_v50 }
 0xce5   : > { %v15555_v35 = vadd.f32 %v7815_v62, %v7787_v9 }
 0xce6   : > { %v7857_v13 = vadd.f32 %v7856_v55, %v7828_v47  ;;  %8058 = vmatmul.bf16.vlgmr.msra.gmra.mxu0 %v15364_v20  ;;  %8087 = vmatmul.bf16.vlgmr.msra.gmra.mxu1 %v15366_v23 }
 0xce7   : > { %8116 = vmatmul.bf16.vlgmr.msra.gmra.mxu2 %v15377_v53  ;;  %8150 = vmatmul.bf16.vlgmr.msrb.gmra.mxu3 %v15411_v43 }
 0xcea   : > { %v7885_v18 = vpop.f32.mrf.mxu2  ;;  %v7914_v37 = vpop.f32.mrf.mxu3 }
 0xceb   : > { %v7886_v11 = vadd.f32 %v7885_v18, %v7857_v13  ;;  %v7829_v8 = vpop.f32.mrf.mxu0  ;;  %v7858_v36 = vpop.f32.mrf.mxu1 }
 0xcec   : > { %v7830_v1 = vadd.f32 %v7829_v8, %v15497_v45 }
 0xced   : > { %v15562_v50 = vadd.f32 %v7914_v37, %v7886_v11 }
 0xcee   : > { %v7859_v6 = vadd.f32 %v7858_v36, %v7830_v1 }
 0xcf2   : > { %v7887_v51 = vpop.f32.mrf.mxu2  ;;  %v7916_v30 = vpop.f32.mrf.mxu3 }
 0xcf3   : > { %v7888_v15 = vadd.f32 %v7887_v51, %v7859_v6  ;;  %v7832_v20 = vpop.f32.mrf.mxu0  ;;  %v7861_v57 = vpop.f32.mrf.mxu1 }
 0xcf4   : > { %v7833_v23 = vadd.f32 %v7832_v20, %v15517_v4 }
 0xcf5   : > { %v15565_v53 = vadd.f32 %v7916_v30, %v7888_v15 }
 0xcf6   : > { %v7862_v43 = vadd.f32 %v7861_v57, %v7833_v23  ;;  %8063 = vmatmul.bf16.gmra.mxu0 %v15397_v24  ;;  %8092 = vmatmul.bf16.gmra.mxu1 %v15399_v26 }
 0xcf7   : > { %8121 = vmatmul.bf16.gmra.mxu2 %v15415_v40  ;;  %8155 = vmatmul.bf16.gmra.mxu3 %v15435_v0 }
 0xcfa   : > { %v7890_v45 = vpop.f32.mrf.mxu2  ;;  %v7919_v49 = vpop.f32.mrf.mxu3 }
 0xcfb   : > { %v7891_v3 = vadd.f32 %v7890_v45, %v7862_v43  ;;  %v7834_v16 = vpop.f32.mrf.mxu0  ;;  %v7863_v61 = vpop.f32.mrf.mxu1 }
 0xcfc   : > { %v7835_v14 = vadd.f32 %v7834_v16, %v15529_v27 }
 0xcfd   : > { %v15572_v41 = vadd.f32 %v7919_v49, %v7891_v3 }
 0xcfe   : > { %v7864_v4 = vadd.f32 %v7863_v61, %v7835_v14 }
 0xd02   : > { %v7892_v29 = vpop.f32.mrf.mxu2  ;;  %v7921_v60 = vpop.f32.mrf.mxu3 }
 0xd03   : > { %v7893_v54 = vadd.f32 %v7892_v29, %v7864_v4  ;;  %v7837_v24 = vpop.f32.mrf.mxu0  ;;  %v7866_v31 = vpop.f32.mrf.mxu1 }
 0xd04   : > { %v7838_v26 = vadd.f32 %v7837_v24, %v15537_v22 }
 0xd05   : > { %v15575_v40 = vadd.f32 %v7921_v60, %v7893_v54 }
 0xd06   : > { %v7867_v0 = vadd.f32 %v7866_v31, %v7838_v26  ;;  %8068 = vmatmul.bf16.gmra.mxu0 %v15422_v33  ;;  %8097 = vmatmul.bf16.gmra.mxu1 %v15424_v28 }
 0xd07   : > { %8126 = vmatmul.bf16.gmra.mxu2 %v15437_v39  ;;  %8160 = vmatmul.bf16.gmra.mxu3 %v15472_v21 }
 0xd0a   : > { %v7895_v27 = vpop.f32.mrf.mxu2  ;;  %v7924_v58 = vpop.f32.mrf.mxu3 }
 0xd0b   : > { %v7896_v34 = vadd.f32 %v7895_v27, %v7867_v0  ;;  %v7839_v7 = vpop.f32.mrf.mxu0  ;;  %v7868_v2 = vpop.f32.mrf.mxu1 }
 0xd0c   : > { %v7840_v59 = vadd.f32 %v7839_v7, %v15542_v46 }
 0xd0d   : > { %v15582_v38 = vadd.f32 %v7924_v58, %v7896_v34 }
 0xd0e   : > { %v7869_v22 = vadd.f32 %v7868_v2, %v7840_v59 }
 0xd12   : > { %v7897_v44 = vpop.f32.mrf.mxu2  ;;  %v7926_v12 = vpop.f32.mrf.mxu3 }
 0xd13   : > { %v7898_v56 = vadd.f32 %v7897_v44, %v7869_v22  ;;  %v7842_v33 = vpop.f32.mrf.mxu0  ;;  %v7871_v10 = vpop.f32.mrf.mxu1 }
 0xd14   : > { %v7843_v28 = vadd.f32 %v7842_v33, %v15551_v52 }
 0xd15   : > { %v15585_v39 = vadd.f32 %v7926_v12, %v7898_v56 }
 0xd16   : > { %v7872_v21 = vadd.f32 %v7871_v10, %v7843_v28  ;;  %8073 = vmatmul.bf16.gmra.mxu0 %v15453_v32  ;;  %8102 = vmatmul.bf16.gmra.mxu1 %v15455_v63 }
 0xd17   : > { %8131 = vmatmul.bf16.gmra.mxu2 %v15474_v19 }
 0xd1a   : > { %v7900_v46 = vpop.f32.mrf.mxu2  ;;  %v7929_v42 = vpop.f32.mrf.mxu3 }
 0xd1b   : > { %v7901_v5 = vadd.f32 %v7900_v46, %v7872_v21  ;;  %v7844_v25 = vpop.f32.mrf.mxu0  ;;  %v7873_v62 = vpop.f32.mrf.mxu1 }
 0xd1c   : > { %v7845_v9 = vadd.f32 %v7844_v25, %v15555_v35 }
 0xd1d   : > { %v7930_v17 = vadd.f32 %v7929_v42, %v7901_v5 }
 0xd1e   : > { %v7874_v55 = vadd.f32 %v7873_v62, %v7845_v9 }
 0xd22   : > { %v7902_v47 = vpop.f32.mrf.mxu2  ;;  %v7931_v52 = vpop.f32.mrf.mxu3 }
 0xd23   : > { %v7903_v13 = vadd.f32 %v7902_v47, %v7874_v55  ;;  %v7943_v18 = vpop.f32.mrf.mxu0  ;;  %v7972_v37 = vpop.f32.mrf.mxu1 }
 0xd24   : > { %v7944_v32 = vadd.f32 %v7943_v18, %v15562_v50 }
 0xd25   : > { %v7932_v11 = vadd.f32 %v7931_v52, %v7903_v13 }
 0xd26   : > { %v7973_v63 = vadd.f32 %v7972_v37, %v7944_v32  ;;  %8145 = vmatmul.bf16.vlgmr.msrb.gmra.mxu0 %v15379_v48 }
 0xd2a   : > { %v8001_v19 = vpop.f32.mrf.mxu2  ;;  %v8030_v8 = vpop.f32.mrf.mxu3 }
 0xd2b   : > { %v8002_v36 = vadd.f32 %v8001_v19, %v7973_v63  ;;  %v7945_v1 = vpop.f32.mrf.mxu0  ;;  %v7974_v6 = vpop.f32.mrf.mxu1 }
 0xd2c   : > { %v7946_v35 = vadd.f32 %v7945_v1, %v15565_v53 }
 0xd2d   : > { %v15594_v51 = vadd.f32 %v8030_v8, %v8002_v36 }
 0xd2e   : > { %v7975_v30 = vadd.f32 %v7974_v6, %v7946_v35 }
 0xd32   : > { %v8003_v15 = vpop.f32.mrf.mxu2  ;;  %v8032_v20 = vpop.f32.mrf.mxu3 }
 0xd33   : > { %v8004_v57 = vadd.f32 %v8003_v15, %v7975_v30  ;;  %v7948_v23 = vpop.f32.mrf.mxu0  ;;  %v7977_v43 = vpop.f32.mrf.mxu1 }
 0xd34   : > { %v7949_v21 = vadd.f32 %v7948_v23, %v15572_v41 }
 0xd35   : > { %v15596_v50 = vadd.f32 %v8032_v20, %v8004_v57  ;;  %v16158_v20 = vld [vmem:[#allocation97_spill] sm:$0xff] }
 0xd36   : > { %v7978_v62 = vadd.f32 %v7977_v43, %v7949_v21 }
 0xd3a   : > { %v8006_v45 = vpop.f32.mrf.mxu2  ;;  %v8035_v49 = vpop.f32.mrf.mxu3 }
 0xd3b   : > { %v7950_v48 = vpop.f32.mrf.mxu0  ;;  %v7979_v3 = vpop.f32.mrf.mxu1  ;;  %v8007_v9 = vadd.f32 %v8006_v45, %v7978_v62 }
 0xd3d   : > { %v8036_v47 = vadd.f32 %v8035_v49, %v8007_v9 }
 0xd42   : > { %v8008_v16 = vpop.f32.mrf.mxu2  ;;  %v8037_v4 = vpop.f32.mrf.mxu3 }
 0xd43   : > { %v7953_v61 = vpop.f32.mrf.mxu0  ;;  %v7982_v14 = vpop.f32.mrf.mxu1 }
 0xd4a   : > { %v8011_v29 = vpop.f32.mrf.mxu2  ;;  %v8040_v54 = vpop.f32.mrf.mxu3 }
 0xd4b   : > { %v7955_v53 = vpop.f32.mrf.mxu0  ;;  %v7984_v60 = vpop.f32.mrf.mxu1 }
 0xd4c   : > { %v7956_v43 = vadd.f32 %v7955_v53, %v15585_v39 }
 0xd52   : > { %v8013_v24 = vpop.f32.mrf.mxu2  ;;  %v8042_v58 = vpop.f32.mrf.mxu3 }
 0xd53   : > { %v7958_v31 = vpop.f32.mrf.mxu0  ;;  %v7987_v26 = vpop.f32.mrf.mxu1 }
 0xd54   : > { %v7959_v0 = vadd.f32 %v7958_v31, %v7930_v17  ;;  %v7951_v17 = vadd.f32 %v7950_v48, %v15575_v40 }
 0xd56   : > { %v7988_v27 = vadd.f32 %v7987_v26, %v7959_v0  ;;  %v7980_v18 = vadd.f32 %v7979_v3, %v7951_v17  ;;  %v16159_v26 = vld [vmem:[#allocation70_spill] sm:$0xff] }
 0xd58   : > { %v8009_v32 = vadd.f32 %v8008_v16, %v7980_v18  ;;  %v7985_v16 = vadd.f32 %v7984_v60, %v7956_v43  ;;  %v16163_v43 = vld [vmem:[#allocation96_spill] sm:$0xff] }
 0xd5a   : > { %v8016_v34 = vpop.f32.mrf.mxu2  ;;  %v15600_v12 = vpop.f32.mrf.mxu3  ;;  %v8038_v8 = vadd.f32 %v8037_v4, %v8009_v32  ;;  %v8014_v31 = vadd.f32 %v8013_v24, %v7985_v16 }
 0xd5b   : > { %v15598_v7 = vadd.f32 %v8016_v34, %v7988_v27  ;;  %v7960_v2 = vpop.f32.mrf.mxu0  ;;  %v7989_v59 = vpop.f32.mrf.mxu1 }
 0xd5c   : > { %v7961_v22 = vadd.f32 %v7960_v2, %v7932_v11  ;;  %v7954_v11 = vadd.f32 %v7953_v61, %v15582_v38  ;;  %v8043_v53 = vadd.f32 %v8042_v58, %v8014_v31 }
 0xd5d   : > { %v8046_v18 = vadd.f32 %v15600_v12, %v15598_v7 }
 0xd5e   : > { %v7990_v44 = vadd.f32 %v7989_v59, %v7961_v22  ;;  %v7983_v35 = vadd.f32 %v7982_v14, %v7954_v11  ;;  %v16160_v22 = vld [vmem:[#allocation72_spill] sm:$0xff] }
 0xd60   : > { %v8012_v15 = vadd.f32 %v8011_v29, %v7983_v35 }
 0xd62   : > { %v8018_v56 = vpop.f32.mrf.mxu2  ;;  %v15615_v25 = vpop.f32.mrf.mxu3  ;;  %v8041_v49 = vadd.f32 %v8040_v54, %v8012_v15 }
 0xd63   : > { %v15602_v33 = vadd.f32 %v8018_v56, %v7990_v44  ;;  %v15604_v10 = vpop.f32.mrf.mxu0  ;;  %v15606_v28 = vpop.f32.mrf.mxu1 }
 0xd64   : > { %v8060_v58 = vadd.f32 %v15604_v10, %v15594_v51  ;;  %v16162_v10 = vld [vmem:[#allocation34_spill] sm:$0xff] }
 0xd6a   : > { %v15609_v46 = vpop.f32.mrf.mxu2  ;;  %v8151_v41 = vpop.f32.mrf.mxu3 }
 0xd6b   : > { %v15611_v42 = vpop.f32.mrf.mxu0  ;;  %v15613_v5 = vpop.f32.mrf.mxu1 }
 0xd72   : > { %v15618_v55 = vpop.f32.mrf.mxu2  ;;  %v8153_v23 = vpop.f32.mrf.mxu3 }
 0xd73   : > { %v8064_v52 = vpop.f32.mrf.mxu0  ;;  %v8093_v13 = vpop.f32.mrf.mxu1 }
 0xd74   : > { %v8065_v37 = vadd.f32 %v8064_v52, %v8036_v47  ;;  %v16161_v47 = vld [vmem:[#allocation74_spill] sm:$0xff] }
 0xd76   : > { %v8094_v63 = vadd.f32 %v8093_v13, %v8065_v37  ;;  %v8089_v37 = vadd.f32 %v15606_v28, %v8060_v58 }
 0xd7a   : > { %v8122_v19 = vpop.f32.mrf.mxu2  ;;  %v8156_v27 = vpop.f32.mrf.mxu3 }
 0xd7b   : > { %v8123_v36 = vadd.f32 %v8122_v19, %v8094_v63  ;;  %v8066_v1 = vpop.f32.mrf.mxu0  ;;  %v8095_v6 = vpop.f32.mrf.mxu1  ;;  %v8118_v63 = vadd.f32 %v15609_v46, %v8089_v37 }
 0xd7c   : > { %v8067_v40 = vadd.f32 %v8066_v1, %v8038_v8  ;;  %v8062_v8 = vadd.f32 %v15611_v42, %v15596_v50 }
 0xd7d   : > { %v8152_v30 = vadd.f32 %v8151_v41, %v8123_v36 }
 0xd7e   : > { %v8096_v45 = vadd.f32 %v8095_v6, %v8067_v40  ;;  %v8048_v6 = vadd.f32 %v15615_v25, %v15602_v33  ;;  %v8091_v12 = vadd.f32 %v15613_v5, %v8062_v8  ;;  %v16164_v33 = vld [vmem:[#allocation94_spill] sm:$0xff]  ;;  %v16165_v5 = vld [vmem:[#allocation35_spill] sm:$0xff] }
 0xd7f   : > { %v15622_v57 = vadd.f32 %v8152_v30, %v16158_v20 }
 0xd80   : > { %v8120_v30 = vadd.f32 %v15618_v55, %v8091_v12  ;;  %v16166_v55 = vld [vmem:[#allocation46_spill] sm:$0xff] }
 0xd81   : > { %8180 = vadd.xlane.f32.xlu1 %v15622_v57 }
 0xd82   : > { %v8124_v38 = vpop.f32.mrf.mxu2  ;;  %v8158_v9 = vpop.f32.mrf.mxu3 }
 0xd83   : > { %v8125_v48 = vadd.f32 %v8124_v38, %v8096_v45  ;;  %v8069_v3 = vpop.f32.mrf.mxu0  ;;  %v8098_v14 = vpop.f32.mrf.mxu1 }
 0xd84   : > { %v8070_v4 = vadd.f32 %v8069_v3, %v8041_v49 }
 0xd85   : > { %v8154_v61 = vadd.f32 %v8153_v23, %v8125_v48 }
 0xd86   : > { %v8099_v0 = vadd.f32 %v8098_v14, %v8070_v4 }
 0xd87   : > { %v15627_v29 = vadd.f32 %v8154_v61, %v16159_v26 }
 0xd89   : > { %8182 = vadd.xlane.f32.xlu2 %v15627_v29 }
 0xd8a   : > { %v8127_v39 = vpop.f32.mrf.mxu2  ;;  %v8161_v7 = vpop.f32.mrf.mxu3 }
 0xd8b   : > { %v8128_v34 = vadd.f32 %v8127_v39, %v8099_v0  ;;  %v8071_v2 = vpop.f32.mrf.mxu0  ;;  %v8100_v60 = vpop.f32.mrf.mxu1 }
 0xd8c   : > { %v8072_v54 = vadd.f32 %v8071_v2, %v8043_v53 }
 0xd8d   : > { %v8157_v59 = vadd.f32 %v8156_v27, %v8128_v34 }
 0xd8e   : > { %v8101_v56 = vadd.f32 %v8100_v60, %v8072_v54 }
 0xd8f   : > { %v8170_v44 = vadd.f32 %v8157_v59, %v16160_v22 }
 0xd91   : > { %8184 = vadd.xlane.f32.xlu0 %v8170_v44 }
 0xd92   : > { %v8129_v21 = vpop.f32.mrf.mxu2  ;;  %v8163_v38 = vpop.f32.mrf.mxu3 }
 0xd93   : > { %v8130_v24 = vadd.f32 %v8129_v21, %v8101_v56  ;;  %v8074_v62 = vpop.f32.mrf.mxu0  ;;  %v8103_v32 = vpop.f32.mrf.mxu1 }
 0xd94   : > { %v8075_v41 = vadd.f32 %v8074_v62, %v8046_v18 }
 0xd95   : > { %v8159_v17 = vadd.f32 %v8158_v9, %v8130_v24 }
 0xd96   : > { %v8104_v36 = vadd.f32 %v8103_v32, %v8075_v41 }
 0xd97   : > { %v8171_v52 = vadd.f32 %v8159_v17, %v16161_v47 }
 0xd99   : > { %8186 = vadd.xlane.f32.xlu1 %v8171_v52 }
 0xd9a   : > { %v8132_v11 = vpop.f32.mrf.mxu2 }
 0xd9b   : > { %v8076_v13 = vpop.f32.mrf.mxu0  ;;  %v8133_v51 = vadd.f32 %v8132_v11, %v8104_v36  ;;  %v8105_v40 = vpop.f32.mrf.mxu1 }
 0xd9c   : > { %v8077_v28 = vadd.f32 %v8076_v13, %v8048_v6 }
 0xd9d   : > { %v8162_v46 = vadd.f32 %v8161_v7, %v8133_v51 }
 0xd9e   : > { %v8106_v50 = vadd.f32 %v8105_v40, %v8077_v28  ;;  %v15698_v40 = vld [vmem:[%s899_s6] ss:$0 sm:$0xff] }
 0xd9f   : > { %v8172_v25 = vadd.f32 %v8162_v46, %v16164_v33 }
 0xda2   : > { %v8134_v15 = vpop.f32.mrf.mxu2 }
 0xda3   : > { %v8146_v19 = vpop.f32.mrf.mxu0  ;;  %v8135_v23 = vadd.f32 %v8134_v15, %v8106_v50  ;;  %v15705_v50 = vld [vmem:[%s902_s12] ss:$0 sm:$0xff]  ;;  %s16169_s12 = sld [smem:[#allocation114_spill]] (!%p9993_p1) }
 0xda4   : > { %v8147_v1 = vadd.f32 %v8146_v19, %v8118_v63 }
 0xda5   : > { %v8164_v49 = vadd.f32 %v8163_v38, %v8135_v23 }
 0xda6   : > { %v8166_v35 = vadd.f32 %v8147_v1, %v16162_v10 }
 0xda7   : > { %v8173_v48 = vadd.f32 %v8164_v49, %v16165_v5 }
 0xda8   : > { %8176 = vadd.xlane.f32.xlu2 %v8166_v35 }
 0xdab   : > { %v8148_v20 = vpop.f32.mrf.mxu0 }
 0xdac   : > { %v8149_v42 = vadd.f32 %v8148_v20, %v8120_v30 }
 0xdae   : > { %v8167_v45 = vadd.f32 %v8149_v42, %v16163_v43 }
 0xdb0   : > { %8178 = vadd.xlane.f32.xlu0 %v8167_v45  ;;  %8188 = vadd.xlane.f32.xlu2 %v8172_v25 }
 0xdb8   : > { %8190 = vadd.xlane.f32.xlu0 %v8173_v48 }
 0xdf4   : > { %v8181_v3 = vpop.xlane.xlu1 %8180 }
 0xdf5   : > { %v8194_v16 = vmul.f32 %v8181_v3, %v16166_v55 }
 0xdf7   : > { %v15650_v61 = vsub.f32 %v15622_v57, %v8194_v16 }
 0xdf9   : > { %v8210_v4 = vmul.f32 %v15650_v61, %v15650_v61 }
 0xdfb   : > { %8220 = vadd.xlane.f32.xlu0 %v8210_v4 }
 0xdfc   : > { %v8183_v14 = vpop.xlane.xlu2 %8182 }
 0xdfd   : > { %v8195_v31 = vmul.f32 %v8183_v14, %v16166_v55 }
 0xdff   : > { %v15656_v26 = vsub.f32 %v15627_v29, %v8195_v31 }
 0xe01   : > { %v8211_v0 = vmul.f32 %v15656_v26, %v15656_v26 }
 0xe03   : > { %8222 = vadd.xlane.f32.xlu1 %v8211_v0 }
 0xe04   : > { %v8185_v27 = vpop.xlane.xlu0 %8184 }
 0xe05   : > { %v8196_v39 = vmul.f32 %v8185_v27, %v16166_v55 }
 0xe07   : > { %v15661_v53 = vsub.f32 %v8170_v44, %v8196_v39 }
 0xe09   : > { %v8212_v57 = vmul.f32 %v15661_v53, %v15661_v53 }
 0xe0b   : > { %8224 = vadd.xlane.f32.xlu2 %v8212_v57 }
 0xe0c   : > { %v8187_v34 = vpop.xlane.xlu1 %8186 }
 0xe0d   : > { %v8197_v2 = vmul.f32 %v8187_v34, %v16166_v55 }
 0xe0f   : > { %v15666_v59 = vsub.f32 %v8171_v52, %v8197_v2 }
 0xe11   : > { %v8213_v29 = vmul.f32 %v15666_v59, %v15666_v59 }
 0xe13   : > { %8226 = vadd.xlane.f32.xlu0 %v8213_v29 }
 0xe1b   : > { %v8177_v54 = vpop.xlane.xlu2 %8176 }
 0xe1c   : > { %v8192_v22 = vmul.f32 %v8177_v54, %v16166_v55 }
 0xe1e   : > { %v15671_v60 = vsub.f32 %v8166_v35, %v8192_v22 }
 0xe20   : > { %v8208_v44 = vmul.f32 %v15671_v60, %v15671_v60 }
 0xe22   : > { %8216 = vadd.xlane.f32.xlu1 %v8208_v44 }
 0xe23   : > { %v8179_v56 = vpop.xlane.xlu0 %8178  ;;  %v8189_v21 = vpop.xlane.xlu2 %8188 }
 0xe24   : > { %v8193_v24 = vmul.f32 %v8179_v56, %v16166_v55  ;;  %v8198_v62 = vmul.f32 %v8189_v21, %v16166_v55 }
 0xe26   : > { %v15677_v9 = vsub.f32 %v8167_v45, %v8193_v24  ;;  %v15679_v17 = vsub.f32 %v8172_v25, %v8198_v62 }
 0xe28   : > { %v8209_v47 = vmul.f32 %v15677_v9, %v15677_v9  ;;  %v8214_v52 = vmul.f32 %v15679_v17, %v15679_v17 }
 0xe2a   : > { %8218 = vadd.xlane.f32.xlu2 %v8209_v47  ;;  %8228 = vadd.xlane.f32.xlu1 %v8214_v52 }
 0xe2b   : > { %v8191_v13 = vpop.xlane.xlu0 %8190 }
 0xe2c   : > { %v8199_v58 = vmul.f32 %v8191_v13, %v16166_v55 }
 0xe2e   : > { %v15686_v18 = vsub.f32 %v8173_v48, %v8199_v58 }
 0xe30   : > { %v8215_v37 = vmul.f32 %v15686_v18, %v15686_v18 }
 0xe32   : > { %8230 = vadd.xlane.f32.xlu2 %v8215_v37 }
 0xe6e   : > { %v8221_v41 = vpop.xlane.xlu0 %8220 }
 0xe6f   : > { %v8234_v32 = vmul.f32 %v8221_v41, %v16166_v55 }
 0xe71   : > { %v8242_v11 = vadd.f32 1e-05, %v8234_v32 }
 0xe73   : > { %10959 = vrsqrt.f32 %v8242_v11  ;;  %vm8274_vm1 = vweird.f32 %v8242_v11 }
 0xe76   : > { %v8223_v63 = vpop.xlane.xlu1 %8222 }
 0xe77   : > { %v8235_v19 = vmul.f32 %v8223_v63, %v16166_v55 }
 0xe79   : > { %v10960_v8 = vpop.eup %10959  ;;  %v8243_v36 = vadd.f32 1e-05, %v8235_v19 }
 0xe7a   : > { %v8269_v1 = vmul.f32 %v10960_v8, %v8242_v11  ;;  %vm8275_vm0 = vweird.f32 %v10960_v8 }
 0xe7b   : > { %10961 = vrsqrt.f32 %v8243_v36  ;;  %vm8276_vm2 = vmor %vm8274_vm1, %vm8275_vm0  ;;  %vm8284_vm4 = vweird.f32 %v8243_v36 }
 0xe7c   : > { %v8270_v6 = vmul.f32 %v10960_v8, %v8269_v1 }
 0xe7e   : > { %v8271_v51 = vmul.f32 0.5, %v8270_v6  ;;  %v8225_v10 = vpop.xlane.xlu2 %8224 }
 0xe7f   : > { %v8236_v35 = vmul.f32 %v8225_v10, %v16166_v55 }
 0xe80   : > { %v8272_v7 = vsub.f32 1.5, %v8271_v51 }
 0xe81   : > { %v10962_v12 = vpop.eup %10961  ;;  %v8244_v28 = vadd.f32 1e-05, %v8236_v35 }
 0xe82   : > { %v8273_v30 = vmul.f32 %v10960_v8, %v8272_v7  ;;  %v8279_v46 = vmul.f32 %v10962_v12, %v8243_v36  ;;  %vm8285_vm3 = vweird.f32 %v10962_v12 }
 0xe83   : > { %10963 = vrsqrt.f32 %v8244_v28  ;;  %vm8286_vm5 = vmor %vm8284_vm4, %vm8285_vm3  ;;  %vm8294_vm7 = vweird.f32 %v8244_v28 }
 0xe84   : > { %v8277_v15 = vsel %vm8276_vm2, %v10960_v8, %v8273_v30  ;;  %v8280_v20 = vmul.f32 %v10962_v12, %v8279_v46 }
 0xe85   : > { %v8330_v42 = vmul.f32 %v8277_v15, %v15650_v61 }
 0xe86   : > { %v8281_v23 = vmul.f32 0.5, %v8280_v20  ;;  %v8227_v43 = vpop.xlane.xlu0 %8226 }
 0xe87   : > { %v8341_v45 = vmul.f32 %v15698_v40, %v8330_v42  ;;  %v8237_v33 = vmul.f32 %v8227_v43, %v16166_v55 }
 0xe88   : > { %v8282_v25 = vsub.f32 1.5, %v8281_v23 }
 0xe89   : > { %v10964_v38 = vpop.eup %10963  ;;  %v15711_v49 = vadd.f32 %v15705_v50, %v8341_v45  ;;  %v8245_v5 = vadd.f32 1e-05, %v8237_v33 }
 0xe8a   : > { %v8283_v48 = vmul.f32 %v10962_v12, %v8282_v25  ;;  %v8289_v3 = vmul.f32 %v10964_v38, %v8244_v28  ;;  %vm8295_vm6 = vweird.f32 %v10964_v38 }
 0xe8b   : > { %8360 = vst [vmem:[#allocation2 + $0x18] sm:$0xff] %v15711_v49  ;;  %10965 = vrsqrt.f32 %v8245_v5  ;;  %vm8296_vm8 = vmor %vm8294_vm7, %vm8295_vm6  ;;  %vm8304_vm10 = vweird.f32 %v8245_v5 }
 0xe8c   : > { %v8287_v16 = vsel %vm8286_vm5, %v10962_v12, %v8283_v48  ;;  %v8290_v61 = vmul.f32 %v10964_v38, %v8289_v3 }
 0xe8d   : > { %v8331_v4 = vmul.f32 %v8287_v16, %v15656_v26 }
 0xe8e   : > { %v8291_v14 = vmul.f32 0.5, %v8290_v61 }
 0xe8f   : > { %v8342_v31 = vmul.f32 %v15698_v40, %v8331_v4 }
 0xe90   : > { %v8292_v0 = vsub.f32 1.5, %v8291_v14 }
 0xe91   : > { %v10966_v27 = vpop.eup %10965  ;;  %v15717_v39 = vadd.f32 %v15705_v50, %v8342_v31 }
 0xe92   : > { %v8293_v57 = vmul.f32 %v10964_v38, %v8292_v0  ;;  %v8299_v34 = vmul.f32 %v10966_v27, %v8245_v5  ;;  %vm8305_vm9 = vweird.f32 %v10966_v27 }
 0xe93   : > { %8361 = vst [vmem:[#allocation2 + $0x10] sm:$0xff] %v15717_v39  ;;  %vm8306_vm11 = vmor %vm8304_vm10, %vm8305_vm9 }
 0xe94   : > { %v8297_v2 = vsel %vm8296_vm8, %v10964_v38, %v8293_v57  ;;  %v8300_v29 = vmul.f32 %v10966_v27, %v8299_v34 }
 0xe95   : > { %v8332_v54 = vmul.f32 %v8297_v2, %v15661_v53  ;;  %v8217_v26 = vpop.xlane.xlu1 %8216 }
 0xe96   : > { %v8301_v22 = vmul.f32 0.5, %v8300_v29  ;;  %v8232_v44 = vmul.f32 %v8217_v26, %v16166_v55 }
 0xe97   : > { %v8343_v56 = vmul.f32 %v15698_v40, %v8332_v54 }
 0xe98   : > { %v8302_v21 = vsub.f32 1.5, %v8301_v22  ;;  %v8240_v24 = vadd.f32 1e-05, %v8232_v44 }
 0xe99   : > { %v15724_v62 = vadd.f32 %v15705_v50, %v8343_v56 }
 0xe9a   : > { %v8303_v47 = vmul.f32 %v10966_v27, %v8302_v21  ;;  %10967 = vrsqrt.f32 %v8240_v24  ;;  %vm8254_vm13 = vweird.f32 %v8240_v24 }
 0xe9b   : > { %8362 = vst [vmem:[#allocation2 + $0x8] sm:$0xff] %v15724_v62 }
 0xe9c   : > { %v8307_v52 = vsel %vm8306_vm11, %v10966_v27, %v8303_v47 }
 0xe9d   : > { %v8333_v53 = vmul.f32 %v8307_v52, %v15666_v59  ;;  %v8229_v13 = vpop.xlane.xlu1 %8228  ;;  %v8219_v58 = vpop.xlane.xlu2 %8218 }
 0xe9e   : > { %v8238_v37 = vmul.f32 %v8229_v13, %v16166_v55  ;;  %v8233_v41 = vmul.f32 %v8219_v58, %v16166_v55 }
 0xe9f   : > { %v8344_v32 = vmul.f32 %v15698_v40, %v8333_v53 }
 0xea0   : > { %v10968_v11 = vpop.eup %10967  ;;  %v8246_v63 = vadd.f32 1e-05, %v8238_v37  ;;  %v8241_v19 = vadd.f32 1e-05, %v8233_v41 }
 0xea1   : > { %v15732_v8 = vadd.f32 %v15705_v50, %v8344_v32  ;;  %v8249_v36 = vmul.f32 %v10968_v11, %v8240_v24  ;;  %vm8255_vm12 = vweird.f32 %v10968_v11 }
 0xea2   : > { %10969 = vrsqrt.f32 %v8246_v63  ;;  %vm8256_vm14 = vmor %vm8254_vm13, %vm8255_vm12  ;;  %vm8314_vm1 = vweird.f32 %v8246_v63  ;;  %vm8264_vm3 = vweird.f32 %v8241_v19 }
 0xea3   : > { %8363 = vst [vmem:[#allocation2 + $0x20] sm:$0xff] %v15732_v8  ;;  %v8250_v1 = vmul.f32 %v10968_v11, %v8249_v36  ;;  %10971 = vrsqrt.f32 %v8241_v19 }
 0xea5   : > { %v8251_v59 = vmul.f32 0.5, %v8250_v1  ;;  %v8231_v6 = vpop.xlane.xlu2 %8230 }
 0xea6   : > { %v8239_v51 = vmul.f32 %v8231_v6, %v16166_v55 }
 0xea7   : > { %v8252_v10 = vsub.f32 1.5, %v8251_v59 }
 0xea8   : > { %v10970_v35 = vpop.eup %10969  ;;  %v8247_v7 = vadd.f32 1e-05, %v8239_v51 }
 0xea9   : > { %v10972_v12 = vpop.eup %10971  ;;  %v8253_v28 = vmul.f32 %v10968_v11, %v8252_v10  ;;  %v8309_v30 = vmul.f32 %v10970_v35, %v8246_v63  ;;  %vm8315_vm15 = vweird.f32 %v10970_v35 }
 0xeaa   : > { %v8259_v46 = vmul.f32 %v10972_v12, %v8241_v19  ;;  %10973 = vrsqrt.f32 %v8247_v7  ;;  %vm8265_vm0 = vweird.f32 %v10972_v12  ;;  %vm8316_vm2 = vmor %vm8314_vm1, %vm8315_vm15  ;;  %vm8324_vm6 = vweird.f32 %v8247_v7 }
 0xeab   : > { %v8257_v15 = vsel %vm8256_vm14, %v10968_v11, %v8253_v28  ;;  %v8310_v20 = vmul.f32 %v10970_v35, %v8309_v30  ;;  %vm8266_vm4 = vmor %vm8264_vm3, %vm8265_vm0 }
 0xeac   : > { %v8328_v42 = vmul.f32 %v8257_v15, %v15671_v60  ;;  %v8260_v23 = vmul.f32 %v10972_v12, %v8259_v46 }
 0xead   : > { %v8311_v43 = vmul.f32 0.5, %v8310_v20 }
 0xeae   : > { %v8339_v45 = vmul.f32 %v15698_v40, %v8328_v42  ;;  %v8261_v55 = vmul.f32 0.5, %v8260_v23 }
 0xeaf   : > { %v8312_v33 = vsub.f32 1.5, %v8311_v43 }
 0xeb0   : > { %v10974_v25 = vpop.eup %10973  ;;  %v15739_v38 = vadd.f32 %v15705_v50, %v8339_v45  ;;  %v8262_v5 = vsub.f32 1.5, %v8261_v55 }
 0xeb1   : > { %v8313_v48 = vmul.f32 %v10970_v35, %v8312_v33  ;;  %v8319_v3 = vmul.f32 %v10974_v25, %v8247_v7  ;;  %vm8325_vm5 = vweird.f32 %v10974_v25 }
 0xeb2   : > { %8358 = vst [vmem:[#allocation2 + $0x30] sm:$0xff] %v15739_v38  ;;  %v8263_v60 = vmul.f32 %v10972_v12, %v8262_v5  ;;  %vm8326_vm7 = vmor %vm8324_vm6, %vm8325_vm5 }
 0xeb3   : > { %v8317_v16 = vsel %vm8316_vm2, %v10970_v35, %v8313_v48  ;;  %v8320_v61 = vmul.f32 %v10974_v25, %v8319_v3 }
 0xeb4   : > { %v8334_v4 = vmul.f32 %v8317_v16, %v15679_v17  ;;  %v8267_v14 = vsel %vm8266_vm4, %v10972_v12, %v8263_v60 }
 0xeb5   : > { %v8329_v31 = vmul.f32 %v8267_v14, %v15677_v9  ;;  %v8321_v0 = vmul.f32 0.5, %v8320_v61 }
 0xeb6   : > { %v8345_v27 = vmul.f32 %v15698_v40, %v8334_v4 }
 0xeb7   : > { %v8340_v57 = vmul.f32 %v15698_v40, %v8329_v31  ;;  %v8322_v34 = vsub.f32 1.5, %v8321_v0 }
 0xeb8   : > { %v15747_v2 = vadd.f32 %v15705_v50, %v8345_v27 }
 0xeb9   : > { %v15750_v29 = vadd.f32 %v15705_v50, %v8340_v57  ;;  %v8323_v54 = vmul.f32 %v10974_v25, %v8322_v34 }
 0xeba   : > { %8364 = vst [vmem:[#allocation2 + $0x28] sm:$0xff] %v15747_v2 }
 0xebb   : > { %8359 = vst [vmem:[#allocation2] sm:$0xff] %v15750_v29  ;;  %v8327_v9 = vsel %vm8326_vm7, %v10974_v25, %v8323_v54 }
 0xebc   : > { %v8335_v17 = vmul.f32 %v8327_v9, %v15686_v18 }
 0xebe   : > { %v8346_v26 = vmul.f32 %v15698_v40, %v8335_v17  ;;  %8369 = sbr.rel (%p9993_p1) target bundleno = 3973 (0xf85), region = 136 }
 0xec0   : > { %v15757_v22 = vadd.f32 %v15705_v50, %v8346_v26 }
 0xec2   : > { %8365 = vst [vmem:[#allocation2 + $0x38] sm:$0xff] %v15757_v22 }
 0xec3   : > { %v10052_v44 = vld [vmem:[#allocation18 + $0x70] sm:$0xf]  ;;  %v10368_v56 = vld [vmem:[#allocation18 + $0x74] sm:$0xf0]  ;;  %v10367_v21 = vld [vmem:[#allocation18 + $0x74] sm:$0xf]  ;;  %v8370_v0 = vpack.c.bf16 %v15750_v29, %v15739_v38  ;;  %v8372_v27 = vpack.c.bf16 %v15732_v8, %v15724_v62  ;;  %v8371_v57 = vpack.c.bf16 %v15717_v39, %v15711_v49  ;;  %v8373_v34 = vpack.c.bf16 %v15757_v22, %v15747_v2 }
 0xec4   : > { %v10053_v24 = vor.u32 %v10368_v56, %v10052_v44  ;;  %v10054_v47 = vld [vmem:[#allocation18 + $0x78] sm:$0xf0]  ;;  %v10044_v52 = vld [vmem:[#allocation18 + $0x60] sm:$0xf]  ;;  %v10366_v53 = vld [vmem:[#allocation18 + $0x64] sm:$0xf0] }
 0xec5   : > { %v10057_v13 = vor.u32 %v10367_v21, %v10054_v47  ;;  %v10365_v58 = vld [vmem:[#allocation18 + $0x64] sm:$0xf]  ;;  %v10046_v18 = vld [vmem:[#allocation18 + $0x68] sm:$0xf0]  ;;  %v10045_v40 = vor.u32 %v10366_v53, %v10044_v52  ;;  %v10036_v37 = vld [vmem:[#allocation18 + $0x50] sm:$0xf] }
 0xec6   : > { %8476 = vmatpush.bf16.msra.mxu0 %v10053_v24  ;;  %10416 = vmatpush.bf16.msra.mxu2 %v10053_v24  ;;  %v10049_v50 = vor.u32 %v10365_v58, %v10046_v18  ;;  %v10364_v41 = vld [vmem:[#allocation18 + $0x54] sm:$0xf0]  ;;  %v10363_v32 = vld [vmem:[#allocation18 + $0x54] sm:$0xf]  ;;  %v10038_v11 = vld [vmem:[#allocation18 + $0x58] sm:$0xf0] }
 0xec7   : > { %8505 = vmatpush.bf16.msra.mxu1 %v10057_v13  ;;  %10424 = vmatpush.bf16.msra.mxu3 %v10057_v13  ;;  %v10037_v63 = vor.u32 %v10364_v41, %v10036_v37  ;;  %v10041_v19 = vor.u32 %v10363_v32, %v10038_v11  ;;  %v10028_v36 = vld [vmem:[#allocation18 + $0x40] sm:$0xf]  ;;  %v10362_v1 = vld [vmem:[#allocation18 + $0x44] sm:$0xf0]  ;;  %v10361_v59 = vld [vmem:[#allocation18 + $0x44] sm:$0xf] }
 0xec8   : > { %v10030_v6 = vld [vmem:[#allocation18 + $0x48] sm:$0xf0]  ;;  %v10029_v51 = vor.u32 %v10362_v1, %v10028_v36  ;;  %v10020_v35 = vld [vmem:[#allocation18 + $0x30] sm:$0xf]  ;;  %v10360_v7 = vld [vmem:[#allocation18 + $0x34] sm:$0xf0] }
 0xec9   : > { %v10033_v10 = vor.u32 %v10361_v59, %v10030_v6  ;;  %v10359_v12 = vld [vmem:[#allocation18 + $0x34] sm:$0xf]  ;;  %v10022_v28 = vld [vmem:[#allocation18 + $0x38] sm:$0xf0]  ;;  %v10021_v30 = vor.u32 %v10360_v7, %v10020_v35  ;;  %v10012_v15 = vld [vmem:[#allocation18 + $0x20] sm:$0xf] }
 0xeca   : > { %8477 = vmatpush.bf16.msra.mxu0 %v10045_v40  ;;  %10417 = vmatpush.bf16.msra.mxu2 %v10045_v40  ;;  %v10025_v46 = vor.u32 %v10359_v12, %v10022_v28  ;;  %v10358_v20 = vld [vmem:[#allocation18 + $0x24] sm:$0xf0]  ;;  %v10357_v42 = vld [vmem:[#allocation18 + $0x24] sm:$0xf]  ;;  %v10014_v23 = vld [vmem:[#allocation18 + $0x28] sm:$0xf0] }
 0xecb   : > { %8506 = vmatpush.bf16.msra.mxu1 %v10049_v50  ;;  %10425 = vmatpush.bf16.msra.mxu3 %v10049_v50  ;;  %v10013_v43 = vor.u32 %v10358_v20, %v10012_v15  ;;  %v10017_v45 = vor.u32 %v10357_v42, %v10014_v23  ;;  %v10004_v55 = vld [vmem:[#allocation18 + $0x10] sm:$0xf]  ;;  %v10356_v33 = vld [vmem:[#allocation18 + $0x14] sm:$0xf0]  ;;  %v10355_v25 = vld [vmem:[#allocation18 + $0x14] sm:$0xf] }
 0xecc   : > { %v10006_v5 = vld [vmem:[#allocation18 + $0x18] sm:$0xf0]  ;;  %v10005_v48 = vor.u32 %v10356_v33, %v10004_v55  ;;  %v9996_v60 = vld [vmem:[#allocation18] sm:$0xf]  ;;  %v10354_v16 = vld [vmem:[#allocation18 + $0x4] sm:$0xf0] }
 0xecd   : > { %v10009_v3 = vor.u32 %v10355_v25, %v10006_v5  ;;  %v10353_v61 = vld [vmem:[#allocation18 + $0x4] sm:$0xf]  ;;  %v9998_v4 = vld [vmem:[#allocation18 + $0x8] sm:$0xf0]  ;;  %v9997_v14 = vor.u32 %v10354_v16, %v9996_v60  ;;  %v8390_v62 = vld [vmem:[%s16169_s12] sm:$0x3] }
 0xece   : > { %8478 = vmatpush.bf16.msra.mxu0 %v10037_v63  ;;  %10418 = vmatpush.bf16.msra.mxu2 %v10037_v63  ;;  %v10001_v31 = vor.u32 %v10353_v61, %v9998_v4  ;;  %v8392_v8 = vperm.slane %v8390_v62, 0  ;;  %v8393_v38 = vperm.slane %v8390_v62, 1 }
 0xecf   : > { %8507 = vmatpush.bf16.msra.mxu1 %v10041_v19  ;;  %10426 = vmatpush.bf16.msra.mxu3 %v10041_v19 }
 0xed2   : > { %8479 = vmatpush.bf16.msra.mxu0 %v10029_v51  ;;  %10419 = vmatpush.bf16.msra.mxu2 %v10029_v51 }
 0xed3   : > { %8508 = vmatpush.bf16.msra.mxu1 %v10033_v10  ;;  %10427 = vmatpush.bf16.msra.mxu3 %v10033_v10 }
 0xed6   : > { %8480 = vmatpush.bf16.msra.mxu0 %v10021_v30  ;;  %10420 = vmatpush.bf16.msra.mxu2 %v10021_v30 }
 0xed7   : > { %8509 = vmatpush.bf16.msra.mxu1 %v10025_v46  ;;  %10428 = vmatpush.bf16.msra.mxu3 %v10025_v46 }
 0xeda   : > { %8481 = vmatpush.bf16.msra.mxu0 %v10013_v43  ;;  %10421 = vmatpush.bf16.msra.mxu2 %v10013_v43 }
 0xedb   : > { %8510 = vmatpush.bf16.msra.mxu1 %v10017_v45  ;;  %10429 = vmatpush.bf16.msra.mxu3 %v10017_v45 }
 0xede   : > { %8482 = vmatpush.bf16.msra.mxu0 %v10005_v48  ;;  %10422 = vmatpush.bf16.msra.mxu2 %v10005_v48 }
 0xedf   : > { %8511 = vmatpush.bf16.msra.mxu1 %v10009_v3  ;;  %10430 = vmatpush.bf16.msra.mxu3 %v10009_v3 }
 0xee2   : > { %8483 = vmatpush.bf16.msra.mxu0 %v9997_v14  ;;  %10423 = vmatpush.bf16.msra.mxu2 %v9997_v14 }
 0xee3   : > { %8512 = vmatpush.bf16.msra.mxu1 %v10001_v31  ;;  %10431 = vmatpush.bf16.msra.mxu3 %v10001_v31 }
 0xee5   : > { %8484 = vmatmul.bf16.vlgmr.msra.gmra.mxu0 %v8370_v0  ;;  %8494 = vmatmul.bf16.vlgmr.msra.gmra.mxu2 %v8372_v27 }
 0xee6   : > { %8513 = vmatmul.bf16.vlgmr.msra.gmra.mxu1 %v8370_v0  ;;  %8523 = vmatmul.bf16.vlgmr.msra.gmra.mxu3 %v8372_v27 }
 0xef5   : > { %8489 = vmatmul.bf16.gmra.mxu0 %v8371_v57  ;;  %8499 = vmatmul.bf16.gmra.mxu2 %v8373_v34 }
 0xef6   : > { %8518 = vmatmul.bf16.gmra.mxu1 %v8371_v57  ;;  %8528 = vmatmul.bf16.gmra.mxu3 %v8373_v34 }
 0xf62   : > { %v8485_v29 = vpop.f32.mrf.mxu0 }
 0xf63   : > { %v8486_v54 = vadd.f32 %v8485_v29, %v8392_v8  ;;  %v8514_v9 = vpop.f32.mrf.mxu1 }
 0xf64   : > { %v8515_v17 = vadd.f32 %v8514_v9, %v8393_v38 }
 0xf65   : > { %8534 = vst [vmem:[#allocation20] sm:$0xff] %v8486_v54 }
 0xf66   : > { %8535 = vst [vmem:[#allocation20 + $0x8] sm:$0xff] %v8515_v17 }
 0xf68   : > { %v8495_v49 = vpop.f32.mrf.mxu2 }
 0xf69   : > { %v8496_v39 = vadd.f32 %v8495_v49, %v8392_v8  ;;  %v8524_v26 = vpop.f32.mrf.mxu3 }
 0xf6a   : > { %v8525_v2 = vadd.f32 %v8524_v26, %v8393_v38  ;;  %v8487_v22 = vpop.f32.mrf.mxu0 }
 0xf6b   : > { %8542 = vst [vmem:[#allocation20 + $0x40] sm:$0xff] %v8496_v39  ;;  %v8488_v44 = vadd.f32 %v8487_v22, %v8392_v8  ;;  %v8516_v56 = vpop.f32.mrf.mxu1 }
 0xf6c   : > { %8543 = vst [vmem:[#allocation20 + $0x48] sm:$0xff] %v8525_v2  ;;  %v8517_v21 = vadd.f32 %v8516_v56, %v8393_v38 }
 0xf6d   : > { %8536 = vst [vmem:[#allocation20 + $0x10] sm:$0xff] %v8488_v44 }
 0xf6e   : > { %8537 = vst [vmem:[#allocation20 + $0x18] sm:$0xff] %v8517_v21 }
 0xf70   : > { %v8497_v24 = vpop.f32.mrf.mxu2 }
 0xf71   : > { %v8498_v47 = vadd.f32 %v8497_v24, %v8392_v8  ;;  %v8526_v52 = vpop.f32.mrf.mxu3 }
 0xf72   : > { %v8527_v53 = vadd.f32 %v8526_v52, %v8393_v38  ;;  %v8490_v13 = vpop.f32.mrf.mxu0 }
 0xf73   : > { %8544 = vst [vmem:[#allocation20 + $0x50] sm:$0xff] %v8498_v47  ;;  %v8491_v58 = vadd.f32 %v8490_v13, %v8392_v8  ;;  %v8519_v18 = vpop.f32.mrf.mxu1 }
 0xf74   : > { %8545 = vst [vmem:[#allocation20 + $0x58] sm:$0xff] %v8527_v53  ;;  %v8520_v40 = vadd.f32 %v8519_v18, %v8393_v38 }
 0xf75   : > { %8538 = vst [vmem:[#allocation20 + $0x20] sm:$0xff] %v8491_v58 }
 0xf76   : > { %8539 = vst [vmem:[#allocation20 + $0x28] sm:$0xff] %v8520_v40 }
 0xf78   : > { %v8500_v50 = vpop.f32.mrf.mxu2 }
 0xf79   : > { %v8501_v37 = vadd.f32 %v8500_v50, %v8392_v8  ;;  %v8529_v41 = vpop.f32.mrf.mxu3 }
 0xf7a   : > { %v8530_v32 = vadd.f32 %v8529_v41, %v8393_v38  ;;  %v8492_v11 = vpop.f32.mrf.mxu0 }
 0xf7b   : > { %8546 = vst [vmem:[#allocation20 + $0x60] sm:$0xff] %v8501_v37  ;;  %v8493_v63 = vadd.f32 %v8492_v11, %v8392_v8  ;;  %v8521_v19 = vpop.f32.mrf.mxu1 }
 0xf7c   : > { %8547 = vst [vmem:[#allocation20 + $0x68] sm:$0xff] %v8530_v32  ;;  %v8522_v36 = vadd.f32 %v8521_v19, %v8393_v38 }
 0xf7d   : > { %8540 = vst [vmem:[#allocation20 + $0x30] sm:$0xff] %v8493_v63 }
 0xf7e   : > { %8541 = vst [vmem:[#allocation20 + $0x38] sm:$0xff] %v8522_v36 }
 0xf80   : > { %v8502_v1 = vpop.f32.mrf.mxu2 }
 0xf81   : > { %v8503_v59 = vadd.f32 %v8502_v1, %v8392_v8  ;;  %v8531_v6 = vpop.f32.mrf.mxu3 }
 0xf82   : > { %v8532_v51 = vadd.f32 %v8531_v6, %v8393_v38 }
 0xf83   : > { %8548 = vst [vmem:[#allocation20 + $0x70] sm:$0xff] %v8503_v59 }
 0xf84   : > { %8549 = vst [vmem:[#allocation20 + $0x78] sm:$0xff] %v8532_v51 }
 0xf85 PF: > { %p10511_p4 = scmp.eq.s32.totalorder %s11502_s28, 1  ;;  %s11391_s4 = smov [#allocation20]  }
 0xf86   : > { %s8555_s5 = sshll.u32 %s11391_s4, 4  ;;  %s16170_s13 = sld [smem:[#allocation115_spill]]  ;;  %s8556_s5 = int_to_ptr.vmem [resolvable:$true] %s8555_s5 }
 0xf87   : > { %s11392_s19 = smov 256  }
 0xf8c   : > { %s8557_s16 = sshll.u32 %s16170_s13, 4  ;;  %s8558_s16 = int_to_ptr.hbm [resolvable:$true] %s8557_s16 }
 0xf8d   : > { %10467 = dma.vmem_to_hbm [thread:$0]  (%p10511_p4), %s8556_s5, 2048, %s8558_s16, [#allocation5], %s11392_s19, %s11392_s19, %s11384_s7  }
 0xf8e   : > { %11353 = dma.done.wait (%p10511_p4), [#allocation5], 2048  }
 0xf8f   : > { %11355 = vsyncadd (%p10511_p4), [#allocation5], 4294965248 }
 0xf90 PF: > { %s16171_s27 = sld [smem:[#allocation31_spill]] }
 0xf91   : > { %s16172_s24 = sld [smem:[#allocation28_spill]] }
 0xf92   : > { %s16173_s25 = sld [smem:[#allocation29_spill]] }
 0xf93   : > { %s16174_s26 = sld [smem:[#allocation32_spill]] }
 0xf96   : > { %p37_p5 = scmp.ge.s32.totalorder %s16171_s27, 4  }
 0xf98   :  { %39 = sbr.rel (!%p37_p5) target bundleno = 28 (0x1c), region = 227 }
 0xf9d   :  { %8574 = vsyncpa [#allocation4], 1 }
 0xf9e   :  { %8576 = vsyncpa [#allocation4 + $0x1], 1 }
 0xf9f   :  { %8577 = vsyncpa [#allocation7], 1 }
 0xfa0   :  { %8578 = vsyncpa [#allocation10], 1 }
 0xfa1   :  { %8580 = vsyncpa [#allocation10 + $0x1], 1 }
 0xfa2   :  { %8581 = vsyncpa [#allocation13], 1 }
 0xfa3   :  { %8583 = vsyncpa [#allocation13 + $0x1], 1 }
 0xfa4   :  { %8584 = vsyncpa [#allocation16], 1 }
 0xfa5   :  { %8586 = vsyncpa [#allocation16 + $0x1], 1 }
 0xfa6   :  { %8587 = vsyncpa [#allocation19], 1 }
 0xfa7   :  { %8588 = vsyncpa [#allocation5], 1 }
 0xfa8   :  { %8590 = vsyncpa [#allocation5 + $0x1], 1 }

</bundles_post_ra>
